<compile_context>
chip_gen: v7x
topology: tpu7x:2x2x1
jax: 0.10.0
libtpu: 0.0.40
codegen_flags: <defaults>
</compile_context>

<pallas_src>
import jax
import jax.numpy as jnp
from jax.experimental import pallas as pl
from jax.experimental.pallas import tpu as pltpu

PADW = 8  # left/right W padding in the VMEM scratches: interior stores start
          # at column 8 -> sublane-aligned, unmasked bulk stores.


def _zero_halo(buf_ref, H, W):
    """Zero only the halo cells the 3x3 window reads (rows 0 / H+1 and the
    columns just outside the interior), using aligned 8-wide column strips."""
    Wp, C = buf_ref.shape[1], buf_ref.shape[2]
    zrow = jnp.zeros((1, Wp, C), buf_ref.dtype)
    buf_ref[0:1, :, :] = zrow
    buf_ref[H + 1:H + 2, :, :] = zrow
    zcol = jnp.zeros((H + 2, PADW, C), buf_ref.dtype)
    buf_ref[:, 0:PADW, :] = zcol                       # covers column PADW-1
    buf_ref[:, PADW + W:PADW + W + PADW, :] = zcol     # covers column PADW+W


def _conv3x3_im2col(src_ref, w_ref, patch_ref, H, W, C):
    """3x3 conv (stride 1) as a SINGLE MXU contraction with K = 9*C.

    src_ref:   (H+2, W+2*PADW, C) bf16 zero-haloed activation scratch.
    w_ref:     (9*C, Cout) bf16 weights; rows ordered tap-major then channel
               to match the patch-column layout built below.
    patch_ref: (H*W, >= 9*C) bf16 im2col scratch.
    Returns (H*W, Cout) f32.
    """
    for t in range(9):
        dy, dx = divmod(t, 3)
        tap = src_ref[dy:dy + H, PADW - 1 + dx:PADW - 1 + dx + W, :]
        patch_ref[:, t * C:(t + 1) * C] = tap.reshape(H * W, C)
    lhs = patch_ref[:, 0:9 * C]
    return jnp.dot(lhs, w_ref[...], preferred_element_type=jnp.float32)


def residual_block_kernel(x_ref, w1_ref, s1_ref, b1_ref, w2_ref, s2_ref, b2_ref,
                          out_ref, xpad_ref, mid_ref, patch_ref):
    # x_ref:     (1, H, W, Cin)        one image, NHWC, f32
    # w1_ref:    (9*Cin, Cmid)         conv1 im2col weights, bf16
    # s1/b1_ref: (1, Cmid)             folded BN1 scale / bias, f32
    # w2_ref:    (9*Cmid, Cout)        conv2 im2col weights, bf16
    # s2/b2_ref: (1, Cout)             folded BN2 scale / bias, f32
    # out_ref:   (1, H*W, Cout)        flattened-spatial output block
    # xpad_ref:  VMEM (H+2, W+2*PADW, Cin)    bf16 padded input scratch
    # mid_ref:   VMEM (H+2, W+2*PADW, Cmid)   bf16 padded conv1-output scratch
    # patch_ref: VMEM (H*W, 9*max(Cin,Cmid))  bf16 im2col scratch
    Hp, Wp, Cin = xpad_ref.shape
    H, W = Hp - 2, Wp - 2 * PADW
    Cmid = mid_ref.shape[-1]

    # Halo-only zeroing (no full-plane memset).  Re-done each step so results
    # stay correct even if the batch axis is sharded across TensorCores.
    _zero_halo(xpad_ref, H, W)
    _zero_halo(mid_ref, H, W)

    # Stage the input into the bf16 padded scratch; interior starts at column
    # PADW -> sublane-aligned, unmasked store.
    x0 = x_ref[0]                                             # (H, W, Cin) f32
    xpad_ref[1:H + 1, PADW:PADW + W, :] = x0.astype(jnp.bfloat16)

    # conv1 (single K=9*Cin dot) + bn1 + relu -> bf16 mid scratch (on-chip).
    acc1 = _conv3x3_im2col(xpad_ref, w1_ref, patch_ref, H, W, Cin)  # (H*W, Cmid) f32
    y1 = jnp.maximum(acc1 * s1_ref[...] + b1_ref[...], 0.0)
    mid_ref[1:H + 1, PADW:PADW + W, :] = (
        y1.reshape(H, W, Cmid).astype(jnp.bfloat16))

    # conv2 (single K=9*Cmid dot) + bn2 + identity residual + relu (f32 epilogue).
    acc2 = _conv3x3_im2col(mid_ref, w2_ref, patch_ref, H, W, Cmid)  # (H*W, Cout) f32
    y2 = acc2 * s2_ref[...] + b2_ref[...]
    y2 = y2 + x0.reshape(H * W, Cin).astype(jnp.float32)  # identity (Cin==Cout, stride 1)
    y2 = jnp.maximum(y2, 0.0)
    out_ref[...] = y2[None].astype(out_ref.dtype)


# ----------------------- one-time parameter preparation -----------------------

def _fold_bn(gamma, beta, running_mean, running_var, eps=1e-5):
    scale = gamma / jnp.sqrt(running_var + eps)
    bias = beta - running_mean * scale
    return (scale.reshape(1, -1).astype(jnp.float32),
            bias.reshape(1, -1).astype(jnp.float32))


def _to_im2col_w(w):
    # PyTorch (Cout, Cin, 3, 3) -> (3, 3, Cin, Cout) -> (9*Cin, Cout), bf16.
    cout, cin = w.shape[0], w.shape[1]
    return (jnp.transpose(w, (2, 3, 1, 0)).reshape(9 * cin, cout)
            .astype(jnp.bfloat16))


def prepare_block_params(params, eps=1e-5):
    """Hoisted out of the forward path: run once per block, reuse every call."""
    s1, b1 = _fold_bn(params["bn1_gamma"], params["bn1_beta"],
                      params["bn1_mean"], params["bn1_var"], eps)
    s2, b2 = _fold_bn(params["bn2_gamma"], params["bn2_beta"],
                      params["bn2_mean"], params["bn2_var"], eps)
    return {"w1": _to_im2col_w(params["conv1_w"]), "s1": s1, "b1": b1,
            "w2": _to_im2col_w(params["conv2_w"]), "s2": s2, "b2": b2}


# --------------------------------- forward -----------------------------------

def _vmem_limit_bytes(H, W, Cin, Cmid, Cout):
    # Actual footprint: bf16 scratches + double-buffered f32 in/out blocks +
    # weights, with 2x headroom; clamped to [16, 32] MiB which is safe for the
    # scoped-VMEM defaults / physical limits of v5e, v6e and v7x.
    plane = (H + 2) * (W + 2 * PADW)
    scratch = 2 * (plane * (Cin + Cmid) + H * W * 9 * max(Cin, Cmid))
    blocks = 2 * 4 * H * W * (Cin + Cout)
    weights = 2 * 2 * 9 * (Cin * Cmid + Cmid * Cout)
    need = scratch + blocks + weights
    return int(min(max(2 * need, 16 * 1024 * 1024), 32 * 1024 * 1024))


def residual_block_forward_nhwc(x_nhwc, prepped):
    """Fused BasicBlock forward on an NHWC tensor (single pallas_call)."""
    N, H, W, Cin = x_nhwc.shape
    w1, w2 = prepped["w1"], prepped["w2"]
    Cmid, Cout = w1.shape[1], w2.shape[1]
    assert Cin == Cout, "identity residual requires Cin == Cout (no downsample)"
    Cmax = max(Cin, Cmid)

    out_flat = pl.pallas_call(
        residual_block_kernel,
        out_shape=jax.ShapeDtypeStruct((N, H * W, Cout), x_nhwc.dtype),
        grid_spec=pltpu.PrefetchScalarGridSpec(
            num_scalar_prefetch=0,
            grid=(N,),
            in_specs=[
                pl.BlockSpec((1, H, W, Cin), lambda n: (n, 0, 0, 0)),
                pl.BlockSpec((9 * Cin, Cmid), lambda n: (0, 0)),
                pl.BlockSpec((1, Cmid), lambda n: (0, 0)),
                pl.BlockSpec((1, Cmid), lambda n: (0, 0)),
                pl.BlockSpec((9 * Cmid, Cout), lambda n: (0, 0)),
                pl.BlockSpec((1, Cout), lambda n: (0, 0)),
                pl.BlockSpec((1, Cout), lambda n: (0, 0)),
            ],
            out_specs=pl.BlockSpec((1, H * W, Cout), lambda n: (n, 0, 0)),
            scratch_shapes=[
                pltpu.VMEM((H + 2, W + 2 * PADW, Cin), jnp.bfloat16),
                pltpu.VMEM((H + 2, W + 2 * PADW, Cmid), jnp.bfloat16),
                pltpu.VMEM((H * W, 9 * Cmax), jnp.bfloat16),
            ],
        ),
        compiler_params=pltpu.CompilerParams(
            dimension_semantics=("parallel",),
            vmem_limit_bytes=_vmem_limit_bytes(H, W, Cin, Cmid, Cout),
        ),
    )(x_nhwc, w1, prepped["s1"], prepped["b1"], w2, prepped["s2"], prepped["b2"])
    return out_flat.reshape(N, H, W, Cout)


def residual_block_forward(x_nchw, prepped):
    """PyTorch-convention wrapper: (N, C, H, W) -> (N, C, H, W).

    In a full model keep activations NHWC end-to-end and call
    residual_block_forward_nhwc directly to avoid these transpose passes.
    """
    x = jnp.transpose(x_nchw, (0, 2, 3, 1))
    out = residual_block_forward_nhwc(x, prepped)
    return jnp.transpose(out, (0, 3, 1, 2))


# ------------------------------- reference ------------------------------------

def _reference_forward(x_nchw, params, eps=1e-5):
    """Pure-JAX f32 reference (NCHW conv via lax) for correctness checking."""
    def conv(x, w):
        return jax.lax.conv_general_dilated(
            x, w, window_strides=(1, 1), padding=((1, 1), (1, 1)),
            dimension_numbers=("NCHW", "OIHW", "NCHW"))

    def bn(x, g, b, m, v):
        g = g.reshape(1, -1, 1, 1); b = b.reshape(1, -1, 1, 1)
        m = m.reshape(1, -1, 1, 1); v = v.reshape(1, -1, 1, 1)
        return g * (x - m) / jnp.sqrt(v + eps) + b

    out = conv(x_nchw, params["conv1_w"])
    out = jnp.maximum(bn(out, params["bn1_gamma"], params["bn1_beta"],
                         params["bn1_mean"], params["bn1_var"]), 0.0)
    out = conv(out, params["conv2_w"])
    out = bn(out, params["bn2_gamma"], params["bn2_beta"],
             params["bn2_mean"], params["bn2_var"])
    out = out + x_nchw
    return jnp.maximum(out, 0.0)


if __name__ == "__main__":
    # Small shapes: inplanes = planes = 4, batch = 2, spatial = 16x16.
    N, C, H, W = 2, 4, 16, 16
    key = jax.random.PRNGKey(0)
    ks = jax.random.split(key, 8)

    x = jax.random.normal(ks[0], (N, C, H, W), jnp.float32)

    params = {
        "conv1_w": 0.1 * jax.random.normal(ks[1], (C, C, 3, 3), jnp.float32),
        "conv2_w": 0.1 * jax.random.normal(ks[2], (C, C, 3, 3), jnp.float32),
        "bn1_gamma": 1.0 + 0.1 * jax.random.normal(ks[3], (C,), jnp.float32),
        "bn1_beta": 0.1 * jax.random.normal(ks[4], (C,), jnp.float32),
        "bn1_mean": 0.05 * jax.random.normal(ks[5], (C,), jnp.float32),
        "bn1_var": jnp.abs(1.0 + 0.1 * jax.random.normal(ks[6], (C,), jnp.float32)),
        "bn2_gamma": jnp.ones((C,), jnp.float32),
        "bn2_beta": jnp.zeros((C,), jnp.float32),
        "bn2_mean": 0.05 * jax.random.normal(ks[7], (C,), jnp.float32),
        "bn2_var": jnp.ones((C,), jnp.float32) * 1.2,
    }

    prepped = prepare_block_params(params)   # one-time weight/BN preparation
    out = residual_block_forward(x, prepped)
    out = jax.block_until_ready(out)

    ref = _reference_forward(x, params)
    assert out.shape == (N, C, H, W)
    # Tolerance loosened because the conv matmuls run with bf16 MXU inputs
    # (BN / residual / ReLU epilogue and accumulation remain f32).
    assert jnp.allclose(out, ref, atol=3e-2, rtol=3e-2)

    print("KERNEL_OK")
</pallas_src>

<mosaic_0001>
module attributes {stable_mosaic.version = 11 : i64} {
  func.func @residual_block_kernel(%arg0: i32, %arg1: memref<1x16x16x4xf32, #tpu.memory_space<vmem>>, %arg2: memref<36x4xbf16, #tpu.memory_space<vmem>>, %arg3: memref<1x4xf32, #tpu.memory_space<vmem>>, %arg4: memref<1x4xf32, #tpu.memory_space<vmem>>, %arg5: memref<36x4xbf16, #tpu.memory_space<vmem>>, %arg6: memref<1x4xf32, #tpu.memory_space<vmem>>, %arg7: memref<1x4xf32, #tpu.memory_space<vmem>>, %arg8: memref<1x256x4xf32, #tpu.memory_space<vmem>>, %arg9: memref<18x32x4xbf16, #tpu.memory_space<vmem>>, %arg10: memref<18x32x4xbf16, #tpu.memory_space<vmem>>, %arg11: memref<256x36xbf16, #tpu.memory_space<vmem>>) attributes {dimension_semantics = [#tpu.dimension_semantics<parallel>], iteration_bounds = array<i64: 2>, scalar_prefetch = 0 : i64, scratch_operands = 3 : i64, tpu.core_type = #tpu.core_type<tc>, window_params = [{transform_indices = @transform_0, window_bounds = array<i64: 1, 16, 16, 4>}, {pipeline_mode = #tpu.pipeline_mode<synchronous>, transform_indices = @transform_1, window_bounds = array<i64: 36, 4>}, {pipeline_mode = #tpu.pipeline_mode<synchronous>, transform_indices = @transform_2, window_bounds = array<i64: 1, 4>}, {pipeline_mode = #tpu.pipeline_mode<synchronous>, transform_indices = @transform_3, window_bounds = array<i64: 1, 4>}, {pipeline_mode = #tpu.pipeline_mode<synchronous>, transform_indices = @transform_4, window_bounds = array<i64: 36, 4>}, {pipeline_mode = #tpu.pipeline_mode<synchronous>, transform_indices = @transform_5, window_bounds = array<i64: 1, 4>}, {pipeline_mode = #tpu.pipeline_mode<synchronous>, transform_indices = @transform_6, window_bounds = array<i64: 1, 4>}, {transform_indices = @transform_7, window_bounds = array<i64: 1, 256, 4>}]} {
    %cst = arith.constant 0.000000e+00 : bf16
    %0 = vector.broadcast %cst : bf16 to vector<1x32x4xbf16>
    %c0 = arith.constant 0 : index
    %c0_0 = arith.constant 0 : index
    %c0_1 = arith.constant 0 : index
    %1 = vector.load %arg9[%c0, %c0_0, %c0_1] : memref<18x32x4xbf16, #tpu.memory_space<vmem>>, vector<1x32x4xbf16>
    tpu.vector_store %arg9[%c0, %c0_0, %c0_1], %0 {strides = array<i32>} : memref<18x32x4xbf16, #tpu.memory_space<vmem>>, vector<1x32x4xbf16>,
    %c17 = arith.constant 17 : index
    %c0_2 = arith.constant 0 : index
    %c0_3 = arith.constant 0 : index
    %2 = vector.load %arg9[%c17, %c0_2, %c0_3] : memref<18x32x4xbf16, #tpu.memory_space<vmem>>, vector<1x32x4xbf16>
    tpu.vector_store %arg9[%c17, %c0_2, %c0_3], %0 {strides = array<i32>} : memref<18x32x4xbf16, #tpu.memory_space<vmem>>, vector<1x32x4xbf16>,
    %cst_4 = arith.constant 0.000000e+00 : bf16
    %3 = vector.broadcast %cst_4 : bf16 to vector<18x8x4xbf16>
    %c0_5 = arith.constant 0 : index
    %c0_6 = arith.constant 0 : index
    %c0_7 = arith.constant 0 : index
    %4 = vector.load %arg9[%c0_5, %c0_6, %c0_7] : memref<18x32x4xbf16, #tpu.memory_space<vmem>>, vector<18x8x4xbf16>
    tpu.vector_store %arg9[%c0_5, %c0_6, %c0_7], %3 {strides = array<i32>} : memref<18x32x4xbf16, #tpu.memory_space<vmem>>, vector<18x8x4xbf16>,
    %c0_8 = arith.constant 0 : index
    %c24 = arith.constant 24 : index
    %c0_9 = arith.constant 0 : index
    %5 = vector.load %arg9[%c0_8, %c24, %c0_9] : memref<18x32x4xbf16, #tpu.memory_space<vmem>>, vector<18x8x4xbf16>
    tpu.vector_store %arg9[%c0_8, %c24, %c0_9], %3 {strides = array<i32>} : memref<18x32x4xbf16, #tpu.memory_space<vmem>>, vector<18x8x4xbf16>,
    %cst_10 = arith.constant 0.000000e+00 : bf16
    %6 = vector.broadcast %cst_10 : bf16 to vector<1x32x4xbf16>
    %c0_11 = arith.constant 0 : index
    %c0_12 = arith.constant 0 : index
    %c0_13 = arith.constant 0 : index
    %7 = vector.load %arg10[%c0_11, %c0_12, %c0_13] : memref<18x32x4xbf16, #tpu.memory_space<vmem>>, vector<1x32x4xbf16>
    tpu.vector_store %arg10[%c0_11, %c0_12, %c0_13], %6 {strides = array<i32>} : memref<18x32x4xbf16, #tpu.memory_space<vmem>>, vector<1x32x4xbf16>,
    %c17_14 = arith.constant 17 : index
    %c0_15 = arith.constant 0 : index
    %c0_16 = arith.constant 0 : index
    %8 = vector.load %arg10[%c17_14, %c0_15, %c0_16] : memref<18x32x4xbf16, #tpu.memory_space<vmem>>, vector<1x32x4xbf16>
    tpu.vector_store %arg10[%c17_14, %c0_15, %c0_16], %6 {strides = array<i32>} : memref<18x32x4xbf16, #tpu.memory_space<vmem>>, vector<1x32x4xbf16>,
    %cst_17 = arith.constant 0.000000e+00 : bf16
    %9 = vector.broadcast %cst_17 : bf16 to vector<18x8x4xbf16>
    %c0_18 = arith.constant 0 : index
    %c0_19 = arith.constant 0 : index
    %c0_20 = arith.constant 0 : index
    %10 = vector.load %arg10[%c0_18, %c0_19, %c0_20] : memref<18x32x4xbf16, #tpu.memory_space<vmem>>, vector<18x8x4xbf16>
    tpu.vector_store %arg10[%c0_18, %c0_19, %c0_20], %9 {strides = array<i32>} : memref<18x32x4xbf16, #tpu.memory_space<vmem>>, vector<18x8x4xbf16>,
    %c0_21 = arith.constant 0 : index
    %c24_22 = arith.constant 24 : index
    %c0_23 = arith.constant 0 : index
    %11 = vector.load %arg10[%c0_21, %c24_22, %c0_23] : memref<18x32x4xbf16, #tpu.memory_space<vmem>>, vector<18x8x4xbf16>
    tpu.vector_store %arg10[%c0_21, %c24_22, %c0_23], %9 {strides = array<i32>} : memref<18x32x4xbf16, #tpu.memory_space<vmem>>, vector<18x8x4xbf16>,
    %c0_24 = arith.constant 0 : index
    %c0_25 = arith.constant 0 : index
    %c0_26 = arith.constant 0 : index
    %c0_27 = arith.constant 0 : index
    %12 = vector.load %arg1[%c0_24, %c0_25, %c0_26, %c0_27] : memref<1x16x16x4xf32, #tpu.memory_space<vmem>>, vector<1x16x16x4xf32>
    %13 = vector.shape_cast %12 : vector<1x16x16x4xf32> to vector<16x16x4xf32>
    %14 = arith.truncf %13 : vector<16x16x4xf32> to vector<16x16x4xbf16>
    %c1 = arith.constant 1 : index
    %c8 = arith.constant 8 : index
    %c0_28 = arith.constant 0 : index
    %15 = vector.load %arg9[%c1, %c8, %c0_28] : memref<18x32x4xbf16, #tpu.memory_space<vmem>>, vector<16x16x4xbf16>
    tpu.vector_store %arg9[%c1, %c8, %c0_28], %14 {strides = array<i32>} : memref<18x32x4xbf16, #tpu.memory_space<vmem>>, vector<16x16x4xbf16>,
    %c0_29 = arith.constant 0 : index
    %c7 = arith.constant 7 : index
    %c0_30 = arith.constant 0 : index
    %16 = vector.load %arg9[%c0_29, %c7, %c0_30] : memref<18x32x4xbf16, #tpu.memory_space<vmem>>, vector<16x16x4xbf16>
    %17 = vector.shape_cast %16 : vector<16x16x4xbf16> to vector<256x4xbf16>
    %c0_31 = arith.constant 0 : index
    %c0_32 = arith.constant 0 : index
    %18 = vector.load %arg11[%c0_31, %c0_32] : memref<256x36xbf16, #tpu.memory_space<vmem>>, vector<256x4xbf16>
    tpu.vector_store %arg11[%c0_31, %c0_32], %17 {strides = array<i32>} : memref<256x36xbf16, #tpu.memory_space<vmem>>, vector<256x4xbf16>,
    %c0_33 = arith.constant 0 : index
    %c8_34 = arith.constant 8 : index
    %c0_35 = arith.constant 0 : index
    %19 = vector.load %arg9[%c0_33, %c8_34, %c0_35] : memref<18x32x4xbf16, #tpu.memory_space<vmem>>, vector<16x16x4xbf16>
    %20 = vector.shape_cast %19 : vector<16x16x4xbf16> to vector<256x4xbf16>
    %c0_36 = arith.constant 0 : index
    %c4 = arith.constant 4 : index
    %21 = vector.load %arg11[%c0_36, %c4] : memref<256x36xbf16, #tpu.memory_space<vmem>>, vector<256x4xbf16>
    tpu.vector_store %arg11[%c0_36, %c4], %20 {strides = array<i32>} : memref<256x36xbf16, #tpu.memory_space<vmem>>, vector<256x4xbf16>,
    %c0_37 = arith.constant 0 : index
    %c9 = arith.constant 9 : index
    %c0_38 = arith.constant 0 : index
    %22 = vector.load %arg9[%c0_37, %c9, %c0_38] : memref<18x32x4xbf16, #tpu.memory_space<vmem>>, vector<16x16x4xbf16>
    %23 = vector.shape_cast %22 : vector<16x16x4xbf16> to vector<256x4xbf16>
    %c0_39 = arith.constant 0 : index
    %c8_40 = arith.constant 8 : index
    %24 = vector.load %arg11[%c0_39, %c8_40] : memref<256x36xbf16, #tpu.memory_space<vmem>>, vector<256x4xbf16>
    tpu.vector_store %arg11[%c0_39, %c8_40], %23 {strides = array<i32>} : memref<256x36xbf16, #tpu.memory_space<vmem>>, vector<256x4xbf16>,
    %c1_41 = arith.constant 1 : index
    %c7_42 = arith.constant 7 : index
    %c0_43 = arith.constant 0 : index
    %25 = vector.load %arg9[%c1_41, %c7_42, %c0_43] : memref<18x32x4xbf16, #tpu.memory_space<vmem>>, vector<16x16x4xbf16>
    %26 = vector.shape_cast %25 : vector<16x16x4xbf16> to vector<256x4xbf16>
    %c0_44 = arith.constant 0 : index
    %c12 = arith.constant 12 : index
    %27 = vector.load %arg11[%c0_44, %c12] : memref<256x36xbf16, #tpu.memory_space<vmem>>, vector<256x4xbf16>
    tpu.vector_store %arg11[%c0_44, %c12], %26 {strides = array<i32>} : memref<256x36xbf16, #tpu.memory_space<vmem>>, vector<256x4xbf16>,
    %c1_45 = arith.constant 1 : index
    %c8_46 = arith.constant 8 : index
    %c0_47 = arith.constant 0 : index
    %28 = vector.load %arg9[%c1_45, %c8_46, %c0_47] : memref<18x32x4xbf16, #tpu.memory_space<vmem>>, vector<16x16x4xbf16>
    %29 = vector.shape_cast %28 : vector<16x16x4xbf16> to vector<256x4xbf16>
    %c0_48 = arith.constant 0 : index
    %c16 = arith.constant 16 : index
    %30 = vector.load %arg11[%c0_48, %c16] : memref<256x36xbf16, #tpu.memory_space<vmem>>, vector<256x4xbf16>
    tpu.vector_store %arg11[%c0_48, %c16], %29 {strides = array<i32>} : memref<256x36xbf16, #tpu.memory_space<vmem>>, vector<256x4xbf16>,
    %c1_49 = arith.constant 1 : index
    %c9_50 = arith.constant 9 : index
    %c0_51 = arith.constant 0 : index
    %31 = vector.load %arg9[%c1_49, %c9_50, %c0_51] : memref<18x32x4xbf16, #tpu.memory_space<vmem>>, vector<16x16x4xbf16>
    %32 = vector.shape_cast %31 : vector<16x16x4xbf16> to vector<256x4xbf16>
    %c0_52 = arith.constant 0 : index
    %c20 = arith.constant 20 : index
    %33 = vector.load %arg11[%c0_52, %c20] : memref<256x36xbf16, #tpu.memory_space<vmem>>, vector<256x4xbf16>
    tpu.vector_store %arg11[%c0_52, %c20], %32 {strides = array<i32>} : memref<256x36xbf16, #tpu.memory_space<vmem>>, vector<256x4xbf16>,
    %c2 = arith.constant 2 : index
    %c7_53 = arith.constant 7 : index
    %c0_54 = arith.constant 0 : index
    %34 = vector.load %arg9[%c2, %c7_53, %c0_54] : memref<18x32x4xbf16, #tpu.memory_space<vmem>>, vector<16x16x4xbf16>
    %35 = vector.shape_cast %34 : vector<16x16x4xbf16> to vector<256x4xbf16>
    %c0_55 = arith.constant 0 : index
    %c24_56 = arith.constant 24 : index
    %36 = vector.load %arg11[%c0_55, %c24_56] : memref<256x36xbf16, #tpu.memory_space<vmem>>, vector<256x4xbf16>
    tpu.vector_store %arg11[%c0_55, %c24_56], %35 {strides = array<i32>} : memref<256x36xbf16, #tpu.memory_space<vmem>>, vector<256x4xbf16>,
    %c2_57 = arith.constant 2 : index
    %c8_58 = arith.constant 8 : index
    %c0_59 = arith.constant 0 : index
    %37 = vector.load %arg9[%c2_57, %c8_58, %c0_59] : memref<18x32x4xbf16, #tpu.memory_space<vmem>>, vector<16x16x4xbf16>
    %38 = vector.shape_cast %37 : vector<16x16x4xbf16> to vector<256x4xbf16>
    %c0_60 = arith.constant 0 : index
    %c28 = arith.constant 28 : index
    %39 = vector.load %arg11[%c0_60, %c28] : memref<256x36xbf16, #tpu.memory_space<vmem>>, vector<256x4xbf16>
    tpu.vector_store %arg11[%c0_60, %c28], %38 {strides = array<i32>} : memref<256x36xbf16, #tpu.memory_space<vmem>>, vector<256x4xbf16>,
    %c2_61 = arith.constant 2 : index
    %c9_62 = arith.constant 9 : index
    %c0_63 = arith.constant 0 : index
    %40 = vector.load %arg9[%c2_61, %c9_62, %c0_63] : memref<18x32x4xbf16, #tpu.memory_space<vmem>>, vector<16x16x4xbf16>
    %41 = vector.shape_cast %40 : vector<16x16x4xbf16> to vector<256x4xbf16>
    %c0_64 = arith.constant 0 : index
    %c32 = arith.constant 32 : index
    %42 = vector.load %arg11[%c0_64, %c32] : memref<256x36xbf16, #tpu.memory_space<vmem>>, vector<256x4xbf16>
    tpu.vector_store %arg11[%c0_64, %c32], %41 {strides = array<i32>} : memref<256x36xbf16, #tpu.memory_space<vmem>>, vector<256x4xbf16>,
    %c0_65 = arith.constant 0 : index
    %c0_66 = arith.constant 0 : index
    %43 = vector.load %arg11[%c0_65, %c0_66] : memref<256x36xbf16, #tpu.memory_space<vmem>>, vector<256x36xbf16>
    %c0_67 = arith.constant 0 : index
    %c0_68 = arith.constant 0 : index
    %44 = vector.load %arg2[%c0_67, %c0_68] : memref<36x4xbf16, #tpu.memory_space<vmem>>, vector<36x4xbf16>
    %cst_69 = arith.constant dense<0.000000e+00> : vector<256x4xf32>
    %45 = tpu.matmul %43, %44, %cst_69 {dimension_numbers = #tpu.dot_dimension_numbers<[1], [0], [0], [1], [0, 0, 1, 1], [], []>} : vector<256x36xbf16>, vector<36x4xbf16>, vector<256x4xf32> -> vector<256x4xf32>
    %c0_70 = arith.constant 0 : index
    %c0_71 = arith.constant 0 : index
    %46 = vector.load %arg3[%c0_70, %c0_71] : memref<1x4xf32, #tpu.memory_space<vmem>>, vector<1x4xf32>
    %47 = vector.broadcast %46 : vector<1x4xf32> to vector<256x4xf32>
    %48 = arith.mulf %45, %47 : vector<256x4xf32>
    %c0_72 = arith.constant 0 : index
    %c0_73 = arith.constant 0 : index
    %49 = vector.load %arg4[%c0_72, %c0_73] : memref<1x4xf32, #tpu.memory_space<vmem>>, vector<1x4xf32>
    %50 = vector.broadcast %49 : vector<1x4xf32> to vector<256x4xf32>
    %51 = arith.addf %48, %50 : vector<256x4xf32>
    %cst_74 = arith.constant 0.000000e+00 : f32
    %52 = vector.broadcast %cst_74 : f32 to vector<256x4xf32>
    %53 = arith.maximumf %51, %52 : vector<256x4xf32>
    %54 = vector.shape_cast %53 : vector<256x4xf32> to vector<16x16x4xf32>
    %55 = arith.truncf %54 : vector<16x16x4xf32> to vector<16x16x4xbf16>
    %c1_75 = arith.constant 1 : index
    %c8_76 = arith.constant 8 : index
    %c0_77 = arith.constant 0 : index
    %56 = vector.load %arg10[%c1_75, %c8_76, %c0_77] : memref<18x32x4xbf16, #tpu.memory_space<vmem>>, vector<16x16x4xbf16>
    tpu.vector_store %arg10[%c1_75, %c8_76, %c0_77], %55 {strides = array<i32>} : memref<18x32x4xbf16, #tpu.memory_space<vmem>>, vector<16x16x4xbf16>,
    %c0_78 = arith.constant 0 : index
    %c7_79 = arith.constant 7 : index
    %c0_80 = arith.constant 0 : index
    %57 = vector.load %arg10[%c0_78, %c7_79, %c0_80] : memref<18x32x4xbf16, #tpu.memory_space<vmem>>, vector<16x16x4xbf16>
    %58 = vector.shape_cast %57 : vector<16x16x4xbf16> to vector<256x4xbf16>
    %c0_81 = arith.constant 0 : index
    %c0_82 = arith.constant 0 : index
    %59 = vector.load %arg11[%c0_81, %c0_82] : memref<256x36xbf16, #tpu.memory_space<vmem>>, vector<256x4xbf16>
    tpu.vector_store %arg11[%c0_81, %c0_82], %58 {strides = array<i32>} : memref<256x36xbf16, #tpu.memory_space<vmem>>, vector<256x4xbf16>,
    %c0_83 = arith.constant 0 : index
    %c8_84 = arith.constant 8 : index
    %c0_85 = arith.constant 0 : index
    %60 = vector.load %arg10[%c0_83, %c8_84, %c0_85] : memref<18x32x4xbf16, #tpu.memory_space<vmem>>, vector<16x16x4xbf16>
    %61 = vector.shape_cast %60 : vector<16x16x4xbf16> to vector<256x4xbf16>
    %c0_86 = arith.constant 0 : index
    %c4_87 = arith.constant 4 : index
    %62 = vector.load %arg11[%c0_86, %c4_87] : memref<256x36xbf16, #tpu.memory_space<vmem>>, vector<256x4xbf16>
    tpu.vector_store %arg11[%c0_86, %c4_87], %61 {strides = array<i32>} : memref<256x36xbf16, #tpu.memory_space<vmem>>, vector<256x4xbf16>,
    %c0_88 = arith.constant 0 : index
    %c9_89 = arith.constant 9 : index
    %c0_90 = arith.constant 0 : index
    %63 = vector.load %arg10[%c0_88, %c9_89, %c0_90] : memref<18x32x4xbf16, #tpu.memory_space<vmem>>, vector<16x16x4xbf16>
    %64 = vector.shape_cast %63 : vector<16x16x4xbf16> to vector<256x4xbf16>
    %c0_91 = arith.constant 0 : index
    %c8_92 = arith.constant 8 : index
    %65 = vector.load %arg11[%c0_91, %c8_92] : memref<256x36xbf16, #tpu.memory_space<vmem>>, vector<256x4xbf16>
    tpu.vector_store %arg11[%c0_91, %c8_92], %64 {strides = array<i32>} : memref<256x36xbf16, #tpu.memory_space<vmem>>, vector<256x4xbf16>,
    %c1_93 = arith.constant 1 : index
    %c7_94 = arith.constant 7 : index
    %c0_95 = arith.constant 0 : index
    %66 = vector.load %arg10[%c1_93, %c7_94, %c0_95] : memref<18x32x4xbf16, #tpu.memory_space<vmem>>, vector<16x16x4xbf16>
    %67 = vector.shape_cast %66 : vector<16x16x4xbf16> to vector<256x4xbf16>
    %c0_96 = arith.constant 0 : index
    %c12_97 = arith.constant 12 : index
    %68 = vector.load %arg11[%c0_96, %c12_97] : memref<256x36xbf16, #tpu.memory_space<vmem>>, vector<256x4xbf16>
    tpu.vector_store %arg11[%c0_96, %c12_97], %67 {strides = array<i32>} : memref<256x36xbf16, #tpu.memory_space<vmem>>, vector<256x4xbf16>,
    %c1_98 = arith.constant 1 : index
    %c8_99 = arith.constant 8 : index
    %c0_100 = arith.constant 0 : index
    %69 = vector.load %arg10[%c1_98, %c8_99, %c0_100] : memref<18x32x4xbf16, #tpu.memory_space<vmem>>, vector<16x16x4xbf16>
    %70 = vector.shape_cast %69 : vector<16x16x4xbf16> to vector<256x4xbf16>
    %c0_101 = arith.constant 0 : index
    %c16_102 = arith.constant 16 : index
    %71 = vector.load %arg11[%c0_101, %c16_102] : memref<256x36xbf16, #tpu.memory_space<vmem>>, vector<256x4xbf16>
    tpu.vector_store %arg11[%c0_101, %c16_102], %70 {strides = array<i32>} : memref<256x36xbf16, #tpu.memory_space<vmem>>, vector<256x4xbf16>,
    %c1_103 = arith.constant 1 : index
    %c9_104 = arith.constant 9 : index
    %c0_105 = arith.constant 0 : index
    %72 = vector.load %arg10[%c1_103, %c9_104, %c0_105] : memref<18x32x4xbf16, #tpu.memory_space<vmem>>, vector<16x16x4xbf16>
    %73 = vector.shape_cast %72 : vector<16x16x4xbf16> to vector<256x4xbf16>
    %c0_106 = arith.constant 0 : index
    %c20_107 = arith.constant 20 : index
    %74 = vector.load %arg11[%c0_106, %c20_107] : memref<256x36xbf16, #tpu.memory_space<vmem>>, vector<256x4xbf16>
    tpu.vector_store %arg11[%c0_106, %c20_107], %73 {strides = array<i32>} : memref<256x36xbf16, #tpu.memory_space<vmem>>, vector<256x4xbf16>,
    %c2_108 = arith.constant 2 : index
    %c7_109 = arith.constant 7 : index
    %c0_110 = arith.constant 0 : index
    %75 = vector.load %arg10[%c2_108, %c7_109, %c0_110] : memref<18x32x4xbf16, #tpu.memory_space<vmem>>, vector<16x16x4xbf16>
    %76 = vector.shape_cast %75 : vector<16x16x4xbf16> to vector<256x4xbf16>
    %c0_111 = arith.constant 0 : index
    %c24_112 = arith.constant 24 : index
    %77 = vector.load %arg11[%c0_111, %c24_112] : memref<256x36xbf16, #tpu.memory_space<vmem>>, vector<256x4xbf16>
    tpu.vector_store %arg11[%c0_111, %c24_112], %76 {strides = array<i32>} : memref<256x36xbf16, #tpu.memory_space<vmem>>, vector<256x4xbf16>,
    %c2_113 = arith.constant 2 : index
    %c8_114 = arith.constant 8 : index
    %c0_115 = arith.constant 0 : index
    %78 = vector.load %arg10[%c2_113, %c8_114, %c0_115] : memref<18x32x4xbf16, #tpu.memory_space<vmem>>, vector<16x16x4xbf16>
    %79 = vector.shape_cast %78 : vector<16x16x4xbf16> to vector<256x4xbf16>
    %c0_116 = arith.constant 0 : index
    %c28_117 = arith.constant 28 : index
    %80 = vector.load %arg11[%c0_116, %c28_117] : memref<256x36xbf16, #tpu.memory_space<vmem>>, vector<256x4xbf16>
    tpu.vector_store %arg11[%c0_116, %c28_117], %79 {strides = array<i32>} : memref<256x36xbf16, #tpu.memory_space<vmem>>, vector<256x4xbf16>,
    %c2_118 = arith.constant 2 : index
    %c9_119 = arith.constant 9 : index
    %c0_120 = arith.constant 0 : index
    %81 = vector.load %arg10[%c2_118, %c9_119, %c0_120] : memref<18x32x4xbf16, #tpu.memory_space<vmem>>, vector<16x16x4xbf16>
    %82 = vector.shape_cast %81 : vector<16x16x4xbf16> to vector<256x4xbf16>
    %c0_121 = arith.constant 0 : index
    %c32_122 = arith.constant 32 : index
    %83 = vector.load %arg11[%c0_121, %c32_122] : memref<256x36xbf16, #tpu.memory_space<vmem>>, vector<256x4xbf16>
    tpu.vector_store %arg11[%c0_121, %c32_122], %82 {strides = array<i32>} : memref<256x36xbf16, #tpu.memory_space<vmem>>, vector<256x4xbf16>,
    %c0_123 = arith.constant 0 : index
    %c0_124 = arith.constant 0 : index
    %84 = vector.load %arg11[%c0_123, %c0_124] : memref<256x36xbf16, #tpu.memory_space<vmem>>, vector<256x36xbf16>
    %c0_125 = arith.constant 0 : index
    %c0_126 = arith.constant 0 : index
    %85 = vector.load %arg5[%c0_125, %c0_126] : memref<36x4xbf16, #tpu.memory_space<vmem>>, vector<36x4xbf16>
    %cst_127 = arith.constant dense<0.000000e+00> : vector<256x4xf32>
    %86 = tpu.matmul %84, %85, %cst_127 {dimension_numbers = #tpu.dot_dimension_numbers<[1], [0], [0], [1], [0, 0, 1, 1], [], []>} : vector<256x36xbf16>, vector<36x4xbf16>, vector<256x4xf32> -> vector<256x4xf32>
    %c0_128 = arith.constant 0 : index
    %c0_129 = arith.constant 0 : index
    %87 = vector.load %arg6[%c0_128, %c0_129] : memref<1x4xf32, #tpu.memory_space<vmem>>, vector<1x4xf32>
    %88 = vector.broadcast %87 : vector<1x4xf32> to vector<256x4xf32>
    %89 = arith.mulf %86, %88 : vector<256x4xf32>
    %c0_130 = arith.constant 0 : index
    %c0_131 = arith.constant 0 : index
    %90 = vector.load %arg7[%c0_130, %c0_131] : memref<1x4xf32, #tpu.memory_space<vmem>>, vector<1x4xf32>
    %91 = vector.broadcast %90 : vector<1x4xf32> to vector<256x4xf32>
    %92 = arith.addf %89, %91 : vector<256x4xf32>
    %93 = vector.shape_cast %13 : vector<16x16x4xf32> to vector<256x4xf32>
    %94 = arith.addf %92, %93 : vector<256x4xf32>
    %cst_132 = arith.constant 0.000000e+00 : f32
    %95 = vector.broadcast %cst_132 : f32 to vector<256x4xf32>
    %96 = arith.maximumf %94, %95 : vector<256x4xf32>
    %97 = vector.shape_cast %96 : vector<256x4xf32> to vector<1x256x4xf32>
    %c0_133 = arith.constant 0 : index
    %c0_134 = arith.constant 0 : index
    %c0_135 = arith.constant 0 : index
    %98 = vector.load %arg8[%c0_133, %c0_134, %c0_135] : memref<1x256x4xf32, #tpu.memory_space<vmem>>, vector<1x256x4xf32>
    tpu.vector_store %arg8[%c0_133, %c0_134, %c0_135], %97 {strides = array<i32>} : memref<1x256x4xf32, #tpu.memory_space<vmem>>, vector<1x256x4xf32>,
    return
  }
  func.func @transform_0(%arg0: i32) -> (i32, i32, i32, i32) {
    %c0_i32 = arith.constant 0 : i32
    %c0_i32_0 = arith.constant 0 : i32
    %c0_i32_1 = arith.constant 0 : i32
    %c0_i32_2 = arith.constant 0 : i32
    return %arg0, %c0_i32, %c0_i32_0, %c0_i32_1 : i32, i32, i32, i32
  }
  func.func @transform_1(%arg0: i32) -> (i32, i32) {
    %c0_i32 = arith.constant 0 : i32
    %c0_i32_0 = arith.constant 0 : i32
    %c0_i32_1 = arith.constant 0 : i32
    return %c0_i32, %c0_i32_0 : i32, i32
  }
  func.func @transform_2(%arg0: i32) -> (i32, i32) {
    %c0_i32 = arith.constant 0 : i32
    %c0_i32_0 = arith.constant 0 : i32
    %c0_i32_1 = arith.constant 0 : i32
    return %c0_i32, %c0_i32_0 : i32, i32
  }
  func.func @transform_3(%arg0: i32) -> (i32, i32) {
    %c0_i32 = arith.constant 0 : i32
    %c0_i32_0 = arith.constant 0 : i32
    %c0_i32_1 = arith.constant 0 : i32
    return %c0_i32, %c0_i32_0 : i32, i32
  }
  func.func @transform_4(%arg0: i32) -> (i32, i32) {
    %c0_i32 = arith.constant 0 : i32
    %c0_i32_0 = arith.constant 0 : i32
    %c0_i32_1 = arith.constant 0 : i32
    return %c0_i32, %c0_i32_0 : i32, i32
  }
  func.func @transform_5(%arg0: i32) -> (i32, i32) {
    %c0_i32 = arith.constant 0 : i32
    %c0_i32_0 = arith.constant 0 : i32
    %c0_i32_1 = arith.constant 0 : i32
    return %c0_i32, %c0_i32_0 : i32, i32
  }
  func.func @transform_6(%arg0: i32) -> (i32, i32) {
    %c0_i32 = arith.constant 0 : i32
    %c0_i32_0 = arith.constant 0 : i32
    %c0_i32_1 = arith.constant 0 : i32
    return %c0_i32, %c0_i32_0 : i32, i32
  }
  func.func @transform_7(%arg0: i32) -> (i32, i32, i32) {
    %c0_i32 = arith.constant 0 : i32
    %c0_i32_0 = arith.constant 0 : i32
    %c0_i32_1 = arith.constant 0 : i32
    return %arg0, %c0_i32, %c0_i32_0 : i32, i32, i32
  }
}

</mosaic_0001>

<bundles_post_ra>
// kernel: tpu_custom_call.1
= control target key start
LH: loop header
LB: loop body
LE: loop exit
PB: predicated region body
PF: predicated region fallthrough
CT: control target
= control target key end

     0   :  { %s7137_s24 = smov 0   ;;  %s9014_s0 = inlined_call_operand.vmem [shape: f32[2,16,16,4], index: 0, kind: input, shape index: {}]   ;;  %s9015_s1 = inlined_call_operand.vmem [shape: bf16[36,4], index: 1, kind: input, shape index: {}]   ;;  %s9016_s2 = inlined_call_operand.vmem [shape: f32[1,4], index: 2, kind: input, shape index: {}]   ;;  %s9017_s3 = inlined_call_operand.vmem [shape: f32[1,4], index: 3, kind: input, shape index: {}]   ;;  %s9018_s4 = inlined_call_operand.vmem [shape: bf16[36,4], index: 4, kind: input, shape index: {}]   ;;  %s9019_s5 = inlined_call_operand.vmem [shape: f32[1,4], index: 5, kind: input, shape index: {}]   ;;  %s9020_s6 = inlined_call_operand.vmem [shape: f32[1,4], index: 6, kind: input, shape index: {}]   ;;  %s9021_s7 = inlined_call_operand.vmem [shape: f32[2,256,4], index: 7, kind: output, shape index: {}]  }
   0x1 LB: > { %s6849_s25 = sadd.s32 4294967295, %s7086_s24   ;;  %p6853_p0 = scmp.ge.s32.totalorder %s7086_s24, 1  ;;  %s7086_s24 = sphi %s7137_s24, %s17_s24  }
   0x2   : > { %p237_p1 = scmp.lt.s32.totalorder %s7086_s24, 3 }
   0x4   : > { %p238_p2 = pnand %p6853_p0, %p237_p1 }
   0x5   : > { %vm280_vm0 = vcmask (!%p238_p2), 31744   ;;  %vm286_vm1 = vcmask (!%p238_p2), 27648   ;;  %vm305_vm2 = vcmask (!%p238_p2), 31748   ;;  %v7088_v0 = vmov (!%p238_p2), 0   ;;  %p269_p3 = scmp.lt.s32.totalorder (!%p238_p2), %s6849_s25, 1  ;;  %s7089_s30 = smov (!%p238_p2), 4  }
   0x6   : > { %241 = sbr.rel (%p238_p2) target bundleno = 1124 (0x464), region = 48  ;;  %281 = vst.msk [vmem:[#allocation2] sm:$0xff] (!%p238_p2), %vm280_vm0, %v7088_v0  ;;  %282 = vst.msk [vmem:[#allocation2 + $0x8] sm:$0xff] (!%p238_p2), %vm280_vm0, %v7088_v0  ;;  %vm1041_vm3 = vsmask.f32 (!%p238_p2), 3328  ;;  %vm895_vm4 = vcmask (!%p238_p2), 1043456  }
   0x7   : > { %284 = vst.msk [vmem:[#allocation2 + $0x110] sm:$0xff] (!%p238_p2), %vm280_vm0, %v7088_v0  ;;  %285 = vst.msk [vmem:[#allocation2 + $0x118] sm:$0xff] (!%p238_p2), %vm280_vm0, %v7088_v0  ;;  %s7090_s8 = smov (!%p238_p2), 8   ;;  %s7091_s9 = smov (!%p238_p2), 16   ;;  %vm526_vm5 = vsmask.f32 (!%p238_p2), 4352 }
   0x8   : > { %288 = vst.msk [vmem:[#allocation2 + $0x10] sm:$0xf] (!%p238_p2), %vm286_vm1, %v7088_v0  ;;  %289 = vst.msk [vmem:[#allocation2 + $0x20] sm:$0xf] (!%p238_p2), %vm286_vm1, %v7088_v0  ;;  %s7092_s10 = smov (!%p238_p2), 28   ;;  %s7093_s11 = smov (!%p238_p2), 12  }
   0x9   : > { %290 = vst.msk [vmem:[#allocation2 + $0x30] sm:$0xf] (!%p238_p2), %vm286_vm1, %v7088_v0  ;;  %291 = vst.msk [vmem:[#allocation2 + $0x40] sm:$0xf] (!%p238_p2), %vm286_vm1, %v7088_v0  ;;  %s7094_s12 = smov (!%p238_p2), 20   ;;  %s7095_s13 = smov (!%p238_p2), 24  }
   0xa   : > { %292 = vst.msk [vmem:[#allocation2 + $0x50] sm:$0xf] (!%p238_p2), %vm286_vm1, %v7088_v0  ;;  %293 = vst.msk [vmem:[#allocation2 + $0x60] sm:$0xf] (!%p238_p2), %vm286_vm1, %v7088_v0  ;;  %s7096_s14 = smov (!%p238_p2), 32   ;;  %vm992_vm6 = vcmask (!%p238_p2), 64544  }
   0xb   : > { %294 = vst.msk [vmem:[#allocation2 + $0x70] sm:$0xf] (!%p238_p2), %vm286_vm1, %v7088_v0  ;;  %295 = vst.msk [vmem:[#allocation2 + $0x80] sm:$0xf] (!%p238_p2), %vm286_vm1, %v7088_v0  ;;  %vm1362_vm7 = vcmask (!%p238_p2), 97344   ;;  %vm1731_vm8 = vcmask (!%p238_p2), 130144  }
   0xc   : > { %296 = vst.msk [vmem:[#allocation2 + $0x90] sm:$0xf] (!%p238_p2), %vm286_vm1, %v7088_v0  ;;  %297 = vst.msk [vmem:[#allocation2 + $0xa0] sm:$0xf] (!%p238_p2), %vm286_vm1, %v7088_v0  ;;  %vm1908_vm9 = vcmask (!%p238_p2), 162944   ;;  %vm2277_vm10 = vcmask (!%p238_p2), 195744  }
   0xd   : > { %298 = vst.msk [vmem:[#allocation2 + $0xb0] sm:$0xf] %vm286_vm1, %v7088_v0  ;;  %299 = vst.msk [vmem:[#allocation2 + $0xc0] sm:$0xf] %vm286_vm1, %v7088_v0  ;;  %s9023_s25 = smov (!%p269_p3, %s6849_s25), 1  ;;  %vm2647_vm11 = vcmask 228544  }
   0xe   : > { %300 = vst.msk [vmem:[#allocation2 + $0xd0] sm:$0xf] %vm286_vm1, %v7088_v0  ;;  %301 = vst.msk [vmem:[#allocation2 + $0xe0] sm:$0xf] %vm286_vm1, %v7088_v0  ;;  %s6902_s26 = sshll.u32 %s9023_s25, 8  ;;  %vm2824_vm12 = vcmask 261344  }
   0xf   : > { %302 = vst.msk [vmem:[#allocation2 + $0xf0] sm:$0xf] %vm286_vm1, %v7088_v0  ;;  %303 = vst.msk [vmem:[#allocation2 + $0x100] sm:$0xf] %vm286_vm1, %v7088_v0  ;;  %s7317_s29 = scalar_lea.vmem %s9014_s0, %s6902_s26  ;;  %v1009_v4 = vld [vmem:[#allocation2] sm:$0xf0] }
  0x10   : > { %307 = vst.msk [vmem:[#allocation2 + $0x18] sm:$0xf0] %vm305_vm2, %v7088_v0  ;;  %308 = vst.msk [vmem:[#allocation2 + $0x28] sm:$0xf0] %vm305_vm2, %v7088_v0  ;;  %v367_v1 = vld [vmem:[%s7317_s29 + $0x10] sm:$0xff]  ;;  %v368_v2 = vld [vmem:[%s7317_s29 + $0x18] sm:$0xff] }
  0x11   : > { %309 = vst.msk [vmem:[#allocation2 + $0x38] sm:$0xf0] %vm305_vm2, %v7088_v0  ;;  %310 = vst.msk [vmem:[#allocation2 + $0x48] sm:$0xf0] %vm305_vm2, %v7088_v0  ;;  %v365_v3 = vld [vmem:[%s7317_s29] sm:$0xff]  ;;  %v398_v7 = vpack.c.bf16 %v368_v2, %v367_v1  ;;  %v1043_v9 = vshrl.u32 %v1009_v4, 16 }
  0x12   : > { %311 = vst.msk [vmem:[#allocation2 + $0x58] sm:$0xf0] %vm305_vm2, %v7088_v0  ;;  %312 = vst.msk [vmem:[#allocation2 + $0x68] sm:$0xf0] %vm305_vm2, %v7088_v0  ;;  %v831_v5 = vld [vmem:[#allocation2] sm:$0xf0] }
  0x13   : > { %313 = vst.msk [vmem:[#allocation2 + $0x78] sm:$0xf0] %vm305_vm2, %v7088_v0  ;;  %314 = vst.msk [vmem:[#allocation2 + $0x88] sm:$0xf0] %vm305_vm2, %v7088_v0  ;;  %v832_v6 = vld [vmem:[#allocation2 + $0x8] sm:$0xf] }
  0x14   : > { %315 = vst.msk [vmem:[#allocation2 + $0x98] sm:$0xf0] %vm305_vm2, %v7088_v0  ;;  %316 = vst.msk [vmem:[#allocation2 + $0xa8] sm:$0xf0] %vm305_vm2, %v7088_v0  ;;  %v1046_v10 = vshll.u32 %v1009_v4, 16  ;;  %v896_v11 = vrot.slane %v831_v5, 4 }
  0x15   : > { %317 = vst.msk [vmem:[#allocation2 + $0xb8] sm:$0xf0] %vm305_vm2, %v7088_v0  ;;  %318 = vst.msk [vmem:[#allocation2 + $0xc8] sm:$0xf0] %vm305_vm2, %v7088_v0  ;;  %v897_v12 = vrot.slane %v832_v6, 4  ;;  %v430_v15 = vrot.slane %v398_v7, 4 }
  0x16   : > { %319 = vst.msk [vmem:[#allocation2 + $0xd8] sm:$0xf0] %vm305_vm2, %v7088_v0  ;;  %320 = vst.msk [vmem:[#allocation2 + $0xe8] sm:$0xf0] %vm305_vm2, %v7088_v0  ;;  %v366_v16 = vld [vmem:[%s7317_s29 + $0x8] sm:$0xff]  ;;  %v369_v17 = vld [vmem:[%s7317_s29 + $0x20] sm:$0xff] }
  0x17   : > { %321 = vst.msk [vmem:[#allocation2 + $0xf8] sm:$0xf0] %vm305_vm2, %v7088_v0  ;;  %322 = vst.msk [vmem:[#allocation2 + $0x108] sm:$0xf0] %vm305_vm2, %v7088_v0  ;;  %v370_v18 = vld [vmem:[%s7317_s29 + $0x28] sm:$0xff]  ;;  %v1045_v19 = vrot.slane %v1043_v9, 4  ;;  %v898_v21 = vsel %vm895_vm4, %v896_v11, %v897_v12  ;;  %v397_v22 = vpack.c.bf16 %v366_v16, %v365_v3 }
  0x18   : > { %324 = vst.msk [vmem:[#allocation3] sm:$0xff] %vm280_vm0, %v7088_v0  ;;  %325 = vst.msk [vmem:[#allocation3 + $0x8] sm:$0xff] %vm280_vm0, %v7088_v0  ;;  %v1048_v20 = vrot.slane %v1046_v10, 5  ;;  %v371_v23 = vld [vmem:[%s7317_s29 + $0x30] sm:$0xff]  ;;  %v372_v24 = vld [vmem:[%s7317_s29 + $0x38] sm:$0xff]  ;;  %944 = vrot.lane.b32.xlu0 %v898_v21, %s7089_s30  ;;  %v399_v28 = vpack.c.bf16 %v370_v18, %v369_v17  ;;  %vm3193_vm13 = vcmask 294144  }
  0x19   : > { %327 = vst.msk [vmem:[#allocation3 + $0x110] sm:$0xff] %vm280_vm0, %v7088_v0  ;;  %328 = vst.msk [vmem:[#allocation3 + $0x118] sm:$0xff] %vm280_vm0, %v7088_v0  ;;  %v373_v25 = vld [vmem:[%s7317_s29 + $0x40] sm:$0xff]  ;;  %v400_v29 = vpack.c.bf16 %v372_v24, %v371_v23  ;;  %v374_v30 = vld [vmem:[%s7317_s29 + $0x48] sm:$0xff]  ;;  %v429_v34 = vrot.slane %v397_v22, 4  ;;  %vm3295_vm14 = vcmask 1041408  }
  0x1a   : > { %330 = vst.msk [vmem:[#allocation3 + $0x10] sm:$0xf] %vm286_vm1, %v7088_v0  ;;  %331 = vst.msk [vmem:[#allocation3 + $0x20] sm:$0xf] %vm286_vm1, %v7088_v0  ;;  %v375_v31 = vld [vmem:[%s7317_s29 + $0x50] sm:$0xff]  ;;  %v376_v32 = vld [vmem:[%s7317_s29 + $0x58] sm:$0xff]  ;;  %v1049_v33 = vor.u32 %v1048_v20, %v1045_v19  ;;  %v401_v35 = vpack.c.bf16 %v374_v30, %v373_v25 }
  0x1b   : > { %332 = vst.msk [vmem:[#allocation3 + $0x30] sm:$0xf] %vm286_vm1, %v7088_v0  ;;  %333 = vst.msk [vmem:[#allocation3 + $0x40] sm:$0xf] %vm286_vm1, %v7088_v0  ;;  %v402_v36 = vpack.c.bf16 %v376_v32, %v375_v31  ;;  %v377_v37 = vld [vmem:[%s7317_s29 + $0x60] sm:$0xff]  ;;  %v378_v38 = vld [vmem:[%s7317_s29 + $0x68] sm:$0xff] }
  0x1c   : > { %334 = vst.msk [vmem:[#allocation3 + $0x50] sm:$0xf] %vm286_vm1, %v7088_v0  ;;  %335 = vst.msk [vmem:[#allocation3 + $0x60] sm:$0xf] %vm286_vm1, %v7088_v0  ;;  %v379_v39 = vld [vmem:[%s7317_s29 + $0x70] sm:$0xff]  ;;  %v431_v41 = vrot.slane %v399_v28, 4  ;;  %v403_v43 = vpack.c.bf16 %v378_v38, %v377_v37 }
  0x1d   : > { %336 = vst.msk [vmem:[#allocation3 + $0x70] sm:$0xf] %vm286_vm1, %v7088_v0  ;;  %337 = vst.msk [vmem:[#allocation3 + $0x80] sm:$0xf] %vm286_vm1, %v7088_v0  ;;  %v432_v42 = vrot.slane %v400_v29, 4  ;;  %v380_v44 = vld [vmem:[%s7317_s29 + $0x78] sm:$0xff] }
  0x1e   : > { %338 = vst.msk [vmem:[#allocation3 + $0x90] sm:$0xf] %vm286_vm1, %v7088_v0  ;;  %339 = vst.msk [vmem:[#allocation3 + $0xa0] sm:$0xf] %vm286_vm1, %v7088_v0  ;;  %v495_v45 = vld [vmem:[#allocation2 + $0x8] sm:$0xf]  ;;  %v404_v48 = vpack.c.bf16 %v380_v44, %v379_v39 }
  0x1f   : > { %340 = vst.msk [vmem:[#allocation3 + $0xb0] sm:$0xf] %vm286_vm1, %v7088_v0  ;;  %341 = vst.msk [vmem:[#allocation3 + $0xc0] sm:$0xf] %vm286_vm1, %v7088_v0  ;;  %v433_v46 = vrot.slane %v401_v35, 4  ;;  %v434_v47 = vrot.slane %v402_v36, 4 }
  0x20   : > { %342 = vst.msk [vmem:[#allocation3 + $0xd0] sm:$0xf] %vm286_vm1, %v7088_v0  ;;  %343 = vst.msk [vmem:[#allocation3 + $0xe0] sm:$0xf] %vm286_vm1, %v7088_v0  ;;  %v536_v49 = vshrl.u32 %v495_v45, 16  ;;  %v435_v52 = vrot.slane %v403_v43, 4 }
  0x21   : > { %344 = vst.msk [vmem:[#allocation3 + $0xf0] sm:$0xf] %vm286_vm1, %v7088_v0  ;;  %345 = vst.msk [vmem:[#allocation3 + $0x100] sm:$0xf] %vm286_vm1, %v7088_v0  ;;  %v539_v53 = vshll.u32 %v495_v45, 16  ;;  %v436_v54 = vrot.slane %v404_v48, 4 }
  0x22   : > { %348 = vst.msk [vmem:[#allocation3 + $0x18] sm:$0xf0] %vm305_vm2, %v7088_v0  ;;  %349 = vst.msk [vmem:[#allocation3 + $0x28] sm:$0xf0] %vm305_vm2, %v7088_v0  ;;  %v7356_v56 = vrot.slane %v536_v49, 3  ;;  %v7366_v1 = vld [vmem:[%s7317_s29 + $0x88] sm:$0xff] }
  0x23   : > { %350 = vst.msk [vmem:[#allocation3 + $0x38] sm:$0xf0] %vm305_vm2, %v7088_v0  ;;  %351 = vst.msk [vmem:[#allocation3 + $0x48] sm:$0xf0] %vm305_vm2, %v7088_v0  ;;  %v7358_v57 = vrot.slane %v539_v53, 4  ;;  %vm3246_vm15 = vcmask 293888  }
  0x24   : > { %352 = vst.msk [vmem:[#allocation3 + $0x58] sm:$0xf0] %vm305_vm2, %v7088_v0  ;;  %353 = vst.msk [vmem:[#allocation3 + $0x68] sm:$0xf0] %vm305_vm2, %v7088_v0 }
  0x25   : > { %354 = vst.msk [vmem:[#allocation3 + $0x78] sm:$0xf0] %vm305_vm2, %v7088_v0  ;;  %355 = vst.msk [vmem:[#allocation3 + $0x88] sm:$0xf0] %vm305_vm2, %v7088_v0  ;;  %v542_v16 = vor.u32 %v7358_v57, %v7356_v56 }
  0x26   : > { %356 = vst.msk [vmem:[#allocation3 + $0x98] sm:$0xf0] %vm305_vm2, %v7088_v0  ;;  %357 = vst.msk [vmem:[#allocation3 + $0xa8] sm:$0xf0] %vm305_vm2, %v7088_v0 }
  0x27   : > { %358 = vst.msk [vmem:[#allocation3 + $0xb8] sm:$0xf0] %vm305_vm2, %v7088_v0  ;;  %359 = vst.msk [vmem:[#allocation3 + $0xc8] sm:$0xf0] %vm305_vm2, %v7088_v0 }
  0x28   : > { %360 = vst.msk [vmem:[#allocation3 + $0xd8] sm:$0xf0] %vm305_vm2, %v7088_v0  ;;  %361 = vst.msk [vmem:[#allocation3 + $0xe8] sm:$0xf0] %vm305_vm2, %v7088_v0 }
  0x29   : > { %362 = vst.msk [vmem:[#allocation3 + $0xf8] sm:$0xf0] %vm305_vm2, %v7088_v0  ;;  %363 = vst.msk [vmem:[#allocation3 + $0x108] sm:$0xf0] %vm305_vm2, %v7088_v0 }
  0x2a   : > { %306 = vst.msk [vmem:[#allocation2 + $0x8] sm:$0xf0] %vm305_vm2, %v7088_v0  ;;  %323 = vst.msk [vmem:[#allocation2 + $0x118] sm:$0xf0] %vm305_vm2, %v7088_v0 }
  0x2b   : > { %287 = vst.msk [vmem:[#allocation2] sm:$0xf] %vm286_vm1, %v7088_v0  ;;  %304 = vst.msk [vmem:[#allocation2 + $0x110] sm:$0xf] %vm286_vm1, %v7088_v0 }
  0x2c   : > { %329 = vst.msk [vmem:[#allocation3] sm:$0xf] %vm286_vm1, %v7088_v0  ;;  %346 = vst.msk [vmem:[#allocation3 + $0x110] sm:$0xf] %vm286_vm1, %v7088_v0 }
  0x2d   : > { %347 = vst.msk [vmem:[#allocation3 + $0x8] sm:$0xf0] %vm305_vm2, %v7088_v0  ;;  %364 = vst.msk [vmem:[#allocation3 + $0x118] sm:$0xf0] %vm305_vm2, %v7088_v0  ;;  %v7363_v0 = vld [vmem:[%s7317_s29 + $0x80] sm:$0xff] }
  0x2e   : > { %464 = vst.msk [vmem:[#allocation2 + $0x20] sm:$0xf0] %vm305_vm2, %v430_v15  ;;  %462 = vst.msk [vmem:[#allocation2 + $0x10] sm:$0xf0] %vm305_vm2, %v429_v34  ;;  %v405_v17 = vpack.c.bf16 %v7366_v1, %v7363_v0 }
  0x2f   : > { %465 = vst.msk [vmem:[#allocation2 + $0x28] sm:$0xf] %vm286_vm1, %v430_v15  ;;  %463 = vst.msk [vmem:[#allocation2 + $0x18] sm:$0xf] %vm286_vm1, %v429_v34 }
  0x30   : > { %466 = vst.msk [vmem:[#allocation2 + $0x30] sm:$0xf0] %vm305_vm2, %v431_v41  ;;  %468 = vst.msk [vmem:[#allocation2 + $0x40] sm:$0xf0] %vm305_vm2, %v432_v42 }
  0x31   : > { %v1010_v8 = vld [vmem:[#allocation2 + $0x8] sm:$0x1f]  ;;  %467 = vst.msk [vmem:[#allocation2 + $0x38] sm:$0xf] %vm286_vm1, %v431_v41  ;;  %469 = vst.msk [vmem:[#allocation2 + $0x48] sm:$0xf] %vm286_vm1, %v432_v42 }
  0x32   : > { %v1051_v13 = vshrl.u32 %v1010_v8, 16  ;;  %v1054_v14 = vshll.u32 %v1010_v8, 16  ;;  %v7341_v50 = vld [vmem:[#allocation2] sm:$0xf8]  ;;  %470 = vst.msk [vmem:[#allocation2 + $0x50] sm:$0xf0] %vm305_vm2, %v433_v46 }
  0x33   : > { %471 = vst.msk [vmem:[#allocation2 + $0x58] sm:$0xf] %vm286_vm1, %v433_v46  ;;  %473 = vst.msk [vmem:[#allocation2 + $0x68] sm:$0xf] %vm286_vm1, %v434_v47  ;;  %v528_v55 = vshrl.u32 %v7341_v50, 16  ;;  %v531_v6 = vshll.u32 %v7341_v50, 16 }
  0x34   : > { %v1053_v26 = vrot.slane %v1051_v13, 4  ;;  %v1056_v27 = vrot.slane %v1054_v14, 5  ;;  %472 = vst.msk [vmem:[#allocation2 + $0x60] sm:$0xf0] %vm305_vm2, %v434_v47  ;;  %474 = vst.msk [vmem:[#allocation2 + $0x70] sm:$0xf0] %vm305_vm2, %v435_v52 }
  0x35   : > { %475 = vst.msk [vmem:[#allocation2 + $0x78] sm:$0xf] %vm286_vm1, %v435_v52  ;;  %v1750_v58 = vld [vmem:[#allocation2 + $0x20] sm:$0xf0]  ;;  %477 = vst.msk [vmem:[#allocation2 + $0x88] sm:$0xf] %vm286_vm1, %v436_v54 }
  0x36   : > { %v1057_v40 = vor.u32 %v1056_v27, %v1053_v26  ;;  %v1751_v59 = vld [vmem:[#allocation2 + $0x28] sm:$0xf]  ;;  %v2664_v60 = vld [vmem:[#allocation2 + $0x20] sm:$0xf0]  ;;  %476 = vst.msk [vmem:[#allocation2 + $0x80] sm:$0xf0] %vm305_vm2, %v436_v54 }
  0x37   : > { %v1815_v61 = vrot.slane %v1750_v58, 4  ;;  %v1816_v62 = vrot.slane %v1751_v59, 4  ;;  %v2665_v63 = vld [vmem:[#allocation2 + $0x28] sm:$0xf]  ;;  %v2728_v2 = vrot.slane %v2664_v60, 4  ;;  %v7368_v5 = vrot.slane %v528_v55, 3 }
  0x38   : > { %v1058_v51 = vsel %vm1041_vm3, %v1049_v33, %v1057_v40  ;;  %v2729_v3 = vrot.slane %v2665_v63, 4  ;;  %v1381_v4 = vld [vmem:[#allocation2 + $0x20] sm:$0xf8]  ;;  %v833_v8 = vld [vmem:[#allocation2 + $0x10] sm:$0xf0] }
  0x39   : > { %1314 = vrot.lane.b32.xlu1 %v1058_v51, %s7090_s8  ;;  %v1817_v7 = vsel %vm895_vm4, %v1815_v61, %v1816_v62  ;;  %v834_v9 = vld [vmem:[#allocation2 + $0x18] sm:$0xf]  ;;  %v1748_v10 = vld [vmem:[#allocation2 + $0x10] sm:$0xf0]  ;;  %v899_v11 = vrot.slane %v833_v8, 4  ;;  %v1429_v22 = vshrl.u32 %v1381_v4, 16 }
  0x3a   : > { %v900_v12 = vrot.slane %v834_v9, 4  ;;  %v2666_v13 = vld [vmem:[#allocation2 + $0x30] sm:$0xf0]  ;;  %v2667_v14 = vld [vmem:[#allocation2 + $0x38] sm:$0xf]  ;;  %v1812_v21 = vrot.slane %v1748_v10, 4  ;;  %v2730_v27 = vsel %vm895_vm4, %v2728_v2, %v2729_v3 }
  0x3b   : > { %v1382_v15 = vld [vmem:[#allocation2 + $0x28] sm:$0xf]  ;;  %v2731_v18 = vrot.slane %v2666_v13, 4  ;;  %v2732_v19 = vrot.slane %v2667_v14, 4  ;;  %v1749_v20 = vld [vmem:[#allocation2 + $0x18] sm:$0xf] }
  0x3c   : > { %v901_v23 = vsel %vm895_vm4, %v899_v11, %v900_v12  ;;  %v1813_v24 = vrot.slane %v1749_v20, 4  ;;  %v1011_v25 = vld [vmem:[#allocation2 + $0x10] sm:$0xf0]  ;;  %v1012_v26 = vld [vmem:[#allocation2 + $0x18] sm:$0x1f]  ;;  %v1432_v28 = vshll.u32 %v1381_v4, 16 }
  0x3d   : > { %1862 = vrot.lane.b32.xlu1 %v1817_v7, %s7091_s9  ;;  %946 = vrot.lane.b32.xlu0 %v901_v23, %s7089_s30  ;;  %v2733_v29 = vsel %vm895_vm4, %v2731_v18, %v2732_v19  ;;  %v1060_v30 = vshrl.u32 %v1011_v25, 16  ;;  %v1063_v31 = vshll.u32 %v1011_v25, 16  ;;  %v1068_v32 = vshrl.u32 %v1012_v26, 16  ;;  %v1379_v33 = vld [vmem:[#allocation2 + $0x10] sm:$0xf8] }
  0x3e   : > { %v1814_v34 = vsel %vm895_vm4, %v1812_v21, %v1813_v24  ;;  %v1071_v35 = vshll.u32 %v1012_v26, 16  ;;  %v1431_v36 = vrot.slane %v1429_v22, 3  ;;  %v1434_v37 = vrot.slane %v1432_v28, 4  ;;  %v1380_v38 = vld [vmem:[#allocation2 + $0x18] sm:$0xf] }
  0x3f   : > { %v1062_v39 = vrot.slane %v1060_v30, 4  ;;  %v1065_v40 = vrot.slane %v1063_v31, 5  ;;  %v1070_v41 = vrot.slane %v1068_v32, 4  ;;  %v1437_v42 = vshrl.u32 %v1382_v15, 16  ;;  %v1927_v47 = vld [vmem:[#allocation2 + $0x20] sm:$0xf0] }
  0x40   : > { %v1073_v43 = vrot.slane %v1071_v35, 5  ;;  %v1435_v44 = vor.u32 %v1434_v37, %v1431_v36  ;;  %v1440_v45 = vshll.u32 %v1382_v15, 16  ;;  %v1412_v46 = vshrl.u32 %v1379_v33, 16  ;;  %v1928_v53 = vld [vmem:[#allocation2 + $0x28] sm:$0x1f] }
  0x41   : > { %2778 = vrot.lane.b32.xlu1 %v2733_v29, %s7092_s10  ;;  %1860 = vrot.lane.b32.xlu0 %v1814_v34, %s7091_s9  ;;  %v1066_v48 = vor.u32 %v1065_v40, %v1062_v39  ;;  %v1439_v49 = vrot.slane %v1437_v42, 3  ;;  %v1415_v51 = vshll.u32 %v1379_v33, 16  ;;  %v1420_v52 = vshrl.u32 %v1380_v38, 16  ;;  %v1925_v2 = vld [vmem:[#allocation2 + $0x10] sm:$0xf0] }
  0x42   : > { %v1074_v54 = vor.u32 %v1073_v43, %v1070_v41  ;;  %v1442_v55 = vrot.slane %v1440_v45, 4  ;;  %v1414_v58 = vrot.slane %v1412_v46, 3  ;;  %v1423_v59 = vshll.u32 %v1380_v38, 16  ;;  %v1926_v9 = vld [vmem:[#allocation2 + $0x18] sm:$0x1f] }
  0x43   : > { %v1417_v60 = vrot.slane %v1415_v51, 4  ;;  %v1422_v61 = vrot.slane %v1420_v52, 3  ;;  %v1975_v62 = vshrl.u32 %v1927_v47, 16  ;;  %v1978_v63 = vshll.u32 %v1927_v47, 16  ;;  %v2297_v14 = vld [vmem:[#allocation2 + $0x30] sm:$0xf8] }
  0x44   : > { %v1075_v3 = vsel %vm1041_vm3, %v1066_v48, %v1074_v54  ;;  %v1443_v4 = vor.u32 %v1442_v55, %v1439_v49  ;;  %v1425_v7 = vrot.slane %v1423_v59, 4  ;;  %v1983_v8 = vshrl.u32 %v1928_v53, 16  ;;  %v2298_v25 = vld [vmem:[#allocation2 + $0x38] sm:$0xf]  ;;  %v2295_v30 = vld [vmem:[#allocation2 + $0x20] sm:$0xf8] }
  0x45   : > { %1316 = vrot.lane.b32.xlu1 %v1075_v3, %s7090_s8  ;;  %2776 = vrot.lane.b32.xlu0 %v2730_v27, %s7092_s10  ;;  %v1418_v10 = vor.u32 %v1417_v60, %v1414_v58  ;;  %v1977_v11 = vrot.slane %v1975_v62, 4  ;;  %v1980_v12 = vrot.slane %v1978_v63, 5  ;;  %v1986_v13 = vshll.u32 %v1928_v53, 16  ;;  %v2296_v39 = vld [vmem:[#allocation2 + $0x28] sm:$0xf] }
  0x46   : > { %v1444_v15 = vsel %vm526_vm5, %v1435_v44, %v1443_v4  ;;  %v1426_v18 = vor.u32 %v1425_v7, %v1422_v61  ;;  %v1985_v19 = vrot.slane %v1983_v8, 4  ;;  %v1958_v20 = vshrl.u32 %v1925_v2, 16  ;;  %v2841_v44 = vld [vmem:[#allocation2 + $0x20] sm:$0xf0]  ;;  %v2842_v49 = vld [vmem:[#allocation2 + $0x28] sm:$0x1f] }
  0x47   : > { %v1981_v21 = vor.u32 %v1980_v12, %v1977_v11  ;;  %v1988_v22 = vrot.slane %v1986_v13, 5  ;;  %v1961_v23 = vshll.u32 %v1925_v2, 16  ;;  %v1966_v24 = vshrl.u32 %v1926_v9, 16  ;;  %v835_v61 = vld [vmem:[#allocation2 + $0x20] sm:$0xf0] }
  0x48   : > { %v1427_v26 = vsel %vm526_vm5, %v1418_v10, %v1426_v18  ;;  %v1960_v28 = vrot.slane %v1958_v20, 4  ;;  %v1969_v29 = vshll.u32 %v1926_v9, 16  ;;  %v2345_v27 = vshrl.u32 %v2297_v14, 16  ;;  %v836_v62 = vld [vmem:[#allocation2 + $0x28] sm:$0xf] }
  0x49   : > { %1685 = vrot.lane.b32.xlu1 %v1444_v15, %s7093_s11  ;;  %1683 = vrot.lane.b32.xlu0 %v1427_v26, %s7093_s11  ;;  %v1989_v31 = vor.u32 %v1988_v22, %v1985_v19  ;;  %v1963_v32 = vrot.slane %v1961_v23, 5  ;;  %v1968_v33 = vrot.slane %v1966_v24, 4  ;;  %v2348_v34 = vshll.u32 %v2297_v14, 16  ;;  %v2843_v7 = vld [vmem:[#allocation2 + $0x30] sm:$0xf0] }
  0x4a   : > { %v1971_v35 = vrot.slane %v1969_v29, 5  ;;  %v2347_v36 = vrot.slane %v2345_v27, 3  ;;  %v2353_v37 = vshrl.u32 %v2298_v25, 16  ;;  %v2356_v38 = vshll.u32 %v2298_v25, 16  ;;  %v2844_v12 = vld [vmem:[#allocation2 + $0x38] sm:$0x1f] }
  0x4b   : > { %v1990_v40 = vsel %vm1041_vm3, %v1981_v21, %v1989_v31  ;;  %v1964_v41 = vor.u32 %v1963_v32, %v1960_v28  ;;  %v2350_v42 = vrot.slane %v2348_v34, 4  ;;  %v2328_v43 = vshrl.u32 %v2295_v30, 16  ;;  %v837_v19 = vld [vmem:[#allocation2 + $0x30] sm:$0xf0]  ;;  %v838_v24 = vld [vmem:[#allocation2 + $0x38] sm:$0xf] }
  0x4c   : > { %v1972_v45 = vor.u32 %v1971_v35, %v1968_v33  ;;  %v2355_v46 = vrot.slane %v2353_v37, 3  ;;  %v2358_v47 = vrot.slane %v2356_v38, 4  ;;  %v2331_v48 = vshll.u32 %v2295_v30, 16  ;;  %v1013_v27 = vld [vmem:[#allocation2 + $0x20] sm:$0xf0] }
  0x4d   : > { %2231 = vrot.lane.b32.xlu1 %v1990_v40, %s7094_s12  ;;  %v2351_v51 = vor.u32 %v2350_v42, %v2347_v36  ;;  %v2330_v52 = vrot.slane %v2328_v43, 3  ;;  %v2336_v53 = vshrl.u32 %v2296_v39, 16  ;;  %v2339_v54 = vshll.u32 %v2296_v39, 16  ;;  %v1014_v34 = vld [vmem:[#allocation2 + $0x28] sm:$0x1f] }
  0x4e   : > { %v1973_v55 = vsel %vm1041_vm3, %v1964_v41, %v1972_v45  ;;  %v2359_v58 = vor.u32 %v2358_v47, %v2355_v46  ;;  %v2333_v59 = vrot.slane %v2331_v48, 4  ;;  %v2874_v60 = vshrl.u32 %v2841_v44, 16  ;;  %v1015_v39 = vld [vmem:[#allocation2 + $0x30] sm:$0xf0]  ;;  %v2854_v57 = vld [vmem:[#allocation2 + $0x88] sm:$0x1f] }
  0x4f   : > { %2229 = vrot.lane.b32.xlu0 %v1973_v55, %s7094_s12  ;;  %v2338_v63 = vrot.slane %v2336_v53, 3  ;;  %v2341_v2 = vrot.slane %v2339_v54, 4  ;;  %v2877_v3 = vshll.u32 %v2841_v44, 16  ;;  %v2882_v4 = vshrl.u32 %v2842_v49, 16  ;;  %v1016_v44 = vld [vmem:[#allocation2 + $0x38] sm:$0x1f] }
  0x50   : > { %v2360_v8 = vsel %vm526_vm5, %v2351_v51, %v2359_v58  ;;  %v2334_v9 = vor.u32 %v2333_v59, %v2330_v52  ;;  %v2876_v10 = vrot.slane %v2874_v60, 4  ;;  %v2885_v11 = vshll.u32 %v2842_v49, 16  ;;  %v1383_v49 = vld [vmem:[#allocation2 + $0x30] sm:$0xf8]  ;;  %v1384_v55 = vld [vmem:[#allocation2 + $0x38] sm:$0xf] }
  0x51   : > { %2601 = vrot.lane.b32.xlu1 %v2360_v8, %s7095_s13  ;;  %v2342_v13 = vor.u32 %v2341_v2, %v2338_v63  ;;  %v2879_v14 = vrot.slane %v2877_v3, 5  ;;  %v2884_v15 = vrot.slane %v2882_v4, 4  ;;  %v902_v18 = vrot.slane %v835_v61, 4  ;;  %v7037_v63 = vld [vmem:[%s9015_s1] sm:$0xff]   ;;  %v1386_v8 = vld [vmem:[#allocation2 + $0x48] sm:$0xf] }
  0x52   : > { %v2887_v20 = vrot.slane %v2885_v11, 5  ;;  %v903_v21 = vrot.slane %v836_v62, 4  ;;  %v2891_v22 = vshrl.u32 %v2843_v7, 16  ;;  %v2894_v23 = vshll.u32 %v2843_v7, 16  ;;  %v1385_v62 = vld [vmem:[#allocation2 + $0x40] sm:$0xf8]  ;;  %6942 = vmatprep.subr.bf16.mxu0 %v7037_v63 }
  0x53   : > { %v2343_v25 = vsel %vm526_vm5, %v2334_v9, %v2342_v13  ;;  %v2880_v26 = vor.u32 %v2879_v14, %v2876_v10  ;;  %v2899_v28 = vshrl.u32 %v2844_v12, 16  ;;  %v2902_v29 = vshll.u32 %v2844_v12, 16  ;;  %v1752_v13 = vld [vmem:[#allocation2 + $0x30] sm:$0xf0]  ;;  %6943 = vmatpush3.bf16.msra.mxu0 %v7037_v63  ;;  %v2299_v63 = vld [vmem:[#allocation2 + $0x40] sm:$0xf8] }
  0x54   : > { %2599 = vrot.lane.b32.xlu0 %v2343_v25, %s7095_s13  ;;  %v2888_v30 = vor.u32 %v2887_v20, %v2884_v15  ;;  %v904_v31 = vsel %vm895_vm4, %v902_v18, %v903_v21  ;;  %v2893_v32 = vrot.slane %v2891_v22, 4  ;;  %v2896_v33 = vrot.slane %v2894_v23, 5  ;;  %v1753_v20 = vld [vmem:[#allocation2 + $0x38] sm:$0xf]  ;;  %v7038_v21 = vld [vmem:[%s9015_s1 + $0x8] sm:$0xff]  }
  0x55   : > { %948 = vrot.lane.b32.xlu1 %v904_v31, %s7089_s30  ;;  %v2901_v35 = vrot.slane %v2899_v28, 4  ;;  %v2904_v36 = vrot.slane %v2902_v29, 5  ;;  %v905_v37 = vrot.slane %v837_v19, 4  ;;  %v906_v38 = vrot.slane %v838_v24, 4  ;;  %v1755_v31 = vld [vmem:[#allocation2 + $0x48] sm:$0xf]  ;;  %6944 = vmatprep.subr.bf16.mxu0 %v7038_v21 }
  0x56   : > { %v2889_v40 = vsel %vm1041_vm3, %v2880_v26, %v2888_v30  ;;  %v2897_v41 = vor.u32 %v2896_v33, %v2893_v32  ;;  %v1077_v42 = vshrl.u32 %v1013_v27, 16  ;;  %v1080_v43 = vshll.u32 %v1013_v27, 16  ;;  %v1754_v26 = vld [vmem:[#allocation2 + $0x40] sm:$0xf0] }
  0x57   : > { %v2905_v45 = vor.u32 %v2904_v36, %v2901_v35  ;;  %v907_v46 = vsel %vm895_vm4, %v905_v37, %v906_v38  ;;  %v1085_v47 = vshrl.u32 %v1014_v34, 16  ;;  %v1088_v48 = vshll.u32 %v1014_v34, 16  ;;  %v1929_v36 = vld [vmem:[#allocation2 + $0x30] sm:$0xf0]  ;;  %6945 = vmatpush3.bf16.msra.mxu0 %v7038_v21 }
  0x58   : > { %3145 = vrot.lane.b32.xlu0 %v2889_v40, %s7096_s14  ;;  %v1079_v51 = vrot.slane %v1077_v42, 4  ;;  %v1082_v52 = vrot.slane %v1080_v43, 5  ;;  %v1094_v53 = vshrl.u32 %v1015_v39, 16  ;;  %v1097_v54 = vshll.u32 %v1015_v39, 16 }
  0x59   : > { %v2906_v58 = vsel %vm1041_vm3, %v2897_v41, %v2905_v45  ;;  %950 = vrot.lane.b32.xlu1 %v907_v46, %s7089_s30  ;;  %v1087_v59 = vrot.slane %v1085_v47, 4  ;;  %v1090_v60 = vrot.slane %v1088_v48, 5  ;;  %v1102_v61 = vshrl.u32 %v1016_v44, 16  ;;  %v1930_v41 = vld [vmem:[#allocation2 + $0x38] sm:$0x1f] }
  0x5a   : > { %v1083_v2 = vor.u32 %v1082_v52, %v1079_v51  ;;  %v1096_v3 = vrot.slane %v1094_v53, 4  ;;  %v1099_v4 = vrot.slane %v1097_v54, 5  ;;  %v1105_v7 = vshll.u32 %v1016_v44, 16  ;;  %v1931_v46 = vld [vmem:[#allocation2 + $0x40] sm:$0xf0] }
  0x5b   : > { %v1091_v9 = vor.u32 %v1090_v60, %v1087_v59  ;;  %v1104_v10 = vrot.slane %v1102_v61, 4  ;;  %v1446_v11 = vshrl.u32 %v1383_v49, 16  ;;  %v1449_v12 = vshll.u32 %v1383_v49, 16 }
  0x5c   : > { %3147 = vrot.lane.b32.xlu0 %v2906_v58, %s7096_s14  ;;  %v1100_v14 = vor.u32 %v1099_v4, %v1096_v3  ;;  %v1107_v15 = vrot.slane %v1105_v7, 5  ;;  %v1454_v18 = vshrl.u32 %v1384_v55, 16  ;;  %v1457_v19 = vshll.u32 %v1384_v55, 16  ;;  %v1932_v58 = vld [vmem:[#allocation2 + $0x48] sm:$0x1f] }
  0x5d   : > { %v1092_v22 = vsel %vm1041_vm3, %v1083_v2, %v1091_v9  ;;  %v1448_v23 = vrot.slane %v1446_v11, 3  ;;  %v1451_v24 = vrot.slane %v1449_v12, 4  ;;  %v1463_v25 = vshrl.u32 %v1385_v62, 16 }
  0x5e   : > { %v1108_v28 = vor.u32 %v1107_v15, %v1104_v10  ;;  %v1456_v29 = vrot.slane %v1454_v18, 3  ;;  %v1459_v27 = vrot.slane %v1457_v19, 4  ;;  %v1466_v30 = vshll.u32 %v1385_v62, 16 }
  0x5f   : > { %v1452_v32 = vor.u32 %v1451_v24, %v1448_v23  ;;  %v1465_v33 = vrot.slane %v1463_v25, 3  ;;  %v1471_v34 = vshrl.u32 %v1386_v8, 16  ;;  %v1474_v35 = vshll.u32 %v1386_v8, 16  ;;  %v2300_v8 = vld [vmem:[#allocation2 + $0x48] sm:$0xf] }
  0x60   : > { %1318 = vrot.lane.b32.xlu0 %v1092_v22, %s7090_s8  ;;  %v1109_v37 = vsel %vm1041_vm3, %v1100_v14, %v1108_v28  ;;  %v1460_v38 = vor.u32 %v1459_v27, %v1456_v29  ;;  %v1468_v39 = vrot.slane %v1466_v30, 4  ;;  %v1818_v40 = vrot.slane %v1752_v13, 4  ;;  %v2301_v13 = vld [vmem:[#allocation2 + $0x50] sm:$0xf8]  ;;  %v2668_v25 = vld [vmem:[#allocation2 + $0x40] sm:$0xf0] }
  0x61   : > { %1320 = vrot.lane.b32.xlu1 %v1109_v37, %s7090_s8  ;;  %v1473_v42 = vrot.slane %v1471_v34, 3  ;;  %v1476_v43 = vrot.slane %v1474_v35, 4  ;;  %v1819_v44 = vrot.slane %v1753_v20, 4  ;;  %v1821_v45 = vrot.slane %v1754_v26, 4  ;;  %v2302_v20 = vld [vmem:[#allocation2 + $0x58] sm:$0xf] }
  0x62   : > { %v1461_v47 = vsel %vm526_vm5, %v1452_v32, %v1460_v38  ;;  %v1469_v48 = vor.u32 %v1468_v39, %v1465_v33  ;;  %v1822_v49 = vrot.slane %v1755_v31, 4  ;;  %v1992_v51 = vshrl.u32 %v1929_v36, 16  ;;  %v2669_v30 = vld [vmem:[#allocation2 + $0x48] sm:$0xf]  ;;  %v2670_v35 = vld [vmem:[#allocation2 + $0x50] sm:$0xf0] }
  0x63   : > { %v1477_v52 = vor.u32 %v1476_v43, %v1473_v42  ;;  %v1820_v53 = vsel %vm895_vm4, %v1818_v40, %v1819_v44  ;;  %v1995_v54 = vshll.u32 %v1929_v36, 16  ;;  %v2000_v55 = vshrl.u32 %v1930_v41, 16  ;;  %v2671_v36 = vld [vmem:[#allocation2 + $0x58] sm:$0xf] }
  0x64   : > { %1687 = vrot.lane.b32.xlu0 %v1461_v47, %s7093_s11  ;;  %v1823_v59 = vsel %vm895_vm4, %v1821_v45, %v1822_v49  ;;  %v1994_v60 = vrot.slane %v1992_v51, 4  ;;  %v2003_v61 = vshll.u32 %v1930_v41, 16  ;;  %v2009_v62 = vshrl.u32 %v1931_v46, 16  ;;  %v2845_v41 = vld [vmem:[#allocation2 + $0x40] sm:$0xf0] }
  0x65   : > { %v1478_v2 = vsel %vm526_vm5, %v1469_v48, %v1477_v52  ;;  %v1997_v3 = vrot.slane %v1995_v54, 5  ;;  %v2002_v4 = vrot.slane %v2000_v55, 4  ;;  %v2012_v7 = vshll.u32 %v1931_v46, 16  ;;  %v2846_v46 = vld [vmem:[#allocation2 + $0x48] sm:$0x1f] }
  0x66   : > { %1689 = vrot.lane.b32.xlu1 %v1478_v2, %s7093_s11  ;;  %v2005_v9 = vrot.slane %v2003_v61, 5  ;;  %v2011_v10 = vrot.slane %v2009_v62, 4  ;;  %v2017_v11 = vshrl.u32 %v1932_v58, 16  ;;  %v2020_v12 = vshll.u32 %v1932_v58, 16  ;;  %v839_v52 = vld [vmem:[#allocation2 + $0x40] sm:$0xf0] }
  0x67   : > { %v1998_v14 = vor.u32 %v1997_v3, %v1994_v60  ;;  %v2014_v15 = vrot.slane %v2012_v7, 5  ;;  %v2362_v18 = vshrl.u32 %v2299_v63, 16  ;;  %v2365_v19 = vshll.u32 %v2299_v63, 16  ;;  %v2847_v2 = vld [vmem:[#allocation2 + $0x50] sm:$0xf0] }
  0x68   : > { %1864 = vrot.lane.b32.xlu0 %v1820_v53, %s7091_s9  ;;  %v2006_v21 = vor.u32 %v2005_v9, %v2002_v4  ;;  %v2019_v22 = vrot.slane %v2017_v11, 4  ;;  %v2022_v23 = vrot.slane %v2020_v12, 5  ;;  %v2370_v24 = vshrl.u32 %v2300_v8, 16  ;;  %v2848_v9 = vld [vmem:[#allocation2 + $0x58] sm:$0x1f] }
  0x69   : > { %v2015_v26 = vor.u32 %v2014_v15, %v2011_v10  ;;  %v2364_v28 = vrot.slane %v2362_v18, 3  ;;  %v2367_v29 = vrot.slane %v2365_v19, 4  ;;  %v2373_v27 = vshll.u32 %v2300_v8, 16  ;;  %v841_v10 = vld [vmem:[#allocation2 + $0x50] sm:$0xf0] }
  0x6a   : > { %1866 = vrot.lane.b32.xlu1 %v1823_v59, %s7091_s9  ;;  %v2007_v31 = vsel %vm1041_vm3, %v1998_v14, %v2006_v21  ;;  %v2023_v32 = vor.u32 %v2022_v23, %v2019_v22  ;;  %v2372_v33 = vrot.slane %v2370_v24, 3  ;;  %v2379_v34 = vshrl.u32 %v2301_v13, 16  ;;  %v840_v59 = vld [vmem:[#allocation2 + $0x48] sm:$0xf]  ;;  %v842_v15 = vld [vmem:[#allocation2 + $0x58] sm:$0xf] }
  0x6b   : > { %v2368_v37 = vor.u32 %v2367_v29, %v2364_v28  ;;  %v2375_v38 = vrot.slane %v2373_v27, 4  ;;  %v2382_v39 = vshll.u32 %v2301_v13, 16  ;;  %v2387_v40 = vshrl.u32 %v2302_v20, 16  ;;  %v1017_v22 = vld [vmem:[#allocation2 + $0x40] sm:$0xf0] }
  0x6c   : > { %2233 = vrot.lane.b32.xlu0 %v2007_v31, %s7094_s12  ;;  %v2024_v42 = vsel %vm1041_vm3, %v2015_v26, %v2023_v32  ;;  %v2381_v43 = vrot.slane %v2379_v34, 3  ;;  %v2390_v44 = vshll.u32 %v2302_v20, 16  ;;  %v2734_v45 = vrot.slane %v2668_v25, 4  ;;  %v1018_v28 = vld [vmem:[#allocation2 + $0x48] sm:$0x1f] }
  0x6d   : > { %v2376_v47 = vor.u32 %v2375_v38, %v2372_v33  ;;  %v2384_v48 = vrot.slane %v2382_v39, 4  ;;  %v2389_v49 = vrot.slane %v2387_v40, 3  ;;  %v2735_v51 = vrot.slane %v2669_v30, 4 }
  0x6e   : > { %2235 = vrot.lane.b32.xlu1 %v2024_v42, %s7094_s12  ;;  %v2392_v53 = vrot.slane %v2390_v44, 4  ;;  %v2737_v54 = vrot.slane %v2670_v35, 4  ;;  %v2738_v55 = vrot.slane %v2671_v36, 4  ;;  %v2908_v58 = vshrl.u32 %v2845_v41, 16  ;;  %v1019_v36 = vld [vmem:[#allocation2 + $0x50] sm:$0xf0] }
  0x6f   : > { %v2377_v60 = vsel %vm526_vm5, %v2368_v37, %v2376_v47  ;;  %v2385_v61 = vor.u32 %v2384_v48, %v2381_v43  ;;  %v2736_v62 = vsel %vm895_vm4, %v2734_v45, %v2735_v51  ;;  %v2911_v63 = vshll.u32 %v2845_v41, 16  ;;  %v1020_v41 = vld [vmem:[#allocation2 + $0x58] sm:$0x1f] }
  0x70   : > { %2603 = vrot.lane.b32.xlu0 %v2377_v60, %s7095_s13  ;;  %v2393_v3 = vor.u32 %v2392_v53, %v2389_v49  ;;  %v2739_v4 = vsel %vm895_vm4, %v2737_v54, %v2738_v55  ;;  %v2910_v7 = vrot.slane %v2908_v58, 4  ;;  %v2916_v8 = vshrl.u32 %v2846_v46, 16  ;;  %v1388_v58 = vld [vmem:[#allocation2 + $0x58] sm:$0xf] }
  0x71   : > { %v2913_v11 = vrot.slane %v2911_v63, 5  ;;  %v2919_v12 = vshll.u32 %v2846_v46, 16  ;;  %v908_v13 = vrot.slane %v839_v52, 4  ;;  %v909_v14 = vrot.slane %v840_v59, 4  ;;  %v1387_v46 = vld [vmem:[#allocation2 + $0x50] sm:$0xf8] }
  0x72   : > { %v2394_v18 = vsel %vm526_vm5, %v2385_v61, %v2393_v3  ;;  %v2918_v19 = vrot.slane %v2916_v8, 4  ;;  %v2925_v20 = vshrl.u32 %v2847_v2, 16  ;;  %v2928_v21 = vshll.u32 %v2847_v2, 16  ;;  %v1389_v63 = vld [vmem:[#allocation2 + $0x60] sm:$0xf8] }
  0x73   : > { %2605 = vrot.lane.b32.xlu1 %v2394_v18, %s7095_s13  ;;  %v2914_v23 = vor.u32 %v2913_v11, %v2910_v7  ;;  %v2921_v24 = vrot.slane %v2919_v12, 5  ;;  %v910_v25 = vsel %vm895_vm4, %v908_v13, %v909_v14  ;;  %v2933_v26 = vshrl.u32 %v2848_v9, 16  ;;  %v1390_v8 = vld [vmem:[#allocation2 + $0x68] sm:$0xf]  ;;  %v1756_v13 = vld [vmem:[#allocation2 + $0x50] sm:$0xf0] }
  0x74   : > { %2780 = vrot.lane.b32.xlu0 %v2736_v62, %s7092_s10  ;;  %v2927_v29 = vrot.slane %v2925_v20, 4  ;;  %v2930_v27 = vrot.slane %v2928_v21, 5  ;;  %v2936_v30 = vshll.u32 %v2848_v9, 16  ;;  %v911_v31 = vrot.slane %v841_v10, 4  ;;  %v1757_v20 = vld [vmem:[#allocation2 + $0x58] sm:$0xf] }
  0x75   : > { %v2922_v32 = vor.u32 %v2921_v24, %v2918_v19  ;;  %v2935_v33 = vrot.slane %v2933_v26, 4  ;;  %v912_v34 = vrot.slane %v842_v15, 4  ;;  %v1111_v35 = vshrl.u32 %v1017_v22, 16  ;;  %v1758_v21 = vld [vmem:[#allocation2 + $0x60] sm:$0xf0] }
  0x76   : > { %v2931_v37 = vor.u32 %v2930_v27, %v2927_v29  ;;  %v2938_v38 = vrot.slane %v2936_v30, 5  ;;  %v1114_v39 = vshll.u32 %v1017_v22, 16  ;;  %v1119_v40 = vshrl.u32 %v1018_v28, 16  ;;  %v1759_v26 = vld [vmem:[#allocation2 + $0x68] sm:$0xf] }
  0x77   : > { %2782 = vrot.lane.b32.xlu1 %v2739_v4, %s7092_s10  ;;  %v2923_v42 = vsel %vm1041_vm3, %v2914_v23, %v2922_v32  ;;  %v913_v43 = vsel %vm895_vm4, %v911_v31, %v912_v34  ;;  %v1113_v44 = vrot.slane %v1111_v35, 4  ;;  %v1122_v45 = vshll.u32 %v1018_v28, 16  ;;  %v1933_v31 = vld [vmem:[#allocation2 + $0x50] sm:$0xf0] }
  0x78   : > { %3149 = vrot.lane.b32.xlu0 %v2923_v42, %s7096_s14  ;;  %v2939_v47 = vor.u32 %v2938_v38, %v2935_v33  ;;  %v1116_v48 = vrot.slane %v1114_v39, 5  ;;  %v1121_v49 = vrot.slane %v1119_v40, 4  ;;  %v1128_v51 = vshrl.u32 %v1019_v36, 16 }
  0x79   : > { %v1124_v52 = vrot.slane %v1122_v45, 5  ;;  %v1131_v53 = vshll.u32 %v1019_v36, 16  ;;  %v1136_v54 = vshrl.u32 %v1020_v41, 16  ;;  %v1139_v55 = vshll.u32 %v1020_v41, 16  ;;  %v1934_v36 = vld [vmem:[#allocation2 + $0x58] sm:$0x1f] }
  0x7a   : > { %v2940_v59 = vsel %vm1041_vm3, %v2931_v37, %v2939_v47  ;;  %v1117_v60 = vor.u32 %v1116_v48, %v1113_v44  ;;  %v1130_v61 = vrot.slane %v1128_v51, 4  ;;  %v1480_v62 = vshrl.u32 %v1387_v46, 16  ;;  %v1935_v41 = vld [vmem:[#allocation2 + $0x60] sm:$0xf0]  ;;  %v1936_v51 = vld [vmem:[#allocation2 + $0x68] sm:$0x1f] }
  0x7b   : > { %952 = vrot.lane.b32.xlu1 %v910_v25, %s7089_s30  ;;  %v1125_v2 = vor.u32 %v1124_v52, %v1121_v49  ;;  %v1133_v3 = vrot.slane %v1131_v53, 5  ;;  %v1138_v4 = vrot.slane %v1136_v54, 4  ;;  %v1141_v7 = vrot.slane %v1139_v55, 5 }
  0x7c   : > { %3151 = vrot.lane.b32.xlu0 %v2940_v59, %s7096_s14  ;;  %v1482_v9 = vrot.slane %v1480_v62, 3  ;;  %v1483_v10 = vshll.u32 %v1387_v46, 16  ;;  %v1488_v11 = vshrl.u32 %v1388_v58, 16  ;;  %v1491_v12 = vshll.u32 %v1388_v58, 16  ;;  %v2303_v58 = vld [vmem:[#allocation2 + $0x60] sm:$0xf8] }
  0x7d   : > { %v1126_v14 = vsel %vm1041_vm3, %v1117_v60, %v1125_v2  ;;  %v1134_v15 = vor.u32 %v1133_v3, %v1130_v61  ;;  %v1142_v18 = vor.u32 %v1141_v7, %v1138_v4  ;;  %v1497_v19 = vshrl.u32 %v1389_v63, 16 }
  0x7e   : > { %v1485_v22 = vrot.slane %v1483_v10, 4  ;;  %v1490_v23 = vrot.slane %v1488_v11, 3  ;;  %v1493_v24 = vrot.slane %v1491_v12, 4  ;;  %v1500_v25 = vshll.u32 %v1389_v63, 16  ;;  %v2304_v63 = vld [vmem:[#allocation2 + $0x68] sm:$0xf] }
  0x7f   : > { %954 = vrot.lane.b32.xlu1 %v913_v43, %s7089_s30  ;;  %v1143_v28 = vsel %vm1041_vm3, %v1134_v15, %v1142_v18  ;;  %v1499_v29 = vrot.slane %v1497_v19, 3  ;;  %v1505_v27 = vshrl.u32 %v1390_v8, 16  ;;  %v1508_v30 = vshll.u32 %v1390_v8, 16  ;;  %v2305_v8 = vld [vmem:[#allocation2 + $0x70] sm:$0xf8] }
  0x80   : > { %1322 = vrot.lane.b32.xlu0 %v1126_v14, %s7090_s8  ;;  %v1486_v32 = vor.u32 %v1485_v22, %v1482_v9  ;;  %v1494_v33 = vor.u32 %v1493_v24, %v1490_v23  ;;  %v1502_v34 = vrot.slane %v1500_v25, 4  ;;  %v1824_v35 = vrot.slane %v1756_v13, 4  ;;  %v2306_v13 = vld [vmem:[#allocation2 + $0x78] sm:$0xf]  ;;  %v2673_v25 = vld [vmem:[#allocation2 + $0x68] sm:$0xf] }
  0x81   : > { %v1507_v37 = vrot.slane %v1505_v27, 3  ;;  %v1510_v38 = vrot.slane %v1508_v30, 4  ;;  %v1825_v39 = vrot.slane %v1757_v20, 4  ;;  %v1827_v40 = vrot.slane %v1758_v21, 4  ;;  %v2672_v20 = vld [vmem:[#allocation2 + $0x60] sm:$0xf0] }
  0x82   : > { %v1495_v42 = vsel %vm526_vm5, %v1486_v32, %v1494_v33  ;;  %v1503_v43 = vor.u32 %v1502_v34, %v1499_v29  ;;  %v1828_v44 = vrot.slane %v1759_v26, 4  ;;  %v2026_v45 = vshrl.u32 %v1933_v31, 16  ;;  %v2674_v30 = vld [vmem:[#allocation2 + $0x70] sm:$0xf0] }
  0x83   : > { %1324 = vrot.lane.b32.xlu1 %v1143_v28, %s7090_s8  ;;  %v1511_v46 = vor.u32 %v1510_v38, %v1507_v37  ;;  %v1826_v47 = vsel %vm895_vm4, %v1824_v35, %v1825_v39  ;;  %v2029_v48 = vshll.u32 %v1933_v31, 16  ;;  %v2034_v49 = vshrl.u32 %v1934_v36, 16  ;;  %v2675_v31 = vld [vmem:[#allocation2 + $0x78] sm:$0xf] }
  0x84   : > { %1691 = vrot.lane.b32.xlu0 %v1495_v42, %s7093_s11  ;;  %v1829_v52 = vsel %vm895_vm4, %v1827_v40, %v1828_v44  ;;  %v2028_v53 = vrot.slane %v2026_v45, 4  ;;  %v2037_v54 = vshll.u32 %v1934_v36, 16  ;;  %v2043_v55 = vshrl.u32 %v1935_v41, 16  ;;  %v2849_v36 = vld [vmem:[#allocation2 + $0x60] sm:$0xf0] }
  0x85   : > { %v1512_v59 = vsel %vm526_vm5, %v1503_v43, %v1511_v46  ;;  %v2031_v60 = vrot.slane %v2029_v48, 5  ;;  %v2036_v61 = vrot.slane %v2034_v49, 4  ;;  %v2046_v62 = vshll.u32 %v1935_v41, 16  ;;  %v2850_v41 = vld [vmem:[#allocation2 + $0x68] sm:$0x1f] }
  0x86   : > { %v2039_v2 = vrot.slane %v2037_v54, 5  ;;  %v2045_v3 = vrot.slane %v2043_v55, 4  ;;  %v2051_v4 = vshrl.u32 %v1936_v51, 16  ;;  %v2054_v7 = vshll.u32 %v1936_v51, 16  ;;  %v843_v46 = vld [vmem:[#allocation2 + $0x60] sm:$0xf0] }
  0x87   : > { %1693 = vrot.lane.b32.xlu1 %v1512_v59, %s7093_s11  ;;  %v2032_v9 = vor.u32 %v2031_v60, %v2028_v53  ;;  %v2048_v10 = vrot.slane %v2046_v62, 5  ;;  %v2396_v11 = vshrl.u32 %v2303_v58, 16  ;;  %v2399_v12 = vshll.u32 %v2303_v58, 16  ;;  %v2851_v59 = vld [vmem:[#allocation2 + $0x70] sm:$0xf0] }
  0x88   : > { %1868 = vrot.lane.b32.xlu0 %v1826_v47, %s7091_s9  ;;  %v2040_v14 = vor.u32 %v2039_v2, %v2036_v61  ;;  %v2053_v15 = vrot.slane %v2051_v4, 4  ;;  %v2056_v18 = vrot.slane %v2054_v7, 5  ;;  %v2404_v19 = vshrl.u32 %v2304_v63, 16  ;;  %v2852_v2 = vld [vmem:[#allocation2 + $0x78] sm:$0x1f] }
  0x89   : > { %v2049_v21 = vor.u32 %v2048_v10, %v2045_v3  ;;  %v2398_v22 = vrot.slane %v2396_v11, 3  ;;  %v2401_v23 = vrot.slane %v2399_v12, 4  ;;  %v2407_v24 = vshll.u32 %v2304_v63, 16  ;;  %v845_v3 = vld [vmem:[#allocation2 + $0x70] sm:$0xf0] }
  0x8a   : > { %v2041_v26 = vsel %vm1041_vm3, %v2032_v9, %v2040_v14  ;;  %v2057_v28 = vor.u32 %v2056_v18, %v2053_v15  ;;  %v2406_v29 = vrot.slane %v2404_v19, 3  ;;  %v2413_v27 = vshrl.u32 %v2305_v8, 16  ;;  %v846_v10 = vld [vmem:[#allocation2 + $0x78] sm:$0xf]  ;;  %v1021_v15 = vld [vmem:[#allocation2 + $0x60] sm:$0xf0] }
  0x8b   : > { %1870 = vrot.lane.b32.xlu1 %v1829_v52, %s7091_s9  ;;  %v2402_v32 = vor.u32 %v2401_v23, %v2398_v22  ;;  %v2409_v33 = vrot.slane %v2407_v24, 4  ;;  %v2416_v34 = vshll.u32 %v2305_v8, 16  ;;  %v2421_v35 = vshrl.u32 %v2306_v13, 16  ;;  %v844_v52 = vld [vmem:[#allocation2 + $0x68] sm:$0xf] }
  0x8c   : > { %2237 = vrot.lane.b32.xlu0 %v2041_v26, %s7094_s12  ;;  %v2058_v37 = vsel %vm1041_vm3, %v2049_v21, %v2057_v28  ;;  %v2415_v38 = vrot.slane %v2413_v27, 3  ;;  %v2424_v39 = vshll.u32 %v2306_v13, 16  ;;  %v2740_v40 = vrot.slane %v2672_v20, 4  ;;  %v1022_v22 = vld [vmem:[#allocation2 + $0x68] sm:$0x1f] }
  0x8d   : > { %v2410_v42 = vor.u32 %v2409_v33, %v2406_v29  ;;  %v2418_v43 = vrot.slane %v2416_v34, 4  ;;  %v2423_v44 = vrot.slane %v2421_v35, 3  ;;  %v2741_v45 = vrot.slane %v2673_v25, 4 }
  0x8e   : > { %v2426_v47 = vrot.slane %v2424_v39, 4  ;;  %v2743_v48 = vrot.slane %v2674_v30, 4  ;;  %v2744_v49 = vrot.slane %v2675_v31, 4  ;;  %v2942_v51 = vshrl.u32 %v2849_v36, 16  ;;  %v1023_v31 = vld [vmem:[#allocation2 + $0x70] sm:$0xf0] }
  0x8f   : > { %2239 = vrot.lane.b32.xlu1 %v2058_v37, %s7094_s12  ;;  %v2411_v53 = vsel %vm526_vm5, %v2402_v32, %v2410_v42  ;;  %v2419_v54 = vor.u32 %v2418_v43, %v2415_v38  ;;  %v2742_v55 = vsel %vm895_vm4, %v2740_v40, %v2741_v45  ;;  %v2945_v58 = vshll.u32 %v2849_v36, 16  ;;  %v1024_v36 = vld [vmem:[#allocation2 + $0x78] sm:$0x1f] }
  0x90   : > { %2607 = vrot.lane.b32.xlu0 %v2411_v53, %s7095_s13  ;;  %v2427_v60 = vor.u32 %v2426_v47, %v2423_v44  ;;  %v2745_v61 = vsel %vm895_vm4, %v2743_v48, %v2744_v49  ;;  %v2944_v62 = vrot.slane %v2942_v51, 4  ;;  %v2950_v63 = vshrl.u32 %v2850_v41, 16  ;;  %v1392_v51 = vld [vmem:[#allocation2 + $0x78] sm:$0xf] }
  0x91   : > { %v2947_v4 = vrot.slane %v2945_v58, 5  ;;  %v2953_v7 = vshll.u32 %v2850_v41, 16  ;;  %v914_v8 = vrot.slane %v843_v46, 4  ;;  %v915_v9 = vrot.slane %v844_v52, 4  ;;  %v1391_v41 = vld [vmem:[#allocation2 + $0x70] sm:$0xf8] }
  0x92   : > { %v2428_v11 = vsel %vm526_vm5, %v2419_v54, %v2427_v60  ;;  %v2952_v12 = vrot.slane %v2950_v63, 4  ;;  %v2959_v13 = vshrl.u32 %v2851_v59, 16  ;;  %v2962_v14 = vshll.u32 %v2851_v59, 16  ;;  %v1393_v58 = vld [vmem:[#allocation2 + $0x80] sm:$0xf8] }
  0x93   : > { %2609 = vrot.lane.b32.xlu1 %v2428_v11, %s7095_s13  ;;  %v2948_v18 = vor.u32 %v2947_v4, %v2944_v62  ;;  %v2955_v19 = vrot.slane %v2953_v7, 5  ;;  %v916_v20 = vsel %vm895_vm4, %v914_v8, %v915_v9  ;;  %v2967_v21 = vshrl.u32 %v2852_v2, 16  ;;  %v1394_v63 = vld [vmem:[#allocation2 + $0x88] sm:$0xf]  ;;  %v1760_v8 = vld [vmem:[#allocation2 + $0x70] sm:$0xf0] }
  0x94   : > { %2784 = vrot.lane.b32.xlu0 %v2742_v55, %s7092_s10  ;;  %v2961_v23 = vrot.slane %v2959_v13, 4  ;;  %v2964_v24 = vrot.slane %v2962_v14, 5  ;;  %v2970_v25 = vshll.u32 %v2852_v2, 16  ;;  %v917_v26 = vrot.slane %v845_v3, 4  ;;  %v1761_v13 = vld [vmem:[#allocation2 + $0x78] sm:$0xf] }
  0x95   : > { %v2956_v28 = vor.u32 %v2955_v19, %v2952_v12  ;;  %v2969_v29 = vrot.slane %v2967_v21, 4  ;;  %v918_v27 = vrot.slane %v846_v10, 4  ;;  %v1145_v30 = vshrl.u32 %v1021_v15, 16  ;;  %v1762_v14 = vld [vmem:[#allocation2 + $0x80] sm:$0xf0] }
  0x96   : > { %v2965_v32 = vor.u32 %v2964_v24, %v2961_v23  ;;  %v2972_v33 = vrot.slane %v2970_v25, 5  ;;  %v1148_v34 = vshll.u32 %v1021_v15, 16  ;;  %v1153_v35 = vshrl.u32 %v1022_v22, 16  ;;  %v1763_v21 = vld [vmem:[#allocation2 + $0x88] sm:$0xf] }
  0x97   : > { %2786 = vrot.lane.b32.xlu1 %v2745_v61, %s7092_s10  ;;  %v2957_v37 = vsel %vm1041_vm3, %v2948_v18, %v2956_v28  ;;  %v919_v38 = vsel %vm895_vm4, %v917_v26, %v918_v27  ;;  %v1147_v39 = vrot.slane %v1145_v30, 4  ;;  %v1156_v40 = vshll.u32 %v1022_v22, 16  ;;  %v1937_v26 = vld [vmem:[#allocation2 + $0x70] sm:$0xf0] }
  0x98   : > { %3153 = vrot.lane.b32.xlu0 %v2957_v37, %s7096_s14  ;;  %v2973_v42 = vor.u32 %v2972_v33, %v2969_v29  ;;  %v1150_v43 = vrot.slane %v1148_v34, 5  ;;  %v1155_v44 = vrot.slane %v1153_v35, 4  ;;  %v1162_v45 = vshrl.u32 %v1023_v31, 16 }
  0x99   : > { %v1158_v46 = vrot.slane %v1156_v40, 5  ;;  %v1165_v47 = vshll.u32 %v1023_v31, 16  ;;  %v1170_v48 = vshrl.u32 %v1024_v36, 16  ;;  %v1173_v49 = vshll.u32 %v1024_v36, 16  ;;  %v1938_v31 = vld [vmem:[#allocation2 + $0x78] sm:$0x1f] }
  0x9a   : > { %v2974_v52 = vsel %vm1041_vm3, %v2965_v32, %v2973_v42  ;;  %v1151_v53 = vor.u32 %v1150_v43, %v1147_v39  ;;  %v1164_v54 = vrot.slane %v1162_v45, 4  ;;  %v1514_v55 = vshrl.u32 %v1391_v41, 16  ;;  %v1939_v36 = vld [vmem:[#allocation2 + $0x80] sm:$0xf0]  ;;  %v1940_v45 = vld [vmem:[#allocation2 + $0x88] sm:$0x1f] }
  0x9b   : > { %956 = vrot.lane.b32.xlu1 %v916_v20, %s7089_s30  ;;  %v1159_v59 = vor.u32 %v1158_v46, %v1155_v44  ;;  %v1167_v60 = vrot.slane %v1165_v47, 5  ;;  %v1172_v61 = vrot.slane %v1170_v48, 4  ;;  %v1175_v62 = vrot.slane %v1173_v49, 5 }
  0x9c   : > { %3155 = vrot.lane.b32.xlu0 %v2974_v52, %s7096_s14  ;;  %v1516_v2 = vrot.slane %v1514_v55, 3  ;;  %v1517_v3 = vshll.u32 %v1391_v41, 16  ;;  %v1522_v4 = vshrl.u32 %v1392_v51, 16  ;;  %v1525_v7 = vshll.u32 %v1392_v51, 16  ;;  %v2307_v51 = vld [vmem:[#allocation2 + $0x80] sm:$0xf8] }
  0x9d   : > { %v1160_v9 = vsel %vm1041_vm3, %v1151_v53, %v1159_v59  ;;  %v1168_v10 = vor.u32 %v1167_v60, %v1164_v54  ;;  %v1176_v11 = vor.u32 %v1175_v62, %v1172_v61  ;;  %v1531_v12 = vshrl.u32 %v1393_v58, 16 }
  0x9e   : > { %v1519_v15 = vrot.slane %v1517_v3, 4  ;;  %v1524_v18 = vrot.slane %v1522_v4, 3  ;;  %v1527_v19 = vrot.slane %v1525_v7, 4  ;;  %v1534_v20 = vshll.u32 %v1393_v58, 16 }
  0x9f   : > { %958 = vrot.lane.b32.xlu1 %v919_v38, %s7089_s30  ;;  %v1177_v22 = vsel %vm1041_vm3, %v1168_v10, %v1176_v11  ;;  %v1533_v23 = vrot.slane %v1531_v12, 3  ;;  %v1539_v24 = vshrl.u32 %v1394_v63, 16  ;;  %v1542_v25 = vshll.u32 %v1394_v63, 16  ;;  %v2308_v63 = vld [vmem:[#allocation2 + $0x88] sm:$0xf] }
  0xa0   : > { %1326 = vrot.lane.b32.xlu0 %v1160_v9, %s7090_s8  ;;  %v1520_v28 = vor.u32 %v1519_v15, %v1516_v2  ;;  %v1528_v29 = vor.u32 %v1527_v19, %v1524_v18  ;;  %v1536_v27 = vrot.slane %v1534_v20, 4  ;;  %v1830_v30 = vrot.slane %v1760_v8, 4  ;;  %v497_v12 = vld [vmem:[#allocation2 + $0x18] sm:$0xf]  ;;  %v496_v20 = vld [vmem:[#allocation2 + $0x10] sm:$0xf8] }
  0xa1   : > { %v1541_v32 = vrot.slane %v1539_v24, 3  ;;  %v1544_v33 = vrot.slane %v1542_v25, 4  ;;  %v1831_v34 = vrot.slane %v1761_v13, 4  ;;  %v1833_v35 = vrot.slane %v1762_v14, 4  ;;  %v945_v14 = vpop.permute.xlu0 %944  ;;  %v2677_v24 = vld [vmem:[#allocation2 + $0x88] sm:$0xf] }
  0xa2   : > { %v1529_v37 = vsel %vm526_vm5, %v1520_v28, %v1528_v29  ;;  %v1537_v38 = vor.u32 %v1536_v27, %v1533_v23  ;;  %v1834_v39 = vrot.slane %v1763_v21, 4  ;;  %v2060_v40 = vshrl.u32 %v1937_v26, 16  ;;  %v2676_v23 = vld [vmem:[#allocation2 + $0x80] sm:$0xf0] }
  0xa3   : > { %1328 = vrot.lane.b32.xlu1 %v1177_v22, %s7090_s8  ;;  %v1545_v41 = vor.u32 %v1544_v33, %v1541_v32  ;;  %v1832_v42 = vsel %vm895_vm4, %v1830_v30, %v1831_v34  ;;  %v2063_v43 = vshll.u32 %v1937_v26, 16  ;;  %v2068_v44 = vshrl.u32 %v1938_v31, 16  ;;  %v2853_v29 = vld [vmem:[#allocation2 + $0x80] sm:$0xf0] }
  0xa4   : > { %1695 = vrot.lane.b32.xlu0 %v1529_v37, %s7093_s11  ;;  %v1835_v46 = vsel %vm895_vm4, %v1833_v35, %v1834_v39  ;;  %v2062_v47 = vrot.slane %v2060_v40, 4  ;;  %v2071_v48 = vshll.u32 %v1938_v31, 16  ;;  %v2077_v49 = vshrl.u32 %v1939_v36, 16  ;;  %v847_v37 = vld [vmem:[#allocation2 + $0x80] sm:$0xf0] }
  0xa5   : > { %v1546_v52 = vsel %vm526_vm5, %v1537_v38, %v1545_v41  ;;  %v2065_v53 = vrot.slane %v2063_v43, 5  ;;  %v2070_v54 = vrot.slane %v2068_v44, 4  ;;  %v2080_v55 = vshll.u32 %v1939_v36, 16  ;;  %v848_v43 = vld [vmem:[#allocation2 + $0x88] sm:$0xf] }
  0xa6   : > { %v2073_v58 = vrot.slane %v2071_v48, 5  ;;  %v2079_v59 = vrot.slane %v2077_v49, 4  ;;  %v2085_v60 = vshrl.u32 %v1940_v45, 16  ;;  %v2088_v61 = vshll.u32 %v1940_v45, 16 }
  0xa7   : > { %1697 = vrot.lane.b32.xlu1 %v1546_v52, %s7093_s11  ;;  %v2066_v2 = vor.u32 %v2065_v53, %v2062_v47  ;;  %v2082_v3 = vrot.slane %v2080_v55, 5  ;;  %v533_v4 = vrot.slane %v531_v6, 4  ;;  %v2430_v7 = vshrl.u32 %v2307_v51, 16  ;;  %v7512_v47 = vld [vmem:[#allocation2 + $0x80] sm:$0xf0] }
  0xa8   : > { %1872 = vrot.lane.b32.xlu0 %v1832_v42, %s7091_s9  ;;  %v2074_v8 = vor.u32 %v2073_v58, %v2070_v54  ;;  %v2087_v9 = vrot.slane %v2085_v60, 4  ;;  %v2090_v10 = vrot.slane %v2088_v61, 5  ;;  %v2433_v11 = vshll.u32 %v2307_v51, 16 }
  0xa9   : > { %v2083_v13 = vor.u32 %v2082_v3, %v2079_v59  ;;  %v534_v15 = vor.u32 %v533_v4, %v7368_v5  ;;  %v2432_v18 = vrot.slane %v2430_v7, 3  ;;  %v2438_v19 = vshrl.u32 %v2308_v63, 16  ;;  %v7528_v3 = vld [vmem:[%s7317_s29 + $0x98] sm:$0xff] }
  0xaa   : > { %v2075_v21 = vsel %vm1041_vm3, %v2066_v2, %v2074_v8  ;;  %v2091_v22 = vor.u32 %v2090_v10, %v2087_v9  ;;  %v2435_v50 = vrot.slane %v2433_v11, 4  ;;  %v2441_v6 = vshll.u32 %v2308_v63, 16  ;;  %v7525_v2 = vld [vmem:[%s7317_s29 + $0x90] sm:$0xff] }
  0xab   : > { %v7486_v62 = vpop.permute.xlu1 %1314  ;;  %1874 = vrot.lane.b32.xlu1 %v1835_v46, %s7091_s9  ;;  %v543_v25 = vsel %vm526_vm5, %v534_v15, %v542_v16  ;;  %v2440_v26 = vrot.slane %v2438_v19, 3  ;;  %v437_v5 = vrot.slane %v405_v17, 4  ;;  %v553_v28 = vshrl.u32 %v497_v12, 16 }
  0xac   : > { %2241 = vrot.lane.b32.xlu0 %v2075_v21, %s7094_s12  ;;  %v2092_v27 = vsel %vm1041_vm3, %v2083_v13, %v2091_v22  ;;  %815 = vst.msk [vmem:[#allocation4] sm:$0xff] %vm280_vm0, %v543_v25  ;;  %v2436_v30 = vor.u32 %v2435_v50, %v2432_v18  ;;  %v2443_v31 = vrot.slane %v2441_v6, 4  ;;  %v556_v56 = vshll.u32 %v497_v12, 16 }
  0xad   : > { %993 = vst.msk [vmem:[#allocation4] sm:$0xff] %vm992_vm6, %v945_v14  ;;  %v555_v0 = vrot.slane %v553_v28, 3  ;;  %v545_v1 = vshrl.u32 %v496_v20, 16  ;;  %v548_v16 = vshll.u32 %v496_v20, 16  ;;  %v2746_v17 = vrot.slane %v2676_v23, 4 }
  0xae   : > { %478 = vst.msk [vmem:[#allocation2 + $0x90] sm:$0xf0] %vm305_vm2, %v437_v5  ;;  %v2444_v33 = vor.u32 %v2443_v31, %v2440_v26  ;;  %v558_v34 = vrot.slane %v556_v56, 4  ;;  %v2747_v35 = vrot.slane %v2677_v24, 4  ;;  %v2976_v36 = vshrl.u32 %v2853_v29, 16 }
  0xaf   : > { %v7505_v32 = vpop.permute.xlu1 %1862  ;;  %479 = vst.msk [vmem:[#allocation2 + $0x98] sm:$0xf] %vm286_vm1, %v437_v5  ;;  %2243 = vrot.lane.b32.xlu1 %v2092_v27, %s7094_s12  ;;  %v947_v38 = vpop.permute.xlu0 %946  ;;  %v547_v39 = vrot.slane %v545_v1, 3  ;;  %v550_v40 = vrot.slane %v548_v16, 4  ;;  %v2979_v41 = vshll.u32 %v2853_v29, 16  ;;  %v2984_v42 = vshrl.u32 %v2854_v57, 16 }
  0xb0   : > { %v2445_v44 = vsel %vm526_vm5, %v2436_v30, %v2444_v33  ;;  %v559_v45 = vor.u32 %v558_v34, %v555_v0  ;;  %v2978_v46 = vrot.slane %v2976_v36, 4  ;;  %v2748_v49 = vsel %vm895_vm4, %v2746_v17, %v2747_v35  ;;  %1363 = vst.msk [vmem:[#allocation4] sm:$0xff] %vm1362_vm7, %v7486_v62  ;;  %v1026_v16 = vld [vmem:[#allocation2 + $0x88] sm:$0x1f] }
  0xb1   : > { %2611 = vrot.lane.b32.xlu0 %v2445_v44, %s7095_s13  ;;  %v551_v48 = vor.u32 %v550_v40, %v547_v39  ;;  %v2981_v52 = vrot.slane %v2979_v41, 5  ;;  %v2987_v53 = vshll.u32 %v2854_v57, 16  ;;  %v2986_v54 = vrot.slane %v2984_v42, 4 }
  0xb2   : > { %v920_v55 = vrot.slane %v847_v37, 4  ;;  %v921_v58 = vrot.slane %v848_v43, 4  ;;  %v1179_v63 = vshrl.u32 %v7512_v47, 16  ;;  %v406_v22 = vpack.c.bf16 %v7528_v3, %v7525_v2 }
  0xb3   : > { %v7516_v51 = vpop.permute.xlu1 %2778  ;;  %v560_v59 = vsel %vm526_vm5, %v551_v48, %v559_v45  ;;  %v7519_v60 = vpop.permute.xlu0 %1860  ;;  %v2989_v61 = vrot.slane %v2987_v53, 5  ;;  %v2982_v9 = vor.u32 %v2981_v52, %v2978_v46  ;;  %v1182_v46 = vshll.u32 %v7512_v47, 16 }
  0xb4   : > { %816 = vst.msk [vmem:[#allocation4 + $0x8] sm:$0xff] %vm280_vm0, %v560_v59  ;;  %v7532_v10 = vsel %vm895_vm4, %v920_v55, %v921_v58  ;;  %v1181_v42 = vrot.slane %v1179_v63, 4  ;;  %v1187_v48 = vshrl.u32 %v1026_v16, 16  ;;  %v1190_v52 = vshll.u32 %v1026_v16, 16 }
  0xb5   : > { %v2309_v4 = vld [vmem:[#allocation2 + $0x90] sm:$0xf8]  ;;  %994 = vst.msk [vmem:[#allocation4 + $0x8] sm:$0xff] %vm992_vm6, %v947_v38  ;;  %2788 = vrot.lane.b32.xlu0 %v2748_v49, %s7092_s10  ;;  %v2990_v19 = vor.u32 %v2989_v61, %v2986_v54  ;;  %v1184_v55 = vrot.slane %v1182_v46, 5 }
  0xb6   : > { %v2310_v7 = vld [vmem:[#allocation2 + $0x98] sm:$0xf]  ;;  %v2678_v8 = vld [vmem:[#allocation2 + $0x90] sm:$0xf0]  ;;  %v2447_v11 = vshrl.u32 %v2309_v4, 16  ;;  %v2450_v12 = vshll.u32 %v2309_v4, 16 }
  0xb7   : > { %v2455_v13 = vshrl.u32 %v2310_v7, 16  ;;  %v2458_v62 = vshll.u32 %v2310_v7, 16  ;;  %v2679_v14 = vld [vmem:[#allocation2 + $0x98] sm:$0xf]  ;;  %v2749_v15 = vrot.slane %v2678_v8, 4  ;;  %v1317_v25 = vpop.permute.xlu1 %1316  ;;  %v7538_v26 = vpop.permute.xlu0 %2776  ;;  %v2991_v29 = vsel %vm1041_vm3, %v2982_v9, %v2990_v19 }
  0xb8   : > { %v2750_v18 = vrot.slane %v2679_v14, 4  ;;  %v2855_v20 = vld [vmem:[#allocation2 + $0x90] sm:$0xf0]  ;;  %v2856_v21 = vld [vmem:[#allocation2 + $0x98] sm:$0x1f]  ;;  %v2449_v50 = vrot.slane %v2447_v11, 3  ;;  %v1185_v47 = vor.u32 %v1184_v55, %v1181_v42 }
  0xb9   : > { %v2452_v6 = vrot.slane %v2450_v12, 4  ;;  %v2457_v23 = vrot.slane %v2455_v13, 3  ;;  %v2460_v24 = vrot.slane %v2458_v62, 4  ;;  %v849_v5 = vld [vmem:[#allocation2 + $0x90] sm:$0xf0]  ;;  %1364 = vst.msk [vmem:[#allocation4 + $0x8] sm:$0xff] %vm1362_vm7, %v1317_v25  ;;  %3157 = vrot.lane.b32.xlu0 %v2991_v29, %s7096_s14 }
  0xba   : > { %v2751_v28 = vsel %vm895_vm4, %v2749_v15, %v2750_v18  ;;  %v2993_v27 = vshrl.u32 %v2855_v20, 16  ;;  %v2996_v30 = vshll.u32 %v2855_v20, 16  ;;  %v850_v31 = vld [vmem:[#allocation2 + $0x98] sm:$0xf]  ;;  %v3001_v0 = vshrl.u32 %v2856_v21, 16 }
  0xbb   : > { %v2453_v56 = vor.u32 %v2452_v6, %v2449_v50  ;;  %v2461_v57 = vor.u32 %v2460_v24, %v2457_v23  ;;  %v3004_v1 = vshll.u32 %v2856_v21, 16  ;;  %v923_v34 = vrot.slane %v849_v5, 4  ;;  %v1027_v36 = vld [vmem:[#allocation2 + $0x90] sm:$0xf0]  ;;  %v1686_v40 = vpop.permute.xlu1 %1685  ;;  %v1684_v41 = vpop.permute.xlu0 %1683  ;;  %v1028_v43 = vld [vmem:[#allocation2 + $0x98] sm:$0x1f] }
  0xbc   : > { %v2995_v17 = vrot.slane %v2993_v27, 4  ;;  %v2998_v33 = vrot.slane %v2996_v30, 5  ;;  %v924_v35 = vrot.slane %v850_v31, 4  ;;  %v3003_v38 = vrot.slane %v3001_v0, 4  ;;  %1733 = vst.msk [vmem:[#allocation4 + $0x8] sm:$0xff] %vm1731_vm8, %v1686_v40  ;;  %1732 = vst.msk [vmem:[#allocation4] sm:$0xff] %vm1731_vm8, %v1684_v41 }
  0xbd   : > { %v2462_v37 = vsel %vm526_vm5, %v2453_v56, %v2461_v57  ;;  %v3006_v39 = vrot.slane %v3004_v1, 5  ;;  %v1196_v53 = vshrl.u32 %v1027_v36, 16  ;;  %v1199_v54 = vshll.u32 %v1027_v36, 16  ;;  %v1395_v63 = vld [vmem:[#allocation2 + $0x90] sm:$0xf8]  ;;  %1910 = vst.msk [vmem:[#allocation4 + $0x8] sm:$0xff] %vm1908_vm9, %v7505_v32 }
  0xbe   : > { %2613 = vrot.lane.b32.xlu1 %v2462_v37, %s7095_s13  ;;  %v2999_v44 = vor.u32 %v2998_v33, %v2995_v17  ;;  %v7547_v45 = vsel %vm895_vm4, %v923_v34, %v924_v35  ;;  %v1189_v58 = vrot.slane %v1187_v48, 4  ;;  %v1204_v59 = vshrl.u32 %v1028_v43, 16  ;;  %v1396_v12 = vld [vmem:[#allocation2 + $0x98] sm:$0xf]  ;;  %1909 = vst.msk [vmem:[#allocation4] sm:$0xff] %vm1908_vm9, %v7519_v60 }
  0xbf   : > { %v3007_v49 = vor.u32 %v3006_v39, %v3003_v38  ;;  %v1207_v61 = vshll.u32 %v1028_v43, 16  ;;  %v1192_v7 = vrot.slane %v1190_v52, 5  ;;  %v1198_v8 = vrot.slane %v1196_v53, 4  ;;  %v2232_v11 = vpop.permute.xlu1 %2231  ;;  %v1764_v20 = vld [vmem:[#allocation2 + $0x90] sm:$0xf0]  ;;  %v7579_v39 = vld [vmem:[%s7317_s29 + $0xa0] sm:$0xff] }
  0xc0   : > { %v1201_v9 = vrot.slane %v1199_v54, 5  ;;  %v1206_v13 = vrot.slane %v1204_v59, 4  ;;  %v1548_v19 = vshrl.u32 %v1395_v63, 16  ;;  %v498_v21 = vld [vmem:[#allocation2 + $0x20] sm:$0xf8]  ;;  %2279 = vst.msk [vmem:[#allocation4 + $0x8] sm:$0xff] %vm2277_vm10, %v2232_v11 }
  0xc1   : > { %v3008_v4 = vsel %vm1041_vm3, %v2999_v44, %v3007_v49  ;;  %v1209_v62 = vrot.slane %v1207_v61, 5  ;;  %v1193_v14 = vor.u32 %v1192_v7, %v1189_v58  ;;  %v2230_v18 = vpop.permute.xlu0 %2229  ;;  %v1551_v6 = vshll.u32 %v1395_v63, 16  ;;  %v1765_v25 = vld [vmem:[#allocation2 + $0x98] sm:$0xf]  ;;  %v499_v29 = vld [vmem:[#allocation2 + $0x28] sm:$0xf] }
  0xc2   : > { %2790 = vrot.lane.b32.xlu1 %v2751_v28, %s7092_s10  ;;  %3159 = vrot.lane.b32.xlu0 %v3008_v4, %s7096_s14  ;;  %v1202_v15 = vor.u32 %v1201_v9, %v1198_v8  ;;  %2278 = vst.msk [vmem:[#allocation4] sm:$0xff] %vm2277_vm10, %v2230_v18  ;;  %v1556_v23 = vshrl.u32 %v1396_v12, 16  ;;  %v1559_v24 = vshll.u32 %v1396_v12, 16  ;;  %v1550_v28 = vrot.slane %v1548_v19, 3  ;;  %v1941_v57 = vld [vmem:[#allocation2 + $0x90] sm:$0xf0] }
  0xc3   : > { %v1210_v50 = vor.u32 %v1209_v62, %v1206_v13  ;;  %v1194_v5 = vsel %vm1041_vm3, %v1185_v47, %v1193_v14  ;;  %v438_v32 = vrot.slane %v406_v22, 4  ;;  %v2602_v60 = vpop.permute.xlu1 %2601  ;;  %v1553_v30 = vrot.slane %v1551_v6, 4  ;;  %v1942_v17 = vld [vmem:[#allocation2 + $0x98] sm:$0x1f]  ;;  %v7576_v38 = vld [vmem:[#allocation2 + $0x30] sm:$0xf8] }
  0xc4   : > { %v1558_v31 = vrot.slane %v1556_v23, 3  ;;  %v1561_v56 = vrot.slane %v1559_v24, 4  ;;  %2649 = vst.msk [vmem:[#allocation4 + $0x8] sm:$0xff] %vm2647_vm11, %v2602_v60  ;;  %v1836_v2 = vrot.slane %v1764_v20, 4  ;;  %v1837_v3 = vrot.slane %v1765_v25, 4  ;;  %v7589_v44 = vld [vmem:[%s7317_s29 + $0xa8] sm:$0xff] }
  0xc5   : > { %v1211_v27 = vsel %vm1041_vm3, %v1202_v15, %v1210_v50  ;;  %480 = vst.msk [vmem:[#allocation2 + $0xa0] sm:$0xf0] %vm305_vm2, %v438_v32  ;;  %v562_v1 = vshrl.u32 %v498_v21, 16  ;;  %v565_v16 = vshll.u32 %v498_v21, 16  ;;  %v570_v34 = vshrl.u32 %v499_v29, 16  ;;  %v7593_v53 = vld [vmem:[%s7317_s29 + $0xb0] sm:$0xff] }
  0xc6   : > { %960 = vrot.lane.b32.xlu1 %v7532_v10, %s7089_s30  ;;  %1330 = vrot.lane.b32.xlu0 %v1194_v5, %s7090_s8  ;;  %481 = vst.msk [vmem:[#allocation2 + $0xa8] sm:$0xf] %vm286_vm1, %v438_v32  ;;  %v1554_v10 = vor.u32 %v1553_v30, %v1550_v28  ;;  %v1562_v22 = vor.u32 %v1561_v56, %v1558_v31  ;;  %v2600_v0 = vpop.permute.xlu0 %2599  ;;  %v573_v35 = vshll.u32 %v499_v29, 16  ;;  %v2094_v37 = vshrl.u32 %v1941_v57, 16  ;;  %v7586_v43 = vld [vmem:[#allocation2 + $0x38] sm:$0xf] }
  0xc7   : > { %2826 = vst.msk [vmem:[#allocation4 + $0x8] sm:$0xff] %vm2824_vm12, %v7516_v51  ;;  %v1838_v33 = vsel %vm895_vm4, %v1836_v2, %v1837_v3  ;;  %v949_v36 = vpop.permute.xlu1 %948  ;;  %v564_v40 = vrot.slane %v562_v1, 3  ;;  %v567_v41 = vrot.slane %v565_v16, 4  ;;  %v2097_v42 = vshll.u32 %v1941_v57, 16 }
  0xc8   : > { %2648 = vst.msk [vmem:[#allocation4] sm:$0xff] %vm2647_vm11, %v2600_v0  ;;  %v1563_v51 = vsel %vm526_vm5, %v1554_v10, %v1562_v22  ;;  %v572_v46 = vrot.slane %v570_v34, 3  ;;  %v575_v48 = vrot.slane %v573_v35, 4  ;;  %v2096_v49 = vrot.slane %v2094_v37, 4 }
  0xc9   : > { %2825 = vst.msk [vmem:[#allocation4] sm:$0xff] %vm2824_vm12, %v7538_v26  ;;  %v2102_v52 = vshrl.u32 %v1942_v17, 16  ;;  %v568_v55 = vor.u32 %v567_v41, %v564_v40  ;;  %v2099_v26 = vrot.slane %v2097_v42, 5  ;;  %v2105_v58 = vshll.u32 %v1942_v17, 16 }
  0xca   : > { %962 = vrot.lane.b32.xlu1 %v7547_v45, %s7089_s30  ;;  %1699 = vrot.lane.b32.xlu0 %v1563_v51, %s7093_s11  ;;  %v7596_v45 = vld [vmem:[%s7317_s29 + $0xb8] sm:$0xff]  ;;  %v3146_v54 = vpop.permute.xlu0 %3145  ;;  %v579_v59 = vshrl.u32 %v7576_v38, 16  ;;  %v576_v61 = vor.u32 %v575_v48, %v572_v46  ;;  %v582_v4 = vshll.u32 %v7576_v38, 16  ;;  %v587_v7 = vshrl.u32 %v7586_v43, 16 }
  0xcb   : > { %3194 = vst.msk [vmem:[#allocation4] sm:$0xff] %vm3193_vm13, %v3146_v54  ;;  %v2104_v63 = vrot.slane %v2102_v52, 4  ;;  %v2100_v12 = vor.u32 %v2099_v26, %v2096_v49  ;;  %v407_v47 = vpack.c.bf16 %v7589_v44, %v7579_v39  ;;  %v408_v13 = vpack.c.bf16 %v7596_v45, %v7593_v53  ;;  %v7608_v20 = vpop.permute.xlu1 %950  ;;  %v7039_v39 = vld [vmem:[%s9015_s1 + $0x10] ss:$0 sps:$4 sm:$0x33]  }
  0xcc   : > { %v1397_v8 = vld [vmem:[#allocation2 + $0xa0] sm:$0xf8]  ;;  %v577_v6 = vsel %vm526_vm5, %v568_v55, %v576_v61  ;;  %v2107_v23 = vrot.slane %v2105_v58, 5  ;;  %v581_v17 = vrot.slane %v579_v59, 3  ;;  %v584_v38 = vrot.slane %v582_v4, 4  ;;  %7018 = vmatprep.subr.msk.bf16.mxu0 %vm3295_vm14, %v7039_v39 }
  0xcd   : > { %v1398_v9 = vld [vmem:[#allocation2 + $0xa8] sm:$0xf]  ;;  %v1766_v11 = vld [vmem:[#allocation2 + $0xa0] sm:$0xf0]  ;;  %v1565_v62 = vshrl.u32 %v1397_v8, 16  ;;  %v1568_v14 = vshll.u32 %v1397_v8, 16 }
  0xce   : > { %1332 = vrot.lane.b32.xlu1 %v1211_v27, %s7090_s8  ;;  %v1573_v15 = vshrl.u32 %v1398_v9, 16  ;;  %v1576_v18 = vshll.u32 %v1398_v9, 16  ;;  %1876 = vrot.lane.b32.xlu0 %v1838_v33, %s7091_s9  ;;  %v1767_v19 = vld [vmem:[#allocation2 + $0xa8] sm:$0xf]  ;;  %v1839_v21 = vrot.slane %v1766_v11, 4  ;;  %v3148_v25 = vpop.permute.xlu0 %3147  ;;  %817 = vst.msk [vmem:[#allocation4 + $0x10] sm:$0xff] %vm280_vm0, %v577_v6  ;;  %v2108_v30 = vor.u32 %v2107_v23, %v2104_v63 }
  0xcf   : > { %v1840_v50 = vrot.slane %v1767_v19, 4  ;;  %v1943_v24 = vld [vmem:[#allocation2 + $0xa0] sm:$0xf0]  ;;  %v1567_v5 = vrot.slane %v1565_v62, 3  ;;  %v1570_v28 = vrot.slane %v1568_v14, 4  ;;  %3195 = vst.msk [vmem:[#allocation4 + $0x8] sm:$0xff] %vm3193_vm13, %v3148_v25  ;;  %v585_v49 = vor.u32 %v584_v38, %v581_v17 }
  0xd0   : > { %v1575_v32 = vrot.slane %v1573_v15, 3  ;;  %v1578_v60 = vrot.slane %v1576_v18, 4  ;;  %v1944_v29 = vld [vmem:[#allocation2 + $0xa8] sm:$0x1f]  ;;  %995 = vst.msk [vmem:[#allocation4 + $0x10] sm:$0xff] %vm992_vm6, %v949_v36  ;;  %v2111_v31 = vshrl.u32 %v1943_v24, 16  ;;  %v2109_v0 = vsel %vm1041_vm3, %v2100_v12, %v2108_v30 }
  0xd1   : > { %v1841_v27 = vsel %vm895_vm4, %v1839_v21, %v1840_v50  ;;  %v2114_v56 = vshll.u32 %v1943_v24, 16  ;;  %v1571_v57 = vor.u32 %v1570_v28, %v1567_v5  ;;  %v2119_v3 = vshrl.u32 %v1944_v29, 16  ;;  %v2311_v22 = vld [vmem:[#allocation2 + $0xa0] sm:$0xf8]  ;;  %v2312_v33 = vld [vmem:[#allocation2 + $0xa8] sm:$0xf] }
  0xd2   : > { %v1579_v2 = vor.u32 %v1578_v60, %v1575_v32  ;;  %v2122_v10 = vshll.u32 %v1944_v29, 16  ;;  %v2113_v1 = vrot.slane %v2111_v31, 4  ;;  %v1319_v34 = vpop.permute.xlu0 %1318  ;;  %2245 = vrot.lane.b32.xlu0 %v2109_v0, %s7094_s12  ;;  %v589_v41 = vrot.slane %v587_v7, 3  ;;  %v2680_v46 = vld [vmem:[#allocation2 + $0xa0] sm:$0xf0]  ;;  %v7651_v0 = vld [vmem:[%s7317_s29 + $0xc8] sm:$0xff] }
  0xd3   : > { %v2116_v16 = vrot.slane %v2114_v56, 5  ;;  %v2121_v36 = vrot.slane %v2119_v3, 4  ;;  %1365 = vst.msk [vmem:[#allocation4 + $0x10] sm:$0xff] %vm1362_vm7, %v1319_v34  ;;  %v7622_v51 = vpop.permute.xlu1 %1320  ;;  %v590_v42 = vshll.u32 %v7586_v43, 16  ;;  %v2464_v44 = vshrl.u32 %v2311_v22, 16  ;;  %v3210_v55 = vld [vmem:[#allocation4] sm:$0xff] }
  0xd4   : > { %v1580_v35 = vsel %vm526_vm5, %v1571_v57, %v1579_v2  ;;  %v2124_v37 = vrot.slane %v2122_v10, 5  ;;  %v2467_v52 = vshll.u32 %v2311_v22, 16  ;;  %v2472_v54 = vshrl.u32 %v2312_v33, 16  ;;  %v2681_v26 = vld [vmem:[#allocation2 + $0xa8] sm:$0xf]  ;;  %6948 = vmatprep.mubr.msk.bf16.mxu0 %vm3246_vm15, %v3210_v55  ;;  %v7643_v56 = vld [vmem:[%s7317_s29 + $0xc0] sm:$0xff] }
  0xd5   : > { %1701 = vrot.lane.b32.xlu1 %v1580_v35, %s7093_s11  ;;  %v2117_v40 = vor.u32 %v2116_v16, %v2113_v1  ;;  %v592_v58 = vrot.slane %v590_v42, 4  ;;  %v2466_v59 = vrot.slane %v2464_v44, 3  ;;  %v2475_v61 = vshll.u32 %v2312_v33, 16  ;;  %v2857_v8 = vld [vmem:[#allocation2 + $0xa0] sm:$0xf0]  ;;  %v7654_v1 = vld [vmem:[%s7317_s29 + $0xd0] sm:$0xff] }
  0xd6   : > { %v2125_v48 = vor.u32 %v2124_v37, %v2121_v36  ;;  %v439_v63 = vrot.slane %v407_v47, 4  ;;  %v1688_v4 = vpop.permute.xlu0 %1687  ;;  %v2469_v11 = vrot.slane %v2467_v52, 4  ;;  %v2474_v7 = vrot.slane %v2472_v54, 3  ;;  %v2858_v43 = vld [vmem:[#allocation2 + $0xa8] sm:$0x1f]  ;;  %v7657_v16 = vld [vmem:[%s7317_s29 + $0xd8] sm:$0xff] }
  0xd7   : > { %1734 = vst.msk [vmem:[#allocation4 + $0x10] sm:$0xff] %vm1731_vm8, %v1688_v4  ;;  %v593_v12 = vor.u32 %v592_v58, %v589_v41  ;;  %v2477_v62 = vrot.slane %v2475_v61, 4  ;;  %v3297_v47 = vsel %vm3295_vm14, %v7039_v39, 0  ;;  %v2752_v18 = vrot.slane %v2680_v46, 4  ;;  %v3211_v21 = vld [vmem:[#allocation4 + $0x8] sm:$0xff] }
  0xd8   : > { %v2126_v9 = vsel %vm1041_vm3, %v2117_v40, %v2125_v48  ;;  %482 = vst.msk [vmem:[#allocation2 + $0xb0] sm:$0xf0] %vm305_vm2, %v439_v63  ;;  %v1690_v14 = vpop.permute.xlu1 %1689  ;;  %v2470_v15 = vor.u32 %v2469_v11, %v2466_v59  ;;  %6947 = vmatpush3.bf16.msra.mxu0 %v3297_v47  ;;  %v2753_v19 = vrot.slane %v2681_v26, 4  ;;  %v3010_v50 = vshrl.u32 %v2857_v8, 16  ;;  %v851_v6 = vld [vmem:[#allocation2 + $0xa0] sm:$0xf0] }
  0xd9   : > { %1878 = vrot.lane.b32.xlu1 %v1841_v27, %s7091_s9  ;;  %483 = vst.msk [vmem:[#allocation2 + $0xb8] sm:$0xf] %vm286_vm1, %v439_v63  ;;  %v594_v23 = vsel %vm526_vm5, %v585_v49, %v593_v12  ;;  %v2478_v24 = vor.u32 %v2477_v62, %v2474_v7  ;;  %v3013_v25 = vshll.u32 %v2857_v8, 16  ;;  %v3018_v5 = vshrl.u32 %v2858_v43, 16  ;;  %v852_v28 = vld [vmem:[#allocation2 + $0xa8] sm:$0xf] }
  0xda   : > { %v1865_v32 = vpop.permute.xlu0 %1864  ;;  %v7635_v60 = vld [vmem:[#allocation2 + $0xa0] sm:$0xf0]  ;;  %818 = vst.msk [vmem:[#allocation4 + $0x18] sm:$0xff] %vm280_vm0, %v594_v23  ;;  %v2754_v29 = vsel %vm895_vm4, %v2752_v18, %v2753_v19  ;;  %v3012_v27 = vrot.slane %v3010_v50, 4  ;;  %v3021_v30 = vshll.u32 %v2858_v43, 16  ;;  %v926_v10 = vrot.slane %v851_v6, 4 }
  0xdb   : > { %1911 = vst.msk [vmem:[#allocation4 + $0x10] sm:$0xff] %vm1908_vm9, %v1865_v32  ;;  %v7640_v31 = vld [vmem:[#allocation2 + $0xa8] sm:$0x1f]  ;;  %v2479_v57 = vsel %vm526_vm5, %v2470_v15, %v2478_v24  ;;  %6949 = vmatmul.mubr.msk.bf16.vlgmr.msra.gmra.mrb[0].mxu0 %vm3246_vm15, %v3211_v21  ;;  %v3015_v2 = vrot.slane %v3013_v25, 5  ;;  %v3020_v3 = vrot.slane %v3018_v5, 4  ;;  %v927_v17 = vrot.slane %v852_v28, 4 }
  0xdc   : > { %996 = vst.msk [vmem:[#allocation4 + $0x18] sm:$0xff] %vm992_vm6, %v7608_v20  ;;  %v1867_v22 = vpop.permute.xlu1 %1866  ;;  %2615 = vrot.lane.b32.xlu0 %v2479_v57, %s7095_s13  ;;  %v3023_v20 = vrot.slane %v3021_v30, 5  ;;  %v1213_v33 = vshrl.u32 %v7635_v60, 16  ;;  %v1216_v34 = vshll.u32 %v7635_v60, 16  ;;  %v1221_v37 = vshrl.u32 %v7640_v31, 16 }
  0xdd   : > { %2247 = vrot.lane.b32.xlu1 %v2126_v9, %s7094_s12  ;;  %1366 = vst.msk [vmem:[#allocation4 + $0x18] sm:$0xff] %vm1362_vm7, %v7622_v51  ;;  %v3016_v35 = vor.u32 %v3015_v2, %v3012_v27  ;;  %v1224_v38 = vshll.u32 %v7640_v31, 16  ;;  %v440_v39 = vrot.slane %v408_v13, 4  ;;  %v409_v44 = vpack.c.bf16 %v7651_v0, %v7643_v56 }
  0xde   : > { %1735 = vst.msk [vmem:[#allocation4 + $0x18] sm:$0xff] %vm1731_vm8, %v1690_v14  ;;  %v2234_v36 = vpop.permute.xlu0 %2233  ;;  %v3024_v42 = vor.u32 %v3023_v20, %v3020_v3  ;;  %v410_v46 = vpack.c.bf16 %v7657_v16, %v7654_v1  ;;  %v7681_v58 = vsel %vm895_vm4, %v926_v10, %v927_v17  ;;  %v1218_v27 = vrot.slane %v1216_v34, 5 }
  0xdf   : > { %v2313_v40 = vld [vmem:[#allocation2 + $0xb0] sm:$0xf8]  ;;  %1912 = vst.msk [vmem:[#allocation4 + $0x18] sm:$0xff] %vm1908_vm9, %v1867_v22  ;;  %v1223_v3 = vrot.slane %v1221_v37, 4  ;;  %v1226_v10 = vrot.slane %v1224_v38, 5 }
  0xe0   : > { %v2314_v51 = vld [vmem:[#allocation2 + $0xb8] sm:$0xf]  ;;  %v2682_v41 = vld [vmem:[#allocation2 + $0xb0] sm:$0xf0]  ;;  %2280 = vst.msk [vmem:[#allocation4 + $0x10] sm:$0xff] %vm2277_vm10, %v2234_v36  ;;  %v2481_v48 = vshrl.u32 %v2313_v40, 16  ;;  %v2236_v45 = vpop.permute.xlu1 %2235  ;;  %2792 = vrot.lane.b32.xlu0 %v2754_v29, %s7092_s10  ;;  %v3025_v26 = vsel %vm1041_vm3, %v3016_v35, %v3024_v42 }
  0xe1   : > { %v2484_v49 = vshll.u32 %v2313_v40, 16  ;;  %v2489_v52 = vshrl.u32 %v2314_v51, 16  ;;  %v2492_v54 = vshll.u32 %v2314_v51, 16  ;;  %v2683_v53 = vld [vmem:[#allocation2 + $0xb8] sm:$0xf]  ;;  %v2755_v13 = vrot.slane %v2682_v41, 4 }
  0xe2   : > { %484 = vst.msk [vmem:[#allocation2 + $0xc0] sm:$0xf0] %vm305_vm2, %v440_v39  ;;  %v2756_v55 = vrot.slane %v2683_v53, 4  ;;  %v2859_v59 = vld [vmem:[#allocation2 + $0xb0] sm:$0xf0]  ;;  %v2483_v63 = vrot.slane %v2481_v48, 3  ;;  %v2604_v7 = vpop.permute.xlu0 %2603  ;;  %v1227_v34 = vor.u32 %v1226_v10, %v1223_v3 }
  0xe3   : > { %485 = vst.msk [vmem:[#allocation2 + $0xc8] sm:$0xf] %vm286_vm1, %v440_v39  ;;  %v2860_v61 = vld [vmem:[#allocation2 + $0xb8] sm:$0x1f]  ;;  %v2486_v4 = vrot.slane %v2484_v49, 4  ;;  %v2491_v8 = vrot.slane %v2489_v52, 3 }
  0xe4   : > { %2281 = vst.msk [vmem:[#allocation4 + $0x18] sm:$0xff] %vm2277_vm10, %v2236_v45  ;;  %v2494_v9 = vrot.slane %v2492_v54, 4  ;;  %v853_v11 = vld [vmem:[#allocation2 + $0xb0] sm:$0xf0]  ;;  %v2757_v43 = vsel %vm895_vm4, %v2755_v13, %v2756_v55  ;;  %v3027_v12 = vshrl.u32 %v2859_v59, 16  ;;  %v3030_v62 = vshll.u32 %v2859_v59, 16  ;;  %3161 = vrot.lane.b32.xlu0 %v3025_v26, %s7096_s14 }
  0xe5   : > { %v3035_v47 = vshrl.u32 %v2860_v61, 16  ;;  %v854_v14 = vld [vmem:[#allocation2 + $0xb8] sm:$0xf]  ;;  %2650 = vst.msk [vmem:[#allocation4 + $0x10] sm:$0xff] %vm2647_vm11, %v2604_v7  ;;  %v2487_v15 = vor.u32 %v2486_v4, %v2483_v63  ;;  %v3038_v19 = vshll.u32 %v2860_v61, 16  ;;  %v929_v21 = vrot.slane %v853_v11, 4  ;;  %v2606_v28 = vpop.permute.xlu1 %2605 }
  0xe6   : > { %v2495_v18 = vor.u32 %v2494_v9, %v2491_v8  ;;  %v1031_v50 = vld [vmem:[#allocation2 + $0xb0] sm:$0xf0]  ;;  %v3029_v6 = vrot.slane %v3027_v12, 4  ;;  %v3032_v23 = vrot.slane %v3030_v62, 5  ;;  %v930_v25 = vrot.slane %v854_v14, 4  ;;  %2651 = vst.msk [vmem:[#allocation4 + $0x18] sm:$0xff] %vm2647_vm11, %v2606_v28  ;;  %v2781_v31 = vpop.permute.xlu0 %2780 }
  0xe7   : > { %v3037_v24 = vrot.slane %v3035_v47, 4  ;;  %v1032_v5 = vld [vmem:[#allocation2 + $0xb8] sm:$0x1f]  ;;  %v3040_v60 = vrot.slane %v3038_v19, 5  ;;  %v1215_v29 = vrot.slane %v1213_v33, 4  ;;  %2827 = vst.msk [vmem:[#allocation4 + $0x10] sm:$0xff] %vm2824_vm12, %v2781_v31 }
  0xe8   : > { %v2496_v32 = vsel %vm526_vm5, %v2487_v15, %v2495_v18  ;;  %v1399_v30 = vld [vmem:[#allocation2 + $0xb0] sm:$0xf8]  ;;  %v3033_v57 = vor.u32 %v3032_v23, %v3029_v6  ;;  %v7691_v2 = vsel %vm895_vm4, %v929_v21, %v930_v25  ;;  %v1230_v17 = vshrl.u32 %v1031_v50, 16  ;;  %v1400_v33 = vld [vmem:[#allocation2 + $0xb8] sm:$0xf] }
  0xe9   : > { %2617 = vrot.lane.b32.xlu1 %v2496_v32, %s7095_s13  ;;  %v3041_v22 = vor.u32 %v3040_v60, %v3037_v24  ;;  %v1219_v20 = vor.u32 %v1218_v27, %v1215_v29  ;;  %v1233_v35 = vshll.u32 %v1031_v50, 16  ;;  %v1238_v36 = vshrl.u32 %v1032_v5, 16  ;;  %v1401_v51 = vld [vmem:[#allocation2 + $0xc0] sm:$0xf8]  ;;  %v2783_v41 = vpop.permute.xlu1 %2782  ;;  %v1768_v55 = vld [vmem:[#allocation2 + $0xb0] sm:$0xf0] }
  0xea   : > { %v1241_v39 = vshll.u32 %v1032_v5, 16  ;;  %v1582_v40 = vshrl.u32 %v1399_v30, 16  ;;  %v1232_v48 = vrot.slane %v1230_v17, 4  ;;  %v1585_v52 = vshll.u32 %v1399_v30, 16  ;;  %v1402_v37 = vld [vmem:[#allocation2 + $0xc8] sm:$0xf]  ;;  %v3150_v38 = vpop.permute.xlu0 %3149 }
  0xeb   : > { %v3042_v42 = vsel %vm1041_vm3, %v3033_v57, %v3041_v22  ;;  %v1235_v49 = vrot.slane %v1233_v35, 5  ;;  %2828 = vst.msk [vmem:[#allocation4 + $0x18] sm:$0xff] %vm2824_vm12, %v2783_v41  ;;  %v1228_v54 = vsel %vm1041_vm3, %v1219_v20, %v1227_v34  ;;  %v1240_v53 = vrot.slane %v1238_v36, 4  ;;  %v1769_v4 = vld [vmem:[#allocation2 + $0xb8] sm:$0xf] }
  0xec   : > { %3163 = vrot.lane.b32.xlu0 %v3042_v42, %s7096_s14  ;;  %v1243_v45 = vrot.slane %v1241_v39, 5  ;;  %v1584_v13 = vrot.slane %v1582_v40, 3  ;;  %3196 = vst.msk [vmem:[#allocation4 + $0x10] sm:$0xff] %vm3193_vm13, %v3150_v38  ;;  %v1587_v59 = vrot.slane %v1585_v52, 4  ;;  %v1590_v61 = vshrl.u32 %v1400_v33, 16 }
  0xed   : > { %2794 = vrot.lane.b32.xlu1 %v2757_v43, %s7092_s10  ;;  %v1236_v26 = vor.u32 %v1235_v49, %v1232_v48  ;;  %v1593_v63 = vshll.u32 %v1400_v33, 16  ;;  %v502_v8 = vld [vmem:[#allocation2 + $0x40] sm:$0xf8]  ;;  %v1599_v11 = vshrl.u32 %v1401_v51, 16  ;;  %v1602_v7 = vshll.u32 %v1401_v51, 16  ;;  %v7700_v62 = vpop.permute.xlu1 %952 }
  0xee   : > { %v1244_v9 = vor.u32 %v1243_v45, %v1240_v53  ;;  %v1607_v43 = vshrl.u32 %v1402_v37, 16  ;;  %v1770_v12 = vld [vmem:[#allocation2 + $0xc0] sm:$0xf0]  ;;  %v1588_v47 = vor.u32 %v1587_v59, %v1584_v13  ;;  %v1592_v14 = vrot.slane %v1590_v61, 3  ;;  %v1771_v19 = vld [vmem:[#allocation2 + $0xc8] sm:$0xf]  ;;  %v3152_v21 = vpop.permute.xlu0 %3151 }
  0xef   : > { %v1595_v15 = vrot.slane %v1593_v63, 4  ;;  %v1610_v18 = vshll.u32 %v1402_v37, 16  ;;  %v1601_v6 = vrot.slane %v1599_v11, 3  ;;  %v1604_v23 = vrot.slane %v1602_v7, 4  ;;  %3197 = vst.msk [vmem:[#allocation4 + $0x18] sm:$0xff] %vm3193_vm13, %v3152_v21 }
  0xf0   : > { %1334 = vrot.lane.b32.xlu0 %v1228_v54, %s7090_s8  ;;  %v1245_v50 = vsel %vm1041_vm3, %v1236_v26, %v1244_v9  ;;  %v1609_v24 = vrot.slane %v1607_v43, 3  ;;  %v1842_v28 = vrot.slane %v1768_v55, 4  ;;  %v1843_v32 = vrot.slane %v1769_v4, 4  ;;  %v503_v60 = vld [vmem:[#allocation2 + $0x48] sm:$0xf] }
  0xf1   : > { %964 = vrot.lane.b32.xlu1 %v7681_v58, %s7089_s30  ;;  %v1596_v25 = vor.u32 %v1595_v15, %v1592_v14  ;;  %v1612_v5 = vrot.slane %v1610_v18, 4  ;;  %v1605_v29 = vor.u32 %v1604_v23, %v1601_v6  ;;  %v1845_v27 = vrot.slane %v1770_v12, 4  ;;  %v1945_v57 = vld [vmem:[#allocation2 + $0xb0] sm:$0xf0]  ;;  %v7707_v58 = vpop.permute.xlu1 %954  ;;  %v1946_v17 = vld [vmem:[#allocation2 + $0xb8] sm:$0x1f] }
  0xf2   : > { %v1846_v30 = vrot.slane %v1771_v19, 4  ;;  %v596_v31 = vshrl.u32 %v502_v8, 16  ;;  %v1844_v22 = vsel %vm895_vm4, %v1842_v28, %v1843_v32  ;;  %v599_v20 = vshll.u32 %v502_v8, 16  ;;  %v7711_v35 = vpop.permute.xlu0 %1322  ;;  %v1947_v51 = vld [vmem:[#allocation2 + $0xc0] sm:$0xf0] }
  0xf3   : > { %v1597_v3 = vsel %vm526_vm5, %v1588_v47, %v1596_v25  ;;  %v1613_v10 = vor.u32 %v1612_v5, %v1609_v24  ;;  %v3212_v33 = vld [vmem:[#allocation4 + $0x10] sm:$0xff]  ;;  %v604_v39 = vshrl.u32 %v503_v60, 16  ;;  %v607_v40 = vshll.u32 %v503_v60, 16  ;;  %v1948_v54 = vld [vmem:[#allocation2 + $0xc8] sm:$0x1f] }
  0xf4   : > { %1703 = vrot.lane.b32.xlu0 %v1597_v3, %s7093_s11  ;;  %v7717_v34 = vsel %vm895_vm4, %v1845_v27, %v1846_v30  ;;  %v598_v36 = vrot.slane %v596_v31, 3  ;;  %v601_v42 = vrot.slane %v599_v20, 4  ;;  %v2128_v48 = vshrl.u32 %v1945_v57, 16  ;;  %6952 = vmatprep.mubr.msk.bf16.mxu0 %vm3246_vm15, %v3212_v33  ;;  %v504_v59 = vld [vmem:[#allocation2 + $0x50] sm:$0xf8] }
  0xf5   : > { %966 = vrot.lane.b32.xlu1 %v7691_v2, %s7089_s30  ;;  %v1614_v41 = vsel %vm526_vm5, %v1605_v29, %v1613_v10  ;;  %v2131_v49 = vshll.u32 %v1945_v57, 16  ;;  %v606_v52 = vrot.slane %v604_v39, 3  ;;  %v609_v37 = vrot.slane %v607_v40, 4  ;;  %v7721_v53 = vpop.permute.xlu1 %1324  ;;  %v505_v7 = vld [vmem:[#allocation2 + $0x58] sm:$0xf] }
  0xf6   : > { %v2136_v38 = vshrl.u32 %v1946_v17, 16  ;;  %v2139_v2 = vshll.u32 %v1946_v17, 16  ;;  %v602_v45 = vor.u32 %v601_v42, %v598_v36  ;;  %v2130_v13 = vrot.slane %v2128_v48, 4  ;;  %v1692_v61 = vpop.permute.xlu0 %1691  ;;  %v3213_v63 = vld [vmem:[#allocation4 + $0x18] sm:$0xff]  ;;  %v2315_v6 = vld [vmem:[#allocation2 + $0xc0] sm:$0xf8] }
  0xf7   : > { %v2133_v55 = vrot.slane %v2131_v49, 5  ;;  %v2145_v26 = vshrl.u32 %v1947_v51, 16  ;;  %v610_v4 = vor.u32 %v609_v37, %v606_v52  ;;  %v2148_v11 = vshll.u32 %v1947_v51, 16  ;;  %6953 = vmatmul.mubr.msk.bf16.gmra.mrb[4].mxu0 %vm3246_vm15, %v3213_v63  ;;  %v2316_v28 = vld [vmem:[#allocation2 + $0xc8] sm:$0xf] }
  0xf8   : > { %1880 = vrot.lane.b32.xlu0 %v1844_v22, %s7091_s9  ;;  %v2138_v8 = vrot.slane %v2136_v38, 4  ;;  %v2141_v9 = vrot.slane %v2139_v2, 5  ;;  %v2153_v47 = vshrl.u32 %v1948_v54, 16  ;;  %v2156_v14 = vshll.u32 %v1948_v54, 16  ;;  %v2684_v31 = vld [vmem:[#allocation2 + $0xc0] sm:$0xf0] }
  0xf9   : > { %1336 = vrot.lane.b32.xlu1 %v1245_v50, %s7090_s8  ;;  %v2134_v43 = vor.u32 %v2133_v55, %v2130_v13  ;;  %v2147_v12 = vrot.slane %v2145_v26, 4  ;;  %v611_v15 = vsel %vm526_vm5, %v602_v45, %v610_v4  ;;  %v2150_v19 = vrot.slane %v2148_v11, 5  ;;  %v7727_v50 = vpop.permute.xlu1 %1693  ;;  %v2685_v20 = vld [vmem:[#allocation2 + $0xc8] sm:$0xf]  ;;  %v2861_v39 = vld [vmem:[#allocation2 + $0xc0] sm:$0xf0] }
  0xfa   : > { %v2142_v18 = vor.u32 %v2141_v9, %v2138_v8  ;;  %v613_v21 = vshrl.u32 %v504_v59, 16  ;;  %819 = vst.msk [vmem:[#allocation4 + $0x20] sm:$0xff] %vm280_vm0, %v611_v15  ;;  %v2155_v23 = vrot.slane %v2153_v47, 4  ;;  %v2158_v24 = vrot.slane %v2156_v14, 5  ;;  %v1869_v32 = vpop.permute.xlu0 %1868  ;;  %v2862_v49 = vld [vmem:[#allocation2 + $0xc8] sm:$0x1f] }
  0xfb   : > { %v616_v25 = vshll.u32 %v504_v59, 16  ;;  %v621_v5 = vshrl.u32 %v505_v7, 16  ;;  %997 = vst.msk [vmem:[#allocation4 + $0x20] sm:$0xff] %vm992_vm6, %v7700_v62  ;;  %v2151_v29 = vor.u32 %v2150_v19, %v2147_v12  ;;  %v624_v30 = vshll.u32 %v505_v7, 16  ;;  %v855_v54 = vld [vmem:[#allocation2 + $0xc0] sm:$0xf0] }
  0xfc   : > { %v2143_v60 = vsel %vm1041_vm3, %v2134_v43, %v2142_v18  ;;  %v615_v27 = vrot.slane %v613_v21, 3  ;;  %v2159_v57 = vor.u32 %v2158_v24, %v2155_v23  ;;  %v2498_v22 = vshrl.u32 %v2315_v6, 16  ;;  %1367 = vst.msk [vmem:[#allocation4 + $0x20] sm:$0xff] %vm1362_vm7, %v7711_v35  ;;  %v856_v13 = vld [vmem:[#allocation2 + $0xc8] sm:$0xf]  ;;  %v7760_v18 = vld [vmem:[%s7317_s29 + $0xe0] sm:$0xff] }
  0xfd   : > { %1705 = vrot.lane.b32.xlu1 %v1614_v41, %s7093_s11  ;;  %2249 = vrot.lane.b32.xlu0 %v2143_v60, %s7094_s12  ;;  %v618_v3 = vrot.slane %v616_v25, 4  ;;  %v623_v10 = vrot.slane %v621_v5, 3  ;;  %v626_v17 = vrot.slane %v624_v30, 4  ;;  %v2501_v33 = vshll.u32 %v2315_v6, 16  ;;  %1736 = vst.msk [vmem:[#allocation4 + $0x20] sm:$0xff] %vm1731_vm8, %v1692_v61  ;;  %v1871_v40 = vpop.permute.xlu1 %1870  ;;  %v7767_v23 = vld [vmem:[%s7317_s29 + $0xe8] sm:$0xff] }
  0xfe   : > { %v2506_v36 = vshrl.u32 %v2316_v28, 16  ;;  %v2509_v62 = vshll.u32 %v2316_v28, 16  ;;  %v2160_v51 = vsel %vm1041_vm3, %v2151_v29, %v2159_v57  ;;  %v2500_v42 = vrot.slane %v2498_v22, 3  ;;  %1913 = vst.msk [vmem:[#allocation4 + $0x20] sm:$0xff] %vm1908_vm9, %v1869_v32  ;;  %v2238_v35 = vpop.permute.xlu0 %2237  ;;  %v1033_v63 = vld [vmem:[#allocation2 + $0xc0] sm:$0xf0] }
  0xff   : > { %v619_v41 = vor.u32 %v618_v3, %v615_v27  ;;  %v441_v48 = vrot.slane %v409_v44, 4  ;;  %v627_v52 = vor.u32 %v626_v17, %v623_v10  ;;  %v2503_v37 = vrot.slane %v2501_v33, 4  ;;  %2282 = vst.msk [vmem:[#allocation4 + $0x20] sm:$0xff] %vm2277_vm10, %v2238_v35  ;;  %v7750_v11 = vld [vmem:[#allocation2 + $0xc8] sm:$0x1f]  ;;  %v7770_v24 = vld [vmem:[%s7317_s29 + $0xf0] sm:$0xff] }
 0x100   : > { %v2508_v38 = vrot.slane %v2506_v36, 3  ;;  %v2511_v2 = vrot.slane %v2509_v62, 4  ;;  %v2758_v56 = vrot.slane %v2684_v31, 4  ;;  %v2759_v0 = vrot.slane %v2685_v20, 4  ;;  %v7757_v15 = vld [vmem:[#allocation2 + $0x60] sm:$0xf8] }
 0x101   : > { %1882 = vrot.lane.b32.xlu1 %v7717_v34, %s7091_s9  ;;  %486 = vst.msk [vmem:[#allocation2 + $0xd0] sm:$0xf0] %vm305_vm2, %v441_v48  ;;  %v3044_v44 = vshrl.u32 %v2861_v39, 16  ;;  %v3047_v45 = vshll.u32 %v2861_v39, 16  ;;  %v628_v55 = vsel %vm526_vm5, %v619_v41, %v627_v52  ;;  %v2504_v26 = vor.u32 %v2503_v37, %v2500_v42  ;;  %v2240_v61 = vpop.permute.xlu1 %2239  ;;  %v7773_v25 = vld [vmem:[%s7317_s29 + $0xf8] sm:$0xff] }
 0x102   : > { %487 = vst.msk [vmem:[#allocation2 + $0xd8] sm:$0xf] %vm286_vm1, %v441_v48  ;;  %v2512_v34 = vor.u32 %v2511_v2, %v2508_v38  ;;  %v3052_v59 = vshrl.u32 %v2862_v49, 16  ;;  %v3055_v9 = vshll.u32 %v2862_v49, 16  ;;  %v2608_v7 = vpop.permute.xlu0 %2607  ;;  %v932_v47 = vrot.slane %v855_v54, 4 }
 0x103   : > { %820 = vst.msk [vmem:[#allocation4 + $0x28] sm:$0xff] %vm280_vm0, %v628_v55  ;;  %v3046_v4 = vrot.slane %v3044_v44, 4  ;;  %v3049_v8 = vrot.slane %v3047_v45, 5  ;;  %v933_v14 = vrot.slane %v856_v13, 4  ;;  %v2760_v19 = vsel %vm895_vm4, %v2758_v56, %v2759_v0 }
 0x104   : > { %998 = vst.msk [vmem:[#allocation4 + $0x28] sm:$0xff] %vm992_vm6, %v7707_v58  ;;  %v2513_v43 = vsel %vm526_vm5, %v2504_v26, %v2512_v34  ;;  %v3054_v12 = vrot.slane %v3052_v59, 4  ;;  %v3057_v58 = vrot.slane %v3055_v9, 5  ;;  %v1247_v21 = vshrl.u32 %v1033_v63, 16 }
 0x105   : > { %2251 = vrot.lane.b32.xlu1 %v2160_v51, %s7094_s12  ;;  %2652 = vst.msk [vmem:[#allocation4 + $0x20] sm:$0xff] %vm2647_vm11, %v2608_v7  ;;  %2619 = vrot.lane.b32.xlu0 %v2513_v43, %s7095_s13  ;;  %v1250_v6 = vshll.u32 %v1033_v63, 16  ;;  %v3050_v5 = vor.u32 %v3049_v8, %v3046_v4  ;;  %v1255_v28 = vshrl.u32 %v7750_v11, 16  ;;  %v1258_v32 = vshll.u32 %v7750_v11, 16 }
 0x106   : > { %1368 = vst.msk [vmem:[#allocation4 + $0x28] sm:$0xff] %vm1362_vm7, %v7721_v53  ;;  %v2610_v53 = vpop.permute.xlu1 %2609  ;;  %v442_v60 = vrot.slane %v410_v46, 4  ;;  %v3058_v29 = vor.u32 %v3057_v58, %v3054_v12  ;;  %v7783_v27 = vrot.slane %v1247_v21, 4  ;;  %v2785_v31 = vpop.permute.xlu0 %2784  ;;  %v7789_v22 = vsel %vm895_vm4, %v932_v47, %v933_v14 }
 0x107   : > { %1737 = vst.msk [vmem:[#allocation4 + $0x28] sm:$0xff] %vm1731_vm8, %v7727_v50  ;;  %v7785_v30 = vrot.slane %v1250_v6, 5  ;;  %v630_v50 = vshrl.u32 %v7757_v15, 16  ;;  %v411_v1 = vpack.c.bf16 %v7767_v23, %v7760_v18  ;;  %v412_v16 = vpack.c.bf16 %v7773_v25, %v7770_v24 }
 0x108   : > { %1914 = vst.msk [vmem:[#allocation4 + $0x28] sm:$0xff] %vm1908_vm9, %v1871_v40  ;;  %v2317_v57 = vld [vmem:[#allocation2 + $0xd0] sm:$0xf8]  ;;  %v3059_v40 = vsel %vm1041_vm3, %v3050_v5, %v3058_v29  ;;  %v1257_v12 = vrot.slane %v1255_v28, 4  ;;  %v1260_v47 = vrot.slane %v1258_v32, 5 }
 0x109   : > { %v2318_v3 = vld [vmem:[#allocation2 + $0xd8] sm:$0xf]  ;;  %v2686_v10 = vld [vmem:[#allocation2 + $0xd0] sm:$0xf0]  ;;  %2283 = vst.msk [vmem:[#allocation4 + $0x28] sm:$0xff] %vm2277_vm10, %v2240_v61  ;;  %v2515_v46 = vshrl.u32 %v2317_v57, 16  ;;  %2796 = vrot.lane.b32.xlu0 %v2760_v19, %s7092_s10  ;;  %v1253_v42 = vor.u32 %v7785_v30, %v7783_v27 }
 0x10a   : > { %488 = vst.msk [vmem:[#allocation2 + $0xe0] sm:$0xf0] %vm305_vm2, %v442_v60  ;;  %v2518_v20 = vshll.u32 %v2317_v57, 16  ;;  %v2523_v17 = vshrl.u32 %v2318_v3, 16  ;;  %v2526_v33 = vshll.u32 %v2318_v3, 16  ;;  %v2761_v62 = vrot.slane %v2686_v10, 4  ;;  %v2787_v48 = vpop.permute.xlu1 %2786  ;;  %v3154_v2 = vpop.permute.xlu0 %3153 }
 0x10b   : > { %489 = vst.msk [vmem:[#allocation2 + $0xe8] sm:$0xf] %vm286_vm1, %v442_v60  ;;  %v2687_v36 = vld [vmem:[#allocation2 + $0xd8] sm:$0xf]  ;;  %v2863_v51 = vld [vmem:[#allocation2 + $0xd0] sm:$0xf0]  ;;  %v1261_v60 = vor.u32 %v1260_v47, %v1257_v12 }
 0x10c   : > { %2829 = vst.msk [vmem:[#allocation4 + $0x20] sm:$0xff] %vm2824_vm12, %v2785_v31  ;;  %v2762_v39 = vrot.slane %v2687_v36, 4  ;;  %v2864_v41 = vld [vmem:[#allocation2 + $0xd8] sm:$0x1f]  ;;  %v2517_v49 = vrot.slane %v2515_v46, 3  ;;  %v2520_v35 = vrot.slane %v2518_v20, 4 }
 0x10d   : > { %2653 = vst.msk [vmem:[#allocation4 + $0x28] sm:$0xff] %vm2647_vm11, %v2610_v53  ;;  %v2525_v52 = vrot.slane %v2523_v17, 3  ;;  %v2528_v37 = vrot.slane %v2526_v33, 4  ;;  %v857_v38 = vld [vmem:[#allocation2 + $0xd0] sm:$0xf0]  ;;  %v3061_v56 = vshrl.u32 %v2863_v51, 16  ;;  %3165 = vrot.lane.b32.xlu0 %v3059_v40, %s7096_s14  ;;  %v1262_v20 = vsel %vm1041_vm3, %v1253_v42, %v1261_v60 }
 0x10e   : > { %2830 = vst.msk [vmem:[#allocation4 + $0x28] sm:$0xff] %vm2824_vm12, %v2787_v48  ;;  %v2763_v54 = vsel %vm895_vm4, %v2761_v62, %v2762_v39  ;;  %v3064_v0 = vshll.u32 %v2863_v51, 16  ;;  %v3069_v44 = vshrl.u32 %v2864_v41, 16  ;;  %v858_v45 = vld [vmem:[#allocation2 + $0xd8] sm:$0xf]  ;;  %v2521_v13 = vor.u32 %v2520_v35, %v2517_v49  ;;  %v7808_v11 = vpop.permute.xlu1 %956  ;;  %v3156_v19 = vpop.permute.xlu0 %3155 }
 0x10f   : > { %3198 = vst.msk [vmem:[#allocation4 + $0x20] sm:$0xff] %vm3193_vm13, %v3154_v2  ;;  %v2529_v55 = vor.u32 %v2528_v37, %v2525_v52  ;;  %v3072_v26 = vshll.u32 %v2864_v41, 16  ;;  %v935_v34 = vrot.slane %v857_v38, 4  ;;  %v1035_v59 = vld [vmem:[#allocation2 + $0xd0] sm:$0xf0]  ;;  %v3063_v61 = vrot.slane %v3061_v56, 4 }
 0x110   : > { %v3066_v63 = vrot.slane %v3064_v0, 5  ;;  %v3071_v4 = vrot.slane %v3069_v44, 4  ;;  %v936_v8 = vrot.slane %v858_v45, 4  ;;  %v1036_v9 = vld [vmem:[#allocation2 + $0xd8] sm:$0x1f]  ;;  %v1264_v6 = vshrl.u32 %v1035_v59, 16 }
 0x111   : > { %v2530_v7 = vsel %vm526_vm5, %v2521_v13, %v2529_v55  ;;  %v3074_v43 = vrot.slane %v3072_v26, 5  ;;  %v1403_v14 = vld [vmem:[#allocation2 + $0xd0] sm:$0xf8]  ;;  %v1267_v5 = vshll.u32 %v1035_v59, 16  ;;  %3199 = vst.msk [vmem:[#allocation4 + $0x28] sm:$0xff] %vm3193_vm13, %v3156_v19  ;;  %v1272_v29 = vshrl.u32 %v1036_v9, 16 }
 0x112   : > { %2621 = vrot.lane.b32.xlu1 %v2530_v7, %s7095_s13  ;;  %v3067_v58 = vor.u32 %v3066_v63, %v3063_v61  ;;  %v7813_v21 = vsel %vm895_vm4, %v935_v34, %v936_v8  ;;  %v1275_v27 = vshll.u32 %v1036_v9, 16  ;;  %v1404_v30 = vld [vmem:[#allocation2 + $0xd8] sm:$0xf]  ;;  %v1266_v31 = vrot.slane %v1264_v6, 4  ;;  %v1405_v3 = vld [vmem:[#allocation2 + $0xe0] sm:$0xf8]  ;;  %v7816_v10 = vpop.permute.xlu1 %958  ;;  %v7820_v39 = vpop.permute.xlu0 %1326 }
 0x113   : > { %v3075_v53 = vor.u32 %v3074_v43, %v3071_v4  ;;  %v1269_v28 = vrot.slane %v1267_v5, 5  ;;  %v1616_v32 = vshrl.u32 %v1403_v14, 16  ;;  %v1619_v57 = vshll.u32 %v1403_v14, 16  ;;  %v1406_v36 = vld [vmem:[#allocation2 + $0xe8] sm:$0xf] }
 0x114   : > { %v1274_v17 = vrot.slane %v1272_v29, 4  ;;  %v1277_v33 = vrot.slane %v1275_v27, 5  ;;  %v1772_v62 = vld [vmem:[#allocation2 + $0xd0] sm:$0xf0]  ;;  %v1624_v48 = vshrl.u32 %v1404_v30, 16  ;;  %v1627_v37 = vshll.u32 %v1404_v30, 16 }
 0x115   : > { %v3076_v46 = vsel %vm1041_vm3, %v3067_v58, %v3075_v53  ;;  %v1270_v40 = vor.u32 %v1269_v28, %v1266_v31  ;;  %v1618_v51 = vrot.slane %v1616_v32, 3  ;;  %v1621_v41 = vrot.slane %v1619_v57, 4  ;;  %v1773_v49 = vld [vmem:[#allocation2 + $0xd8] sm:$0xf]  ;;  %v1774_v2 = vld [vmem:[#allocation2 + $0xe0] sm:$0xf0] }
 0x116   : > { %2798 = vrot.lane.b32.xlu1 %v2763_v54, %s7092_s10  ;;  %3167 = vrot.lane.b32.xlu0 %v3076_v46, %s7096_s14  ;;  %v3214_v35 = vld [vmem:[#allocation4 + $0x20] sm:$0xff]  ;;  %v1278_v52 = vor.u32 %v1277_v33, %v1274_v17  ;;  %v1633_v38 = vshrl.u32 %v1405_v3, 16  ;;  %v1636_v42 = vshll.u32 %v1405_v3, 16  ;;  %v1626_v0 = vrot.slane %v1624_v48, 3  ;;  %v1775_v54 = vld [vmem:[#allocation2 + $0xe8] sm:$0xf]  ;;  %v7826_v59 = vpop.permute.xlu1 %1328  ;;  %v7828_v61 = vpop.permute.xlu0 %1695 }
 0x117   : > { %6956 = vmatprep.mubr.msk.bf16.mxu0 %vm3246_vm15, %v3214_v35  ;;  %v1622_v56 = vor.u32 %v1621_v41, %v1618_v51  ;;  %v1641_v44 = vshrl.u32 %v1406_v36, 16  ;;  %v1644_v45 = vshll.u32 %v1406_v36, 16  ;;  %v1629_v55 = vrot.slane %v1627_v37, 4  ;;  %v507_v43 = vld [vmem:[#allocation2 + $0x68] sm:$0xf] }
 0x118   : > { %v1279_v13 = vsel %vm1041_vm3, %v1270_v40, %v1278_v52  ;;  %v1635_v26 = vrot.slane %v1633_v38, 3  ;;  %v1638_v34 = vrot.slane %v1636_v42, 4  ;;  %v3215_v63 = vld [vmem:[#allocation4 + $0x28] sm:$0xff]  ;;  %v1848_v9 = vrot.slane %v1772_v62, 4  ;;  %v1949_v58 = vld [vmem:[#allocation2 + $0xd0] sm:$0xf0] }
 0x119   : > { %v1643_v4 = vrot.slane %v1641_v44, 3  ;;  %v1646_v8 = vrot.slane %v1644_v45, 4  ;;  %v1849_v7 = vrot.slane %v1773_v49, 4  ;;  %v1630_v12 = vor.u32 %v1629_v55, %v1626_v0  ;;  %6957 = vmatmul.mubr.msk.bf16.gmra.mrb[8].mxu0 %vm3246_vm15, %v3215_v63  ;;  %v1950_v60 = vld [vmem:[#allocation2 + $0xd8] sm:$0x1f] }
 0x11a   : > { %968 = vrot.lane.b32.xlu1 %v7789_v22, %s7089_s30  ;;  %1338 = vrot.lane.b32.xlu0 %v1262_v20, %s7090_s8  ;;  %v1639_v47 = vor.u32 %v1638_v34, %v1635_v26  ;;  %v1851_v14 = vrot.slane %v1774_v2, 4  ;;  %v1852_v19 = vrot.slane %v1775_v54, 4  ;;  %v632_v22 = vrot.slane %v630_v50, 3  ;;  %v1951_v28 = vld [vmem:[#allocation2 + $0xe0] sm:$0xf0]  ;;  %v7842_v32 = vpop.permute.xlu0 %1872  ;;  %v7848_v62 = vpop.permute.xlu1 %1697 }
 0x11b   : > { %v1647_v6 = vor.u32 %v1646_v8, %v1643_v4  ;;  %v1850_v5 = vsel %vm895_vm4, %v1848_v9, %v1849_v7  ;;  %v633_v53 = vshll.u32 %v7757_v15, 16  ;;  %v1631_v29 = vsel %vm526_vm5, %v1622_v56, %v1630_v12  ;;  %v1952_v36 = vld [vmem:[#allocation2 + $0xe8] sm:$0x1f]  ;;  %v508_v49 = vld [vmem:[#allocation2 + $0x70] sm:$0xf8] }
 0x11c   : > { %v7840_v27 = vsel %vm895_vm4, %v1851_v14, %v1852_v19  ;;  %v638_v30 = vshrl.u32 %v507_v43, 16  ;;  %v641_v31 = vshll.u32 %v507_v43, 16  ;;  %v2162_v15 = vshrl.u32 %v1949_v58, 16  ;;  %v509_v38 = vld [vmem:[#allocation2 + $0x78] sm:$0xf] }
 0x11d   : > { %v1648_v50 = vsel %vm526_vm5, %v1639_v47, %v1647_v6  ;;  %v635_v57 = vrot.slane %v633_v53, 4  ;;  %v2165_v3 = vshll.u32 %v1949_v58, 16  ;;  %v2170_v17 = vshrl.u32 %v1950_v60, 16  ;;  %v2319_v34 = vld [vmem:[#allocation2 + $0xe0] sm:$0xf8] }
 0x11e   : > { %970 = vrot.lane.b32.xlu1 %v7813_v21, %s7089_s30  ;;  %1707 = vrot.lane.b32.xlu0 %v1631_v29, %s7093_s11  ;;  %v640_v46 = vrot.slane %v638_v30, 3  ;;  %v643_v20 = vrot.slane %v641_v31, 4  ;;  %v2173_v33 = vshll.u32 %v1950_v60, 16  ;;  %v2164_v51 = vrot.slane %v2162_v15, 4  ;;  %v2242_v42 = vpop.permute.xlu0 %2241  ;;  %v2320_v7 = vld [vmem:[#allocation2 + $0xe8] sm:$0xf]  ;;  %v7857_v19 = vpop.permute.xlu1 %1874 }
 0x11f   : > { %v636_v40 = vor.u32 %v635_v57, %v632_v22  ;;  %v2167_v41 = vrot.slane %v2165_v3, 5  ;;  %v2179_v48 = vshrl.u32 %v1951_v28, 16  ;;  %v2172_v35 = vrot.slane %v2170_v17, 4  ;;  %v2688_v14 = vld [vmem:[#allocation2 + $0xe0] sm:$0xf0] }
 0x120   : > { %v644_v21 = vor.u32 %v643_v20, %v640_v46  ;;  %v2175_v52 = vrot.slane %v2173_v33, 5  ;;  %v2182_v37 = vshll.u32 %v1951_v28, 16  ;;  %v2187_v0 = vshrl.u32 %v1952_v36, 16  ;;  %v2865_v28 = vld [vmem:[#allocation2 + $0xe0] sm:$0xf0] }
 0x121   : > { %v2168_v2 = vor.u32 %v2167_v41, %v2164_v51  ;;  %v2181_v56 = vrot.slane %v2179_v48, 4  ;;  %v2190_v44 = vshll.u32 %v1952_v36, 16  ;;  %v647_v26 = vshrl.u32 %v508_v49, 16  ;;  %v2866_v46 = vld [vmem:[#allocation2 + $0xe8] sm:$0x1f] }
 0x122   : > { %1340 = vrot.lane.b32.xlu1 %v1279_v13, %s7090_s8  ;;  %1884 = vrot.lane.b32.xlu0 %v1850_v5, %s7091_s9  ;;  %v645_v45 = vsel %vm526_vm5, %v636_v40, %v644_v21  ;;  %v2176_v54 = vor.u32 %v2175_v52, %v2172_v35  ;;  %v2184_v55 = vrot.slane %v2182_v37, 5  ;;  %v2189_v63 = vrot.slane %v2187_v0, 4  ;;  %v859_v36 = vld [vmem:[#allocation2 + $0xe0] sm:$0xf0]  ;;  %v860_v40 = vld [vmem:[#allocation2 + $0xe8] sm:$0xf]  ;;  %v2244_v21 = vpop.permute.xlu1 %2243 }
 0x123   : > { %821 = vst.msk [vmem:[#allocation4 + $0x30] sm:$0xff] %vm280_vm0, %v645_v45  ;;  %v2192_v4 = vrot.slane %v2190_v44, 5  ;;  %v650_v8 = vshll.u32 %v508_v49, 16  ;;  %v655_v9 = vshrl.u32 %v509_v38, 16  ;;  %v649_v12 = vrot.slane %v647_v26, 3  ;;  %v2612_v53 = vpop.permute.xlu0 %2611 }
 0x124   : > { %999 = vst.msk [vmem:[#allocation4 + $0x30] sm:$0xff] %vm992_vm6, %v7808_v11  ;;  %v2177_v13 = vsel %vm1041_vm3, %v2168_v2, %v2176_v54  ;;  %v2185_v43 = vor.u32 %v2184_v55, %v2181_v56  ;;  %v658_v47 = vshll.u32 %v509_v38, 16  ;;  %v2532_v22 = vshrl.u32 %v2319_v34, 16  ;;  %v2689_v11 = vld [vmem:[#allocation2 + $0xe8] sm:$0xf] }
 0x125   : > { %v2193_v58 = vor.u32 %v2192_v4, %v2189_v63  ;;  %v652_v6 = vrot.slane %v650_v8, 4  ;;  %v657_v5 = vrot.slane %v655_v9, 3  ;;  %1369 = vst.msk [vmem:[#allocation4 + $0x30] sm:$0xff] %vm1362_vm7, %v7820_v39  ;;  %v2535_v29 = vshll.u32 %v2319_v34, 16  ;;  %v1037_v35 = vld [vmem:[#allocation2 + $0xe0] sm:$0xf0] }
 0x126   : > { %1709 = vrot.lane.b32.xlu1 %v1648_v50, %s7093_s11  ;;  %2253 = vrot.lane.b32.xlu0 %v2177_v13, %s7094_s12  ;;  %v660_v60 = vrot.slane %v658_v47, 4  ;;  %v2540_v30 = vshrl.u32 %v2320_v7, 16  ;;  %v2543_v31 = vshll.u32 %v2320_v7, 16  ;;  %1738 = vst.msk [vmem:[#allocation4 + $0x30] sm:$0xff] %vm1731_vm8, %v7828_v61  ;;  %v2534_v15 = vrot.slane %v2532_v22, 3 }
 0x127   : > { %v2194_v50 = vsel %vm1041_vm3, %v2185_v43, %v2193_v58  ;;  %v653_v57 = vor.u32 %v652_v6, %v649_v12  ;;  %v443_v3 = vrot.slane %v411_v1, 4  ;;  %1915 = vst.msk [vmem:[#allocation4 + $0x30] sm:$0xff] %vm1908_vm9, %v7842_v32  ;;  %v2537_v20 = vrot.slane %v2535_v29, 4  ;;  %v2789_v32 = vpop.permute.xlu0 %2788  ;;  %v7880_v38 = vld [vmem:[#allocation2 + $0xe8] sm:$0x1f] }
 0x128   : > { %v661_v39 = vor.u32 %v660_v60, %v657_v5  ;;  %v2542_v17 = vrot.slane %v2540_v30, 3  ;;  %v2545_v33 = vrot.slane %v2543_v31, 4  ;;  %2284 = vst.msk [vmem:[#allocation4 + $0x30] sm:$0xff] %vm2277_vm10, %v2242_v42  ;;  %v2764_v18 = vrot.slane %v2688_v14, 4  ;;  %v7885_v44 = vld [vmem:[#allocation2 + $0x80] sm:$0xf8] }
 0x129   : > { %490 = vst.msk [vmem:[#allocation2 + $0xf0] sm:$0xf0] %vm305_vm2, %v443_v3  ;;  %v2765_v23 = vrot.slane %v2689_v11, 4  ;;  %v3078_v1 = vshrl.u32 %v2865_v28, 16  ;;  %v3081_v61 = vshll.u32 %v2865_v28, 16  ;;  %v2538_v41 = vor.u32 %v2537_v20, %v2534_v15 }
 0x12a   : > { %1886 = vrot.lane.b32.xlu1 %v7840_v27, %s7091_s9  ;;  %491 = vst.msk [vmem:[#allocation2 + $0xf8] sm:$0xf] %vm286_vm1, %v443_v3  ;;  %v662_v51 = vsel %vm526_vm5, %v653_v57, %v661_v39  ;;  %v2546_v48 = vor.u32 %v2545_v33, %v2542_v17  ;;  %v3086_v49 = vshrl.u32 %v2866_v46, 16  ;;  %v3089_v37 = vshll.u32 %v2866_v46, 16 }
 0x12b   : > { %2654 = vst.msk [vmem:[#allocation4 + $0x30] sm:$0xff] %vm2647_vm11, %v2612_v53  ;;  %v3080_v27 = vrot.slane %v3078_v1, 4  ;;  %v3083_v52 = vrot.slane %v3081_v61, 5  ;;  %v938_v56 = vrot.slane %v859_v36, 4  ;;  %v939_v0 = vrot.slane %v860_v40, 4 }
 0x12c   : > { %2831 = vst.msk [vmem:[#allocation4 + $0x30] sm:$0xff] %vm2824_vm12, %v2789_v32  ;;  %v2547_v42 = vsel %vm526_vm5, %v2538_v41, %v2546_v48  ;;  %v3088_v2 = vrot.slane %v3086_v49, 4  ;;  %v2766_v45 = vsel %vm895_vm4, %v2764_v18, %v2765_v23  ;;  %v3091_v54 = vrot.slane %v3089_v37, 5 }
 0x12d   : > { %822 = vst.msk [vmem:[#allocation4 + $0x38] sm:$0xff] %vm280_vm0, %v662_v51  ;;  %2623 = vrot.lane.b32.xlu0 %v2547_v42, %s7095_s13  ;;  %v1281_v55 = vshrl.u32 %v1037_v35, 16  ;;  %v1284_v26 = vshll.u32 %v1037_v35, 16  ;;  %v3084_v34 = vor.u32 %v3083_v52, %v3080_v27  ;;  %v1289_v63 = vshrl.u32 %v7880_v38, 16 }
 0x12e   : > { %1000 = vst.msk [vmem:[#allocation4 + $0x38] sm:$0xff] %vm992_vm6, %v7816_v10  ;;  %2255 = vrot.lane.b32.xlu1 %v2194_v50, %s7094_s12  ;;  %v3158_v10 = vpop.permute.xlu0 %3157  ;;  %v1292_v4 = vshll.u32 %v7880_v38, 16  ;;  %v444_v8 = vrot.slane %v412_v16, 4  ;;  %v7908_v47 = vsel %vm895_vm4, %v938_v56, %v939_v0 }
 0x12f   : > { %1370 = vst.msk [vmem:[#allocation4 + $0x38] sm:$0xff] %vm1362_vm7, %v7826_v59  ;;  %v3092_v59 = vor.u32 %v3091_v54, %v3088_v2  ;;  %v7902_v9 = vrot.slane %v1281_v55, 4  ;;  %v7904_v7 = vrot.slane %v1284_v26, 5 }
 0x130   : > { %1739 = vst.msk [vmem:[#allocation4 + $0x38] sm:$0xff] %vm1731_vm8, %v7848_v62  ;;  %v664_v62 = vshrl.u32 %v7885_v44, 16  ;;  %v2321_v13 = vld [vmem:[#allocation2 + $0xf0] sm:$0xf8]  ;;  %v2614_v24 = vpop.permute.xlu1 %2613  ;;  %v1294_v35 = vrot.slane %v1292_v4, 5 }
 0x131   : > { %3200 = vst.msk [vmem:[#allocation4 + $0x30] sm:$0xff] %vm3193_vm13, %v3158_v10  ;;  %v2322_v43 = vld [vmem:[#allocation2 + $0xf8] sm:$0xf]  ;;  %v2690_v12 = vld [vmem:[#allocation2 + $0xf0] sm:$0xf0]  ;;  %v2549_v25 = vshrl.u32 %v2321_v13, 16  ;;  %2800 = vrot.lane.b32.xlu0 %v2766_v45, %s7092_s10  ;;  %v3093_v22 = vsel %vm1041_vm3, %v3084_v34, %v3092_v59  ;;  %v1287_v60 = vor.u32 %v7904_v7, %v7902_v9 }
 0x132   : > { %1916 = vst.msk [vmem:[#allocation4 + $0x38] sm:$0xff] %vm1908_vm9, %v7857_v19  ;;  %v2552_v16 = vshll.u32 %v2321_v13, 16  ;;  %v2557_v14 = vshrl.u32 %v2322_v43, 16  ;;  %v2560_v19 = vshll.u32 %v2322_v43, 16  ;;  %v2691_v58 = vld [vmem:[#allocation2 + $0xf8] sm:$0xf] }
 0x133   : > { %2285 = vst.msk [vmem:[#allocation4 + $0x38] sm:$0xff] %vm2277_vm10, %v2244_v21  ;;  %v2767_v6 = vrot.slane %v2690_v12, 4  ;;  %v2768_v5 = vrot.slane %v2691_v58, 4  ;;  %v2867_v11 = vld [vmem:[#allocation2 + $0xf0] sm:$0xf0]  ;;  %v2551_v29 = vrot.slane %v2549_v25, 3 }
 0x134   : > { %492 = vst.msk [vmem:[#allocation2 + $0x100] sm:$0xf0] %vm305_vm2, %v444_v8  ;;  %v2868_v53 = vld [vmem:[#allocation2 + $0xf8] sm:$0x1f]  ;;  %v2554_v30 = vrot.slane %v2552_v16, 4  ;;  %v2559_v31 = vrot.slane %v2557_v14, 3  ;;  %v2791_v20 = vpop.permute.xlu1 %2790  ;;  %v3160_v17 = vpop.permute.xlu0 %3159 }
 0x135   : > { %493 = vst.msk [vmem:[#allocation2 + $0x108] sm:$0xf] %vm286_vm1, %v444_v8  ;;  %v2562_v28 = vrot.slane %v2560_v19, 4  ;;  %v861_v50 = vld [vmem:[#allocation2 + $0xf0] sm:$0xf0]  ;;  %v2769_v57 = vsel %vm895_vm4, %v2767_v6, %v2768_v5  ;;  %v3095_v15 = vshrl.u32 %v2867_v11, 16  ;;  %3169 = vrot.lane.b32.xlu0 %v3093_v22, %s7096_s14 }
 0x136   : > { %2655 = vst.msk [vmem:[#allocation4 + $0x38] sm:$0xff] %vm2647_vm11, %v2614_v24  ;;  %v3098_v3 = vshll.u32 %v2867_v11, 16  ;;  %v3103_v46 = vshrl.u32 %v2868_v53, 16  ;;  %v862_v39 = vld [vmem:[#allocation2 + $0xf8] sm:$0xf]  ;;  %v2555_v33 = vor.u32 %v2554_v30, %v2551_v29  ;;  %v3106_v18 = vshll.u32 %v2868_v53, 16 }
 0x137   : > { %v2563_v36 = vor.u32 %v2562_v28, %v2559_v31  ;;  %v941_v23 = vrot.slane %v861_v50, 4  ;;  %v1039_v1 = vld [vmem:[#allocation2 + $0xf0] sm:$0xf0]  ;;  %2832 = vst.msk [vmem:[#allocation4 + $0x38] sm:$0xff] %vm2824_vm12, %v2791_v20  ;;  %v3097_v61 = vrot.slane %v3095_v15, 4  ;;  %v942_v51 = vrot.slane %v862_v39, 4 }
 0x138   : > { %v3100_v40 = vrot.slane %v3098_v3, 5  ;;  %v3105_v32 = vrot.slane %v3103_v46, 4  ;;  %v1040_v41 = vld [vmem:[#allocation2 + $0xf8] sm:$0x1f]  ;;  %3201 = vst.msk [vmem:[#allocation4 + $0x38] sm:$0xff] %vm3193_vm13, %v3160_v17  ;;  %v3108_v49 = vrot.slane %v3106_v18, 5  ;;  %v7927_v56 = vpop.permute.xlu1 %960  ;;  %v7930_v10 = vpop.permute.xlu0 %1330 }
 0x139   : > { %v2564_v48 = vsel %vm526_vm5, %v2555_v33, %v2563_v36  ;;  %v1291_v21 = vrot.slane %v1289_v63, 4  ;;  %v1407_v27 = vld [vmem:[#allocation2 + $0xf0] sm:$0xf8]  ;;  %v7925_v38 = vsel %vm895_vm4, %v941_v23, %v942_v51  ;;  %v1298_v42 = vshrl.u32 %v1039_v1, 16  ;;  %v1408_v26 = vld [vmem:[#allocation2 + $0xf8] sm:$0xf] }
 0x13a   : > { %v3216_v52 = vld [vmem:[#allocation4 + $0x30] sm:$0xff]  ;;  %2625 = vrot.lane.b32.xlu1 %v2564_v48, %s7095_s13  ;;  %v3101_v37 = vor.u32 %v3100_v40, %v3097_v61  ;;  %v1301_v2 = vshll.u32 %v1039_v1, 16  ;;  %v3109_v0 = vor.u32 %v3108_v49, %v3105_v32  ;;  %v1306_v54 = vshrl.u32 %v1040_v41, 16  ;;  %v1777_v58 = vld [vmem:[#allocation2 + $0xf8] sm:$0xf] }
 0x13b   : > { %6960 = vmatprep.mubr.msk.bf16.mxu0 %vm3246_vm15, %v3216_v52  ;;  %v1295_v45 = vor.u32 %v1294_v35, %v1291_v21  ;;  %v1309_v55 = vshll.u32 %v1040_v41, 16  ;;  %v1300_v34 = vrot.slane %v1298_v42, 4  ;;  %v1650_v4 = vshrl.u32 %v1407_v27, 16  ;;  %v1409_v59 = vld [vmem:[#allocation2 + $0x100] sm:$0xf8] }
 0x13c   : > { %v1303_v63 = vrot.slane %v1301_v2, 5  ;;  %v1653_v8 = vshll.u32 %v1407_v27, 16  ;;  %v3110_v9 = vsel %vm1041_vm3, %v3101_v37, %v3109_v0  ;;  %v1308_v13 = vrot.slane %v1306_v54, 4  ;;  %v1410_v12 = vld [vmem:[#allocation2 + $0x108] sm:$0xf]  ;;  %v7936_v6 = vpop.permute.xlu1 %962  ;;  %v7940_v20 = vpop.permute.xlu0 %1699 }
 0x13d   : > { %v1296_v7 = vsel %vm1041_vm3, %v1287_v60, %v1295_v45  ;;  %v1311_v43 = vrot.slane %v1309_v55, 5  ;;  %v1776_v24 = vld [vmem:[#allocation2 + $0xf0] sm:$0xf0]  ;;  %3171 = vrot.lane.b32.xlu0 %v3110_v9, %s7096_s14  ;;  %v1652_v16 = vrot.slane %v1650_v4, 3  ;;  %v1658_v19 = vshrl.u32 %v1408_v26, 16 }
 0x13e   : > { %2802 = vrot.lane.b32.xlu1 %v2769_v57, %s7092_s10  ;;  %v1304_v25 = vor.u32 %v1303_v63, %v1300_v34  ;;  %v1655_v14 = vrot.slane %v1653_v8, 4  ;;  %v1661_v22 = vshll.u32 %v1408_v26, 16  ;;  %v1667_v11 = vshrl.u32 %v1409_v59, 16  ;;  %v1778_v60 = vld [vmem:[#allocation2 + $0x100] sm:$0xf0] }
 0x13f   : > { %v1312_v5 = vor.u32 %v1311_v43, %v1308_v13  ;;  %v1670_v53 = vshll.u32 %v1409_v59, 16  ;;  %v3217_v29 = vld [vmem:[#allocation4 + $0x38] sm:$0xff]  ;;  %v1660_v31 = vrot.slane %v1658_v19, 3  ;;  %v1675_v28 = vshrl.u32 %v1410_v12, 16  ;;  %v1779_v57 = vld [vmem:[#allocation2 + $0x108] sm:$0xf] }
 0x140   : > { %v1656_v30 = vor.u32 %v1655_v14, %v1652_v16  ;;  %v1678_v50 = vshll.u32 %v1410_v12, 16  ;;  %6961 = vmatmul.mubr.msk.bf16.gmra.mrb[12].mxu0 %vm3246_vm15, %v3217_v29  ;;  %v1663_v3 = vrot.slane %v1661_v22, 4  ;;  %v1669_v46 = vrot.slane %v1667_v11, 3  ;;  %v511_v23 = vld [vmem:[#allocation2 + $0x88] sm:$0xf]  ;;  %v7949_v35 = vpop.permute.xlu1 %1332  ;;  %v1877_v4 = vpop.permute.xlu0 %1876 }
 0x141   : > { %v1313_v15 = vsel %vm1041_vm3, %v1304_v25, %v1312_v5  ;;  %v1672_v39 = vrot.slane %v1670_v53, 4  ;;  %1342 = vrot.lane.b32.xlu0 %v1296_v7, %s7090_s8  ;;  %v1677_v17 = vrot.slane %v1675_v28, 3  ;;  %v1854_v36 = vrot.slane %v1776_v24, 4  ;;  %v1953_v51 = vld [vmem:[#allocation2 + $0xf0] sm:$0xf0] }
 0x142   : > { %972 = vrot.lane.b32.xlu1 %v7908_v47, %s7089_s30  ;;  %v1680_v33 = vrot.slane %v1678_v50, 4  ;;  %v1855_v18 = vrot.slane %v1777_v58, 4  ;;  %v1664_v1 = vor.u32 %v1663_v3, %v1660_v31  ;;  %v1857_v40 = vrot.slane %v1778_v60, 4  ;;  %v1954_v21 = vld [vmem:[#allocation2 + $0xf8] sm:$0x1f] }
 0x143   : > { %v1673_v61 = vor.u32 %v1672_v39, %v1669_v46  ;;  %v1858_v32 = vrot.slane %v1779_v57, 4  ;;  %v666_v49 = vrot.slane %v664_v62, 3  ;;  %v667_v47 = vshll.u32 %v7885_v44, 16  ;;  %v1955_v2 = vld [vmem:[#allocation2 + $0x100] sm:$0xf0] }
 0x144   : > { %v1681_v41 = vor.u32 %v1680_v33, %v1677_v17  ;;  %v1856_v48 = vsel %vm895_vm4, %v1854_v36, %v1855_v18  ;;  %v1665_v27 = vsel %vm526_vm5, %v1656_v30, %v1664_v1  ;;  %v672_v37 = vshrl.u32 %v511_v23, 16  ;;  %v1956_v63 = vld [vmem:[#allocation2 + $0x108] sm:$0x1f]  ;;  %v512_v13 = vld [vmem:[#allocation2 + $0x90] sm:$0xf8]  ;;  %v2246_v33 = vpop.permute.xlu0 %2245 }
 0x145   : > { %v7953_v52 = vsel %vm895_vm4, %v1857_v40, %v1858_v32  ;;  %v675_v42 = vshll.u32 %v511_v23, 16  ;;  %1711 = vrot.lane.b32.xlu0 %v1665_v27, %s7093_s11  ;;  %v669_v0 = vrot.slane %v667_v47, 4  ;;  %v2196_v44 = vshrl.u32 %v1953_v51, 16  ;;  %v513_v25 = vld [vmem:[#allocation2 + $0x98] sm:$0xf] }
 0x146   : > { %974 = vrot.lane.b32.xlu1 %v7925_v38, %s7089_s30  ;;  %v1682_v62 = vsel %vm526_vm5, %v1673_v61, %v1681_v41  ;;  %v2199_v45 = vshll.u32 %v1953_v51, 16  ;;  %v674_v54 = vrot.slane %v672_v37, 3  ;;  %v2204_v26 = vshrl.u32 %v1954_v21, 16  ;;  %v2323_v29 = vld [vmem:[#allocation2 + $0x100] sm:$0xf8] }
 0x147   : > { %v677_v55 = vrot.slane %v675_v42, 4  ;;  %v2207_v34 = vshll.u32 %v1954_v21, 16  ;;  %v670_v8 = vor.u32 %v669_v0, %v666_v49  ;;  %v2198_v59 = vrot.slane %v2196_v44, 4  ;;  %v7961_v5 = vpop.permute.xlu1 %1701  ;;  %v2324_v57 = vld [vmem:[#allocation2 + $0x108] sm:$0xf] }
 0x148   : > { %v2201_v9 = vrot.slane %v2199_v45, 5  ;;  %v2213_v7 = vshrl.u32 %v1955_v2, 16  ;;  %v2206_v38 = vrot.slane %v2204_v26, 4  ;;  %v2216_v24 = vshll.u32 %v1955_v2, 16  ;;  %v2325_v17 = vld [vmem:[#allocation2 + $0x110] sm:$0xf8] }
 0x149   : > { %v678_v43 = vor.u32 %v677_v55, %v674_v54  ;;  %v2209_v12 = vrot.slane %v2207_v34, 5  ;;  %1888 = vrot.lane.b32.xlu0 %v1856_v48, %s7091_s9  ;;  %v2221_v19 = vshrl.u32 %v1956_v63, 16  ;;  %v2224_v58 = vshll.u32 %v1956_v63, 16  ;;  %v2326_v51 = vld [vmem:[#allocation2 + $0x118] sm:$0xf] }
 0x14a   : > { %1344 = vrot.lane.b32.xlu1 %v1313_v15, %s7090_s8  ;;  %v2202_v16 = vor.u32 %v2201_v9, %v2198_v59  ;;  %v2215_v14 = vrot.slane %v2213_v7, 4  ;;  %v2218_v53 = vrot.slane %v2216_v24, 5  ;;  %v681_v60 = vshrl.u32 %v512_v13, 16  ;;  %v2692_v21 = vld [vmem:[#allocation2 + $0x100] sm:$0xf0] }
 0x14b   : > { %v679_v22 = vsel %vm526_vm5, %v670_v8, %v678_v43  ;;  %v2210_v11 = vor.u32 %v2209_v12, %v2206_v38  ;;  %v2223_v30 = vrot.slane %v2221_v19, 4  ;;  %v2226_v31 = vrot.slane %v2224_v58, 5  ;;  %v2694_v27 = vld [vmem:[#allocation2 + $0x110] sm:$0xf0]  ;;  %v2695_v37 = vld [vmem:[#allocation2 + $0x118] sm:$0xf]  ;;  %v1879_v42 = vpop.permute.xlu1 %1878 }
 0x14c   : > { %823 = vst.msk [vmem:[#allocation4 + $0x40] sm:$0xff] %vm280_vm0, %v679_v22  ;;  %v684_v28 = vshll.u32 %v512_v13, 16  ;;  %v689_v50 = vshrl.u32 %v513_v25, 16  ;;  %v2219_v3 = vor.u32 %v2218_v53, %v2215_v14  ;;  %v683_v46 = vrot.slane %v681_v60, 3  ;;  %v2693_v44 = vld [vmem:[#allocation2 + $0x108] sm:$0xf] }
 0x14d   : > { %1001 = vst.msk [vmem:[#allocation4 + $0x40] sm:$0xff] %vm992_vm6, %v7927_v56  ;;  %v2211_v15 = vsel %vm1041_vm3, %v2202_v16, %v2210_v11  ;;  %v692_v39 = vshll.u32 %v513_v25, 16  ;;  %v2227_v36 = vor.u32 %v2226_v31, %v2223_v30  ;;  %v2566_v1 = vshrl.u32 %v2323_v29, 16  ;;  %v2869_v26 = vld [vmem:[#allocation2 + $0x100] sm:$0xf0] }
 0x14e   : > { %1713 = vrot.lane.b32.xlu1 %v1682_v62, %s7093_s11  ;;  %2257 = vrot.lane.b32.xlu0 %v2211_v15, %s7094_s12  ;;  %v686_v18 = vrot.slane %v684_v28, 4  ;;  %v691_v23 = vrot.slane %v689_v50, 3  ;;  %1371 = vst.msk [vmem:[#allocation4 + $0x40] sm:$0xff] %vm1362_vm7, %v7930_v10  ;;  %v2569_v56 = vshll.u32 %v2323_v29, 16  ;;  %v2574_v40 = vshrl.u32 %v2324_v57, 16  ;;  %v2616_v59 = vpop.permute.xlu0 %2615 }
 0x14f   : > { %v694_v61 = vrot.slane %v692_v39, 4  ;;  %v2577_v32 = vshll.u32 %v2324_v57, 16  ;;  %1740 = vst.msk [vmem:[#allocation4 + $0x40] sm:$0xff] %vm1731_vm8, %v7940_v20  ;;  %v2228_v41 = vsel %vm1041_vm3, %v2219_v3, %v2227_v36  ;;  %v2568_v49 = vrot.slane %v2566_v1, 3  ;;  %v2870_v38 = vld [vmem:[#allocation2 + $0x108] sm:$0x1f] }
 0x150   : > { %v687_v48 = vor.u32 %v686_v18, %v683_v46  ;;  %v2583_v47 = vshrl.u32 %v2325_v17, 16  ;;  %1917 = vst.msk [vmem:[#allocation4 + $0x40] sm:$0xff] %vm1908_vm9, %v1877_v4  ;;  %v2571_v2 = vrot.slane %v2569_v56, 4  ;;  %v2576_v62 = vrot.slane %v2574_v40, 3  ;;  %v2871_v16 = vld [vmem:[#allocation2 + $0x110] sm:$0xf0] }
 0x151   : > { %v695_v10 = vor.u32 %v694_v61, %v691_v23  ;;  %v2579_v0 = vrot.slane %v2577_v32, 4  ;;  %2286 = vst.msk [vmem:[#allocation4 + $0x40] sm:$0xff] %vm2277_vm10, %v2246_v33  ;;  %v2586_v45 = vshll.u32 %v2325_v17, 16  ;;  %v2591_v54 = vshrl.u32 %v2326_v51, 16  ;;  %v2872_v11 = vld [vmem:[#allocation2 + $0x118] sm:$0x1f] }
 0x152   : > { %1890 = vrot.lane.b32.xlu1 %v7953_v52, %s7091_s9  ;;  %v2585_v20 = vrot.slane %v2583_v47, 3  ;;  %v2594_v55 = vshll.u32 %v2326_v51, 16  ;;  %v2572_v63 = vor.u32 %v2571_v2, %v2568_v49  ;;  %v2770_v8 = vrot.slane %v2692_v21, 4  ;;  %2656 = vst.msk [vmem:[#allocation4 + $0x40] sm:$0xff] %vm2647_vm11, %v2616_v59  ;;  %v2793_v31 = vpop.permute.xlu0 %2792  ;;  %v514_v28 = vld [vmem:[#allocation2 + $0xa0] sm:$0xf8] }
 0x153   : > { %v696_v34 = vsel %vm526_vm5, %v687_v48, %v695_v10  ;;  %v2580_v4 = vor.u32 %v2579_v0, %v2576_v62  ;;  %v2588_v9 = vrot.slane %v2586_v45, 4  ;;  %v2593_v7 = vrot.slane %v2591_v54, 3  ;;  %2833 = vst.msk [vmem:[#allocation4 + $0x40] sm:$0xff] %vm2824_vm12, %v2793_v31  ;;  %v516_v1 = vld [vmem:[#allocation2 + $0xb0] sm:$0xf8] }
 0x154   : > { %824 = vst.msk [vmem:[#allocation4 + $0x48] sm:$0xff] %vm280_vm0, %v696_v34  ;;  %v2596_v13 = vrot.slane %v2594_v55, 4  ;;  %v2771_v43 = vrot.slane %v2693_v44, 4  ;;  %v2773_v12 = vrot.slane %v2694_v27, 4  ;;  %v2774_v24 = vrot.slane %v2695_v37, 4 }
 0x155   : > { %1002 = vst.msk [vmem:[#allocation4 + $0x48] sm:$0xff] %vm992_vm6, %v7936_v6  ;;  %v2581_v52 = vsel %vm526_vm5, %v2572_v63, %v2580_v4  ;;  %v3112_v25 = vshrl.u32 %v2869_v26, 16  ;;  %v2589_v14 = vor.u32 %v2588_v9, %v2585_v20  ;;  %v3115_v22 = vshll.u32 %v2869_v26, 16  ;;  %v2248_v6 = vpop.permute.xlu1 %2247  ;;  %v518_v62 = vld [vmem:[#allocation2 + $0xc0] sm:$0xf8] }
 0x156   : > { %2259 = vrot.lane.b32.xlu1 %v2228_v41, %s7094_s12  ;;  %2627 = vrot.lane.b32.xlu0 %v2581_v52, %s7095_s13  ;;  %v2597_v19 = vor.u32 %v2596_v13, %v2593_v7  ;;  %1372 = vst.msk [vmem:[#allocation4 + $0x48] sm:$0xff] %vm1362_vm7, %v7949_v35  ;;  %v2772_v58 = vsel %vm895_vm4, %v2770_v8, %v2771_v43  ;;  %v3120_v29 = vshrl.u32 %v2870_v38, 16  ;;  %v3123_v30 = vshll.u32 %v2870_v38, 16  ;;  %v3162_v32 = vpop.permute.xlu0 %3161  ;;  %v517_v41 = vld [vmem:[#allocation2 + $0xb8] sm:$0xf] }
 0x157   : > { %v2775_v53 = vsel %vm895_vm4, %v2773_v12, %v2774_v24  ;;  %1741 = vst.msk [vmem:[#allocation4 + $0x48] sm:$0xff] %vm1731_vm8, %v7961_v5  ;;  %v3114_v60 = vrot.slane %v3112_v25, 4  ;;  %v3117_v57 = vrot.slane %v3115_v22, 5  ;;  %v3129_v15 = vshrl.u32 %v2871_v16, 16  ;;  %v515_v5 = vld [vmem:[#allocation2 + $0xa8] sm:$0xf] }
 0x158   : > { %v2598_v50 = vsel %vm526_vm5, %v2589_v14, %v2597_v19  ;;  %v3132_v35 = vshll.u32 %v2871_v16, 16  ;;  %1918 = vst.msk [vmem:[#allocation4 + $0x48] sm:$0xff] %vm1908_vm9, %v1879_v42  ;;  %v3122_v3 = vrot.slane %v3120_v29, 4  ;;  %v3125_v46 = vrot.slane %v3123_v30, 5  ;;  %v519_v54 = vld [vmem:[#allocation2 + $0xc8] sm:$0xf] }
 0x159   : > { %v3137_v39 = vshrl.u32 %v2872_v11, 16  ;;  %v3140_v17 = vshll.u32 %v2872_v11, 16  ;;  %2287 = vst.msk [vmem:[#allocation4 + $0x48] sm:$0xff] %vm2277_vm10, %v2248_v6  ;;  %v3118_v33 = vor.u32 %v3117_v57, %v3114_v60  ;;  %v3131_v36 = vrot.slane %v3129_v15, 4  ;;  %v520_v4 = vld [vmem:[#allocation2 + $0xd0] sm:$0xf8] }
 0x15a   : > { %2629 = vrot.lane.b32.xlu1 %v2598_v50, %s7095_s13  ;;  %2804 = vrot.lane.b32.xlu0 %v2772_v58, %s7092_s10  ;;  %v3134_v18 = vrot.slane %v3132_v35, 5  ;;  %v698_v23 = vshrl.u32 %v514_v28, 16  ;;  %v3126_v61 = vor.u32 %v3125_v46, %v3122_v3  ;;  %v701_v51 = vshll.u32 %v514_v28, 16  ;;  %3202 = vst.msk [vmem:[#allocation4 + $0x40] sm:$0xff] %vm3193_vm13, %v3162_v32  ;;  %v521_v25 = vld [vmem:[#allocation2 + $0xd8] sm:$0xf] }
 0x15b   : > { %v3139_v56 = vrot.slane %v3137_v39, 4  ;;  %v3142_v40 = vrot.slane %v3140_v17, 5  ;;  %v706_v47 = vshrl.u32 %v515_v5, 16  ;;  %v709_v21 = vshll.u32 %v515_v5, 16  ;;  %v2618_v42 = vpop.permute.xlu1 %2617  ;;  %v522_v22 = vld [vmem:[#allocation2 + $0xe0] sm:$0xf8] }
 0x15c   : > { %v3135_v48 = vor.u32 %v3134_v18, %v3131_v36  ;;  %v700_v49 = vrot.slane %v698_v23, 3  ;;  %v3127_v27 = vsel %vm1041_vm3, %v3118_v33, %v3126_v61  ;;  %v703_v10 = vrot.slane %v701_v51, 4  ;;  %2657 = vst.msk [vmem:[#allocation4 + $0x48] sm:$0xff] %vm2647_vm11, %v2618_v42  ;;  %v523_v57 = vld [vmem:[#allocation2 + $0xe8] sm:$0xf] }
 0x15d   : > { %v3143_v37 = vor.u32 %v3142_v40, %v3139_v56  ;;  %v715_v2 = vshrl.u32 %v516_v1, 16  ;;  %v708_v0 = vrot.slane %v706_v47, 3  ;;  %v711_v44 = vrot.slane %v709_v21, 4  ;;  %v524_v5 = vld [vmem:[#allocation2 + $0xf0] sm:$0xf8] }
 0x15e   : > { %2806 = vrot.lane.b32.xlu1 %v2775_v53, %s7092_s10  ;;  %3173 = vrot.lane.b32.xlu0 %v3127_v27, %s7096_s14  ;;  %v718_v20 = vshll.u32 %v516_v1, 16  ;;  %v723_v45 = vshrl.u32 %v517_v41, 16  ;;  %v704_v26 = vor.u32 %v703_v10, %v700_v49  ;;  %v726_v63 = vshll.u32 %v517_v41, 16  ;;  %v3164_v43 = vpop.permute.xlu0 %3163  ;;  %v525_v1 = vld [vmem:[#allocation2 + $0xf8] sm:$0xf] }
 0x15f   : > { %v3144_v55 = vsel %vm1041_vm3, %v3135_v48, %v3143_v37  ;;  %v717_v34 = vrot.slane %v715_v2, 3  ;;  %v712_v8 = vor.u32 %v711_v44, %v708_v0  ;;  %v732_v7 = vshrl.u32 %v518_v62, 16  ;;  %v2795_v13 = vpop.permute.xlu1 %2794  ;;  %v4003_v47 = vld [vmem:[#allocation3] sm:$0xf0]  ;;  %v4004_v21 = vld [vmem:[#allocation3 + $0x8] sm:$0xf] }
 0x160   : > { %v720_v59 = vrot.slane %v718_v20, 4  ;;  %v725_v9 = vrot.slane %v723_v45, 3  ;;  %v728_v38 = vrot.slane %v726_v63, 4  ;;  %v735_v52 = vshll.u32 %v518_v62, 16  ;;  %2834 = vst.msk [vmem:[#allocation4 + $0x48] sm:$0xff] %vm2824_vm12, %v2795_v13 }
 0x161   : > { %v740_v12 = vshrl.u32 %v519_v54, 16  ;;  %v743_v24 = vshll.u32 %v519_v54, 16  ;;  %v713_v16 = vsel %vm526_vm5, %v704_v26, %v712_v8  ;;  %v734_v19 = vrot.slane %v732_v7, 3  ;;  %3203 = vst.msk [vmem:[#allocation4 + $0x48] sm:$0xff] %vm3193_vm13, %v3164_v43  ;;  %v3218_v6 = vld [vmem:[#allocation4 + $0x40] sm:$0xff] }
 0x162   : > { %3175 = vrot.lane.b32.xlu1 %v3144_v55, %s7096_s14  ;;  %v721_v14 = vor.u32 %v720_v59, %v717_v34  ;;  %v749_v58 = vshrl.u32 %v520_v4, 16  ;;  %825 = vst.msk [vmem:[#allocation4 + $0x50] sm:$0xff] %vm280_vm0, %v713_v16  ;;  %v729_v11 = vor.u32 %v728_v38, %v725_v9  ;;  %v737_v53 = vrot.slane %v735_v52, 4  ;;  %6964 = vmatprep.mubr.msk.bf16.mxu0 %vm3246_vm15, %v3218_v6  ;;  %v1335_v3 = vpop.permute.xlu0 %1334  ;;  %v4179_v0 = vld [vmem:[#allocation3] sm:$0xf0] }
 0x163   : > { %v742_v60 = vrot.slane %v740_v12, 3  ;;  %v745_v29 = vrot.slane %v743_v24, 4  ;;  %v752_v31 = vshll.u32 %v520_v4, 16  ;;  %v757_v28 = vshrl.u32 %v521_v25, 16  ;;  %v965_v15 = vpop.permute.xlu1 %964  ;;  %v4180_v26 = vld [vmem:[#allocation3 + $0x8] sm:$0x1f] }
 0x164   : > { %v751_v30 = vrot.slane %v749_v58, 3  ;;  %v760_v50 = vshll.u32 %v521_v25, 16  ;;  %v730_v35 = vsel %vm526_vm5, %v721_v14, %v729_v11  ;;  %v738_v46 = vor.u32 %v737_v53, %v734_v19  ;;  %1003 = vst.msk [vmem:[#allocation4 + $0x50] sm:$0xff] %vm992_vm6, %v965_v15 }
 0x165   : > { %v746_v39 = vor.u32 %v745_v29, %v742_v60  ;;  %v766_v17 = vshrl.u32 %v522_v22, 16  ;;  %826 = vst.msk [vmem:[#allocation4 + $0x58] sm:$0xff] %vm280_vm0, %v730_v35  ;;  %v754_v33 = vrot.slane %v752_v31, 4  ;;  %v759_v36 = vrot.slane %v757_v28, 3 }
 0x166   : > { %v762_v18 = vrot.slane %v760_v50, 4  ;;  %v769_v23 = vshll.u32 %v522_v22, 16  ;;  %1373 = vst.msk [vmem:[#allocation4 + $0x50] sm:$0xff] %vm1362_vm7, %v1335_v3  ;;  %v774_v40 = vshrl.u32 %v523_v57, 16  ;;  %v777_v32 = vshll.u32 %v523_v57, 16  ;;  %v1704_v37 = vpop.permute.xlu0 %1703 }
 0x167   : > { %v747_v61 = vsel %vm526_vm5, %v738_v46, %v746_v39  ;;  %v768_v56 = vrot.slane %v766_v17, 3  ;;  %v755_v51 = vor.u32 %v754_v33, %v751_v30  ;;  %v783_v49 = vshrl.u32 %v524_v5, 16  ;;  %v967_v27 = vpop.permute.xlu1 %966  ;;  %1742 = vst.msk [vmem:[#allocation4 + $0x50] sm:$0xff] %vm1731_vm8, %v1704_v37 }
 0x168   : > { %827 = vst.msk [vmem:[#allocation4 + $0x60] sm:$0xff] %vm280_vm0, %v747_v61  ;;  %v763_v41 = vor.u32 %v762_v18, %v759_v36  ;;  %v771_v48 = vrot.slane %v769_v23, 4  ;;  %v776_v42 = vrot.slane %v774_v40, 3  ;;  %v779_v10 = vrot.slane %v777_v32, 4  ;;  %v3219_v44 = vld [vmem:[#allocation4 + $0x48] sm:$0xff] }
 0x169   : > { %v786_v2 = vshll.u32 %v524_v5, 16  ;;  %v791_v62 = vshrl.u32 %v525_v1, 16  ;;  %1004 = vst.msk [vmem:[#allocation4 + $0x58] sm:$0xff] %vm992_vm6, %v967_v27  ;;  %v785_v54 = vrot.slane %v783_v49, 3  ;;  %v794_v55 = vshll.u32 %v525_v1, 16  ;;  %6965 = vmatmul.mubr.msk.bf16.gmra.mrb[16].mxu0 %vm3246_vm15, %v3219_v44 }
 0x16a   : > { %v764_v20 = vsel %vm526_vm5, %v755_v51, %v763_v41  ;;  %v772_v45 = vor.u32 %v771_v48, %v768_v56  ;;  %v780_v34 = vor.u32 %v779_v10, %v776_v42  ;;  %v4067_v8 = vrot.slane %v4003_v47, 4  ;;  %v1881_v38 = vpop.permute.xlu0 %1880  ;;  %v8062_v42 = vld [vmem:[%s9016_s2] ss:$0 sm:$0xff] }
 0x16b   : > { %828 = vst.msk [vmem:[#allocation4 + $0x68] sm:$0xff] %vm280_vm0, %v764_v20  ;;  %v788_v63 = vrot.slane %v786_v2, 4  ;;  %v793_v4 = vrot.slane %v791_v62, 3  ;;  %v796_v59 = vrot.slane %v794_v55, 4  ;;  %v4068_v9 = vrot.slane %v4004_v21, 4  ;;  %v1337_v43 = vpop.permute.xlu1 %1336 }
 0x16c   : > { %v4212_v7 = vshrl.u32 %v4179_v0, 16  ;;  %v4215_v13 = vshll.u32 %v4179_v0, 16  ;;  %v781_v52 = vsel %vm526_vm5, %v772_v45, %v780_v34  ;;  %v4220_v24 = vshrl.u32 %v4180_v26, 16  ;;  %1374 = vst.msk [vmem:[#allocation4 + $0x58] sm:$0xff] %vm1362_vm7, %v1337_v43  ;;  %v8070_v44 = vld [vmem:[%s9017_s3] ss:$0 sm:$0xff] }
 0x16d   : > { %v789_v12 = vor.u32 %v788_v63, %v785_v54  ;;  %v4223_v25 = vshll.u32 %v4180_v26, 16  ;;  %1919 = vst.msk [vmem:[#allocation4 + $0x50] sm:$0xff] %vm1908_vm9, %v1881_v38  ;;  %v797_v16 = vor.u32 %v796_v59, %v793_v4  ;;  %v4069_v14 = vsel %vm895_vm4, %v4067_v8, %v4068_v9 }
 0x16e   : > { %829 = vst.msk [vmem:[#allocation4 + $0x70] sm:$0xff] %vm280_vm0, %v781_v52  ;;  %v4214_v19 = vrot.slane %v4212_v7, 4  ;;  %v4217_v58 = vrot.slane %v4215_v13, 5  ;;  %4115 = vrot.lane.b32.xlu0 %v4069_v14, %s7089_s30  ;;  %v4222_v22 = vrot.slane %v4220_v24, 4 }
 0x16f   : > { %v4225_v11 = vrot.slane %v4223_v25, 5  ;;  %v798_v6 = vsel %vm526_vm5, %v789_v12, %v797_v16  ;;  %v1706_v60 = vpop.permute.xlu1 %1705  ;;  %v2250_v30 = vpop.permute.xlu0 %2249 }
 0x170   : > { %v4218_v53 = vor.u32 %v4217_v58, %v4214_v19  ;;  %830 = vst.msk [vmem:[#allocation4 + $0x78] sm:$0xff] %vm280_vm0, %v798_v6 }
 0x171   : > { %v4226_v29 = vor.u32 %v4225_v11, %v4222_v22  ;;  %1743 = vst.msk [vmem:[#allocation4 + $0x58] sm:$0xff] %vm1731_vm8, %v1706_v60  ;;  %v3668_v60 = vld [vmem:[#allocation3 + $0x8] sm:$0xf] }
 0x172   : > { %2288 = vst.msk [vmem:[#allocation4 + $0x50] sm:$0xff] %vm2277_vm10, %v2250_v30 }
 0x173   : > { %v4227_v31 = vsel %vm1041_vm3, %v4218_v53, %v4226_v29  ;;  %v1883_v28 = vpop.permute.xlu1 %1882  ;;  %v3667_v53 = vld [vmem:[#allocation3] sm:$0xf8] }
 0x174   : > { %4483 = vrot.lane.b32.xlu0 %v4227_v31, %s7090_s8  ;;  %1920 = vst.msk [vmem:[#allocation4 + $0x58] sm:$0xff] %vm1908_vm9, %v1883_v28  ;;  %v3700_v29 = vshrl.u32 %v3667_v53, 16  ;;  %v3703_v30 = vshll.u32 %v3667_v53, 16  ;;  %v3708_v31 = vshrl.u32 %v3668_v60, 16  ;;  %v3711_v28 = vshll.u32 %v3668_v60, 16 }
 0x177   : > { %v2252_v50 = vpop.permute.xlu1 %2251  ;;  %v2620_v57 = vpop.permute.xlu0 %2619 }
 0x178   : > { %2289 = vst.msk [vmem:[#allocation4 + $0x58] sm:$0xff] %vm2277_vm10, %v2252_v50  ;;  %v3702_v50 = vrot.slane %v3700_v29, 3 }
 0x179   : > { %2658 = vst.msk [vmem:[#allocation4 + $0x50] sm:$0xff] %vm2647_vm11, %v2620_v57  ;;  %v3705_v57 = vrot.slane %v3703_v30, 4 }
 0x17b   : > { %v2797_v15 = vpop.permute.xlu0 %2796 }
 0x17c   : > { %2835 = vst.msk [vmem:[#allocation4 + $0x50] sm:$0xff] %vm2824_vm12, %v2797_v15  ;;  %v3710_v15 = vrot.slane %v3708_v31, 3 }
 0x17f   : > { %v3166_v35 = vpop.permute.xlu0 %3165 }
 0x180   : > { %3204 = vst.msk [vmem:[#allocation4 + $0x50] sm:$0xff] %vm3193_vm13, %v3166_v35  ;;  %v3713_v35 = vrot.slane %v3711_v28, 4 }
 0x184   : > { %v2622_v3 = vpop.permute.xlu1 %2621 }
 0x185   : > { %2659 = vst.msk [vmem:[#allocation4 + $0x58] sm:$0xff] %vm2647_vm11, %v2622_v3 }
 0x187   : > { %v3220_v17 = vld [vmem:[#allocation4 + $0x50] sm:$0xff] }
 0x188   : > { %v2799_v46 = vpop.permute.xlu1 %2798  ;;  %v3168_v39 = vpop.permute.xlu0 %3167  ;;  %6968 = vmatprep.mubr.msk.bf16.mxu0 %vm3246_vm15, %v3220_v17 }
 0x189   : > { %2836 = vst.msk [vmem:[#allocation4 + $0x58] sm:$0xff] %vm2824_vm12, %v2799_v46 }
 0x18a   : > { %3205 = vst.msk [vmem:[#allocation4 + $0x58] sm:$0xff] %vm3193_vm13, %v3168_v39 }
 0x18c   : > { %v969_v5 = vpop.permute.xlu1 %968  ;;  %v1339_v33 = vpop.permute.xlu0 %1338 }
 0x18d   : > { %1005 = vst.msk [vmem:[#allocation4 + $0x60] sm:$0xff] %vm992_vm6, %v969_v5 }
 0x18e   : > { %1375 = vst.msk [vmem:[#allocation4 + $0x60] sm:$0xff] %vm1362_vm7, %v1339_v33 }
 0x190   : > { %v971_v36 = vpop.permute.xlu1 %970  ;;  %v1708_v18 = vpop.permute.xlu0 %1707 }
 0x191   : > { %1006 = vst.msk [vmem:[#allocation4 + $0x68] sm:$0xff] %vm992_vm6, %v971_v36  ;;  %v3221_v23 = vld [vmem:[#allocation4 + $0x58] sm:$0xff] }
 0x192   : > { %1744 = vst.msk [vmem:[#allocation4 + $0x60] sm:$0xff] %vm1731_vm8, %v1708_v18  ;;  %6969 = vmatmul.mubr.msk.bf16.gmra.mrb[20].mxu0 %vm3246_vm15, %v3221_v23 }
 0x194   : > { %v1341_v1 = vpop.permute.xlu1 %1340  ;;  %v1885_v61 = vpop.permute.xlu0 %1884 }
 0x195   : > { %1376 = vst.msk [vmem:[#allocation4 + $0x68] sm:$0xff] %vm1362_vm7, %v1341_v1  ;;  %v3706_v1 = vor.u32 %v3705_v57, %v3702_v50 }
 0x196   : > { %1921 = vst.msk [vmem:[#allocation4 + $0x60] sm:$0xff] %vm1908_vm9, %v1885_v61 }
 0x198   : > { %v1710_v56 = vpop.permute.xlu1 %1709  ;;  %v2254_v40 = vpop.permute.xlu0 %2253 }
 0x199   : > { %1745 = vst.msk [vmem:[#allocation4 + $0x68] sm:$0xff] %vm1731_vm8, %v1710_v56 }
 0x19a   : > { %2290 = vst.msk [vmem:[#allocation4 + $0x60] sm:$0xff] %vm2277_vm10, %v2254_v40 }
 0x19c   : > { %v1887_v32 = vpop.permute.xlu1 %1886 }
 0x19d   : > { %1922 = vst.msk [vmem:[#allocation4 + $0x68] sm:$0xff] %vm1908_vm9, %v1887_v32  ;;  %v3714_v32 = vor.u32 %v3713_v35, %v3710_v15 }
 0x19f   : > { %v2624_v41 = vpop.permute.xlu0 %2623 }
 0x1a0   : > { %v2256_v51 = vpop.permute.xlu1 %2255  ;;  %2660 = vst.msk [vmem:[#allocation4 + $0x60] sm:$0xff] %vm2647_vm11, %v2624_v41 }
 0x1a1   : > { %2291 = vst.msk [vmem:[#allocation4 + $0x68] sm:$0xff] %vm2277_vm10, %v2256_v51 }
 0x1a3   : > { %v2801_v48 = vpop.permute.xlu0 %2800 }
 0x1a4   : > { %2837 = vst.msk [vmem:[#allocation4 + $0x60] sm:$0xff] %vm2824_vm12, %v2801_v48 }
 0x1a7   : > { %v3170_v49 = vpop.permute.xlu0 %3169 }
 0x1a8   : > { %3206 = vst.msk [vmem:[#allocation4 + $0x60] sm:$0xff] %vm3193_vm13, %v3170_v49 }
 0x1ac   : > { %v2626_v47 = vpop.permute.xlu1 %2625 }
 0x1ad   : > { %2661 = vst.msk [vmem:[#allocation4 + $0x68] sm:$0xff] %vm2647_vm11, %v2626_v47 }
 0x1ae   : > { %v6950_v10 = vpop.f32.mrb[0].mxu0 }
 0x1af   : > { %v3172_v27 = vpop.permute.xlu0 %3171  ;;  %v3222_v37 = vld [vmem:[#allocation4 + $0x60] sm:$0xff]  ;;  %v3469_v0 = vmul.f32 %v6950_v10, %v8062_v42  ;;  %v3333_v20 = vpop.f32.mrb[1].mxu0 }
 0x1b0   : > { %v2803_v21 = vpop.permute.xlu1 %2802  ;;  %6972 = vmatprep.mubr.msk.bf16.mxu0 %vm3246_vm15, %v3222_v37  ;;  %v3467_v45 = vmul.f32 %v8062_v42, %v3333_v20  ;;  %v6951_v54 = vpop.f32.mrb[2].mxu0  ;;  %v3715_v20 = vsel %vm526_vm5, %v3706_v1, %v3714_v32 }
 0x1b1   : > { %2838 = vst.msk [vmem:[#allocation4 + $0x68] sm:$0xff] %vm2824_vm12, %v2803_v21  ;;  %v3508_v55 = vadd.f32 %v8070_v44, %v3469_v0  ;;  %v3470_v26 = vmul.f32 %v6951_v54, %v8062_v42  ;;  %v3336_v34 = vpop.f32.mrb[3].mxu0 }
 0x1b2   : > { %3207 = vst.msk [vmem:[#allocation4 + $0x68] sm:$0xff] %vm3193_vm13, %v3172_v27  ;;  %v3506_v8 = vadd.f32 %v8070_v44, %v3467_v45  ;;  %v3468_v59 = vmul.f32 %v8062_v42, %v3336_v34 }
 0x1b3   : > { %v1343_v62 = vpop.permute.xlu0 %1342  ;;  %v3509_v7 = vadd.f32 %v8070_v44, %v3470_v26  ;;  %v3540_v43 = vmax.f32 %v3508_v55, 0.0  ;;  %3987 = vst.msk [vmem:[#allocation4] sm:$0xff] %vm280_vm0, %v3715_v20 }
 0x1b4   : > { %v973_v2 = vpop.permute.xlu1 %972  ;;  %v3507_v13 = vadd.f32 %v8070_v44, %v3468_v59  ;;  %v3538_v24 = vmax.f32 %v3506_v8, 0.0 }
 0x1b5   : > { %1007 = vst.msk [vmem:[#allocation4 + $0x70] sm:$0xff] %vm992_vm6, %v973_v2  ;;  %v3541_v38 = vmax.f32 %v3509_v7, 0.0 }
 0x1b6   : > { %1377 = vst.msk [vmem:[#allocation4 + $0x70] sm:$0xff] %vm1362_vm7, %v1343_v62  ;;  %v3539_v25 = vmax.f32 %v3507_v13, 0.0 }
 0x1b7   : > { %v1712_v4 = vpop.permute.xlu0 %1711  ;;  %v3571_v16 = vpack.c.bf16 %v3541_v38, %v3540_v43 }
 0x1b8   : > { %v975_v63 = vpop.permute.xlu1 %974  ;;  %1746 = vst.msk [vmem:[#allocation4 + $0x70] sm:$0xff] %vm1731_vm8, %v1712_v4  ;;  %v3570_v14 = vpack.c.bf16 %v3539_v25, %v3538_v24 }
 0x1b9   : > { %1008 = vst.msk [vmem:[#allocation4 + $0x78] sm:$0xff] %vm992_vm6, %v975_v63  ;;  %v3223_v9 = vld [vmem:[#allocation4 + $0x68] sm:$0xff]  ;;  %v3603_v19 = vrot.slane %v3571_v16, 4 }
 0x1ba   : > { %6973 = vmatmul.mubr.msk.bf16.gmra.mrb[24].mxu0 %vm3246_vm15, %v3223_v9  ;;  %v3602_v11 = vrot.slane %v3570_v14, 4 }
 0x1bb   : > { %v1889_v12 = vpop.permute.xlu0 %1888  ;;  %3637 = vst.msk [vmem:[#allocation3 + $0x20] sm:$0xf0] %vm305_vm2, %v3603_v19 }
 0x1bc   : > { %v1345_v52 = vpop.permute.xlu1 %1344  ;;  %1923 = vst.msk [vmem:[#allocation4 + $0x70] sm:$0xff] %vm1908_vm9, %v1889_v12 }
 0x1bd   : > { %1378 = vst.msk [vmem:[#allocation4 + $0x78] sm:$0xff] %vm1362_vm7, %v1345_v52 }
 0x1be   : > { %3638 = vst.msk [vmem:[#allocation3 + $0x28] sm:$0xf] %vm286_vm1, %v3603_v19  ;;  %3636 = vst.msk [vmem:[#allocation3 + $0x18] sm:$0xf] %vm286_vm1, %v3602_v11 }
 0x1bf   : > { %3635 = vst.msk [vmem:[#allocation3 + $0x10] sm:$0xf0] %vm305_vm2, %v3602_v11 }
 0x1c0   : > { %v1714_v58 = vpop.permute.xlu1 %1713  ;;  %v2258_v22 = vpop.permute.xlu0 %2257 }
 0x1c1   : > { %1747 = vst.msk [vmem:[#allocation4 + $0x78] sm:$0xff] %vm1731_vm8, %v1714_v58 }
 0x1c2   : > { %2292 = vst.msk [vmem:[#allocation4 + $0x70] sm:$0xff] %vm2277_vm10, %v2258_v22  ;;  %v5828_v39 = vld [vmem:[#allocation3 + $0x20] sm:$0xf0] }
 0x1c3   : > { %v4917_v5 = vld [vmem:[#allocation3 + $0x20] sm:$0xf0]  ;;  %v5892_v33 = vrot.slane %v5828_v39, 4 }
 0x1c4   : > { %v1891_v6 = vpop.permute.xlu1 %1890  ;;  %v4982_v23 = vrot.slane %v4917_v5, 4  ;;  %v4007_v56 = vld [vmem:[#allocation3 + $0x20] sm:$0xf0] }
 0x1c5   : > { %1924 = vst.msk [vmem:[#allocation4 + $0x78] sm:$0xff] %vm1908_vm9, %v1891_v6  ;;  %v5829_v17 = vld [vmem:[#allocation3 + $0x28] sm:$0xf]  ;;  %v4073_v41 = vrot.slane %v4007_v56, 4  ;;  %v4916_v47 = vld [vmem:[#allocation3 + $0x18] sm:$0xf] }
 0x1c6   : > { %v5893_v36 = vrot.slane %v5829_v17, 4  ;;  %v4918_v18 = vld [vmem:[#allocation3 + $0x28] sm:$0xf]  ;;  %v4915_v49 = vld [vmem:[#allocation3 + $0x10] sm:$0xf0]  ;;  %v4980_v2 = vrot.slane %v4916_v47, 4 }
 0x1c7   : > { %v4983_v61 = vrot.slane %v4918_v18, 4  ;;  %v4008_v40 = vld [vmem:[#allocation3 + $0x28] sm:$0xf]  ;;  %v4979_v10 = vrot.slane %v4915_v49, 4  ;;  %v5460_v62 = vld [vmem:[#allocation3 + $0x20] sm:$0xf8] }
 0x1c8   : > { %v2260_v3 = vpop.permute.xlu1 %2259  ;;  %v2628_v46 = vpop.permute.xlu0 %2627  ;;  %v5894_v51 = vsel %vm895_vm4, %v5892_v33, %v5893_v36  ;;  %v4074_v48 = vrot.slane %v4008_v40, 4  ;;  %v5461_v0 = vld [vmem:[#allocation3 + $0x28] sm:$0xf]  ;;  %v5493_v45 = vshrl.u32 %v5460_v62, 16  ;;  %v5496_v54 = vshll.u32 %v5460_v62, 16 }
 0x1c9   : > { %2293 = vst.msk [vmem:[#allocation4 + $0x78] sm:$0xff] %vm2277_vm10, %v2260_v3  ;;  %5940 = vrot.lane.b32.xlu0 %v5894_v51, %s7092_s10  ;;  %v4984_v37 = vsel %vm895_vm4, %v4982_v23, %v4983_v61  ;;  %v5501_v55 = vshrl.u32 %v5461_v0, 16  ;;  %v4005_v26 = vld [vmem:[#allocation3 + $0x10] sm:$0xf0]  ;;  %v4981_v63 = vsel %vm895_vm4, %v4979_v10, %v4980_v2  ;;  %v5504_v4 = vshll.u32 %v5461_v0, 16 }
 0x1ca   : > { %2662 = vst.msk [vmem:[#allocation4 + $0x70] sm:$0xff] %vm2647_vm11, %v2628_v46  ;;  %5029 = vrot.lane.b32.xlu1 %v4984_v37, %s7091_s9  ;;  %v4075_v34 = vsel %vm895_vm4, %v4073_v41, %v4074_v48  ;;  %v4006_v8 = vld [vmem:[#allocation3 + $0x18] sm:$0xf]  ;;  %v4070_v59 = vrot.slane %v4005_v26, 4  ;;  %v6004_v9 = vld [vmem:[#allocation3 + $0x20] sm:$0xf0] }
 0x1cb   : > { %v5495_v7 = vrot.slane %v5493_v45, 3  ;;  %v5498_v13 = vrot.slane %v5496_v54, 4  ;;  %v5503_v43 = vrot.slane %v5501_v55, 3  ;;  %v4071_v38 = vrot.slane %v4006_v8, 4  ;;  %v6954_v52 = vpop.f32.mrb[4].mxu0 }
 0x1cc   : > { %v2630_v21 = vpop.permute.xlu1 %2629  ;;  %v2805_v27 = vpop.permute.xlu0 %2804  ;;  %v5506_v25 = vrot.slane %v5504_v4, 4  ;;  %v3473_v16 = vmul.f32 %v6954_v52, %v8062_v42  ;;  %v6005_v14 = vld [vmem:[#allocation3 + $0x28] sm:$0x1f]  ;;  %v6037_v19 = vshrl.u32 %v6004_v9, 16  ;;  %v6040_v58 = vshll.u32 %v6004_v9, 16 }
 0x1cd   : > { %2663 = vst.msk [vmem:[#allocation4 + $0x78] sm:$0xff] %vm2647_vm11, %v2630_v21  ;;  %5027 = vrot.lane.b32.xlu0 %v4981_v63, %s7091_s9  ;;  %v5499_v22 = vor.u32 %v5498_v13, %v5495_v7  ;;  %v4072_v11 = vsel %vm895_vm4, %v4070_v59, %v4071_v38  ;;  %v3349_v6 = vpop.f32.mrb[5].mxu0  ;;  %v6045_v53 = vshrl.u32 %v6005_v14, 16  ;;  %v6048_v60 = vshll.u32 %v6005_v14, 16  ;;  %v4549_v57 = vld [vmem:[#allocation3 + $0x20] sm:$0xf8] }
 0x1ce   : > { %2839 = vst.msk [vmem:[#allocation4 + $0x70] sm:$0xff] %vm2824_vm12, %v2805_v27  ;;  %4119 = vrot.lane.b32.xlu1 %v4075_v34, %s7089_s30  ;;  %v5507_v29 = vor.u32 %v5506_v25, %v5503_v43  ;;  %v3512_v30 = vadd.f32 %v8070_v44, %v3473_v16  ;;  %v3471_v31 = vmul.f32 %v8062_v42, %v3349_v6  ;;  %v6955_v28 = vpop.f32.mrb[6].mxu0  ;;  %v6039_v50 = vrot.slane %v6037_v19, 4  ;;  %v4550_v17 = vld [vmem:[#allocation3 + $0x28] sm:$0xf] }
 0x1cf   : > { %v3474_v15 = vmul.f32 %v6955_v28, %v8062_v42  ;;  %v3352_v35 = vpop.f32.mrb[7].mxu0  ;;  %v6042_v3 = vrot.slane %v6040_v58, 5  ;;  %v6047_v46 = vrot.slane %v6045_v53, 4  ;;  %v6050_v39 = vrot.slane %v6048_v60, 5  ;;  %v4183_v32 = vld [vmem:[#allocation3 + $0x20] sm:$0xf0] }
 0x1d0   : > { %v2807_v12 = vpop.permute.xlu1 %2806  ;;  %v3174_v24 = vpop.permute.xlu0 %3173  ;;  %v5508_v33 = vsel %vm526_vm5, %v5499_v22, %v5507_v29  ;;  %v3544_v36 = vmax.f32 %v3512_v30, 0.0  ;;  %v3510_v18 = vadd.f32 %v8070_v44, %v3471_v31  ;;  %v3472_v23 = vmul.f32 %v8062_v42, %v3352_v35  ;;  %v4184_v47 = vld [vmem:[#allocation3 + $0x28] sm:$0x1f]  ;;  %v5093_v63 = vld [vmem:[#allocation3 + $0x20] sm:$0xf0] }
 0x1d1   : > { %2840 = vst.msk [vmem:[#allocation4 + $0x78] sm:$0xff] %vm2824_vm12, %v2807_v12  ;;  %5764 = vrot.lane.b32.xlu0 %v5508_v33, %s7095_s13  ;;  %v3513_v1 = vadd.f32 %v8070_v44, %v3474_v15  ;;  %v6043_v61 = vor.u32 %v6042_v3, %v6039_v50  ;;  %v6051_v56 = vor.u32 %v6050_v39, %v6047_v46  ;;  %v4597_v40 = vshrl.u32 %v4549_v57, 16  ;;  %v5094_v7 = vld [vmem:[#allocation3 + $0x28] sm:$0x1f]  ;;  %v4547_v13 = vld [vmem:[#allocation3 + $0x10] sm:$0xf8] }
 0x1d2   : > { %3208 = vst.msk [vmem:[#allocation4 + $0x70] sm:$0xff] %vm3193_vm13, %v3174_v24  ;;  %4117 = vrot.lane.b32.xlu1 %v4072_v11, %s7089_s30  ;;  %v3542_v51 = vmax.f32 %v3510_v18, 0.0  ;;  %v3511_v41 = vadd.f32 %v8070_v44, %v3472_v23  ;;  %v4600_v48 = vshll.u32 %v4549_v57, 16  ;;  %v4605_v49 = vshrl.u32 %v4550_v17, 16  ;;  %v4548_v24 = vld [vmem:[#allocation3 + $0x18] sm:$0xf] }
 0x1d3   : > { %v3545_v21 = vmax.f32 %v3513_v1, 0.0  ;;  %v6052_v27 = vsel %vm1041_vm3, %v6043_v61, %v6051_v56  ;;  %v4599_v37 = vrot.slane %v4597_v40, 3  ;;  %v4608_v10 = vshll.u32 %v4550_v17, 16  ;;  %v4181_v28 = vld [vmem:[#allocation3 + $0x10] sm:$0xf0] }
 0x1d4   : > { %v3176_v5 = vpop.permute.xlu1 %3175  ;;  %v3543_v62 = vmax.f32 %v3511_v41, 0.0  ;;  %v4602_v0 = vrot.slane %v4600_v48, 4  ;;  %v4607_v20 = vrot.slane %v4605_v49, 3  ;;  %v4246_v45 = vshrl.u32 %v4183_v32, 16  ;;  %v4182_v3 = vld [vmem:[#allocation3 + $0x18] sm:$0x1f] }
 0x1d5   : > { %3209 = vst.msk [vmem:[#allocation4 + $0x78] sm:$0xff] %vm3193_vm13, %v3176_v5  ;;  %v3573_v54 = vpack.c.bf16 %v3545_v21, %v3544_v36  ;;  %6308 = vrot.lane.b32.xlu0 %v6052_v27, %s7096_s14  ;;  %v4610_v55 = vrot.slane %v4608_v10, 4  ;;  %v4249_v26 = vshll.u32 %v4183_v32, 16  ;;  %v4254_v34 = vshrl.u32 %v4184_v47, 16  ;;  %v5091_v33 = vld [vmem:[#allocation3 + $0x10] sm:$0xf0] }
 0x1d6   : > { %v3572_v4 = vpack.c.bf16 %v3543_v62, %v3542_v51  ;;  %v4603_v8 = vor.u32 %v4602_v0, %v4599_v37  ;;  %v4248_v59 = vrot.slane %v4246_v45, 4  ;;  %v4257_v9 = vshll.u32 %v4184_v47, 16  ;;  %v5092_v41 = vld [vmem:[#allocation3 + $0x18] sm:$0x1f] }
 0x1d7   : > { %v3605_v43 = vrot.slane %v3573_v54, 4  ;;  %v4611_v38 = vor.u32 %v4610_v55, %v4607_v20  ;;  %v4251_v52 = vrot.slane %v4249_v26, 5  ;;  %v4256_v12 = vrot.slane %v4254_v34, 4 }
 0x1d8   : > { %v3604_v16 = vrot.slane %v3572_v4, 4  ;;  %v4259_v14 = vrot.slane %v4257_v9, 5  ;;  %v5141_v19 = vshrl.u32 %v5093_v63, 16  ;;  %v5144_v58 = vshll.u32 %v5093_v63, 16 }
 0x1d9   : > { %v3224_v2 = vld [vmem:[#allocation4 + $0x70] sm:$0xff]  ;;  %3641 = vst.msk [vmem:[#allocation3 + $0x40] sm:$0xf0] %vm305_vm2, %v3605_v43  ;;  %v4612_v22 = vsel %vm526_vm5, %v4603_v8, %v4611_v38  ;;  %v4252_v11 = vor.u32 %v4251_v52, %v4248_v59  ;;  %v5149_v6 = vshrl.u32 %v5094_v7, 16  ;;  %v5152_v53 = vshll.u32 %v5094_v7, 16 }
 0x1da   : > { %6976 = vmatprep.mubr.msk.bf16.mxu0 %vm3246_vm15, %v3224_v2  ;;  %3642 = vst.msk [vmem:[#allocation3 + $0x48] sm:$0xf] %vm286_vm1, %v3605_v43  ;;  %3640 = vst.msk [vmem:[#allocation3 + $0x38] sm:$0xf] %vm286_vm1, %v3604_v16  ;;  %4853 = vrot.lane.b32.xlu1 %v4612_v22, %s7093_s11  ;;  %v4260_v60 = vor.u32 %v4259_v14, %v4256_v12  ;;  %v5143_v29 = vrot.slane %v5141_v19, 4  ;;  %v5146_v30 = vrot.slane %v5144_v58, 5 }
 0x1db   : > { %3639 = vst.msk [vmem:[#allocation3 + $0x30] sm:$0xf0] %vm305_vm2, %v3604_v16  ;;  %v4580_v31 = vshrl.u32 %v4547_v13, 16  ;;  %v5151_v50 = vrot.slane %v5149_v6, 4  ;;  %v5154_v57 = vrot.slane %v5152_v53, 5  ;;  %v4583_v15 = vshll.u32 %v4547_v13, 16 }
 0x1dc   : > { %v3225_v25 = vld [vmem:[#allocation4 + $0x78] sm:$0xff]  ;;  %v4588_v35 = vshrl.u32 %v4548_v24, 16  ;;  %v4261_v46 = vsel %vm1041_vm3, %v4252_v11, %v4260_v60  ;;  %v5147_v39 = vor.u32 %v5146_v30, %v5143_v29  ;;  %v4591_v5 = vshll.u32 %v4548_v24, 16 }
 0x1dd   : > { %6977 = vmatmul.mubr.msk.bf16.gmra.mrb[28].mxu0 %vm3246_vm15, %v3225_v25  ;;  %v4582_v17 = vrot.slane %v4580_v31, 3  ;;  %4487 = vrot.lane.b32.xlu0 %v4261_v46, %s7090_s8  ;;  %v5155_v36 = vor.u32 %v5154_v57, %v5151_v50  ;;  %v4585_v18 = vrot.slane %v4583_v15, 4  ;;  %v4229_v1 = vshrl.u32 %v4181_v28, 16 }
 0x1de   : > { %v4590_v23 = vrot.slane %v4588_v35, 3  ;;  %v4593_v56 = vrot.slane %v4591_v5, 4  ;;  %v4232_v40 = vshll.u32 %v4181_v28, 16  ;;  %v4237_v32 = vshrl.u32 %v4182_v3, 16 }
 0x1df   : > { %v4240_v51 = vshll.u32 %v4182_v3, 16  ;;  %v5156_v48 = vsel %vm1041_vm3, %v5147_v39, %v5155_v36  ;;  %v4586_v49 = vor.u32 %v4585_v18, %v4582_v17  ;;  %v4231_v47 = vrot.slane %v4229_v1, 4 }
 0x1e0   : > { %v4116_v61 = vpop.permute.xlu0 %4115  ;;  %v5124_v21 = vshrl.u32 %v5091_v33, 16  ;;  %5397 = vrot.lane.b32.xlu1 %v5156_v48, %s7094_s12  ;;  %v4594_v27 = vor.u32 %v4593_v56, %v4590_v23  ;;  %v4234_v37 = vrot.slane %v4232_v40, 5  ;;  %v4239_v10 = vrot.slane %v4237_v32, 4  ;;  %v5832_v62 = vld [vmem:[#allocation3 + $0x40] sm:$0xf0] }
 0x1e1   : > { %4163 = vst.msk [vmem:[#allocation4] sm:$0xff] %vm992_vm6, %v4116_v61  ;;  %v4242_v2 = vrot.slane %v4240_v51, 5  ;;  %v5127_v20 = vshll.u32 %v5091_v33, 16  ;;  %v5132_v45 = vshrl.u32 %v5092_v41, 16  ;;  %v5135_v54 = vshll.u32 %v5092_v41, 16 }
 0x1e2   : > { %v5126_v0 = vrot.slane %v5124_v21, 4  ;;  %v5833_v55 = vld [vmem:[#allocation3 + $0x48] sm:$0xf]  ;;  %v4595_v26 = vsel %vm526_vm5, %v4586_v49, %v4594_v27  ;;  %v4235_v34 = vor.u32 %v4234_v37, %v4231_v47  ;;  %v5898_v4 = vrot.slane %v5832_v62, 4  ;;  %v4921_v8 = vld [vmem:[#allocation3 + $0x40] sm:$0xf0] }
 0x1e3   : > { %v4243_v63 = vor.u32 %v4242_v2, %v4239_v10  ;;  %v4922_v59 = vld [vmem:[#allocation3 + $0x48] sm:$0xf]  ;;  %4851 = vrot.lane.b32.xlu0 %v4595_v26, %s7093_s11  ;;  %v5129_v7 = vrot.slane %v5127_v20, 5  ;;  %v5134_v13 = vrot.slane %v5132_v45, 4  ;;  %v5137_v43 = vrot.slane %v5135_v54, 5 }
 0x1e4   : > { %v5899_v38 = vrot.slane %v5833_v55, 4  ;;  %v4011_v52 = vld [vmem:[#allocation3 + $0x40] sm:$0xf0]  ;;  %v4988_v24 = vrot.slane %v4921_v8, 4  ;;  %v4989_v25 = vrot.slane %v4922_v59, 4 }
 0x1e5   : > { %v4244_v12 = vsel %vm1041_vm3, %v4235_v34, %v4243_v63  ;;  %v4012_v16 = vld [vmem:[#allocation3 + $0x48] sm:$0xf]  ;;  %v4079_v14 = vrot.slane %v4011_v52, 4  ;;  %v5130_v19 = vor.u32 %v5129_v7, %v5126_v0  ;;  %v5138_v58 = vor.u32 %v5137_v43, %v5134_v13  ;;  %v4919_v11 = vld [vmem:[#allocation3 + $0x30] sm:$0xf0] }
 0x1e6   : > { %v4484_v9 = vpop.permute.xlu0 %4483  ;;  %4485 = vrot.lane.b32.xlu1 %v4244_v12, %s7090_s8  ;;  %v4080_v22 = vrot.slane %v4012_v16, 4  ;;  %v4920_v6 = vld [vmem:[#allocation3 + $0x38] sm:$0xf]  ;;  %v5900_v53 = vsel %vm895_vm4, %v5898_v4, %v5899_v38  ;;  %v4990_v60 = vsel %vm895_vm4, %v4988_v24, %v4989_v25  ;;  %v4985_v29 = vrot.slane %v4919_v11, 4  ;;  %v5830_v31 = vld [vmem:[#allocation3 + $0x30] sm:$0xf0] }
 0x1e7   : > { %4531 = vst.msk [vmem:[#allocation4] sm:$0xff] %vm1362_vm7, %v4484_v9  ;;  %v4986_v30 = vrot.slane %v4920_v6, 4  ;;  %v5831_v28 = vld [vmem:[#allocation3 + $0x38] sm:$0xf]  ;;  %v5139_v50 = vsel %vm1041_vm3, %v5130_v19, %v5138_v58  ;;  %v5895_v15 = vrot.slane %v5830_v31, 4 }
 0x1e8   : > { %v4081_v57 = vsel %vm895_vm4, %v4079_v14, %v4080_v22  ;;  %v5896_v35 = vrot.slane %v5831_v28, 4  ;;  %v5464_v3 = vld [vmem:[#allocation3 + $0x40] sm:$0xf8]  ;;  %v5465_v46 = vld [vmem:[#allocation3 + $0x48] sm:$0xf]  ;;  %5395 = vrot.lane.b32.xlu0 %v5139_v50, %s7094_s12 }
 0x1e9   : > { %v4987_v39 = vsel %vm895_vm4, %v4985_v29, %v4986_v30  ;;  %v5527_v17 = vshrl.u32 %v5464_v3, 16  ;;  %v5530_v5 = vshll.u32 %v5464_v3, 16  ;;  %v5535_v33 = vshrl.u32 %v5465_v46, 16  ;;  %v6008_v36 = vld [vmem:[#allocation3 + $0x40] sm:$0xf0] }
 0x1ea   : > { %5033 = vrot.lane.b32.xlu1 %v4990_v60, %s7091_s9  ;;  %v5897_v18 = vsel %vm895_vm4, %v5895_v15, %v5896_v35  ;;  %v5538_v23 = vshll.u32 %v5465_v46, 16  ;;  %v6009_v1 = vld [vmem:[#allocation3 + $0x48] sm:$0x1f]  ;;  %v6071_v61 = vshrl.u32 %v6008_v36, 16  ;;  %v6074_v56 = vshll.u32 %v6008_v36, 16 }
 0x1eb   : > { %v5529_v40 = vrot.slane %v5527_v17, 3  ;;  %v5532_v32 = vrot.slane %v5530_v5, 4  ;;  %v5537_v51 = vrot.slane %v5535_v33, 3  ;;  %v6079_v41 = vshrl.u32 %v6009_v1, 16  ;;  %v4009_v48 = vld [vmem:[#allocation3 + $0x30] sm:$0xf0] }
 0x1ec   : > { %v5540_v49 = vrot.slane %v5538_v23, 4  ;;  %v6958_v47 = vpop.f32.mrb[8].mxu0  ;;  %v6073_v21 = vrot.slane %v6071_v61, 4  ;;  %v6076_v27 = vrot.slane %v6074_v56, 5  ;;  %v6082_v37 = vshll.u32 %v6009_v1, 16  ;;  %5944 = vrot.lane.b32.xlu0 %v5900_v53, %s7092_s10 }
 0x1ed   : > { %v5533_v10 = vor.u32 %v5532_v32, %v5529_v40  ;;  %v3477_v2 = vmul.f32 %v6958_v47, %v8062_v42  ;;  %v3365_v62 = vpop.f32.mrb[9].mxu0  ;;  %v6081_v0 = vrot.slane %v6079_v41, 4  ;;  %v4010_v20 = vld [vmem:[#allocation3 + $0x38] sm:$0xf]  ;;  %v4076_v45 = vrot.slane %v4009_v48, 4 }
 0x1ee   : > { %4123 = vrot.lane.b32.xlu1 %v4081_v57, %s7089_s30  ;;  %v5541_v54 = vor.u32 %v5540_v49, %v5537_v51  ;;  %v3475_v55 = vmul.f32 %v8062_v42, %v3365_v62  ;;  %v6959_v26 = vpop.f32.mrb[10].mxu0  ;;  %v6077_v34 = vor.u32 %v6076_v27, %v6073_v21  ;;  %v6084_v63 = vrot.slane %v6082_v37, 5  ;;  %v4187_v4 = vld [vmem:[#allocation3 + $0x40] sm:$0xf0]  ;;  %v4188_v24 = vld [vmem:[#allocation3 + $0x48] sm:$0x1f] }
 0x1ef   : > { %v3516_v8 = vadd.f32 %v8070_v44, %v3477_v2  ;;  %v3478_v59 = vmul.f32 %v6959_v26, %v8062_v42  ;;  %v3368_v9 = vpop.f32.mrb[11].mxu0  ;;  %v4077_v7 = vrot.slane %v4010_v20, 4  ;;  %v4280_v13 = vshrl.u32 %v4187_v4, 16  ;;  %v4553_v25 = vld [vmem:[#allocation3 + $0x40] sm:$0xf8] }
 0x1f0   : > { %v5542_v43 = vsel %vm526_vm5, %v5533_v10, %v5541_v54  ;;  %v3514_v38 = vadd.f32 %v8070_v44, %v3475_v55  ;;  %v3476_v52 = vmul.f32 %v8062_v42, %v3368_v9  ;;  %v6085_v12 = vor.u32 %v6084_v63, %v6081_v0  ;;  %5031 = vrot.lane.b32.xlu0 %v4987_v39, %s7091_s9  ;;  %v4554_v22 = vld [vmem:[#allocation3 + $0x48] sm:$0xf]  ;;  %v6006_v3 = vld [vmem:[#allocation3 + $0x30] sm:$0xf0]  ;;  %v6007_v33 = vld [vmem:[#allocation3 + $0x38] sm:$0x1f] }
 0x1f1   : > { %v3548_v16 = vmax.f32 %v3516_v8, 0.0  ;;  %v3517_v14 = vadd.f32 %v8070_v44, %v3478_v59  ;;  %v4078_v19 = vsel %vm895_vm4, %v4076_v45, %v4077_v7  ;;  %v4282_v58 = vrot.slane %v4280_v13, 4  ;;  %v5097_v51 = vld [vmem:[#allocation3 + $0x40] sm:$0xf0]  ;;  %v5098_v21 = vld [vmem:[#allocation3 + $0x48] sm:$0x1f] }
 0x1f2   : > { %5942 = vrot.lane.b32.xlu1 %v5897_v18, %s7092_s10  ;;  %v3546_v11 = vmax.f32 %v3514_v38, 0.0  ;;  %v3515_v6 = vadd.f32 %v8070_v44, %v3476_v52  ;;  %v6086_v53 = vsel %vm1041_vm3, %v6077_v34, %v6085_v12  ;;  %v4283_v60 = vshll.u32 %v4187_v4, 16  ;;  %v4551_v62 = vld [vmem:[#allocation3 + $0x30] sm:$0xf8]  ;;  %v4552_v4 = vld [vmem:[#allocation3 + $0x38] sm:$0xf] }
 0x1f3   : > { %v3549_v29 = vmax.f32 %v3517_v14, 0.0  ;;  %v4288_v30 = vshrl.u32 %v4188_v24, 16  ;;  %v4291_v31 = vshll.u32 %v4188_v24, 16  ;;  %v4631_v28 = vshrl.u32 %v4553_v25, 16  ;;  %v5462_v13 = vld [vmem:[#allocation3 + $0x30] sm:$0xf8] }
 0x1f4   : > { %v3547_v50 = vmax.f32 %v3515_v6, 0.0  ;;  %v4285_v57 = vrot.slane %v4283_v60, 5  ;;  %v4634_v15 = vshll.u32 %v4553_v25, 16  ;;  %v4639_v35 = vshrl.u32 %v4554_v22, 16  ;;  %5768 = vrot.lane.b32.xlu0 %v5542_v43, %s7095_s13  ;;  %v5463_v24 = vld [vmem:[#allocation3 + $0x38] sm:$0xf] }
 0x1f5   : > { %v3575_v46 = vpack.c.bf16 %v3549_v29, %v3548_v16  ;;  %v4290_v39 = vrot.slane %v4288_v30, 4  ;;  %v4293_v17 = vrot.slane %v4291_v31, 5  ;;  %v4633_v5 = vrot.slane %v4631_v28, 3  ;;  %v5096_v60 = vld [vmem:[#allocation3 + $0x38] sm:$0x1f] }
 0x1f6   : > { %v3574_v36 = vpack.c.bf16 %v3547_v50, %v3546_v11  ;;  %4121 = vrot.lane.b32.xlu1 %v4078_v19, %s7089_s30  ;;  %v4286_v18 = vor.u32 %v4285_v57, %v4282_v58  ;;  %v4636_v23 = vrot.slane %v4634_v15, 4  ;;  %v4641_v1 = vrot.slane %v4639_v35, 3  ;;  %v4185_v50 = vld [vmem:[#allocation3 + $0x30] sm:$0xf0] }
 0x1f7   : > { %v3607_v61 = vrot.slane %v3575_v46, 4  ;;  %v4294_v56 = vor.u32 %v4293_v17, %v4290_v39  ;;  %v4642_v40 = vshll.u32 %v4554_v22, 16  ;;  %v6054_v32 = vshrl.u32 %v6006_v3, 16  ;;  %v4186_v46 = vld [vmem:[#allocation3 + $0x38] sm:$0x1f] }
 0x1f8   : > { %v3606_v41 = vrot.slane %v3574_v36, 4  ;;  %v4637_v48 = vor.u32 %v4636_v23, %v4633_v5  ;;  %v6057_v49 = vshll.u32 %v6006_v3, 16  ;;  %v6062_v47 = vshrl.u32 %v6007_v33, 16  ;;  %6312 = vrot.lane.b32.xlu0 %v6086_v53, %s7096_s14  ;;  %v5095_v53 = vld [vmem:[#allocation3 + $0x30] sm:$0xf0] }
 0x1f9   : > { %3645 = vst.msk [vmem:[#allocation3 + $0x60] sm:$0xf0] %vm305_vm2, %v3607_v61  ;;  %v4295_v27 = vsel %vm1041_vm3, %v4286_v18, %v4294_v56  ;;  %v4644_v37 = vrot.slane %v4642_v40, 4  ;;  %v6056_v10 = vrot.slane %v6054_v32, 4  ;;  %v6065_v2 = vshll.u32 %v6007_v33, 16 }
 0x1fa   : > { %3646 = vst.msk [vmem:[#allocation3 + $0x68] sm:$0xf] %vm286_vm1, %v3607_v61  ;;  %3644 = vst.msk [vmem:[#allocation3 + $0x58] sm:$0xf] %vm286_vm1, %v3606_v41  ;;  %v6059_v0 = vrot.slane %v6057_v49, 5  ;;  %v6064_v20 = vrot.slane %v6062_v47, 4 }
 0x1fb   : > { %3643 = vst.msk [vmem:[#allocation3 + $0x50] sm:$0xf0] %vm305_vm2, %v3606_v41  ;;  %v5175_v45 = vshrl.u32 %v5097_v51, 16  ;;  %v5178_v54 = vshll.u32 %v5097_v51, 16  ;;  %v4645_v55 = vor.u32 %v4644_v37, %v4641_v1  ;;  %v6067_v26 = vrot.slane %v6065_v2, 5 }
 0x1fc   : > { %v5183_v34 = vshrl.u32 %v5098_v21, 16  ;;  %v5186_v63 = vshll.u32 %v5098_v21, 16  ;;  %v6060_v8 = vor.u32 %v6059_v0, %v6056_v10  ;;  %v4614_v7 = vshrl.u32 %v4551_v62, 16  ;;  %4491 = vrot.lane.b32.xlu0 %v4295_v27, %s7090_s8 }
 0x1fd   : > { %v5177_v59 = vrot.slane %v5175_v45, 4  ;;  %v5180_v9 = vrot.slane %v5178_v54, 5  ;;  %v4646_v43 = vsel %vm526_vm5, %v4637_v48, %v4645_v55  ;;  %v6068_v38 = vor.u32 %v6067_v26, %v6064_v20 }
 0x1fe   : > { %v5185_v52 = vrot.slane %v5183_v34, 4  ;;  %v5188_v12 = vrot.slane %v5186_v63, 5  ;;  %4857 = vrot.lane.b32.xlu1 %v4646_v43, %s7093_s11  ;;  %v4616_v16 = vrot.slane %v4614_v7, 3  ;;  %v4617_v14 = vshll.u32 %v4551_v62, 16 }
 0x1ff   : > { %v5181_v25 = vor.u32 %v5180_v9, %v5177_v59  ;;  %v4622_v19 = vshrl.u32 %v4552_v4, 16  ;;  %v6069_v58 = vsel %vm1041_vm3, %v6060_v8, %v6068_v38  ;;  %v4625_v11 = vshll.u32 %v4552_v4, 16 }
 0x200   : > { %v5189_v22 = vor.u32 %v5188_v12, %v5185_v52  ;;  %v5510_v6 = vshrl.u32 %v5462_v13, 16  ;;  %v4619_v29 = vrot.slane %v4617_v14, 4  ;;  %v5513_v31 = vshll.u32 %v5462_v13, 16  ;;  %6310 = vrot.lane.b32.xlu0 %v6069_v58, %s7096_s14  ;;  %v5836_v36 = vld [vmem:[#allocation3 + $0x60] sm:$0xf0] }
 0x201   : > { %v4624_v30 = vrot.slane %v4622_v19, 3  ;;  %v5518_v28 = vshrl.u32 %v5463_v24, 16  ;;  %v4627_v15 = vrot.slane %v4625_v11, 4  ;;  %v5521_v3 = vshll.u32 %v5463_v24, 16  ;;  %v5837_v56 = vld [vmem:[#allocation3 + $0x68] sm:$0xf] }
 0x202   : > { %v5190_v57 = vsel %vm1041_vm3, %v5181_v25, %v5189_v22  ;;  %v5512_v35 = vrot.slane %v5510_v6, 3  ;;  %v4620_v39 = vor.u32 %v4619_v29, %v4616_v16  ;;  %v5515_v17 = vrot.slane %v5513_v31, 4  ;;  %v4925_v48 = vld [vmem:[#allocation3 + $0x60] sm:$0xf0]  ;;  %v4926_v49 = vld [vmem:[#allocation3 + $0x68] sm:$0xf] }
 0x203   : > { %5401 = vrot.lane.b32.xlu1 %v5190_v57, %s7094_s12  ;;  %v5520_v5 = vrot.slane %v5518_v28, 3  ;;  %v5158_v33 = vshrl.u32 %v5095_v53, 16  ;;  %v4628_v18 = vor.u32 %v4627_v15, %v4624_v30  ;;  %v5523_v23 = vrot.slane %v5521_v3, 4  ;;  %v4015_v10 = vld [vmem:[#allocation3 + $0x60] sm:$0xf0] }
 0x204   : > { %v5161_v1 = vshll.u32 %v5095_v53, 16  ;;  %v5166_v61 = vshrl.u32 %v5096_v60, 16  ;;  %v5516_v40 = vor.u32 %v5515_v17, %v5512_v35  ;;  %v5169_v51 = vshll.u32 %v5096_v60, 16  ;;  %v4016_v2 = vld [vmem:[#allocation3 + $0x68] sm:$0xf] }
 0x205   : > { %v5160_v32 = vrot.slane %v5158_v33, 4  ;;  %v4263_v41 = vshrl.u32 %v4185_v50, 16  ;;  %v4629_v47 = vsel %vm526_vm5, %v4620_v39, %v4628_v18  ;;  %v5524_v21 = vor.u32 %v5523_v23, %v5520_v5  ;;  %v4923_v54 = vld [vmem:[#allocation3 + $0x50] sm:$0xf0]  ;;  %v4924_v4 = vld [vmem:[#allocation3 + $0x58] sm:$0xf] }
 0x206   : > { %v5163_v27 = vrot.slane %v5161_v1, 5  ;;  %v5168_v37 = vrot.slane %v5166_v61, 4  ;;  %4855 = vrot.lane.b32.xlu0 %v4629_v47, %s7093_s11  ;;  %v5171_v62 = vrot.slane %v5169_v51, 5  ;;  %v4266_v20 = vshll.u32 %v4185_v50, 16  ;;  %v5834_v8 = vld [vmem:[#allocation3 + $0x50] sm:$0xf0] }
 0x207   : > { %v4265_v0 = vrot.slane %v4263_v41, 4  ;;  %v4271_v45 = vshrl.u32 %v4186_v46, 16  ;;  %v5525_v55 = vsel %vm526_vm5, %v5516_v40, %v5524_v21  ;;  %v4274_v34 = vshll.u32 %v4186_v46, 16  ;;  %v5835_v43 = vld [vmem:[#allocation3 + $0x58] sm:$0xf]  ;;  %v7040_v47 = vld [vmem:[%s9018_s4] sm:$0xff]  }
 0x208   : > { %v5164_v26 = vor.u32 %v5163_v27, %v5160_v32  ;;  %v5904_v63 = vrot.slane %v5836_v36, 4  ;;  %5766 = vrot.lane.b32.xlu1 %v5525_v55, %s7095_s13  ;;  %v5172_v59 = vor.u32 %v5171_v62, %v5168_v37  ;;  %v4268_v9 = vrot.slane %v4266_v20, 5  ;;  %v5468_v25 = vld [vmem:[#allocation3 + $0x60] sm:$0xf8]  ;;  %v5469_v22 = vld [vmem:[#allocation3 + $0x68] sm:$0xf]  ;;  %6980 = vmatprep.subr.bf16.mxu1 %v7040_v47 }
 0x209   : > { %v4273_v7 = vrot.slane %v4271_v45, 4  ;;  %v5905_v13 = vrot.slane %v5837_v56, 4  ;;  %v4276_v38 = vrot.slane %v4274_v34, 5  ;;  %v4994_v52 = vrot.slane %v4925_v48, 4  ;;  %v6012_v29 = vld [vmem:[#allocation3 + $0x60] sm:$0xf0]  ;;  %6981 = vmatpush3.bf16.msra.mxu1 %v7040_v47 }
 0x20a   : > { %v4995_v12 = vrot.slane %v4926_v49, 4  ;;  %v4085_v24 = vrot.slane %v4015_v10, 4  ;;  %v5173_v16 = vsel %vm1041_vm3, %v5164_v26, %v5172_v59  ;;  %v4269_v14 = vor.u32 %v4268_v9, %v4265_v0  ;;  %v6013_v57 = vld [vmem:[#allocation3 + $0x68] sm:$0x1f]  ;;  %v4013_v39 = vld [vmem:[#allocation3 + $0x50] sm:$0xf0] }
 0x20b   : > { %v5906_v19 = vsel %vm895_vm4, %v5904_v63, %v5905_v13  ;;  %v4086_v58 = vrot.slane %v4016_v2, 4  ;;  %5399 = vrot.lane.b32.xlu0 %v5173_v16, %s7094_s12  ;;  %v4277_v11 = vor.u32 %v4276_v38, %v4273_v7  ;;  %v4991_v53 = vrot.slane %v4923_v54, 4  ;;  %v4014_v18 = vld [vmem:[#allocation3 + $0x58] sm:$0xf]  ;;  %v4191_v40 = vld [vmem:[#allocation3 + $0x60] sm:$0xf0] }
 0x20c   : > { %v4996_v6 = vsel %vm895_vm4, %v4994_v52, %v4995_v12  ;;  %v4992_v60 = vrot.slane %v4924_v4, 4  ;;  %v5901_v31 = vrot.slane %v5834_v8, 4  ;;  %v5902_v28 = vrot.slane %v5835_v43, 4  ;;  %v8207_v26 = vld [vmem:[%s9016_s2] ss:$0 sm:$0xff] }
 0x20d   : > { %v4087_v30 = vsel %vm895_vm4, %v4085_v24, %v4086_v58  ;;  %v5561_v50 = vshrl.u32 %v5468_v25, 16  ;;  %v4278_v15 = vsel %vm1041_vm3, %v4269_v14, %v4277_v11  ;;  %v5564_v3 = vshll.u32 %v5468_v25, 16  ;;  %v8214_v59 = vld [vmem:[%s9017_s3] ss:$0 sm:$0xff]  ;;  %v4192_v13 = vld [vmem:[#allocation3 + $0x68] sm:$0x1f] }
 0x20e   : > { %v4993_v35 = vsel %vm895_vm4, %v4991_v53, %v4992_v60  ;;  %v5569_v46 = vshrl.u32 %v5469_v22, 16  ;;  %4489 = vrot.lane.b32.xlu1 %v4278_v15, %s7090_s8  ;;  %v8193_v17 = vsel %vm895_vm4, %v5901_v31, %v5902_v28  ;;  %v5572_v33 = vshll.u32 %v5469_v22, 16  ;;  %v4557_v43 = vld [vmem:[#allocation3 + $0x60] sm:$0xf8]  ;;  %v4558_v25 = vld [vmem:[#allocation3 + $0x68] sm:$0xf] }
 0x20f   : > { %v5563_v5 = vrot.slane %v5561_v50, 3  ;;  %v6105_v36 = vshrl.u32 %v6012_v29, 16  ;;  %5948 = vrot.lane.b32.xlu0 %v5906_v19, %s7092_s10  ;;  %v5566_v23 = vrot.slane %v5564_v3, 4  ;;  %v6108_v61 = vshll.u32 %v6012_v29, 16  ;;  %v6010_v22 = vld [vmem:[#allocation3 + $0x50] sm:$0xf0] }
 0x210   : > { %v5571_v1 = vrot.slane %v5569_v46, 3  ;;  %v6113_v56 = vshrl.u32 %v6013_v57, 16  ;;  %v5574_v32 = vrot.slane %v5572_v33, 4  ;;  %v6116_v48 = vshll.u32 %v6013_v57, 16  ;;  %v6011_v29 = vld [vmem:[#allocation3 + $0x58] sm:$0x1f] }
 0x211   : > { %v6107_v41 = vrot.slane %v6105_v36, 4  ;;  %v4082_v49 = vrot.slane %v4013_v39, 4  ;;  %v5567_v21 = vor.u32 %v5566_v23, %v5563_v5  ;;  %v6110_v10 = vrot.slane %v6108_v61, 5  ;;  %v7042_v39 = vld [vmem:[%s9018_s4 + $0x10] ss:$0 sps:$4 sm:$0x33]  }
 0x212   : > { %v6115_v2 = vrot.slane %v6113_v56, 4  ;;  %5037 = vrot.lane.b32.xlu1 %v4996_v6, %s7091_s9  ;;  %v5575_v62 = vor.u32 %v5574_v32, %v5571_v1  ;;  %v6118_v45 = vrot.slane %v6116_v48, 5  ;;  %v4083_v54 = vrot.slane %v4014_v18, 4 }
 0x213   : > { %v6962_v51 = vpop.f32.mrb[12].mxu0  ;;  %5035 = vrot.lane.b32.xlu0 %v4993_v35, %s7091_s9  ;;  %v6111_v4 = vor.u32 %v6110_v10, %v6107_v41  ;;  %v4314_v8 = vshrl.u32 %v4191_v40, 16  ;;  %v4317_v58 = vshll.u32 %v4191_v40, 16  ;;  %v4322_v6 = vshrl.u32 %v4192_v13, 16  ;;  %v5101_v40 = vld [vmem:[#allocation3 + $0x60] sm:$0xf0] }
 0x214   : > { %v3481_v27 = vmul.f32 %v6962_v51, %v8062_v42  ;;  %v3381_v37 = vpop.f32.mrb[13].mxu0  ;;  %v6119_v7 = vor.u32 %v6118_v45, %v6115_v2  ;;  %v4084_v12 = vsel %vm895_vm4, %v4082_v49, %v4083_v54  ;;  %v4325_v53 = vshll.u32 %v4192_v13, 16  ;;  %v5102_v49 = vld [vmem:[#allocation3 + $0x68] sm:$0x1f] }
 0x215   : > { %v3479_v0 = vmul.f32 %v8062_v42, %v3381_v37  ;;  %v6963_v20 = vpop.f32.mrb[14].mxu0  ;;  %v5576_v42 = vsel %vm526_vm5, %v5567_v21, %v5575_v62  ;;  %v4316_v24 = vrot.slane %v4314_v8, 4  ;;  %v4665_v60 = vshrl.u32 %v4557_v43, 16  ;;  %v4555_v37 = vld [vmem:[#allocation3 + $0x50] sm:$0xf8] }
 0x216   : > { %v3520_v55 = vadd.f32 %v8070_v44, %v3481_v27  ;;  %v3482_v34 = vmul.f32 %v8207_v26, %v6963_v20  ;;  %v3384_v63 = vpop.f32.mrb[15].mxu0  ;;  %4127 = vrot.lane.b32.xlu1 %v4087_v30, %s7089_s30  ;;  %v6120_v19 = vsel %vm1041_vm3, %v6111_v4, %v6119_v7  ;;  %v4319_v28 = vrot.slane %v4317_v58, 5  ;;  %v7041_v30 = vld [vmem:[%s9018_s4 + $0x8] sm:$0xff]  }
 0x217   : > { %v3518_v44 = vadd.f32 %v8214_v59, %v3479_v0  ;;  %v3480_v9 = vmul.f32 %v8207_v26, %v3384_v63  ;;  %5772 = vrot.lane.b32.xlu0 %v5576_v42, %s7095_s13  ;;  %v4668_v50 = vshll.u32 %v4557_v43, 16  ;;  %v4673_v57 = vshrl.u32 %v4558_v25, 16  ;;  %6982 = vmatprep.subr.bf16.mxu1 %v7041_v30 }
 0x218   : > { %v3552_v38 = vmax.f32 %v3520_v55, 0.0  ;;  %v3521_v52 = vadd.f32 %v8214_v59, %v3482_v34  ;;  %v4324_v35 = vrot.slane %v4322_v6, 4  ;;  %v4327_v3 = vrot.slane %v4325_v53, 5  ;;  %6983 = vmatpush3.bf16.msra.mxu1 %v7041_v30  ;;  %v4556_v34 = vld [vmem:[#allocation3 + $0x58] sm:$0xf] }
 0x219   : > { %v3550_v16 = vmax.f32 %v3518_v44, 0.0  ;;  %v3519_v14 = vadd.f32 %v8214_v59, %v3480_v9  ;;  %v4667_v46 = vrot.slane %v4665_v60, 3  ;;  %v4320_v33 = vor.u32 %v4319_v28, %v4316_v24  ;;  %7019 = vmatprep.subr.msk.bf16.mxu1 %vm3295_vm14, %v7042_v39  ;;  %v5466_v44 = vld [vmem:[#allocation3 + $0x50] sm:$0xf8] }
 0x21a   : > { %v3553_v11 = vmax.f32 %v3521_v52, 0.0  ;;  %5946 = vrot.lane.b32.xlu1 %v8193_v17, %s7092_s10  ;;  %v4670_v36 = vrot.slane %v4668_v50, 4  ;;  %v4675_v18 = vrot.slane %v4673_v57, 3  ;;  %v4328_v1 = vor.u32 %v4327_v3, %v4324_v35 }
 0x21b   : > { %v3551_v31 = vmax.f32 %v3519_v14, 0.0  ;;  %6316 = vrot.lane.b32.xlu0 %v6120_v19, %s7096_s14  ;;  %v4676_v61 = vshll.u32 %v4558_v25, 16  ;;  %v6088_v56 = vshrl.u32 %v6010_v22, 16  ;;  %v6091_v41 = vshll.u32 %v6010_v22, 16  ;;  %v5099_v22 = vld [vmem:[#allocation3 + $0x50] sm:$0xf0] }
 0x21c   : > { %v3577_v15 = vpack.c.bf16 %v3553_v11, %v3552_v38  ;;  %v4671_v51 = vor.u32 %v4670_v36, %v4667_v46  ;;  %v6096_v48 = vshrl.u32 %v6011_v29, 16  ;;  %v4329_v17 = vsel %vm1041_vm3, %v4320_v33, %v4328_v1  ;;  %v5467_v38 = vld [vmem:[#allocation3 + $0x58] sm:$0xf] }
 0x21d   : > { %v3576_v5 = vpack.c.bf16 %v3551_v31, %v3550_v16  ;;  %v4678_v47 = vrot.slane %v4676_v61, 4  ;;  %v6090_v21 = vrot.slane %v6088_v56, 4  ;;  %v6099_v27 = vshll.u32 %v6011_v29, 16  ;;  %v5100_v11 = vld [vmem:[#allocation3 + $0x58] sm:$0x1f] }
 0x21e   : > { %v3609_v23 = vrot.slane %v3577_v15, 4  ;;  %4125 = vrot.lane.b32.xlu1 %v4084_v12, %s7089_s30  ;;  %v6093_v10 = vrot.slane %v6091_v41, 5  ;;  %v6098_v2 = vrot.slane %v6096_v48, 4  ;;  %v5209_v62 = vshrl.u32 %v5101_v40, 16  ;;  %v4189_v31 = vld [vmem:[#allocation3 + $0x50] sm:$0xf0] }
 0x21f   : > { %v3608_v32 = vrot.slane %v3576_v5, 4  ;;  %v5212_v0 = vshll.u32 %v5101_v40, 16  ;;  %4495 = vrot.lane.b32.xlu0 %v4329_v17, %s7090_s8  ;;  %v4679_v20 = vor.u32 %v4678_v47, %v4675_v18  ;;  %v6101_v45 = vrot.slane %v6099_v27, 5  ;;  %v4190_v15 = vld [vmem:[#allocation3 + $0x58] sm:$0x1f] }
 0x220   : > { %3649 = vst.msk [vmem:[#allocation3 + $0x80] sm:$0xf0] %vm305_vm2, %v3609_v23  ;;  %v5217_v54 = vshrl.u32 %v5102_v49, 16  ;;  %v5220_v55 = vshll.u32 %v5102_v49, 16  ;;  %v6094_v63 = vor.u32 %v6093_v10, %v6090_v21  ;;  %v5211_v4 = vrot.slane %v5209_v62, 4 }
 0x221   : > { %3650 = vst.msk [vmem:[#allocation3 + $0x88] sm:$0xf] %vm286_vm1, %v3609_v23  ;;  %3648 = vst.msk [vmem:[#allocation3 + $0x78] sm:$0xf] %vm286_vm1, %v3608_v32  ;;  %v5214_v8 = vrot.slane %v5212_v0, 5  ;;  %v4648_v42 = vshrl.u32 %v4555_v37, 16  ;;  %v4680_v9 = vsel %vm526_vm5, %v4671_v51, %v4679_v20  ;;  %v6102_v7 = vor.u32 %v6101_v45, %v6098_v2 }
 0x222   : > { %3647 = vst.msk [vmem:[#allocation3 + $0x70] sm:$0xf0] %vm305_vm2, %v3608_v32  ;;  %v5219_v13 = vrot.slane %v5217_v54, 4  ;;  %v5222_v43 = vrot.slane %v5220_v55, 5  ;;  %4861 = vrot.lane.b32.xlu1 %v4680_v9, %s7093_s11  ;;  %v4651_v24 = vshll.u32 %v4555_v37, 16  ;;  %v4656_v25 = vshrl.u32 %v4556_v34, 16 }
 0x223   : > { %v5215_v52 = vor.u32 %v5214_v8, %v5211_v4  ;;  %v4650_v12 = vrot.slane %v4648_v42, 3  ;;  %v6103_v16 = vsel %vm1041_vm3, %v6094_v63, %v6102_v7  ;;  %v4659_v19 = vshll.u32 %v4556_v34, 16 }
 0x224   : > { %v5223_v14 = vor.u32 %v5222_v43, %v5219_v13  ;;  %v5544_v58 = vshrl.u32 %v5466_v44, 16  ;;  %6314 = vrot.lane.b32.xlu0 %v6103_v16, %s7096_s14  ;;  %v4653_v6 = vrot.slane %v4651_v24, 4  ;;  %v4658_v53 = vrot.slane %v4656_v25, 3 }
 0x225   : > { %v5547_v60 = vshll.u32 %v5466_v44, 16  ;;  %v5552_v29 = vshrl.u32 %v5467_v38, 16  ;;  %v4661_v50 = vrot.slane %v4659_v19, 4  ;;  %v5555_v30 = vshll.u32 %v5467_v38, 16 }
 0x226   : > { %v5224_v28 = vsel %vm1041_vm3, %v5215_v52, %v5223_v14  ;;  %v5546_v57 = vrot.slane %v5544_v58, 3  ;;  %v4654_v35 = vor.u32 %v4653_v6, %v4650_v12  ;;  %v5192_v39 = vshrl.u32 %v5099_v22, 16 }
 0x227   : > { %5405 = vrot.lane.b32.xlu1 %v5224_v28, %s7094_s12  ;;  %v5549_v3 = vrot.slane %v5547_v60, 4  ;;  %v5554_v46 = vrot.slane %v5552_v29, 3  ;;  %v5840_v5 = vld [vmem:[#allocation3 + $0x80] sm:$0xf0]  ;;  %v4662_v33 = vor.u32 %v4661_v50, %v4658_v53  ;;  %v5557_v36 = vrot.slane %v5555_v30, 4 }
 0x228   : > { %v5195_v18 = vshll.u32 %v5099_v22, 16  ;;  %v5200_v23 = vshrl.u32 %v5100_v11, 16  ;;  %v5841_v1 = vld [vmem:[#allocation3 + $0x88] sm:$0xf]  ;;  %v5194_v56 = vrot.slane %v5192_v39, 4  ;;  %v5203_v40 = vshll.u32 %v5100_v11, 16 }
 0x229   : > { %v5550_v61 = vor.u32 %v5549_v3, %v5546_v57  ;;  %v4297_v32 = vshrl.u32 %v4189_v31, 16  ;;  %v4929_v51 = vld [vmem:[#allocation3 + $0x80] sm:$0xf0]  ;;  %v4930_v41 = vld [vmem:[#allocation3 + $0x88] sm:$0xf]  ;;  %v4663_v48 = vsel %vm526_vm5, %v4654_v35, %v4662_v33  ;;  %v5558_v49 = vor.u32 %v5557_v36, %v5554_v46 }
 0x22a   : > { %v5197_v17 = vrot.slane %v5195_v18, 5  ;;  %v5202_v47 = vrot.slane %v5200_v23, 4  ;;  %v4019_v21 = vld [vmem:[#allocation3 + $0x80] sm:$0xf0]  ;;  %v4020_v27 = vld [vmem:[#allocation3 + $0x88] sm:$0xf]  ;;  %4859 = vrot.lane.b32.xlu0 %v4663_v48, %s7093_s11 }
 0x22b   : > { %v5205_v37 = vrot.slane %v5203_v40, 5  ;;  %v4299_v10 = vrot.slane %v4297_v32, 4  ;;  %v4300_v2 = vshll.u32 %v4189_v31, 16  ;;  %v4305_v62 = vshrl.u32 %v4190_v15, 16  ;;  %v4927_v0 = vld [vmem:[#allocation3 + $0x70] sm:$0xf0] }
 0x22c   : > { %v5559_v20 = vsel %vm526_vm5, %v5550_v61, %v5558_v49  ;;  %v5198_v45 = vor.u32 %v5197_v17, %v5194_v56  ;;  %v4308_v54 = vshll.u32 %v4190_v15, 16  ;;  %v5910_v55 = vrot.slane %v5840_v5, 4  ;;  %v4928_v34 = vld [vmem:[#allocation3 + $0x78] sm:$0xf]  ;;  %v5838_v63 = vld [vmem:[#allocation3 + $0x70] sm:$0xf0] }
 0x22d   : > { %5770 = vrot.lane.b32.xlu1 %v5559_v20, %s7095_s13  ;;  %v5206_v4 = vor.u32 %v5205_v37, %v5202_v47  ;;  %v4302_v8 = vrot.slane %v4300_v2, 5  ;;  %v4307_v42 = vrot.slane %v4305_v62, 4  ;;  %v5911_v44 = vrot.slane %v5841_v1, 4  ;;  %v5839_v9 = vld [vmem:[#allocation3 + $0x78] sm:$0xf] }
 0x22e   : > { %v4310_v7 = vrot.slane %v4308_v54, 5  ;;  %v5000_v13 = vrot.slane %v4929_v51, 4  ;;  %v5001_v43 = vrot.slane %v4930_v41, 4  ;;  %v4091_v38 = vrot.slane %v4019_v21, 4  ;;  %v5472_v52 = vld [vmem:[#allocation3 + $0x80] sm:$0xf8] }
 0x22f   : > { %v5207_v12 = vsel %vm1041_vm3, %v5198_v45, %v5206_v4  ;;  %v4303_v24 = vor.u32 %v4302_v8, %v4299_v10  ;;  %v5912_v25 = vsel %vm895_vm4, %v5910_v55, %v5911_v44  ;;  %v4092_v16 = vrot.slane %v4020_v27, 4  ;;  %v5473_v14 = vld [vmem:[#allocation3 + $0x88] sm:$0xf]  ;;  %v6016_v6 = vld [vmem:[#allocation3 + $0x80] sm:$0xf0] }
 0x230   : > { %5403 = vrot.lane.b32.xlu0 %v5207_v12, %s7094_s12  ;;  %v4311_v19 = vor.u32 %v4310_v7, %v4307_v42  ;;  %v5002_v58 = vsel %vm895_vm4, %v5000_v13, %v5001_v43  ;;  %v4997_v22 = vrot.slane %v4927_v0, 4  ;;  %v4998_v11 = vrot.slane %v4928_v34, 4  ;;  %v6017_v28 = vld [vmem:[#allocation3 + $0x88] sm:$0x1f]  ;;  %v4017_v35 = vld [vmem:[#allocation3 + $0x70] sm:$0xf0] }
 0x231   : > { %v4093_v53 = vsel %vm895_vm4, %v4091_v38, %v4092_v16  ;;  %v5907_v60 = vrot.slane %v5838_v63, 4  ;;  %v5908_v29 = vrot.slane %v5839_v9, 4  ;;  %v5595_v31 = vshrl.u32 %v5472_v52, 16  ;;  %v4018_v33 = vld [vmem:[#allocation3 + $0x78] sm:$0xf] }
 0x232   : > { %v4312_v50 = vsel %vm1041_vm3, %v4303_v24, %v4311_v19  ;;  %v4999_v57 = vsel %vm895_vm4, %v4997_v22, %v4998_v11  ;;  %v5598_v30 = vshll.u32 %v5472_v52, 16  ;;  %v5603_v15 = vshrl.u32 %v5473_v14, 16  ;;  %v4195_v61 = vld [vmem:[#allocation3 + $0x80] sm:$0xf0]  ;;  %v4196_v41 = vld [vmem:[#allocation3 + $0x88] sm:$0x1f] }
 0x233   : > { %4493 = vrot.lane.b32.xlu1 %v4312_v50, %s7090_s8  ;;  %v8260_v3 = vsel %vm895_vm4, %v5907_v60, %v5908_v29  ;;  %v5597_v46 = vrot.slane %v5595_v31, 3  ;;  %v5606_v39 = vshll.u32 %v5473_v14, 16  ;;  %v6139_v5 = vshrl.u32 %v6016_v6, 16  ;;  %v4561_v2 = vld [vmem:[#allocation3 + $0x80] sm:$0xf8] }
 0x234   : > { %5952 = vrot.lane.b32.xlu0 %v5912_v25, %s7092_s10  ;;  %v5600_v36 = vrot.slane %v5598_v30, 4  ;;  %v5605_v18 = vrot.slane %v5603_v15, 3  ;;  %v6142_v23 = vshll.u32 %v6016_v6, 16  ;;  %v6147_v1 = vshrl.u32 %v6017_v28, 16  ;;  %v4562_v54 = vld [vmem:[#allocation3 + $0x88] sm:$0xf] }
 0x235   : > { %v5608_v56 = vrot.slane %v5606_v39, 4  ;;  %v6141_v40 = vrot.slane %v6139_v5, 4  ;;  %v6150_v32 = vshll.u32 %v6017_v28, 16  ;;  %v4088_v51 = vrot.slane %v4017_v35, 4  ;;  %v6014_v8 = vld [vmem:[#allocation3 + $0x70] sm:$0xf0] }
 0x236   : > { %v5601_v48 = vor.u32 %v5600_v36, %v5597_v46  ;;  %v6144_v49 = vrot.slane %v6142_v23, 5  ;;  %v6149_v17 = vrot.slane %v6147_v1, 4  ;;  %v4089_v47 = vrot.slane %v4018_v33, 4  ;;  %v6015_v60 = vld [vmem:[#allocation3 + $0x78] sm:$0x1f] }
 0x237   : > { %5041 = vrot.lane.b32.xlu1 %v5002_v58, %s7091_s9  ;;  %v5609_v21 = vor.u32 %v5608_v56, %v5605_v18  ;;  %v6152_v27 = vrot.slane %v6150_v32, 5  ;;  %v4348_v37 = vshrl.u32 %v4195_v61, 16  ;;  %v4351_v10 = vshll.u32 %v4195_v61, 16  ;;  %v5105_v1 = vld [vmem:[#allocation3 + $0x80] sm:$0xf0] }
 0x238   : > { %5039 = vrot.lane.b32.xlu0 %v4999_v57, %s7091_s9  ;;  %v6145_v62 = vor.u32 %v6144_v49, %v6141_v40  ;;  %v4090_v0 = vsel %vm895_vm4, %v4088_v51, %v4089_v47  ;;  %v4356_v20 = vshrl.u32 %v4196_v41, 16  ;;  %v4359_v45 = vshll.u32 %v4196_v41, 16  ;;  %v5106_v61 = vld [vmem:[#allocation3 + $0x88] sm:$0x1f] }
 0x239   : > { %v5610_v55 = vsel %vm526_vm5, %v5601_v48, %v5609_v21  ;;  %v6153_v34 = vor.u32 %v6152_v27, %v6149_v17  ;;  %v4350_v63 = vrot.slane %v4348_v37, 4  ;;  %v4353_v4 = vrot.slane %v4351_v10, 5  ;;  %v3672_v41 = vld [vmem:[#allocation3 + $0x28] sm:$0xf] }
 0x23a   : > { %v4358_v42 = vrot.slane %v4356_v20, 4  ;;  %v4361_v44 = vrot.slane %v4359_v45, 5  ;;  %v4699_v9 = vshrl.u32 %v4561_v2, 16  ;;  %v4702_v7 = vshll.u32 %v4561_v2, 16 }
 0x23b   : > { %4131 = vrot.lane.b32.xlu1 %v4093_v53, %s7089_s30  ;;  %v6154_v13 = vsel %vm1041_vm3, %v6145_v62, %v6153_v34  ;;  %v4354_v43 = vor.u32 %v4353_v4, %v4350_v63  ;;  %v4707_v38 = vshrl.u32 %v4562_v54, 16  ;;  %v4710_v52 = vshll.u32 %v4562_v54, 16  ;;  %v8270_v14 = vpop.permute.xlu0 %5940 }
 0x23c   : > { %5776 = vrot.lane.b32.xlu0 %v5610_v55, %s7095_s13  ;;  %v6966_v12 = vpop.f32.mrb[16].mxu0  ;;  %v4362_v24 = vor.u32 %v4361_v44, %v4358_v42  ;;  %v4701_v25 = vrot.slane %v4699_v9, 3  ;;  %v4704_v16 = vrot.slane %v4702_v7, 4  ;;  %v6122_v19 = vshrl.u32 %v6014_v8, 16  ;;  %v8273_v53 = vpop.permute.xlu1 %5029  ;;  %v3671_v55 = vld [vmem:[#allocation3 + $0x20] sm:$0xf8] }
 0x23d   : > { %v3485_v58 = vmul.f32 %v8207_v26, %v6966_v12  ;;  %v3397_v22 = vpop.f32.mrb[17].mxu0  ;;  %v4709_v11 = vrot.slane %v4707_v38, 3  ;;  %v4712_v6 = vrot.slane %v4710_v52, 4  ;;  %v6125_v29 = vshll.u32 %v6014_v8, 16  ;;  %v4559_v42 = vld [vmem:[#allocation3 + $0x70] sm:$0xf8] }
 0x23e   : > { %v3483_v31 = vmul.f32 %v8207_v26, %v3397_v22  ;;  %v6967_v28 = vpop.f32.mrb[18].mxu0  ;;  %v4363_v50 = vsel %vm1041_vm3, %v4354_v43, %v4362_v24  ;;  %v4705_v57 = vor.u32 %v4704_v16, %v4701_v25  ;;  %v6124_v30 = vrot.slane %v6122_v19, 4  ;;  %v4560_v43 = vld [vmem:[#allocation3 + $0x78] sm:$0xf]  ;;  %v5470_v22 = vld [vmem:[#allocation3 + $0x70] sm:$0xf8] }
 0x23f   : > { %5950 = vrot.lane.b32.xlu1 %v8260_v3, %s7092_s10  ;;  %v3524_v15 = vadd.f32 %v8214_v59, %v3485_v58  ;;  %v3486_v35 = vmul.f32 %v8207_v26, %v6967_v28  ;;  %v3400_v46 = vpop.f32.mrb[19].mxu0  ;;  %v4713_v39 = vor.u32 %v4712_v6, %v4709_v11  ;;  %v6127_v5 = vrot.slane %v6125_v29, 5  ;;  %v8284_v56 = vpop.permute.xlu0 %5027  ;;  %v5471_v28 = vld [vmem:[#allocation3 + $0x78] sm:$0xf] }
 0x240   : > { %v3522_v33 = vadd.f32 %v8214_v59, %v3483_v31  ;;  %v3484_v36 = vmul.f32 %v8207_v26, %v3400_v46  ;;  %6320 = vrot.lane.b32.xlu0 %v6154_v13, %s7096_s14  ;;  %v6130_v18 = vshrl.u32 %v6015_v60, 16  ;;  %v6133_v23 = vshll.u32 %v6015_v60, 16  ;;  %v8289_v21 = vpop.permute.xlu1 %4119 }
 0x241   : > { %v3556_v3 = vmax.f32 %v3524_v15, 0.0  ;;  %v3525_v40 = vadd.f32 %v8214_v59, %v3486_v35  ;;  %v4714_v32 = vsel %vm526_vm5, %v4705_v57, %v4713_v39  ;;  %v6128_v51 = vor.u32 %v6127_v5, %v6124_v30  ;;  %v3670_v35 = vld [vmem:[#allocation3 + $0x18] sm:$0xf] }
 0x242   : > { %v3554_v48 = vmax.f32 %v3522_v33, 0.0  ;;  %v3523_v49 = vadd.f32 %v8214_v59, %v3484_v36  ;;  %v6132_v17 = vrot.slane %v6130_v18, 4  ;;  %v6135_v47 = vrot.slane %v6133_v23, 5 }
 0x243   : > { %v3557_v27 = vmax.f32 %v3525_v40, 0.0  ;;  %4129 = vrot.lane.b32.xlu1 %v4090_v0, %s7089_s30  ;;  %v5243_v37 = vshrl.u32 %v5105_v1, 16  ;;  %v5246_v10 = vshll.u32 %v5105_v1, 16  ;;  %v5251_v2 = vshrl.u32 %v5106_v61, 16  ;;  %v8293_v44 = vpop.permute.xlu0 %5764 }
 0x244   : > { %v3555_v62 = vmax.f32 %v3523_v49, 0.0  ;;  %4499 = vrot.lane.b32.xlu0 %v4363_v50, %s7090_s8  ;;  %v6136_v20 = vor.u32 %v6135_v47, %v6132_v17  ;;  %v5254_v45 = vshll.u32 %v5106_v61, 16  ;;  %v3742_v54 = vshrl.u32 %v3672_v41, 16  ;;  %v8298_v11 = vpop.permute.xlu1 %4117 }
 0x245   : > { %v3579_v34 = vpack.c.bf16 %v3557_v27, %v3556_v3  ;;  %v5245_v63 = vrot.slane %v5243_v37, 4  ;;  %v5248_v4 = vrot.slane %v5246_v10, 5  ;;  %v5253_v8 = vrot.slane %v5251_v2, 4  ;;  %v3669_v3 = vld [vmem:[#allocation3 + $0x10] sm:$0xf8] }
 0x246   : > { %v3578_v9 = vpack.c.bf16 %v3555_v62, %v3554_v48  ;;  %v6137_v0 = vsel %vm1041_vm3, %v6128_v51, %v6136_v20  ;;  %v5256_v7 = vrot.slane %v5254_v45, 5  ;;  %v3744_v13 = vrot.slane %v3742_v54, 3  ;;  %v5103_v48 = vld [vmem:[#allocation3 + $0x70] sm:$0xf0]  ;;  %v5104_v45 = vld [vmem:[#allocation3 + $0x78] sm:$0x1f] }
 0x247   : > { %v3611_v38 = vrot.slane %v3579_v34, 4  ;;  %4865 = vrot.lane.b32.xlu1 %v4714_v32, %s7093_s11  ;;  %v5249_v52 = vor.u32 %v5248_v4, %v5245_v63  ;;  %v3745_v12 = vshll.u32 %v3672_v41, 16  ;;  %v3734_v24 = vshrl.u32 %v3671_v55, 16  ;;  %v8306_v36 = vpop.permute.xlu0 %6308  ;;  %v4193_v4 = vld [vmem:[#allocation3 + $0x70] sm:$0xf0] }
 0x248   : > { %v3610_v25 = vrot.slane %v3578_v9, 4  ;;  %6318 = vrot.lane.b32.xlu0 %v6137_v0, %s7096_s14  ;;  %v5257_v16 = vor.u32 %v5256_v7, %v5253_v8  ;;  %v3737_v19 = vshll.u32 %v3671_v55, 16  ;;  %v4682_v58 = vshrl.u32 %v4559_v42, 16  ;;  %v4194_v8 = vld [vmem:[#allocation3 + $0x78] sm:$0x1f] }
 0x249   : > { %3653 = vst.msk [vmem:[#allocation3 + $0xa0] sm:$0xf0] %vm305_vm2, %v3611_v38  ;;  %v3747_v6 = vrot.slane %v3745_v12, 4  ;;  %v3736_v60 = vrot.slane %v3734_v24, 3  ;;  %v4685_v29 = vshll.u32 %v4559_v42, 16  ;;  %v4690_v31 = vshrl.u32 %v4560_v43, 16 }
 0x24a   : > { %3654 = vst.msk [vmem:[#allocation3 + $0xa8] sm:$0xf] %vm286_vm1, %v3611_v38  ;;  %3652 = vst.msk [vmem:[#allocation3 + $0x98] sm:$0xf] %vm286_vm1, %v3610_v25  ;;  %v5258_v50 = vsel %vm1041_vm3, %v5249_v52, %v5257_v16  ;;  %v3739_v57 = vrot.slane %v3737_v19, 4  ;;  %v4684_v30 = vrot.slane %v4682_v58, 3 }
 0x24b   : > { %3651 = vst.msk [vmem:[#allocation3 + $0x90] sm:$0xf0] %vm305_vm2, %v3610_v25  ;;  %v4693_v15 = vshll.u32 %v4560_v43, 16  ;;  %5409 = vrot.lane.b32.xlu1 %v5258_v50, %s7094_s12  ;;  %v3748_v46 = vor.u32 %v3747_v6, %v3744_v13  ;;  %v4687_v39 = vrot.slane %v4685_v29, 4  ;;  %v4692_v5 = vrot.slane %v4690_v31, 3 }
 0x24c   : > { %v5578_v33 = vshrl.u32 %v5470_v22, 16  ;;  %v3740_v18 = vor.u32 %v3739_v57, %v3736_v60  ;;  %v5581_v1 = vshll.u32 %v5470_v22, 16  ;;  %v5586_v61 = vshrl.u32 %v5471_v28, 16  ;;  %v8309_v37 = vpop.permute.xlu1 %4853 }
 0x24d   : > { %v4695_v23 = vrot.slane %v4693_v15, 4  ;;  %v4688_v40 = vor.u32 %v4687_v39, %v4684_v30  ;;  %v5589_v51 = vshll.u32 %v5471_v28, 16  ;;  %v3725_v41 = vshrl.u32 %v3670_v35, 16 }
 0x24e   : > { %v5580_v32 = vrot.slane %v5578_v33, 3  ;;  %v3749_v49 = vsel %vm526_vm5, %v3740_v18, %v3748_v46  ;;  %v5583_v47 = vrot.slane %v5581_v1, 4  ;;  %v5588_v27 = vrot.slane %v5586_v61, 3 }
 0x24f   : > { %v4696_v17 = vor.u32 %v4695_v23, %v4692_v5  ;;  %3989 = vst.msk [vmem:[#allocation4 + $0x10] sm:$0xff] %vm280_vm0, %v3749_v49  ;;  %v5591_v10 = vrot.slane %v5589_v51, 4  ;;  %v3727_v2 = vrot.slane %v3725_v41, 3  ;;  %v3728_v62 = vshll.u32 %v3670_v35, 16  ;;  %v4488_v43 = vpop.permute.xlu0 %4487 }
 0x250   : > { %v3717_v20 = vshrl.u32 %v3669_v3, 16  ;;  %4165 = vst.msk [vmem:[#allocation4 + $0x10] sm:$0xff] %vm992_vm6, %v8289_v21  ;;  %v5584_v55 = vor.u32 %v5583_v47, %v5580_v32  ;;  %v3720_v34 = vshll.u32 %v3669_v3, 16  ;;  %v5226_v63 = vshrl.u32 %v5103_v48, 16  ;;  %v5844_v13 = vld [vmem:[#allocation3 + $0xa0] sm:$0xf0] }
 0x251   : > { %v4697_v54 = vsel %vm526_vm5, %v4688_v40, %v4696_v17  ;;  %v5592_v42 = vor.u32 %v5591_v10, %v5588_v27  ;;  %v3730_v9 = vrot.slane %v3728_v62, 4  ;;  %v5229_v7 = vshll.u32 %v5103_v48, 16  ;;  %v5845_v21 = vld [vmem:[#allocation3 + $0xa8] sm:$0xf]  ;;  %v4933_v25 = vld [vmem:[#allocation3 + $0xa0] sm:$0xf0] }
 0x252   : > { %4863 = vrot.lane.b32.xlu0 %v4697_v54, %s7093_s11  ;;  %v3719_v0 = vrot.slane %v3717_v20, 3  ;;  %v3722_v38 = vrot.slane %v3720_v34, 4  ;;  %v5228_v52 = vrot.slane %v5226_v63, 4  ;;  %v5234_v12 = vshrl.u32 %v5104_v45, 16  ;;  %4533 = vst.msk [vmem:[#allocation4 + $0x10] sm:$0xff] %vm1362_vm7, %v4488_v43  ;;  %v5398_v57 = vpop.permute.xlu1 %5397 }
 0x253   : > { %v5237_v24 = vshll.u32 %v5104_v45, 16  ;;  %v5593_v16 = vsel %vm526_vm5, %v5584_v55, %v5592_v42  ;;  %v3731_v19 = vor.u32 %v3730_v9, %v3727_v2  ;;  %v5231_v58 = vrot.slane %v5229_v7, 5  ;;  %v4934_v6 = vld [vmem:[#allocation3 + $0xa8] sm:$0xf]  ;;  %v4023_v60 = vld [vmem:[#allocation3 + $0xa0] sm:$0xf0] }
 0x254   : > { %v4331_v22 = vshrl.u32 %v4193_v4, 16  ;;  %5774 = vrot.lane.b32.xlu1 %v5593_v16, %s7095_s13  ;;  %v3723_v29 = vor.u32 %v3722_v38, %v3719_v0  ;;  %v5236_v31 = vrot.slane %v5234_v12, 4  ;;  %v4334_v50 = vshll.u32 %v4193_v4, 16  ;;  %v4024_v30 = vld [vmem:[#allocation3 + $0xa8] sm:$0xf] }
 0x255   : > { %v5239_v28 = vrot.slane %v5237_v24, 5  ;;  %v5232_v15 = vor.u32 %v5231_v58, %v5228_v52  ;;  %v4339_v46 = vshrl.u32 %v4194_v8, 16  ;;  %v4342_v39 = vshll.u32 %v4194_v8, 16  ;;  %v4931_v5 = vld [vmem:[#allocation3 + $0x90] sm:$0xf0]  ;;  %v4852_v48 = vpop.permute.xlu0 %4851 }
 0x256   : > { %v4333_v35 = vrot.slane %v4331_v22, 4  ;;  %v3732_v33 = vsel %vm526_vm5, %v3723_v29, %v3731_v19  ;;  %v4336_v23 = vrot.slane %v4334_v50, 5  ;;  %v5916_v1 = vrot.slane %v5844_v13, 4  ;;  %v4932_v61 = vld [vmem:[#allocation3 + $0x98] sm:$0xf]  ;;  %4899 = vst.msk [vmem:[#allocation4] sm:$0xff] %vm1731_vm8, %v4852_v48 }
 0x257   : > { %v5240_v18 = vor.u32 %v5239_v28, %v5236_v31  ;;  %v5842_v3 = vld [vmem:[#allocation3 + $0x90] sm:$0xf0]  ;;  %3988 = vst.msk [vmem:[#allocation4 + $0x8] sm:$0xff] %vm280_vm0, %v3732_v33  ;;  %v4341_v40 = vrot.slane %v4339_v46, 4  ;;  %v4344_v32 = vrot.slane %v4342_v39, 5  ;;  %v5917_v51 = vrot.slane %v5845_v21, 4 }
 0x258   : > { %v5006_v41 = vrot.slane %v4933_v25, 4  ;;  %v5843_v49 = vld [vmem:[#allocation3 + $0x98] sm:$0xf]  ;;  %4164 = vst.msk [vmem:[#allocation4 + $0x8] sm:$0xff] %vm992_vm6, %v8298_v11  ;;  %v4337_v47 = vor.u32 %v4336_v23, %v4333_v35  ;;  %v5007_v27 = vrot.slane %v4934_v6, 4  ;;  %v4097_v10 = vrot.slane %v4023_v60, 4  ;;  %v4486_v55 = vpop.permute.xlu1 %4485 }
 0x259   : > { %v5241_v17 = vsel %vm1041_vm3, %v5232_v15, %v5240_v18  ;;  %v5476_v2 = vld [vmem:[#allocation3 + $0xa0] sm:$0xf8]  ;;  %v4345_v62 = vor.u32 %v4344_v32, %v4341_v40  ;;  %v5918_v20 = vsel %vm895_vm4, %v5916_v1, %v5917_v51  ;;  %v4098_v45 = vrot.slane %v4024_v30, 4  ;;  %5075 = vst.msk [vmem:[#allocation4] sm:$0xff] %vm1908_vm9, %v8284_v56  ;;  %v5477_v11 = vld [vmem:[#allocation3 + $0xa8] sm:$0xf] }
 0x25a   : > { %5407 = vrot.lane.b32.xlu0 %v5241_v17, %s7094_s12  ;;  %v5003_v54 = vrot.slane %v4931_v5, 4  ;;  %v5008_v34 = vsel %vm895_vm4, %v5006_v41, %v5007_v27  ;;  %v5004_v63 = vrot.slane %v4932_v61, 4  ;;  %4532 = vst.msk [vmem:[#allocation4 + $0x8] sm:$0xff] %vm1362_vm7, %v4486_v55  ;;  %v5913_v4 = vrot.slane %v5842_v3, 4  ;;  %v6020_v42 = vld [vmem:[#allocation3 + $0xa0] sm:$0xf0]  ;;  %v5396_v24 = vpop.permute.xlu0 %5395 }
 0x25b   : > { %v5914_v8 = vrot.slane %v5843_v49, 4  ;;  %v4346_v9 = vsel %vm1041_vm3, %v4337_v47, %v4345_v62  ;;  %v4099_v0 = vsel %vm895_vm4, %v4097_v10, %v4098_v45  ;;  %4900 = vst.msk [vmem:[#allocation4 + $0x8] sm:$0xff] %vm1731_vm8, %v8309_v37  ;;  %v5629_v7 = vshrl.u32 %v5476_v2, 16  ;;  %v6021_v56 = vld [vmem:[#allocation3 + $0xa8] sm:$0x1f] }
 0x25c   : > { %v5632_v13 = vshll.u32 %v5476_v2, 16  ;;  %4497 = vrot.lane.b32.xlu1 %v4346_v9, %s7090_s8  ;;  %v5005_v43 = vsel %vm895_vm4, %v5003_v54, %v5004_v63  ;;  %5076 = vst.msk [vmem:[#allocation4 + $0x8] sm:$0xff] %vm1908_vm9, %v8273_v53  ;;  %v5637_v52 = vshrl.u32 %v5477_v11, 16  ;;  %v5640_v12 = vshll.u32 %v5477_v11, 16  ;;  %v4021_v21 = vld [vmem:[#allocation3 + $0x90] sm:$0xf0]  ;;  %v8345_v53 = vpop.permute.xlu1 %5033 }
 0x25d   : > { %v8340_v38 = vsel %vm895_vm4, %v5913_v4, %v5914_v8  ;;  %v4022_v25 = vld [vmem:[#allocation3 + $0x98] sm:$0xf]  ;;  %5444 = vst.msk [vmem:[#allocation4 + $0x8] sm:$0xff] %vm2277_vm10, %v5398_v57  ;;  %v5631_v37 = vrot.slane %v5629_v7, 3  ;;  %5443 = vst.msk [vmem:[#allocation4] sm:$0xff] %vm2277_vm10, %v5396_v24  ;;  %v6173_v19 = vshrl.u32 %v6020_v42, 16 }
 0x25e   : > { %5956 = vrot.lane.b32.xlu0 %v5918_v20, %s7092_s10  ;;  %v5634_v16 = vrot.slane %v5632_v13, 4  ;;  %v6176_v58 = vshll.u32 %v6020_v42, 16  ;;  %v4199_v22 = vld [vmem:[#allocation3 + $0xa0] sm:$0xf0]  ;;  %v5639_v6 = vrot.slane %v5637_v52, 3  ;;  %v5642_v60 = vrot.slane %v5640_v12, 4  ;;  %v8354_v33 = vpop.permute.xlu0 %5944 }
 0x25f   : > { %5812 = vst.msk [vmem:[#allocation4] sm:$0xff] %vm2647_vm11, %v8293_v44  ;;  %v6181_v29 = vshrl.u32 %v6021_v56, 16  ;;  %v6184_v31 = vshll.u32 %v6021_v56, 16  ;;  %v4200_v28 = vld [vmem:[#allocation3 + $0xa8] sm:$0x1f]  ;;  %v6175_v57 = vrot.slane %v6173_v19, 4 }
 0x260   : > { %v5635_v50 = vor.u32 %v5634_v16, %v5631_v37  ;;  %5988 = vst.msk [vmem:[#allocation4] sm:$0xff] %vm2824_vm12, %v8270_v14  ;;  %v6178_v30 = vrot.slane %v6176_v58, 5  ;;  %v4094_v15 = vrot.slane %v4021_v21, 4  ;;  %5045 = vrot.lane.b32.xlu1 %v5008_v34, %s7091_s9  ;;  %v5643_v35 = vor.u32 %v5642_v60, %v5639_v6  ;;  %v4565_v44 = vld [vmem:[#allocation3 + $0xa0] sm:$0xf8]  ;;  %v8357_v3 = vpop.permute.xlu1 %4123 }
 0x261   : > { %6356 = vst.msk [vmem:[#allocation4] sm:$0xff] %vm3193_vm13, %v8306_v36  ;;  %v6183_v46 = vrot.slane %v6181_v29, 4  ;;  %v6186_v39 = vrot.slane %v6184_v31, 5  ;;  %v4095_v5 = vrot.slane %v4022_v25, 4  ;;  %v4382_v23 = vshrl.u32 %v4199_v22, 16 }
 0x262   : > { %5043 = vrot.lane.b32.xlu0 %v5005_v43, %s7091_s9  ;;  %v6179_v18 = vor.u32 %v6178_v30, %v6175_v57  ;;  %v4385_v14 = vshll.u32 %v4199_v22, 16  ;;  %v4390_v1 = vshrl.u32 %v4200_v28, 16  ;;  %v4566_v61 = vld [vmem:[#allocation3 + $0xa8] sm:$0xf]  ;;  %v5644_v40 = vsel %vm526_vm5, %v5635_v50, %v5643_v35  ;;  %v6018_v20 = vld [vmem:[#allocation3 + $0x90] sm:$0xf0]  ;;  %v8363_v45 = vpop.permute.xlu0 %5031 }
 0x263   : > { %v6187_v32 = vor.u32 %v6186_v39, %v6183_v46  ;;  %v4096_v36 = vsel %vm895_vm4, %v4094_v15, %v4095_v5  ;;  %v4393_v51 = vshll.u32 %v4200_v28, 16  ;;  %v4384_v41 = vrot.slane %v4382_v23, 4  ;;  %v6019_v12 = vld [vmem:[#allocation3 + $0x98] sm:$0x1f]  ;;  %v5109_v58 = vld [vmem:[#allocation3 + $0xa0] sm:$0xf0] }
 0x264   : > { %v4387_v48 = vrot.slane %v4385_v14, 5  ;;  %v4392_v49 = vrot.slane %v4390_v1, 4  ;;  %v4733_v17 = vshrl.u32 %v4565_v44, 16  ;;  %4135 = vrot.lane.b32.xlu1 %v4099_v0, %s7089_s30  ;;  %v4736_v2 = vshll.u32 %v4565_v44, 16  ;;  %v8367_v4 = vpop.permute.xlu1 %5942  ;;  %v5110_v57 = vld [vmem:[#allocation3 + $0xa8] sm:$0x1f] }
 0x265   : > { %v6970_v47 = vpop.f32.mrb[20].mxu0  ;;  %v6188_v27 = vsel %vm1041_vm3, %v6179_v18, %v6187_v32  ;;  %v4395_v10 = vrot.slane %v4393_v51, 5  ;;  %v4741_v62 = vshrl.u32 %v4566_v61, 16  ;;  %v4744_v63 = vshll.u32 %v4566_v61, 16  ;;  %v3676_v14 = vld [vmem:[#allocation3 + $0x48] sm:$0xf] }
 0x266   : > { %5780 = vrot.lane.b32.xlu0 %v5644_v40, %s7095_s13  ;;  %v3489_v54 = vmul.f32 %v8207_v26, %v6970_v47  ;;  %v3413_v55 = vpop.f32.mrb[21].mxu0  ;;  %v4388_v11 = vor.u32 %v4387_v48, %v4384_v41  ;;  %v4735_v34 = vrot.slane %v4733_v17, 3  ;;  %v4738_v0 = vrot.slane %v4736_v2, 4  ;;  %v8377_v22 = vpop.permute.xlu0 %5768  ;;  %v3675_v17 = vld [vmem:[#allocation3 + $0x40] sm:$0xf8] }
 0x267   : > { %v3487_v8 = vmul.f32 %v8207_v26, %v3413_v55  ;;  %v6971_v42 = vpop.f32.mrb[22].mxu0  ;;  %v4396_v9 = vor.u32 %v4395_v10, %v4392_v49  ;;  %v4743_v7 = vrot.slane %v4741_v62, 3  ;;  %v4746_v52 = vrot.slane %v4744_v63, 4  ;;  %v4563_v2 = vld [vmem:[#allocation3 + $0x90] sm:$0xf8] }
 0x268   : > { %v3528_v13 = vadd.f32 %v8214_v59, %v3489_v54  ;;  %v3490_v56 = vmul.f32 %v8207_v26, %v6971_v42  ;;  %v3416_v43 = vpop.f32.mrb[23].mxu0  ;;  %v6156_v24 = vshrl.u32 %v6018_v20, 16  ;;  %v6372_v21 = vld [vmem:[#allocation4] sm:$0xff]  ;;  %5954 = vrot.lane.b32.xlu1 %v8340_v38, %s7092_s10  ;;  %v4739_v19 = vor.u32 %v4738_v0, %v4735_v34  ;;  %v8384_v39 = vpop.permute.xlu1 %4121 }
 0x269   : > { %v3526_v25 = vadd.f32 %v8214_v59, %v3487_v8  ;;  %v3488_v37 = vmul.f32 %v8207_v26, %v3416_v43  ;;  %v4397_v16 = vsel %vm1041_vm3, %v4388_v11, %v4396_v9  ;;  %v4747_v29 = vor.u32 %v4746_v52, %v4743_v7  ;;  %6986 = vmatprep.mubr.msk.bf16.mxu1 %vm3246_vm15, %v6372_v21  ;;  %v4564_v11 = vld [vmem:[#allocation3 + $0x98] sm:$0xf]  ;;  %v5474_v52 = vld [vmem:[#allocation3 + $0x90] sm:$0xf8] }
 0x26a   : > { %v3560_v6 = vmax.f32 %v3528_v13, 0.0  ;;  %v3529_v60 = vadd.f32 %v8214_v59, %v3490_v56  ;;  %6324 = vrot.lane.b32.xlu0 %v6188_v27, %s7096_s14  ;;  %v6158_v31 = vrot.slane %v6156_v24, 4  ;;  %v6159_v50 = vshll.u32 %v6018_v20, 16  ;;  %v8387_v1 = vpop.permute.xlu0 %6312 }
 0x26b   : > { %v3558_v38 = vmax.f32 %v3526_v25, 0.0  ;;  %v3527_v28 = vadd.f32 %v8214_v59, %v3488_v37  ;;  %v6164_v26 = vshrl.u32 %v6019_v12, 16  ;;  %v4748_v15 = vsel %vm526_vm5, %v4739_v19, %v4747_v29  ;;  %v5475_v37 = vld [vmem:[#allocation3 + $0x98] sm:$0xf] }
 0x26c   : > { %v3561_v30 = vmax.f32 %v3529_v60, 0.0  ;;  %v6167_v35 = vshll.u32 %v6019_v12, 16  ;;  %v5277_v46 = vshrl.u32 %v5109_v58, 16  ;;  %4133 = vrot.lane.b32.xlu1 %v4096_v36, %s7089_s30  ;;  %v6161_v44 = vrot.slane %v6159_v50, 5  ;;  %v5107_v60 = vld [vmem:[#allocation3 + $0x90] sm:$0xf0] }
 0x26d   : > { %v3559_v5 = vmax.f32 %v3527_v28, 0.0  ;;  %v6166_v18 = vrot.slane %v6164_v26, 4  ;;  %v5280_v23 = vshll.u32 %v5109_v58, 16  ;;  %v5285_v32 = vshrl.u32 %v5110_v57, 16 }
 0x26e   : > { %v3581_v59 = vpack.c.bf16 %v3561_v30, %v3560_v6  ;;  %4503 = vrot.lane.b32.xlu0 %v4397_v16, %s7090_s8  ;;  %v6169_v61 = vrot.slane %v6167_v35, 5  ;;  %v5279_v40 = vrot.slane %v5277_v46, 4  ;;  %v6162_v41 = vor.u32 %v6161_v44, %v6158_v31  ;;  %v4492_v34 = vpop.permute.xlu0 %4491  ;;  %v5108_v46 = vld [vmem:[#allocation3 + $0x98] sm:$0x1f] }
 0x26f   : > { %v3580_v51 = vpack.c.bf16 %v3559_v5, %v3558_v38  ;;  %v5282_v48 = vrot.slane %v5280_v23, 5  ;;  %v5288_v49 = vshll.u32 %v5110_v57, 16  ;;  %v5287_v36 = vrot.slane %v5285_v32, 4 }
 0x270   : > { %v3613_v47 = vrot.slane %v3581_v59, 4  ;;  %v6170_v27 = vor.u32 %v6169_v61, %v6166_v18  ;;  %v3776_v10 = vshrl.u32 %v3676_v14, 16  ;;  %4869 = vrot.lane.b32.xlu1 %v4748_v15, %s7093_s11  ;;  %v3779_v55 = vshll.u32 %v3676_v14, 16  ;;  %v8394_v0 = vpop.permute.xlu1 %4857  ;;  %v4197_v14 = vld [vmem:[#allocation3 + $0x90] sm:$0xf0] }
 0x271   : > { %v3612_v62 = vrot.slane %v3580_v51, 4  ;;  %v5283_v20 = vor.u32 %v5282_v48, %v5279_v40  ;;  %v5290_v54 = vrot.slane %v5288_v49, 5  ;;  %v3768_v42 = vshrl.u32 %v3675_v17, 16  ;;  %v4198_v51 = vld [vmem:[#allocation3 + $0x98] sm:$0x1f] }
 0x272   : > { %3657 = vst.msk [vmem:[#allocation3 + $0xc0] sm:$0xf0] %vm305_vm2, %v3613_v47  ;;  %v6171_v63 = vsel %vm1041_vm3, %v6162_v41, %v6170_v27  ;;  %v3778_v8 = vrot.slane %v3776_v10, 3  ;;  %v3771_v9 = vshll.u32 %v3675_v17, 16  ;;  %v3781_v13 = vrot.slane %v3779_v55, 4  ;;  %v8400_v29 = vpop.permute.xlu0 %6310 }
 0x273   : > { %3658 = vst.msk [vmem:[#allocation3 + $0xc8] sm:$0xf] %vm286_vm1, %v3613_v47  ;;  %3656 = vst.msk [vmem:[#allocation3 + $0xb8] sm:$0xf] %vm286_vm1, %v3612_v62  ;;  %6322 = vrot.lane.b32.xlu0 %v6171_v63, %s7096_s14  ;;  %v5291_v7 = vor.u32 %v5290_v54, %v5287_v36  ;;  %v4716_v56 = vshrl.u32 %v4563_v2, 16  ;;  %v4719_v43 = vshll.u32 %v4563_v2, 16 }
 0x274   : > { %3655 = vst.msk [vmem:[#allocation3 + $0xb0] sm:$0xf0] %vm305_vm2, %v3612_v62  ;;  %v3770_v12 = vrot.slane %v3768_v42, 3  ;;  %v3773_v24 = vrot.slane %v3771_v9, 4  ;;  %v4724_v21 = vshrl.u32 %v4564_v11, 16  ;;  %v4727_v25 = vshll.u32 %v4564_v11, 16 }
 0x275   : > { %v5292_v16 = vsel %vm1041_vm3, %v5283_v20, %v5291_v7  ;;  %v3782_v19 = vor.u32 %v3781_v13, %v3778_v8  ;;  %v4718_v58 = vrot.slane %v4716_v56, 3  ;;  %v4721_v6 = vrot.slane %v4719_v43, 4  ;;  %v8403_v26 = vpop.permute.xlu1 %5401  ;;  %v3674_v62 = vld [vmem:[#allocation3 + $0x38] sm:$0xf]  ;;  %v3673_v20 = vld [vmem:[#allocation3 + $0x30] sm:$0xf8] }
 0x276   : > { %5413 = vrot.lane.b32.xlu1 %v5292_v16, %s7094_s12  ;;  %v3774_v31 = vor.u32 %v3773_v24, %v3770_v12  ;;  %v4726_v38 = vrot.slane %v4724_v21, 3  ;;  %v4729_v28 = vrot.slane %v4727_v25, 4  ;;  %v5612_v50 = vshrl.u32 %v5474_v52, 16 }
 0x277   : > { %v4722_v57 = vor.u32 %v4721_v6, %v4718_v58  ;;  %v5615_v30 = vshll.u32 %v5474_v52, 16  ;;  %v5620_v15 = vshrl.u32 %v5475_v37, 16  ;;  %v5623_v35 = vshll.u32 %v5475_v37, 16 }
 0x278   : > { %v3783_v5 = vsel %vm526_vm5, %v3774_v31, %v3782_v19  ;;  %v4730_v44 = vor.u32 %v4729_v28, %v4726_v38  ;;  %v5614_v18 = vrot.slane %v5612_v50, 3  ;;  %v5260_v23 = vshrl.u32 %v5107_v60, 16  ;;  %v4856_v47 = vpop.permute.xlu0 %4855 }
 0x279   : > { %3991 = vst.msk [vmem:[#allocation4 + $0x20] sm:$0xff] %vm280_vm0, %v3783_v5  ;;  %v5617_v59 = vrot.slane %v5615_v30, 4  ;;  %v5622_v61 = vrot.slane %v5620_v15, 3  ;;  %v5625_v40 = vrot.slane %v5623_v35, 4  ;;  %v5263_v32 = vshll.u32 %v5107_v60, 16 }
 0x27a   : > { %4167 = vst.msk [vmem:[#allocation4 + $0x20] sm:$0xff] %vm992_vm6, %v8357_v3  ;;  %v4731_v41 = vsel %vm526_vm5, %v4722_v57, %v4730_v44  ;;  %v5262_v48 = vrot.slane %v5260_v23, 4  ;;  %v5268_v49 = vshrl.u32 %v5108_v46, 16  ;;  %v5271_v17 = vshll.u32 %v5108_v46, 16  ;;  %v4937_v63 = vld [vmem:[#allocation3 + $0xc0] sm:$0xf0]  ;;  %v5767_v8 = vpop.permute.xlu1 %5766 }
 0x27b   : > { %4867 = vrot.lane.b32.xlu0 %v4731_v41, %s7093_s11  ;;  %v5618_v27 = vor.u32 %v5617_v59, %v5614_v18  ;;  %v5626_v36 = vor.u32 %v5625_v40, %v5622_v61  ;;  %v5265_v10 = vrot.slane %v5263_v32, 5  ;;  %v4365_v2 = vshrl.u32 %v4197_v14, 16  ;;  %4535 = vst.msk [vmem:[#allocation4 + $0x20] sm:$0xff] %vm1362_vm7, %v4492_v34  ;;  %v4938_v56 = vld [vmem:[#allocation3 + $0xc8] sm:$0xf] }
 0x27c   : > { %4901 = vst.msk [vmem:[#allocation4 + $0x10] sm:$0xff] %vm1731_vm8, %v4856_v47  ;;  %v5270_v54 = vrot.slane %v5268_v49, 4  ;;  %v5273_v3 = vrot.slane %v5271_v17, 5  ;;  %v4368_v55 = vshll.u32 %v4197_v14, 16  ;;  %v4373_v11 = vshrl.u32 %v4198_v51, 16 }
 0x27d   : > { %5077 = vst.msk [vmem:[#allocation4 + $0x10] sm:$0xff] %vm1908_vm9, %v8363_v45  ;;  %v5627_v42 = vsel %vm526_vm5, %v5618_v27, %v5626_v36  ;;  %v5266_v9 = vor.u32 %v5265_v10, %v5262_v48  ;;  %v4367_v7 = vrot.slane %v4365_v2, 4  ;;  %v4376_v13 = vshll.u32 %v4198_v51, 16  ;;  %v4935_v43 = vld [vmem:[#allocation3 + $0xb0] sm:$0xf0]  ;;  %v5400_v58 = vpop.permute.xlu0 %5399 }
 0x27e   : > { %5813 = vst.msk [vmem:[#allocation4 + $0x8] sm:$0xff] %vm2647_vm11, %v5767_v8  ;;  %5778 = vrot.lane.b32.xlu1 %v5627_v42, %s7095_s13  ;;  %v5274_v34 = vor.u32 %v5273_v3, %v5270_v54  ;;  %v4370_v52 = vrot.slane %v4368_v55, 5  ;;  %v4375_v12 = vrot.slane %v4373_v11, 4  ;;  %v3759_v24 = vshrl.u32 %v3674_v62, 16  ;;  %v4936_v21 = vld [vmem:[#allocation3 + $0xb8] sm:$0xf] }
 0x27f   : > { %5989 = vst.msk [vmem:[#allocation4 + $0x8] sm:$0xff] %vm2824_vm12, %v8367_v4  ;;  %v4378_v45 = vrot.slane %v4376_v13, 5  ;;  %v3762_v25 = vshll.u32 %v3674_v62, 16  ;;  %v3751_v37 = vshrl.u32 %v3673_v20, 16  ;;  %v3754_v16 = vshll.u32 %v3673_v20, 16 }
 0x280   : > { %v5846_v19 = vld [vmem:[#allocation3 + $0xb0] sm:$0xf0]  ;;  %6357 = vst.msk [vmem:[#allocation4 + $0x8] sm:$0xff] %vm3193_vm13, %v8400_v29  ;;  %v5275_v6 = vsel %vm1041_vm3, %v5266_v9, %v5274_v34  ;;  %v4371_v60 = vor.u32 %v4370_v52, %v4367_v7  ;;  %v3761_v31 = vrot.slane %v3759_v24, 3  ;;  %v5012_v38 = vrot.slane %v4937_v63, 4  ;;  %v4490_v18 = vpop.permute.xlu1 %4489 }
 0x281   : > { %v5847_v28 = vld [vmem:[#allocation3 + $0xb8] sm:$0xf]  ;;  %5445 = vst.msk [vmem:[#allocation4 + $0x10] sm:$0xff] %vm2277_vm10, %v5400_v58  ;;  %5411 = vrot.lane.b32.xlu0 %v5275_v6, %s7094_s12  ;;  %v4379_v4 = vor.u32 %v4378_v45, %v4375_v12  ;;  %v3764_v50 = vrot.slane %v3762_v25, 4  ;;  %v3753_v57 = vrot.slane %v3751_v37, 3  ;;  %v3756_v30 = vrot.slane %v3754_v16, 4 }
 0x282   : > { %v6022_v15 = vld [vmem:[#allocation3 + $0xb0] sm:$0xf0]  ;;  %5814 = vst.msk [vmem:[#allocation4 + $0x10] sm:$0xff] %vm2647_vm11, %v8377_v22  ;;  %v5013_v29 = vrot.slane %v4938_v56, 4  ;;  %v5009_v35 = vrot.slane %v4935_v43, 4  ;;  %v5010_v46 = vrot.slane %v4936_v21, 4  ;;  %v8432_v22 = vpop.permute.xlu0 %5948 }
 0x283   : > { %v5919_v5 = vrot.slane %v5846_v19, 4  ;;  %v6023_v44 = vld [vmem:[#allocation3 + $0xb8] sm:$0x1f]  ;;  %5990 = vst.msk [vmem:[#allocation4 + $0x10] sm:$0xff] %vm2824_vm12, %v8354_v33  ;;  %v4380_v23 = vsel %vm1041_vm3, %v4371_v60, %v4379_v4  ;;  %v3765_v14 = vor.u32 %v3764_v50, %v3761_v31  ;;  %v3757_v59 = vor.u32 %v3756_v30, %v3753_v57  ;;  %v4025_v40 = vld [vmem:[#allocation3 + $0xb0] sm:$0xf0] }
 0x284   : > { %v5920_v61 = vrot.slane %v5847_v28, 4  ;;  %v4026_v32 = vld [vmem:[#allocation3 + $0xb8] sm:$0xf]  ;;  %6358 = vst.msk [vmem:[#allocation4 + $0x10] sm:$0xff] %vm3193_vm13, %v8387_v1  ;;  %4501 = vrot.lane.b32.xlu1 %v4380_v23, %s7090_s8  ;;  %v5014_v51 = vsel %vm895_vm4, %v5012_v38, %v5013_v29  ;;  %v5011_v41 = vsel %vm895_vm4, %v5009_v35, %v5010_v46  ;;  %v6190_v33 = vshrl.u32 %v6022_v15, 16  ;;  %v8441_v3 = vpop.permute.xlu1 %5037 }
 0x285   : > { %v6193_v48 = vshll.u32 %v6022_v15, 16  ;;  %v4567_v49 = vld [vmem:[#allocation3 + $0xb0] sm:$0xf8]  ;;  %v3766_v17 = vsel %vm526_vm5, %v3757_v59, %v3765_v14  ;;  %5047 = vrot.lane.b32.xlu0 %v5011_v41, %s7091_s9  ;;  %v6198_v27 = vshrl.u32 %v6023_v44, 16  ;;  %v6201_v36 = vshll.u32 %v6023_v44, 16 }
 0x286   : > { %v5921_v47 = vsel %vm895_vm4, %v5919_v5, %v5920_v61  ;;  %v4568_v1 = vld [vmem:[#allocation3 + $0xb8] sm:$0xf]  ;;  %3990 = vst.msk [vmem:[#allocation4 + $0x18] sm:$0xff] %vm280_vm0, %v3766_v17  ;;  %v6192_v10 = vrot.slane %v6190_v33, 4  ;;  %v4100_v62 = vrot.slane %v4025_v40, 4  ;;  %v4101_v20 = vrot.slane %v4026_v32, 4  ;;  %v8445_v9 = vpop.permute.xlu0 %5035 }
 0x287   : > { %v6195_v2 = vrot.slane %v6193_v48, 5  ;;  %v4569_v54 = vld [vmem:[#allocation3 + $0xc0] sm:$0xf8]  ;;  %4166 = vst.msk [vmem:[#allocation4 + $0x18] sm:$0xff] %vm992_vm6, %v8384_v39  ;;  %v6200_v55 = vrot.slane %v6198_v27, 4  ;;  %v6203_v11 = vrot.slane %v6201_v36, 5 }
 0x288   : > { %v4750_v63 = vshrl.u32 %v4567_v49, 16  ;;  %v4753_v8 = vshll.u32 %v4567_v49, 16  ;;  %v4570_v42 = vld [vmem:[#allocation3 + $0xc8] sm:$0xf]  ;;  %5049 = vrot.lane.b32.xlu1 %v5014_v51, %s7091_s9  ;;  %v4102_v13 = vsel %vm895_vm4, %v4100_v62, %v4101_v20  ;;  %v4758_v56 = vshrl.u32 %v4568_v1, 16  ;;  %4534 = vst.msk [vmem:[#allocation4 + $0x18] sm:$0xff] %vm1362_vm7, %v4490_v18  ;;  %v8454_v19 = vpop.permute.xlu1 %4127 }
 0x289   : > { %v6196_v7 = vor.u32 %v6195_v2, %v6192_v10  ;;  %v4761_v43 = vshll.u32 %v4568_v1, 16  ;;  %v6204_v34 = vor.u32 %v6203_v11, %v6200_v55  ;;  %v4767_v39 = vshrl.u32 %v4569_v54, 16  ;;  %v5111_v24 = vld [vmem:[#allocation3 + $0xb0] sm:$0xf0]  ;;  %4902 = vst.msk [vmem:[#allocation4 + $0x18] sm:$0xff] %vm1731_vm8, %v8394_v0 }
 0x28a   : > { %v4752_v52 = vrot.slane %v4750_v63, 3  ;;  %v4755_v12 = vrot.slane %v4753_v8, 4  ;;  %v4760_v21 = vrot.slane %v4758_v56, 3  ;;  %v4770_v25 = vshll.u32 %v4569_v54, 16  ;;  %v5112_v16 = vld [vmem:[#allocation3 + $0xb8] sm:$0x1f]  ;;  %v8459_v38 = vpop.permute.xlu0 %5772 }
 0x28b   : > { %v4763_v45 = vrot.slane %v4761_v43, 4  ;;  %v4775_v37 = vshrl.u32 %v4570_v42, 16  ;;  %5078 = vst.msk [vmem:[#allocation4 + $0x18] sm:$0xff] %vm1908_vm9, %v8345_v53  ;;  %v6205_v58 = vsel %vm1041_vm3, %v6196_v7, %v6204_v34  ;;  %v4769_v60 = vrot.slane %v4767_v39, 3  ;;  %v8466_v57 = vld [vmem:[%s9016_s2] ss:$0 sm:$0xff] }
 0x28c   : > { %v4756_v6 = vor.u32 %v4755_v12, %v4752_v52  ;;  %v4778_v31 = vshll.u32 %v4570_v42, 16  ;;  %5446 = vst.msk [vmem:[#allocation4 + $0x18] sm:$0xff] %vm2277_vm10, %v8403_v26  ;;  %5958 = vrot.lane.b32.xlu1 %v5921_v47, %s7092_s10  ;;  %6326 = vrot.lane.b32.xlu0 %v6205_v58, %s7096_s14  ;;  %v4772_v4 = vrot.slane %v4770_v25, 4  ;;  %v5294_v50 = vshrl.u32 %v5111_v24, 16  ;;  %v8471_v14 = vpop.permute.xlu1 %5946  ;;  %v8476_v59 = vld [vmem:[%s9017_s3] ss:$0 sm:$0xff] }
 0x28d   : > { %v6974_v0 = vpop.f32.mrb[24].mxu0  ;;  %v4764_v28 = vor.u32 %v4763_v45, %v4760_v21  ;;  %v4777_v53 = vrot.slane %v4775_v37, 3  ;;  %v5297_v29 = vshll.u32 %v5111_v24, 16  ;;  %v5302_v35 = vshrl.u32 %v5112_v16, 16  ;;  %v5113_v33 = vld [vmem:[#allocation3 + $0xc0] sm:$0xf0] }
 0x28e   : > { %v3493_v30 = vmul.f32 %v8466_v57, %v6974_v0  ;;  %v3429_v15 = vpop.f32.mrb[25].mxu0  ;;  %v4780_v26 = vrot.slane %v4778_v31, 4  ;;  %v4773_v18 = vor.u32 %v4772_v4, %v4769_v60  ;;  %v5296_v23 = vrot.slane %v5294_v50, 4  ;;  %v8480_v48 = vpop.permute.xlu0 %6316  ;;  %v5114_v36 = vld [vmem:[#allocation3 + $0xc8] sm:$0x1f] }
 0x28f   : > { %v4765_v46 = vsel %vm526_vm5, %v4756_v6, %v4764_v28  ;;  %v3491_v5 = vmul.f32 %v8466_v57, %v3429_v15  ;;  %v6975_v44 = vpop.f32.mrb[26].mxu0  ;;  %v5299_v41 = vrot.slane %v5297_v29, 5  ;;  %v5304_v47 = vrot.slane %v5302_v35, 4  ;;  %v5480_v20 = vld [vmem:[#allocation3 + $0xc0] sm:$0xf8] }
 0x290   : > { %v3532_v61 = vadd.f32 %v8476_v59, %v3493_v30  ;;  %v3494_v40 = vmul.f32 %v8466_v57, %v6975_v44  ;;  %v3432_v32 = vpop.f32.mrb[27].mxu0  ;;  %v4781_v51 = vor.u32 %v4780_v26, %v4777_v53  ;;  %4137 = vrot.lane.b32.xlu1 %v4102_v13, %s7089_s30  ;;  %4871 = vrot.lane.b32.xlu0 %v4765_v46, %s7093_s11  ;;  %v5305_v27 = vshll.u32 %v5112_v16, 16  ;;  %v8489_v8 = vpop.permute.xlu1 %4125  ;;  %v5481_v39 = vld [vmem:[#allocation3 + $0xc8] sm:$0xf]  ;;  %v5478_v31 = vld [vmem:[#allocation3 + $0xb0] sm:$0xf8] }
 0x291   : > { %v3530_v49 = vadd.f32 %v8476_v59, %v3491_v5  ;;  %v3492_v17 = vmul.f32 %v8466_v57, %v3432_v32  ;;  %v5300_v62 = vor.u32 %v5299_v41, %v5296_v23  ;;  %v5311_v63 = vshrl.u32 %v5113_v33, 16  ;;  %v5479_v30 = vld [vmem:[#allocation3 + $0xb8] sm:$0xf]  ;;  %v5848_v15 = vld [vmem:[#allocation3 + $0xc0] sm:$0xf0] }
 0x292   : > { %v3564_v1 = vmax.f32 %v3532_v61, 0.0  ;;  %v3533_v10 = vadd.f32 %v8476_v59, %v3494_v40  ;;  %v4782_v2 = vsel %vm526_vm5, %v4773_v18, %v4781_v51  ;;  %v5307_v11 = vrot.slane %v5305_v27, 5  ;;  %v8491_v43 = vpop.permute.xlu0 %4495  ;;  %v7047_v46 = vld [vmem:[%s9018_s4 + $0x10] ss:$0 sps:$4 sm:$0x33]   ;;  %v6373_v51 = vld [vmem:[#allocation4 + $0x8] sm:$0xff] }
 0x293   : > { %v3562_v54 = vmax.f32 %v3530_v49, 0.0  ;;  %v3531_v55 = vadd.f32 %v8476_v59, %v3492_v17  ;;  %v5314_v7 = vshll.u32 %v5113_v33, 16  ;;  %v5319_v13 = vshrl.u32 %v5114_v36, 16  ;;  %v5849_v44 = vld [vmem:[#allocation3 + $0xc8] sm:$0xf] }
 0x294   : > { %v3565_v42 = vmax.f32 %v3533_v10, 0.0  ;;  %v5322_v56 = vshll.u32 %v5114_v36, 16  ;;  %4873 = vrot.lane.b32.xlu1 %v4782_v2, %s7093_s11  ;;  %v5308_v52 = vor.u32 %v5307_v11, %v5304_v47  ;;  %v5313_v12 = vrot.slane %v5311_v63, 4  ;;  %v8495_v0 = vpop.permute.xlu1 %4861  ;;  %v3680_v41 = vld [vmem:[#allocation3 + $0x68] sm:$0xf]  ;;  %v6374_v36 = vld [vmem:[#allocation4 + $0x10] sm:$0xff] }
 0x295   : > { %v3563_v34 = vmax.f32 %v3531_v55, 0.0  ;;  %v5663_v24 = vshrl.u32 %v5480_v20, 16  ;;  %v5316_v45 = vrot.slane %v5314_v7, 5  ;;  %v5321_v25 = vrot.slane %v5319_v13, 4  ;;  %v3679_v27 = vld [vmem:[#allocation3 + $0x60] sm:$0xf8] }
 0x296   : > { %v3583_v21 = vpack.c.bf16 %v3565_v42, %v3564_v1  ;;  %v5324_v37 = vrot.slane %v5322_v56, 5  ;;  %v5309_v58 = vsel %vm1041_vm3, %v5300_v62, %v5308_v52  ;;  %v5666_v60 = vshll.u32 %v5480_v20, 16  ;;  %v8502_v18 = vpop.permute.xlu0 %6314  ;;  %v4201_v42 = vld [vmem:[#allocation3 + $0xb0] sm:$0xf0]  ;;  %v4202_v52 = vld [vmem:[#allocation3 + $0xb8] sm:$0x1f] }
 0x297   : > { %v3582_v16 = vpack.c.bf16 %v3563_v34, %v3562_v54  ;;  %v5665_v6 = vrot.slane %v5663_v24, 3  ;;  %5415 = vrot.lane.b32.xlu0 %v5309_v58, %s7094_s12  ;;  %v5317_v4 = vor.u32 %v5316_v45, %v5313_v12  ;;  %v5671_v50 = vshrl.u32 %v5481_v39, 16  ;;  %v6024_v45 = vld [vmem:[#allocation3 + $0xc0] sm:$0xf0] }
 0x298   : > { %v3615_v28 = vrot.slane %v3583_v21, 4  ;;  %v5325_v53 = vor.u32 %v5324_v37, %v5321_v25  ;;  %v5668_v29 = vrot.slane %v5666_v60, 4  ;;  %v5674_v35 = vshll.u32 %v5481_v39, 16 }
 0x299   : > { %v3614_v26 = vrot.slane %v3582_v16, 4  ;;  %v6457_v5 = vsel %vm3295_vm14, %v7047_v46, 0  ;;  %v5673_v61 = vrot.slane %v5671_v50, 3  ;;  %v5646_v40 = vshrl.u32 %v5478_v31, 16  ;;  %v8510_v1 = vpop.permute.xlu1 %5405 }
 0x29a   : > { %3661 = vst.msk [vmem:[#allocation3 + $0xe0] sm:$0xf0] %vm305_vm2, %v3615_v28  ;;  %v5326_v23 = vsel %vm1041_vm3, %v5317_v4, %v5325_v53  ;;  %6985 = vmatpush3.bf16.msra.mxu1 %v6457_v5  ;;  %v5649_v32 = vshll.u32 %v5478_v31, 16  ;;  %v5669_v33 = vor.u32 %v5668_v29, %v5665_v6  ;;  %v5676_v49 = vrot.slane %v5674_v35, 4  ;;  %v6025_v53 = vld [vmem:[#allocation3 + $0xc8] sm:$0x1f] }
 0x29b   : > { %3662 = vst.msk [vmem:[#allocation3 + $0xe8] sm:$0xf] %vm286_vm1, %v3615_v28  ;;  %3660 = vst.msk [vmem:[#allocation3 + $0xd8] sm:$0xf] %vm286_vm1, %v3614_v26  ;;  %5417 = vrot.lane.b32.xlu1 %v5326_v23, %s7094_s12  ;;  %v5654_v17 = vshrl.u32 %v5479_v30, 16  ;;  %v5657_v47 = vshll.u32 %v5479_v30, 16 }
 0x29c   : > { %3659 = vst.msk [vmem:[#allocation3 + $0xd0] sm:$0xf0] %vm305_vm2, %v3614_v26  ;;  %v5648_v10 = vrot.slane %v5646_v40, 3  ;;  %v5651_v2 = vrot.slane %v5649_v32, 4  ;;  %v5922_v62 = vrot.slane %v5848_v15, 4  ;;  %v5923_v20 = vrot.slane %v5849_v44, 4  ;;  %v4860_v25 = vpop.permute.xlu0 %4859 }
 0x29d   : > { %v5677_v54 = vor.u32 %v5676_v49, %v5673_v61  ;;  %v5656_v55 = vrot.slane %v5654_v17, 3  ;;  %v5659_v11 = vrot.slane %v5657_v47, 4  ;;  %6987 = vmatmul.mubr.msk.bf16.vlgmr.msra.gmra.mrb[0].mxu1 %vm3246_vm15, %v6373_v51  ;;  %v3810_v63 = vshrl.u32 %v3680_v41, 16  ;;  %4903 = vst.msk [vmem:[#allocation4 + $0x20] sm:$0xff] %vm1731_vm8, %v4860_v25  ;;  %v3678_v35 = vld [vmem:[#allocation3 + $0x58] sm:$0xf] }
 0x29e   : > { %v5652_v7 = vor.u32 %v5651_v2, %v5648_v10  ;;  %v5924_v13 = vsel %vm895_vm4, %v5922_v62, %v5923_v20  ;;  %v3813_v56 = vshll.u32 %v3680_v41, 16  ;;  %v3802_v34 = vshrl.u32 %v3679_v27, 16  ;;  %6990 = vmatprep.mubr.msk.bf16.mxu1 %vm3246_vm15, %v6374_v36  ;;  %5079 = vst.msk [vmem:[#allocation4 + $0x20] sm:$0xff] %vm1908_vm9, %v8445_v9  ;;  %v3677_v61 = vld [vmem:[#allocation3 + $0x50] sm:$0xf8] }
 0x29f   : > { %v5678_v12 = vsel %vm526_vm5, %v5669_v33, %v5677_v54  ;;  %v5660_v39 = vor.u32 %v5659_v11, %v5656_v55  ;;  %v3812_v24 = vrot.slane %v3810_v63, 3  ;;  %v3805_v21 = vshll.u32 %v3679_v27, 16  ;;  %v5771_v50 = vpop.permute.xlu1 %5770 }
 0x2a0   : > { %5784 = vrot.lane.b32.xlu0 %v5678_v12, %s7095_s13  ;;  %v3815_v37 = vrot.slane %v3813_v56, 4  ;;  %v3804_v16 = vrot.slane %v3802_v34, 3  ;;  %v4399_v58 = vshrl.u32 %v4201_v42, 16  ;;  %v4402_v6 = vshll.u32 %v4201_v42, 16  ;;  %5815 = vst.msk [vmem:[#allocation4 + $0x18] sm:$0xff] %vm2647_vm11, %v5771_v50 }
 0x2a1   : > { %v5661_v60 = vsel %vm526_vm5, %v5652_v7, %v5660_v39  ;;  %v3807_v31 = vrot.slane %v3805_v21, 4  ;;  %v4407_v28 = vshrl.u32 %v4202_v52, 16  ;;  %v4410_v4 = vshll.u32 %v4202_v52, 16  ;;  %5991 = vst.msk [vmem:[#allocation4 + $0x18] sm:$0xff] %vm2824_vm12, %v8471_v14 }
 0x2a2   : > { %5782 = vrot.lane.b32.xlu1 %v5661_v60, %s7095_s13  ;;  %v3816_v30 = vor.u32 %v3815_v37, %v3812_v24  ;;  %v4401_v15 = vrot.slane %v4399_v58, 4  ;;  %v4404_v26 = vrot.slane %v4402_v6, 5  ;;  %v6207_v29 = vshrl.u32 %v6024_v45, 16  ;;  %6359 = vst.msk [vmem:[#allocation4 + $0x18] sm:$0xff] %vm3193_vm13, %v8502_v18  ;;  %v5404_v41 = vpop.permute.xlu0 %5403  ;;  %v5851_v36 = vld [vmem:[#allocation3 + $0xd8] sm:$0xf] }
 0x2a3   : > { %v3808_v46 = vor.u32 %v3807_v31, %v3804_v16  ;;  %v4409_v5 = vrot.slane %v4407_v28, 4  ;;  %v4412_v44 = vrot.slane %v4410_v4, 5  ;;  %v6210_v23 = vshll.u32 %v6024_v45, 16  ;;  %v5850_v27 = vld [vmem:[#allocation3 + $0xd0] sm:$0xf0]  ;;  %5447 = vst.msk [vmem:[#allocation4 + $0x20] sm:$0xff] %vm2277_vm10, %v5404_v41 }
 0x2a4   : > { %5960 = vrot.lane.b32.xlu0 %v5924_v13, %s7092_s10  ;;  %v4405_v9 = vor.u32 %v4404_v26, %v4401_v15  ;;  %v6209_v40 = vrot.slane %v6207_v29, 4  ;;  %v6215_v32 = vshrl.u32 %v6025_v53, 16  ;;  %v6218_v51 = vshll.u32 %v6025_v53, 16  ;;  %v6026_v20 = vld [vmem:[#allocation3 + $0xd0] sm:$0xf0]  ;;  %5816 = vst.msk [vmem:[#allocation4 + $0x20] sm:$0xff] %vm2647_vm11, %v8459_v38 }
 0x2a5   : > { %v3817_v33 = vsel %vm526_vm5, %v3808_v46, %v3816_v30  ;;  %v4413_v49 = vor.u32 %v4412_v44, %v4409_v5  ;;  %v6212_v17 = vrot.slane %v6210_v23, 5  ;;  %v3793_v47 = vshrl.u32 %v3678_v35, 16  ;;  %v6027_v63 = vld [vmem:[#allocation3 + $0xd8] sm:$0x1f]  ;;  %5992 = vst.msk [vmem:[#allocation4 + $0x20] sm:$0xff] %vm2824_vm12, %v8432_v22  ;;  %v4494_v42 = vpop.permute.xlu1 %4493 }
 0x2a6   : > { %3993 = vst.msk [vmem:[#allocation4 + $0x30] sm:$0xff] %vm280_vm0, %v3817_v33  ;;  %v6217_v14 = vrot.slane %v6215_v32, 4  ;;  %v6220_v10 = vrot.slane %v6218_v51, 5  ;;  %v3796_v2 = vshll.u32 %v3678_v35, 16  ;;  %v3785_v62 = vshrl.u32 %v3677_v61, 16 }
 0x2a7   : > { %4169 = vst.msk [vmem:[#allocation4 + $0x30] sm:$0xff] %vm992_vm6, %v8454_v19  ;;  %v4414_v18 = vsel %vm1041_vm3, %v4405_v9, %v4413_v49  ;;  %v6213_v54 = vor.u32 %v6212_v17, %v6209_v40  ;;  %v3795_v55 = vrot.slane %v3793_v47, 3  ;;  %v3788_v11 = vshll.u32 %v3677_v61, 16  ;;  %v8543_v19 = vpop.permute.xlu0 %5952  ;;  %v5482_v22 = vld [vmem:[#allocation3 + $0xd0] sm:$0xf8] }
 0x2a8   : > { %4505 = vrot.lane.b32.xlu1 %v4414_v18, %s7090_s8  ;;  %v6221_v7 = vor.u32 %v6220_v10, %v6217_v14  ;;  %v3798_v13 = vrot.slane %v3796_v2, 4  ;;  %v3787_v56 = vrot.slane %v3785_v62, 3  ;;  %v5925_v34 = vrot.slane %v5850_v27, 4  ;;  %4537 = vst.msk [vmem:[#allocation4 + $0x30] sm:$0xff] %vm1362_vm7, %v8491_v43  ;;  %v5483_v37 = vld [vmem:[#allocation3 + $0xd8] sm:$0xf] }
 0x2a9   : > { %6360 = vst.msk [vmem:[#allocation4 + $0x20] sm:$0xff] %vm3193_vm13, %v8480_v48  ;;  %v3790_v38 = vrot.slane %v3788_v11, 4  ;;  %v5926_v52 = vrot.slane %v5851_v36, 4  ;;  %v6224_v12 = vshrl.u32 %v6026_v20, 16  ;;  %v6227_v39 = vshll.u32 %v6026_v20, 16  ;;  %v8548_v31 = vpop.permute.xlu1 %5041  ;;  %v6375_v30 = vld [vmem:[#allocation4 + $0x18] sm:$0xff] }
 0x2aa   : > { %v6222_v24 = vsel %vm1041_vm3, %v6213_v54, %v6221_v7  ;;  %v3799_v21 = vor.u32 %v3798_v13, %v3795_v55  ;;  %v6232_v45 = vshrl.u32 %v6027_v63, 16  ;;  %v6235_v25 = vshll.u32 %v6027_v63, 16  ;;  %v4203_v6 = vld [vmem:[#allocation3 + $0xc0] sm:$0xf0]  ;;  %v4204_v60 = vld [vmem:[#allocation3 + $0xc8] sm:$0x1f]  ;;  %6991 = vmatmul.mubr.msk.bf16.gmra.mrb[4].mxu1 %vm3246_vm15, %v6375_v30 }
 0x2ab   : > { %6328 = vrot.lane.b32.xlu0 %v6222_v24, %s7096_s14  ;;  %v3791_v16 = vor.u32 %v3790_v38, %v3787_v56  ;;  %v5927_v43 = vsel %vm895_vm4, %v5925_v34, %v5926_v52  ;;  %v6226_v58 = vrot.slane %v6224_v12, 4  ;;  %v6229_v48 = vrot.slane %v6227_v39, 5  ;;  %v8551_v15 = vpop.permute.xlu0 %5039  ;;  %v4027_v9 = vld [vmem:[#allocation3 + $0xc0] sm:$0xf0]  ;;  %v4028_v33 = vld [vmem:[#allocation3 + $0xc8] sm:$0xf] }
 0x2ac   : > { %5962 = vrot.lane.b32.xlu1 %v5927_v43, %s7092_s10  ;;  %v6234_v28 = vrot.slane %v6232_v45, 4  ;;  %v6237_v4 = vrot.slane %v6235_v25, 5  ;;  %v5680_v53 = vshrl.u32 %v5482_v22, 16  ;;  %v5683_v50 = vshll.u32 %v5482_v22, 16  ;;  %v4571_v13 = vld [vmem:[#allocation3 + $0xd0] sm:$0xf8] }
 0x2ad   : > { %v3800_v26 = vsel %vm526_vm5, %v3791_v16, %v3799_v21  ;;  %v6230_v29 = vor.u32 %v6229_v48, %v6226_v58  ;;  %v5688_v35 = vshrl.u32 %v5483_v37, 16  ;;  %v5691_v46 = vshll.u32 %v5483_v37, 16  ;;  %v8558_v49 = vpop.permute.xlu1 %4131  ;;  %v4572_v12 = vld [vmem:[#allocation3 + $0xd8] sm:$0xf]  ;;  %v4029_v45 = vld [vmem:[#allocation3 + $0xd0] sm:$0xf0] }
 0x2ae   : > { %3992 = vst.msk [vmem:[#allocation4 + $0x28] sm:$0xff] %vm280_vm0, %v3800_v26  ;;  %v6238_v5 = vor.u32 %v6237_v4, %v6234_v28  ;;  %v5682_v44 = vrot.slane %v5680_v53, 3  ;;  %v5685_v23 = vrot.slane %v5683_v50, 4  ;;  %v4416_v61 = vshrl.u32 %v4203_v6, 16  ;;  %v4939_v4 = vld [vmem:[#allocation3 + $0xd0] sm:$0xf0] }
 0x2af   : > { %4168 = vst.msk [vmem:[#allocation4 + $0x28] sm:$0xff] %vm992_vm6, %v8489_v8  ;;  %v5690_v40 = vrot.slane %v5688_v35, 3  ;;  %v5693_v32 = vrot.slane %v5691_v46, 4  ;;  %v4419_v51 = vshll.u32 %v4203_v6, 16  ;;  %v4424_v41 = vshrl.u32 %v4204_v60, 16  ;;  %v8562_v2 = vpop.permute.xlu0 %5776 }
 0x2b0   : > { %v6239_v17 = vsel %vm1041_vm3, %v6230_v29, %v6238_v5  ;;  %v5686_v47 = vor.u32 %v5685_v23, %v5682_v44  ;;  %v6978_v27 = vpop.f32.mrb[28].mxu0  ;;  %v4418_v36 = vrot.slane %v4416_v61, 4  ;;  %v4427_v14 = vshll.u32 %v4204_v60, 16  ;;  %4536 = vst.msk [vmem:[#allocation4 + $0x28] sm:$0xff] %vm1362_vm7, %v4494_v42  ;;  %v6376_v10 = vld [vmem:[#allocation4 + $0x20] sm:$0xff] }
 0x2b1   : > { %6330 = vrot.lane.b32.xlu0 %v6239_v17, %s7096_s14  ;;  %v5694_v8 = vor.u32 %v5693_v32, %v5690_v40  ;;  %v3497_v62 = vmul.f32 %v8466_v57, %v6978_v27  ;;  %v3445_v20 = vpop.f32.mrb[29].mxu0  ;;  %v4421_v18 = vrot.slane %v4419_v51, 5  ;;  %v4426_v54 = vrot.slane %v4424_v41, 4  ;;  %4904 = vst.msk [vmem:[#allocation4 + $0x28] sm:$0xff] %vm1731_vm8, %v8495_v0  ;;  %6994 = vmatprep.mubr.msk.bf16.mxu1 %vm3246_vm15, %v6376_v10  ;;  %v8577_v39 = vpop.permute.xlu1 %5950  ;;  %v4205_v29 = vld [vmem:[#allocation3 + $0xd0] sm:$0xf0] }
 0x2b2   : > { %v3495_v55 = vmul.f32 %v8466_v57, %v3445_v20  ;;  %v6979_v11 = vpop.f32.mrb[30].mxu0  ;;  %v4429_v63 = vrot.slane %v4427_v14, 5  ;;  %v4103_v42 = vrot.slane %v4027_v9, 4  ;;  %v4104_v7 = vrot.slane %v4028_v33, 4  ;;  %5080 = vst.msk [vmem:[#allocation4 + $0x28] sm:$0xff] %vm1908_vm9, %v8441_v3 }
 0x2b3   : > { %v5695_v56 = vsel %vm526_vm5, %v5686_v47, %v5694_v8  ;;  %v3536_v34 = vadd.f32 %v8476_v59, %v3497_v62  ;;  %v3498_v38 = vmul.f32 %v8466_v57, %v6979_v11  ;;  %v3448_v52 = vpop.f32.mrb[31].mxu0  ;;  %v4422_v0 = vor.u32 %v4421_v18, %v4418_v36  ;;  %5448 = vst.msk [vmem:[#allocation4 + $0x28] sm:$0xff] %vm2277_vm10, %v8510_v1  ;;  %v8583_v25 = vpop.permute.xlu0 %6320  ;;  %v4030_v1 = vld [vmem:[#allocation3 + $0xd8] sm:$0xf]  ;;  %v5115_v27 = vld [vmem:[#allocation3 + $0xd0] sm:$0xf0] }
 0x2b4   : > { %5786 = vrot.lane.b32.xlu1 %v5695_v56, %s7095_s13  ;;  %v3534_v22 = vadd.f32 %v8476_v59, %v3495_v55  ;;  %v3496_v3 = vmul.f32 %v8466_v57, %v3448_v52  ;;  %v4430_v24 = vor.u32 %v4429_v63, %v4426_v54  ;;  %v4105_v21 = vsel %vm895_vm4, %v4103_v42, %v4104_v7  ;;  %v4940_v57 = vld [vmem:[#allocation3 + $0xd8] sm:$0xf]  ;;  %v4573_v11 = vld [vmem:[#allocation3 + $0xe0] sm:$0xf8] }
 0x2b5   : > { %v3568_v37 = vmax.f32 %v3536_v34, 0.0  ;;  %v3537_v16 = vadd.f32 %v8476_v59, %v3498_v38  ;;  %v4784_v43 = vshrl.u32 %v4571_v13, 16  ;;  %v4787_v58 = vshll.u32 %v4571_v13, 16  ;;  %v8589_v35 = vpop.permute.xlu1 %4129  ;;  %v4206_v23 = vld [vmem:[#allocation3 + $0xd8] sm:$0x1f] }
 0x2b6   : > { %v3566_v48 = vmax.f32 %v3534_v22, 0.0  ;;  %v3535_v6 = vadd.f32 %v8476_v59, %v3496_v3  ;;  %v4431_v60 = vsel %vm1041_vm3, %v4422_v0, %v4430_v24  ;;  %v4792_v28 = vshrl.u32 %v4572_v12, 16  ;;  %v5116_v62 = vld [vmem:[#allocation3 + $0xd8] sm:$0x1f] }
 0x2b7   : > { %v3569_v53 = vmax.f32 %v3537_v16, 0.0  ;;  %4507 = vrot.lane.b32.xlu0 %v4431_v60, %s7090_s8  ;;  %v4786_v50 = vrot.slane %v4784_v43, 3  ;;  %v4789_v30 = vrot.slane %v4787_v58, 4  ;;  %v4795_v26 = vshll.u32 %v4572_v12, 16  ;;  %v8592_v51 = vpop.permute.xlu0 %4499  ;;  %v4574_v12 = vld [vmem:[#allocation3 + $0xe8] sm:$0xf] }
 0x2b8   : > { %v3567_v46 = vmax.f32 %v3535_v6, 0.0  ;;  %4139 = vrot.lane.b32.xlu1 %v4105_v21, %s7089_s30  ;;  %v4794_v5 = vrot.slane %v4792_v28, 3  ;;  %v4106_v44 = vrot.slane %v4029_v45, 4  ;;  %v4107_v59 = vrot.slane %v4030_v1, 4  ;;  %v3684_v45 = vld [vmem:[#allocation3 + $0x88] sm:$0xf] }
 0x2b9   : > { %v3585_v61 = vpack.c.bf16 %v3569_v53, %v3568_v37  ;;  %v4790_v9 = vor.u32 %v4789_v30, %v4786_v50  ;;  %v4797_v40 = vrot.slane %v4795_v26, 4  ;;  %v5015_v32 = vrot.slane %v4939_v4, 4  ;;  %v8597_v63 = vpop.permute.xlu1 %4865  ;;  %v3683_v4 = vld [vmem:[#allocation3 + $0x80] sm:$0xf8] }
 0x2ba   : > { %v3584_v41 = vpack.c.bf16 %v3567_v46, %v3566_v48  ;;  %v4108_v33 = vsel %vm895_vm4, %v4106_v44, %v4107_v59  ;;  %v5016_v17 = vrot.slane %v4940_v57, 4  ;;  %v4433_v47 = vshrl.u32 %v4205_v29, 16  ;;  %v5484_v26 = vld [vmem:[#allocation3 + $0xe0] sm:$0xf8] }
 0x2bb   : > { %v3617_v36 = vrot.slane %v3585_v61, 4  ;;  %v4798_v14 = vor.u32 %v4797_v40, %v4794_v5  ;;  %v4436_v10 = vshll.u32 %v4205_v29, 16  ;;  %v4441_v8 = vshrl.u32 %v4206_v23, 16  ;;  %v8605_v37 = vpop.permute.xlu0 %6318  ;;  %v5485_v29 = vld [vmem:[#allocation3 + $0xe8] sm:$0xf] }
 0x2bc   : > { %v3616_v20 = vrot.slane %v3584_v41, 4  ;;  %4141 = vrot.lane.b32.xlu1 %v4108_v33, %s7089_s30  ;;  %v5017_v18 = vsel %vm895_vm4, %v5015_v32, %v5016_v17  ;;  %v4435_v54 = vrot.slane %v4433_v47, 4  ;;  %v4444_v55 = vshll.u32 %v4206_v23, 16  ;;  %v4941_v61 = vld [vmem:[#allocation3 + $0xe0] sm:$0xf0] }
 0x2bd   : > { %3665 = vst.msk [vmem:[#allocation3 + $0x100] sm:$0xf0] %vm305_vm2, %v3617_v36  ;;  %v4799_v42 = vsel %vm526_vm5, %v4790_v9, %v4798_v14  ;;  %v4438_v7 = vrot.slane %v4436_v10, 5  ;;  %v4443_v13 = vrot.slane %v4441_v8, 4  ;;  %v5328_v56 = vshrl.u32 %v5115_v27, 16  ;;  %v8609_v46 = vpop.permute.xlu1 %5409 }
 0x2be   : > { %3666 = vst.msk [vmem:[#allocation3 + $0x108] sm:$0xf] %vm286_vm1, %v3617_v36  ;;  %3664 = vst.msk [vmem:[#allocation3 + $0xf8] sm:$0xf] %vm286_vm1, %v3616_v20  ;;  %4875 = vrot.lane.b32.xlu0 %v4799_v42, %s7093_s11  ;;  %v4446_v34 = vrot.slane %v4444_v55, 5  ;;  %v5331_v38 = vshll.u32 %v5115_v27, 16 }
 0x2bf   : > { %3663 = vst.msk [vmem:[#allocation3 + $0xf0] sm:$0xf0] %vm305_vm2, %v3616_v20  ;;  %v5336_v52 = vshrl.u32 %v5116_v62, 16  ;;  %v5339_v0 = vshll.u32 %v5116_v62, 16  ;;  %v4439_v22 = vor.u32 %v4438_v7, %v4435_v54  ;;  %v5330_v3 = vrot.slane %v5328_v56, 4 }
 0x2c0   : > { %v4801_v24 = vshrl.u32 %v4573_v11, 16  ;;  %v4804_v21 = vshll.u32 %v4573_v11, 16  ;;  %v4447_v16 = vor.u32 %v4446_v34, %v4443_v13  ;;  %v5333_v43 = vrot.slane %v5331_v38, 5  ;;  %v4942_v33 = vld [vmem:[#allocation3 + $0xe8] sm:$0xf] }
 0x2c1   : > { %v5338_v58 = vrot.slane %v5336_v52, 4  ;;  %v5341_v1 = vrot.slane %v5339_v0, 5  ;;  %v4809_v60 = vshrl.u32 %v4574_v12, 16  ;;  %v4812_v28 = vshll.u32 %v4574_v12, 16  ;;  %v5852_v14 = vld [vmem:[#allocation3 + $0xe0] sm:$0xf0] }
 0x2c2   : > { %v4803_v48 = vrot.slane %v4801_v24, 3  ;;  %v4806_v6 = vrot.slane %v4804_v21, 4  ;;  %5051 = vrot.lane.b32.xlu0 %v5017_v18, %s7091_s9  ;;  %v4448_v57 = vsel %vm1041_vm3, %v4439_v22, %v4447_v16  ;;  %v5334_v53 = vor.u32 %v5333_v43, %v5330_v3  ;;  %v5853_v54 = vld [vmem:[#allocation3 + $0xe8] sm:$0xf]  ;;  %v5117_v13 = vld [vmem:[#allocation3 + $0xe0] sm:$0xf0] }
 0x2c3   : > { %v5342_v50 = vor.u32 %v5341_v1, %v5338_v58  ;;  %v3844_v30 = vshrl.u32 %v3684_v45, 16  ;;  %4509 = vrot.lane.b32.xlu1 %v4448_v57, %s7090_s8  ;;  %v4811_v44 = vrot.slane %v4809_v60, 3  ;;  %v4814_v59 = vrot.slane %v4812_v28, 4  ;;  %v5118_v0 = vld [vmem:[#allocation3 + $0xe8] sm:$0x1f] }
 0x2c4   : > { %v4807_v5 = vor.u32 %v4806_v6, %v4803_v48  ;;  %v3847_v23 = vshll.u32 %v3684_v45, 16  ;;  %v3836_v32 = vshrl.u32 %v3683_v4, 16  ;;  %v3839_v41 = vshll.u32 %v3683_v4, 16  ;;  %v4864_v10 = vpop.permute.xlu0 %4863  ;;  %v3682_v45 = vld [vmem:[#allocation3 + $0x78] sm:$0xf] }
 0x2c5   : > { %v5343_v9 = vsel %vm1041_vm3, %v5334_v53, %v5342_v50  ;;  %v3846_v40 = vrot.slane %v3844_v30, 3  ;;  %v4815_v17 = vor.u32 %v4814_v59, %v4811_v44  ;;  %v5697_v27 = vshrl.u32 %v5484_v26, 16  ;;  %4905 = vst.msk [vmem:[#allocation4 + $0x30] sm:$0xff] %vm1731_vm8, %v4864_v10  ;;  %v3681_v1 = vld [vmem:[#allocation3 + $0x70] sm:$0xf8] }
 0x2c6   : > { %v3849_v47 = vrot.slane %v3847_v23, 4  ;;  %v5700_v36 = vshll.u32 %v5484_v26, 16  ;;  %5419 = vrot.lane.b32.xlu0 %v5343_v9, %s7094_s12  ;;  %v3838_v8 = vrot.slane %v3836_v32, 3  ;;  %v3841_v62 = vrot.slane %v3839_v41, 4  ;;  %5081 = vst.msk [vmem:[#allocation4 + $0x30] sm:$0xff] %vm1908_vm9, %v8551_v15  ;;  %v5775_v12 = vpop.permute.xlu1 %5774 }
 0x2c7   : > { %v5705_v20 = vshrl.u32 %v5485_v29, 16  ;;  %v5708_v18 = vshll.u32 %v5485_v29, 16  ;;  %v4816_v55 = vsel %vm526_vm5, %v4807_v5, %v4815_v17  ;;  %v5699_v42 = vrot.slane %v5697_v27, 3  ;;  %5817 = vst.msk [vmem:[#allocation4 + $0x28] sm:$0xff] %vm2647_vm11, %v5775_v12  ;;  %v6028_v4 = vld [vmem:[#allocation3 + $0xe0] sm:$0xf0] }
 0x2c8   : > { %v3850_v11 = vor.u32 %v3849_v47, %v3846_v40  ;;  %v5702_v7 = vrot.slane %v5700_v36, 4  ;;  %4877 = vrot.lane.b32.xlu1 %v4816_v55, %s7093_s11  ;;  %v3842_v56 = vor.u32 %v3841_v62, %v3838_v8  ;;  %v5018_v52 = vrot.slane %v4941_v61, 4  ;;  %5993 = vst.msk [vmem:[#allocation4 + $0x28] sm:$0xff] %vm2824_vm12, %v8577_v39  ;;  %v6029_v44 = vld [vmem:[#allocation3 + $0xe8] sm:$0x1f] }
 0x2c9   : > { %v5707_v34 = vrot.slane %v5705_v20, 3  ;;  %v5710_v38 = vrot.slane %v5708_v18, 4  ;;  %v5019_v3 = vrot.slane %v4942_v33, 4  ;;  %v5928_v24 = vrot.slane %v5852_v14, 4  ;;  %6361 = vst.msk [vmem:[#allocation4 + $0x28] sm:$0xff] %vm3193_vm13, %v8605_v37 }
 0x2ca   : > { %v5703_v22 = vor.u32 %v5702_v7, %v5699_v42  ;;  %v5929_v21 = vrot.slane %v5853_v54, 4  ;;  %v3851_v16 = vsel %vm526_vm5, %v3842_v56, %v3850_v11  ;;  %v5345_v58 = vshrl.u32 %v5117_v13, 16  ;;  %v5486_v9 = vld [vmem:[#allocation3 + $0xf0] sm:$0xf8]  ;;  %v6031_v42 = vld [vmem:[#allocation3 + $0xf8] sm:$0x1f] }
 0x2cb   : > { %v5711_v43 = vor.u32 %v5710_v38, %v5707_v34  ;;  %v5348_v15 = vshll.u32 %v5117_v13, 16  ;;  %3995 = vst.msk [vmem:[#allocation4 + $0x40] sm:$0xff] %vm280_vm0, %v3851_v16  ;;  %v5020_v48 = vsel %vm895_vm4, %v5018_v52, %v5019_v3  ;;  %v5353_v60 = vshrl.u32 %v5118_v0, 16  ;;  %v6030_v18 = vld [vmem:[#allocation3 + $0xf0] sm:$0xf0] }
 0x2cc   : > { %v5930_v6 = vsel %vm895_vm4, %v5928_v24, %v5929_v21  ;;  %v5356_v28 = vshll.u32 %v5118_v0, 16  ;;  %4171 = vst.msk [vmem:[#allocation4 + $0x40] sm:$0xff] %vm992_vm6, %v8558_v49  ;;  %5053 = vrot.lane.b32.xlu1 %v5020_v48, %s7091_s9  ;;  %v5347_v39 = vrot.slane %v5345_v58, 4  ;;  %v3827_v50 = vshrl.u32 %v3682_v45, 16  ;;  %v5408_v37 = vpop.permute.xlu0 %5407  ;;  %v4207_v3 = vld [vmem:[#allocation3 + $0xe0] sm:$0xf0] }
 0x2cd   : > { %v5712_v57 = vsel %vm526_vm5, %v5703_v22, %v5711_v43  ;;  %v5350_v53 = vrot.slane %v5348_v15, 5  ;;  %v5355_v30 = vrot.slane %v5353_v60, 4  ;;  %v3830_v29 = vshll.u32 %v3682_v45, 16  ;;  %4539 = vst.msk [vmem:[#allocation4 + $0x40] sm:$0xff] %vm1362_vm7, %v8592_v51  ;;  %v5487_v51 = vld [vmem:[#allocation3 + $0xf8] sm:$0xf] }
 0x2ce   : > { %5788 = vrot.lane.b32.xlu0 %v5712_v57, %s7095_s13  ;;  %v5358_v26 = vrot.slane %v5356_v28, 5  ;;  %v3819_v5 = vshrl.u32 %v3681_v1, 16  ;;  %v3829_v49 = vrot.slane %v3827_v50, 3  ;;  %v3822_v23 = vshll.u32 %v3681_v1, 16  ;;  %5449 = vst.msk [vmem:[#allocation4 + $0x30] sm:$0xff] %vm2277_vm10, %v5408_v37  ;;  %v4498_v14 = vpop.permute.xlu1 %4497 }
 0x2cf   : > { %v5351_v59 = vor.u32 %v5350_v53, %v5347_v39  ;;  %v6241_v61 = vshrl.u32 %v6028_v4, 16  ;;  %v3832_v32 = vrot.slane %v3830_v29, 4  ;;  %v6244_v33 = vshll.u32 %v6028_v4, 16  ;;  %5818 = vst.msk [vmem:[#allocation4 + $0x30] sm:$0xff] %vm2647_vm11, %v8562_v2  ;;  %v5854_v22 = vld [vmem:[#allocation3 + $0xf0] sm:$0xf0] }
 0x2d0   : > { %v5359_v40 = vor.u32 %v5358_v26, %v5355_v30  ;;  %v3821_v41 = vrot.slane %v3819_v5, 3  ;;  %v3824_v17 = vrot.slane %v3822_v23, 4  ;;  %v6249_v27 = vshrl.u32 %v6029_v44, 16  ;;  %5994 = vst.msk [vmem:[#allocation4 + $0x30] sm:$0xff] %vm2824_vm12, %v8543_v19  ;;  %v8644_v2 = vpop.permute.xlu0 %5956  ;;  %v6377_v7 = vld [vmem:[#allocation4 + $0x28] sm:$0xff] }
 0x2d1   : > { %v6243_v47 = vrot.slane %v6241_v61, 4  ;;  %v6252_v36 = vshll.u32 %v6029_v44, 16  ;;  %v3833_v8 = vor.u32 %v3832_v32, %v3829_v49  ;;  %v6246_v62 = vrot.slane %v6244_v33, 5  ;;  %6362 = vst.msk [vmem:[#allocation4 + $0x30] sm:$0xff] %vm3193_vm13, %v8583_v25  ;;  %6995 = vmatmul.mubr.msk.bf16.gmra.mrb[8].mxu1 %vm3246_vm15, %v6377_v7  ;;  %v5855_v58 = vld [vmem:[#allocation3 + $0xf8] sm:$0xf] }
 0x2d2   : > { %5964 = vrot.lane.b32.xlu0 %v5930_v6, %s7092_s10  ;;  %v5360_v10 = vsel %vm1041_vm3, %v5351_v59, %v5359_v40  ;;  %v5714_v20 = vshrl.u32 %v5486_v9, 16  ;;  %v3825_v54 = vor.u32 %v3824_v17, %v3821_v41  ;;  %v6251_v55 = vrot.slane %v6249_v27, 4  ;;  %v8649_v24 = vpop.permute.xlu1 %5045  ;;  %v4208_v28 = vld [vmem:[#allocation3 + $0xe8] sm:$0x1f]  ;;  %v4031_v4 = vld [vmem:[#allocation3 + $0xe0] sm:$0xf0] }
 0x2d3   : > { %5421 = vrot.lane.b32.xlu1 %v5360_v10, %s7094_s12  ;;  %v6254_v11 = vrot.slane %v6252_v36, 5  ;;  %v5717_v19 = vshll.u32 %v5486_v9, 16  ;;  %v6247_v13 = vor.u32 %v6246_v62, %v6243_v47  ;;  %v5722_v34 = vshrl.u32 %v5487_v51, 16  ;;  %v4032_v30 = vld [vmem:[#allocation3 + $0xe8] sm:$0xf] }
 0x2d4   : > { %v5716_v56 = vrot.slane %v5714_v20, 3  ;;  %v5725_v38 = vshll.u32 %v5487_v51, 16  ;;  %v3834_v52 = vsel %vm526_vm5, %v3825_v54, %v3833_v8  ;;  %v6258_v12 = vshrl.u32 %v6030_v18, 16  ;;  %v8652_v15 = vpop.permute.xlu0 %5043  ;;  %v4575_v9 = vld [vmem:[#allocation3 + $0xf0] sm:$0xf8] }
 0x2d5   : > { %v6255_v0 = vor.u32 %v6254_v11, %v6251_v55  ;;  %v5719_v25 = vrot.slane %v5717_v19, 4  ;;  %3994 = vst.msk [vmem:[#allocation4 + $0x38] sm:$0xff] %vm280_vm0, %v3834_v52  ;;  %v5724_v21 = vrot.slane %v5722_v34, 3  ;;  %v6261_v16 = vshll.u32 %v6030_v18, 16  ;;  %v4576_v17 = vld [vmem:[#allocation3 + $0xf8] sm:$0xf] }
 0x2d6   : > { %v5727_v45 = vrot.slane %v5725_v38, 4  ;;  %v6266_v43 = vshrl.u32 %v6031_v42, 16  ;;  %4170 = vst.msk [vmem:[#allocation4 + $0x38] sm:$0xff] %vm992_vm6, %v8589_v35  ;;  %v6260_v6 = vrot.slane %v6258_v12, 4  ;;  %v6269_v60 = vshll.u32 %v6031_v42, 16  ;;  %v8661_v44 = vpop.permute.xlu1 %4135 }
 0x2d7   : > { %v6256_v1 = vsel %vm1041_vm3, %v6247_v13, %v6255_v0  ;;  %v5720_v48 = vor.u32 %v5719_v25, %v5716_v56  ;;  %v6263_v39 = vrot.slane %v6261_v16, 5  ;;  %v5931_v50 = vrot.slane %v5854_v22, 4  ;;  %4538 = vst.msk [vmem:[#allocation4 + $0x38] sm:$0xff] %vm1362_vm7, %v4498_v14  ;;  %v4033_v47 = vld [vmem:[#allocation3 + $0xf0] sm:$0xf0] }
 0x2d8   : > { %6332 = vrot.lane.b32.xlu0 %v6256_v1, %s7096_s14  ;;  %v5728_v57 = vor.u32 %v5727_v45, %v5724_v21  ;;  %v6268_v53 = vrot.slane %v6266_v43, 4  ;;  %v6271_v26 = vrot.slane %v6269_v60, 5  ;;  %v5932_v29 = vrot.slane %v5855_v58, 4  ;;  %4906 = vst.msk [vmem:[#allocation4 + $0x38] sm:$0xff] %vm1731_vm8, %v8597_v63  ;;  %v6378_v37 = vld [vmem:[#allocation4 + $0x30] sm:$0xff]  ;;  %v8667_v40 = vpop.permute.xlu0 %5780 }
 0x2d9   : > { %v4450_v5 = vshrl.u32 %v4207_v3, 16  ;;  %v4453_v35 = vshll.u32 %v4207_v3, 16  ;;  %v6264_v49 = vor.u32 %v6263_v39, %v6260_v6  ;;  %v4458_v23 = vshrl.u32 %v4208_v28, 16  ;;  %5082 = vst.msk [vmem:[#allocation4 + $0x38] sm:$0xff] %vm1908_vm9, %v8548_v31  ;;  %6998 = vmatprep.mubr.msk.bf16.mxu1 %vm3246_vm15, %v6378_v37  ;;  %v4034_v14 = vld [vmem:[#allocation3 + $0xf8] sm:$0xf] }
 0x2da   : > { %v5729_v59 = vsel %vm526_vm5, %v5720_v48, %v5728_v57  ;;  %v4461_v61 = vshll.u32 %v4208_v28, 16  ;;  %v6272_v32 = vor.u32 %v6271_v26, %v6268_v53  ;;  %v5933_v63 = vsel %vm895_vm4, %v5931_v50, %v5932_v29  ;;  %5450 = vst.msk [vmem:[#allocation4 + $0x38] sm:$0xff] %vm2277_vm10, %v8609_v46  ;;  %v4943_v18 = vld [vmem:[#allocation3 + $0xf0] sm:$0xf0]  ;;  %v8674_v54 = vpop.permute.xlu1 %5954  ;;  %v4944_v42 = vld [vmem:[#allocation3 + $0xf8] sm:$0xf] }
 0x2db   : > { %5790 = vrot.lane.b32.xlu1 %v5729_v59, %s7095_s13  ;;  %v4452_v41 = vrot.slane %v4450_v5, 4  ;;  %v4455_v33 = vrot.slane %v4453_v35, 5  ;;  %v4460_v27 = vrot.slane %v4458_v23, 4  ;;  %v4109_v51 = vrot.slane %v4031_v4, 4  ;;  %v4209_v7 = vld [vmem:[#allocation3 + $0xf0] sm:$0xf0] }
 0x2dc   : > { %v4463_v36 = vrot.slane %v4461_v61, 5  ;;  %v4110_v31 = vrot.slane %v4032_v30, 4  ;;  %v6273_v10 = vsel %vm1041_vm3, %v6264_v49, %v6272_v32  ;;  %v4818_v62 = vshrl.u32 %v4575_v9, 16  ;;  %v8678_v13 = vpop.permute.xlu0 %6324  ;;  %v4210_v0 = vld [vmem:[#allocation3 + $0xf8] sm:$0x1f] }
 0x2dd   : > { %v4456_v8 = vor.u32 %v4455_v33, %v4452_v41  ;;  %v4821_v20 = vshll.u32 %v4575_v9, 16  ;;  %6334 = vrot.lane.b32.xlu0 %v6273_v10, %s7096_s14  ;;  %v4826_v19 = vshrl.u32 %v4576_v17, 16  ;;  %v4829_v46 = vshll.u32 %v4576_v17, 16  ;;  %v5119_v21 = vld [vmem:[#allocation3 + $0xf0] sm:$0xf0] }
 0x2de   : > { %v4464_v55 = vor.u32 %v4463_v36, %v4460_v27  ;;  %v4111_v11 = vsel %vm895_vm4, %v4109_v51, %v4110_v31  ;;  %v4820_v56 = vrot.slane %v4818_v62, 3  ;;  %v4112_v38 = vrot.slane %v4033_v47, 4  ;;  %v8683_v1 = vpop.permute.xlu1 %4133  ;;  %v5120_v4 = vld [vmem:[#allocation3 + $0xf8] sm:$0x1f]  ;;  %v3688_v30 = vld [vmem:[#allocation3 + $0xa8] sm:$0xf] }
 0x2df   : > { %5966 = vrot.lane.b32.xlu1 %v5933_v63, %s7092_s10  ;;  %v4823_v34 = vrot.slane %v4821_v20, 4  ;;  %v4113_v52 = vrot.slane %v4034_v14, 4  ;;  %v4828_v12 = vrot.slane %v4826_v19, 3  ;;  %v4831_v22 = vrot.slane %v4829_v46, 4  ;;  %v3687_v59 = vld [vmem:[#allocation3 + $0xa0] sm:$0xf8] }
 0x2e0   : > { %v4465_v25 = vsel %vm1041_vm3, %v4456_v8, %v4464_v55  ;;  %v5021_v3 = vrot.slane %v4943_v18, 4  ;;  %v5022_v43 = vrot.slane %v4944_v42, 4  ;;  %v4467_v58 = vshrl.u32 %v4209_v7, 16  ;;  %v8688_v26 = vpop.permute.xlu0 %4503  ;;  %v4577_v17 = vld [vmem:[#allocation3 + $0x100] sm:$0xf8] }
 0x2e1   : > { %v4824_v45 = vor.u32 %v4823_v34, %v4820_v56  ;;  %v4114_v16 = vsel %vm895_vm4, %v4112_v38, %v4113_v52  ;;  %4511 = vrot.lane.b32.xlu0 %v4465_v25, %s7090_s8  ;;  %v4832_v48 = vor.u32 %v4831_v22, %v4828_v12  ;;  %v4470_v6 = vshll.u32 %v4209_v7, 16  ;;  %v4578_v14 = vld [vmem:[#allocation3 + $0x108] sm:$0xf]  ;;  %v5488_v18 = vld [vmem:[#allocation3 + $0x100] sm:$0xf8] }
 0x2e2   : > { %v4475_v60 = vshrl.u32 %v4210_v0, 16  ;;  %v4478_v28 = vshll.u32 %v4210_v0, 16  ;;  %v5023_v57 = vsel %vm895_vm4, %v5021_v3, %v5022_v43  ;;  %v4469_v39 = vrot.slane %v4467_v58, 4  ;;  %v8692_v47 = vpop.permute.xlu1 %4869  ;;  %v5489_v42 = vld [vmem:[#allocation3 + $0x108] sm:$0xf] }
 0x2e3   : > { %4143 = vrot.lane.b32.xlu1 %v4111_v11, %s7089_s30  ;;  %v5362_v53 = vshrl.u32 %v5119_v21, 16  ;;  %v5365_v50 = vshll.u32 %v5119_v21, 16  ;;  %v4833_v29 = vsel %vm526_vm5, %v4824_v45, %v4832_v48  ;;  %v4472_v5 = vrot.slane %v4470_v6, 5  ;;  %v4945_v0 = vld [vmem:[#allocation3 + $0x100] sm:$0xf0] }
 0x2e4   : > { %v4477_v35 = vrot.slane %v4475_v60, 4  ;;  %v4480_v37 = vrot.slane %v4478_v28, 5  ;;  %v5370_v61 = vshrl.u32 %v5120_v4, 16  ;;  %v5373_v9 = vshll.u32 %v5120_v4, 16  ;;  %v4946_v21 = vld [vmem:[#allocation3 + $0x108] sm:$0xf] }
 0x2e5   : > { %v5364_v49 = vrot.slane %v5362_v53, 4  ;;  %v5367_v23 = vrot.slane %v5365_v50, 5  ;;  %4879 = vrot.lane.b32.xlu0 %v4833_v29, %s7093_s11  ;;  %v4473_v32 = vor.u32 %v4472_v5, %v4469_v39  ;;  %v3878_v41 = vshrl.u32 %v3688_v30, 16  ;;  %v8696_v7 = vpop.permute.xlu0 %6322  ;;  %v3686_v45 = vld [vmem:[#allocation3 + $0x98] sm:$0xf] }
 0x2e6   : > { %v4481_v63 = vor.u32 %v4480_v37, %v4477_v35  ;;  %v3881_v33 = vshll.u32 %v3688_v30, 16  ;;  %v5372_v36 = vrot.slane %v5370_v61, 4  ;;  %v5375_v51 = vrot.slane %v5373_v9, 5  ;;  %v5856_v6 = vld [vmem:[#allocation3 + $0x100] sm:$0xf0] }
 0x2e7   : > { %4145 = vrot.lane.b32.xlu1 %v4114_v16, %s7089_s30  ;;  %v5368_v27 = vor.u32 %v5367_v23, %v5364_v49  ;;  %v3870_v31 = vshrl.u32 %v3687_v59, 16  ;;  %v3880_v8 = vrot.slane %v3878_v41, 3  ;;  %v3873_v20 = vshll.u32 %v3687_v59, 16  ;;  %v5857_v53 = vld [vmem:[#allocation3 + $0x108] sm:$0xf] }
 0x2e8   : > { %v4482_v10 = vsel %vm1041_vm3, %v4473_v32, %v4481_v63  ;;  %v3883_v62 = vrot.slane %v3881_v33, 4  ;;  %v5376_v55 = vor.u32 %v5375_v51, %v5372_v36  ;;  %v4835_v19 = vshrl.u32 %v4577_v17, 16  ;;  %v8701_v60 = vpop.permute.xlu1 %5413  ;;  %v3685_v35 = vld [vmem:[#allocation3 + $0x90] sm:$0xf8]  ;;  %v5121_v61 = vld [vmem:[#allocation3 + $0x100] sm:$0xf0] }
 0x2e9   : > { %v3872_v11 = vrot.slane %v3870_v31, 3  ;;  %v4838_v46 = vshll.u32 %v4577_v17, 16  ;;  %5055 = vrot.lane.b32.xlu0 %v5023_v57, %s7091_s9  ;;  %v3875_v34 = vrot.slane %v3873_v20, 4  ;;  %v4843_v38 = vshrl.u32 %v4578_v14, 16  ;;  %v5122_v31 = vld [vmem:[#allocation3 + $0x108] sm:$0x1f] }
 0x2ea   : > { %v3884_v56 = vor.u32 %v3883_v62, %v3880_v8  ;;  %v4846_v52 = vshll.u32 %v4578_v14, 16  ;;  %v5377_v25 = vsel %vm1041_vm3, %v5368_v27, %v5376_v55  ;;  %v4837_v12 = vrot.slane %v4835_v19, 3  ;;  %v6032_v62 = vld [vmem:[#allocation3 + $0x100] sm:$0xf0] }
 0x2eb   : > { %4513 = vrot.lane.b32.xlu1 %v4482_v10, %s7090_s8  ;;  %v4840_v22 = vrot.slane %v4838_v46, 4  ;;  %v5731_v3 = vshrl.u32 %v5488_v18, 16  ;;  %v3876_v16 = vor.u32 %v3875_v34, %v3872_v11  ;;  %v4845_v43 = vrot.slane %v4843_v38, 3  ;;  %v6033_v46 = vld [vmem:[#allocation3 + $0x108] sm:$0x1f] }
 0x2ec   : > { %v4848_v58 = vrot.slane %v4846_v52, 4  ;;  %v5734_v48 = vshll.u32 %v5488_v18, 16  ;;  %v5739_v57 = vshrl.u32 %v5489_v42, 16  ;;  %v5742_v39 = vshll.u32 %v5489_v42, 16 }
 0x2ed   : > { %v4841_v28 = vor.u32 %v4840_v22, %v4837_v12  ;;  %v5733_v4 = vrot.slane %v5731_v3, 3  ;;  %5423 = vrot.lane.b32.xlu0 %v5377_v25, %s7094_s12  ;;  %v3885_v50 = vsel %vm526_vm5, %v3876_v16, %v3884_v56  ;;  %v5024_v5 = vrot.slane %v4945_v0, 4  ;;  %v4868_v9 = vpop.permute.xlu0 %4867  ;;  %v5490_v25 = vld [vmem:[#allocation3 + $0x110] sm:$0xf8]  ;;  %v5491_v16 = vld [vmem:[#allocation3 + $0x118] sm:$0xf] }
 0x2ee   : > { %v4849_v30 = vor.u32 %v4848_v58, %v4845_v43  ;;  %v5736_v29 = vrot.slane %v5734_v48, 4  ;;  %3997 = vst.msk [vmem:[#allocation4 + $0x50] sm:$0xff] %vm280_vm0, %v3885_v50  ;;  %v5741_v37 = vrot.slane %v5739_v57, 3  ;;  %v5744_v59 = vrot.slane %v5742_v39, 4  ;;  %v5859_v39 = vld [vmem:[#allocation3 + $0x118] sm:$0xf] }
 0x2ef   : > { %v5025_v49 = vrot.slane %v4946_v21, 4  ;;  %v5934_v23 = vrot.slane %v5856_v6, 4  ;;  %4173 = vst.msk [vmem:[#allocation4 + $0x50] sm:$0xff] %vm992_vm6, %v8661_v44  ;;  %v5935_v41 = vrot.slane %v5857_v53, 4  ;;  %v3861_v33 = vshrl.u32 %v3686_v45, 16 }
 0x2f0   : > { %v4850_v32 = vsel %vm526_vm5, %v4841_v28, %v4849_v30  ;;  %v5737_v63 = vor.u32 %v5736_v29, %v5733_v4  ;;  %4907 = vst.msk [vmem:[#allocation4 + $0x40] sm:$0xff] %vm1731_vm8, %v4868_v9  ;;  %v5745_v17 = vor.u32 %v5744_v59, %v5741_v37  ;;  %v3864_v36 = vshll.u32 %v3686_v45, 16  ;;  %v5779_v20 = vpop.permute.xlu1 %5778  ;;  %v5858_v6 = vld [vmem:[#allocation3 + $0x110] sm:$0xf0] }
 0x2f1   : > { %4881 = vrot.lane.b32.xlu1 %v4850_v32, %s7093_s11  ;;  %v5026_v27 = vsel %vm895_vm4, %v5024_v5, %v5025_v49  ;;  %v3853_v51 = vshrl.u32 %v3685_v35, 16  ;;  %4541 = vst.msk [vmem:[#allocation4 + $0x50] sm:$0xff] %vm1362_vm7, %v8688_v26  ;;  %v5936_v44 = vsel %vm895_vm4, %v5934_v23, %v5935_v41  ;;  %v3863_v14 = vrot.slane %v3861_v33, 3  ;;  %v6034_v53 = vld [vmem:[#allocation3 + $0x110] sm:$0xf0] }
 0x2f2   : > { %5083 = vst.msk [vmem:[#allocation4 + $0x40] sm:$0xff] %vm1908_vm9, %v8652_v15  ;;  %v3856_v10 = vshll.u32 %v3685_v35, 16  ;;  %v5379_v8 = vshrl.u32 %v5121_v61, 16  ;;  %v5746_v18 = vsel %vm526_vm5, %v5737_v63, %v5745_v17  ;;  %v3866_v55 = vrot.slane %v3864_v36, 4 }
 0x2f3   : > { %v3855_v11 = vrot.slane %v3853_v51, 3  ;;  %v5382_v19 = vshll.u32 %v5121_v61, 16  ;;  %5819 = vst.msk [vmem:[#allocation4 + $0x38] sm:$0xff] %vm2647_vm11, %v5779_v20  ;;  %5792 = vrot.lane.b32.xlu0 %v5746_v18, %s7095_s13  ;;  %v5387_v15 = vshrl.u32 %v5122_v31, 16  ;;  %v5390_v56 = vshll.u32 %v5122_v31, 16  ;;  %v5412_v12 = vpop.permute.xlu0 %5411 }
 0x2f4   : > { %v3858_v26 = vrot.slane %v3856_v10, 4  ;;  %v5381_v42 = vrot.slane %v5379_v8, 4  ;;  %5995 = vst.msk [vmem:[#allocation4 + $0x38] sm:$0xff] %vm2824_vm12, %v8674_v54  ;;  %v3867_v34 = vor.u32 %v3866_v55, %v3863_v14  ;;  %v6275_v52 = vshrl.u32 %v6032_v62, 16  ;;  %v3690_v61 = vld [vmem:[#allocation3 + $0xb8] sm:$0xf] }
 0x2f5   : > { %5057 = vrot.lane.b32.xlu1 %v5026_v27, %s7091_s9  ;;  %v5384_v38 = vrot.slane %v5382_v19, 5  ;;  %v6278_v0 = vshll.u32 %v6032_v62, 16  ;;  %6363 = vst.msk [vmem:[#allocation4 + $0x38] sm:$0xff] %vm3193_vm13, %v8696_v7  ;;  %v5389_v3 = vrot.slane %v5387_v15, 4  ;;  %v5392_v21 = vrot.slane %v5390_v56, 5 }
 0x2f6   : > { %v3859_v22 = vor.u32 %v3858_v26, %v3855_v11  ;;  %v6283_v45 = vshrl.u32 %v6033_v46, 16  ;;  %5451 = vst.msk [vmem:[#allocation4 + $0x40] sm:$0xff] %vm2277_vm10, %v5412_v12  ;;  %v6277_v54 = vrot.slane %v6275_v52, 4  ;;  %v6286_v48 = vshll.u32 %v6033_v46, 16  ;;  %v4502_v50 = vpop.permute.xlu1 %4501  ;;  %v3691_v8 = vld [vmem:[#allocation3 + $0xc0] sm:$0xf8] }
 0x2f7   : > { %v5385_v43 = vor.u32 %v5384_v38, %v5381_v42  ;;  %v6280_v58 = vrot.slane %v6278_v0, 5  ;;  %5820 = vst.msk [vmem:[#allocation4 + $0x40] sm:$0xff] %vm2647_vm11, %v8667_v40  ;;  %5968 = vrot.lane.b32.xlu0 %v5936_v44, %s7092_s10  ;;  %v5393_v28 = vor.u32 %v5392_v21, %v5389_v3  ;;  %v5748_v57 = vshrl.u32 %v5490_v25, 16  ;;  %v6035_v40 = vld [vmem:[#allocation3 + $0x118] sm:$0x1f] }
 0x2f8   : > { %v3868_v7 = vsel %vm526_vm5, %v3859_v22, %v3867_v34  ;;  %v6285_v4 = vrot.slane %v6283_v45, 4  ;;  %5996 = vst.msk [vmem:[#allocation4 + $0x40] sm:$0xff] %vm2824_vm12, %v8644_v2  ;;  %v6288_v29 = vrot.slane %v6286_v48, 5  ;;  %v5751_v5 = vshll.u32 %v5490_v25, 16  ;;  %v8738_v2 = vpop.permute.xlu0 %5047  ;;  %v3692_v26 = vld [vmem:[#allocation3 + $0xc8] sm:$0xf] }
 0x2f9   : > { %3996 = vst.msk [vmem:[#allocation4 + $0x48] sm:$0xff] %vm280_vm0, %v3868_v7  ;;  %v6281_v30 = vor.u32 %v6280_v58, %v6277_v54  ;;  %v5756_v35 = vshrl.u32 %v5491_v16, 16  ;;  %v5394_v37 = vsel %vm1041_vm3, %v5385_v43, %v5393_v28  ;;  %v5750_v59 = vrot.slane %v5748_v57, 3  ;;  %v3694_v0 = vld [vmem:[#allocation3 + $0xd8] sm:$0xf] }
 0x2fa   : > { %6364 = vst.msk [vmem:[#allocation4 + $0x40] sm:$0xff] %vm3193_vm13, %v8678_v13  ;;  %v5759_v49 = vshll.u32 %v5491_v16, 16  ;;  %v5937_v23 = vrot.slane %v5858_v6, 4  ;;  %5425 = vrot.lane.b32.xlu1 %v5394_v37, %s7094_s12  ;;  %v6289_v9 = vor.u32 %v6288_v29, %v6285_v4  ;;  %v5753_v32 = vrot.slane %v5751_v5, 4  ;;  %v3689_v13 = vld [vmem:[#allocation3 + $0xb0] sm:$0xf8]  ;;  %v8744_v36 = vpop.permute.xlu1 %5049 }
 0x2fb   : > { %4172 = vst.msk [vmem:[#allocation4 + $0x48] sm:$0xff] %vm992_vm6, %v8683_v1  ;;  %v5758_v63 = vrot.slane %v5756_v35, 3  ;;  %v5938_v41 = vrot.slane %v5859_v39, 4  ;;  %v6292_v17 = vshrl.u32 %v6034_v53, 16  ;;  %v6295_v1 = vshll.u32 %v6034_v53, 16 }
 0x2fc   : > { %4540 = vst.msk [vmem:[#allocation4 + $0x48] sm:$0xff] %vm1362_vm7, %v4502_v50  ;;  %v5761_v33 = vrot.slane %v5759_v49, 4  ;;  %v6300_v27 = vshrl.u32 %v6035_v40, 16  ;;  %v6379_v51 = vld [vmem:[#allocation4 + $0x38] sm:$0xff]  ;;  %v6290_v31 = vsel %vm1041_vm3, %v6281_v30, %v6289_v9  ;;  %v5754_v44 = vor.u32 %v5753_v32, %v5750_v59  ;;  %v3693_v43 = vld [vmem:[#allocation3 + $0xd0] sm:$0xf8] }
 0x2fd   : > { %4908 = vst.msk [vmem:[#allocation4 + $0x48] sm:$0xff] %vm1731_vm8, %v8692_v47  ;;  %v5939_v14 = vsel %vm895_vm4, %v5937_v23, %v5938_v41  ;;  %v6303_v10 = vshll.u32 %v6035_v40, 16  ;;  %6999 = vmatmul.mubr.msk.bf16.gmra.mrb[12].mxu1 %vm3246_vm15, %v6379_v51  ;;  %6336 = vrot.lane.b32.xlu0 %v6290_v31, %s7096_s14  ;;  %v6294_v20 = vrot.slane %v6292_v17, 4  ;;  %v6297_v47 = vrot.slane %v6295_v1, 5  ;;  %v3695_v7 = vld [vmem:[#allocation3 + $0xe0] sm:$0xf8] }
 0x2fe   : > { %5084 = vst.msk [vmem:[#allocation4 + $0x48] sm:$0xff] %vm1908_vm9, %v8649_v24  ;;  %v5762_v62 = vor.u32 %v5761_v33, %v5758_v63  ;;  %v6302_v18 = vrot.slane %v6300_v27, 4  ;;  %v3895_v11 = vshrl.u32 %v3690_v61, 16  ;;  %v3898_v19 = vshll.u32 %v3690_v61, 16  ;;  %v8755_v15 = vpop.permute.xlu1 %5958  ;;  %v8757_v56 = vpop.permute.xlu0 %6326  ;;  %v3696_v40 = vld [vmem:[#allocation3 + $0xe8] sm:$0xf] }
 0x2ff   : > { %5452 = vst.msk [vmem:[#allocation4 + $0x48] sm:$0xff] %vm2277_vm10, %v8701_v60  ;;  %v6305_v55 = vrot.slane %v6303_v10, 5  ;;  %v3887_v46 = vshrl.u32 %v3689_v13, 16  ;;  %v6298_v24 = vor.u32 %v6297_v47, %v6294_v20  ;;  %v3890_v38 = vshll.u32 %v3689_v13, 16  ;;  %v3698_v61 = vld [vmem:[#allocation3 + $0xf8] sm:$0xf] }
 0x300   : > { %v5763_v42 = vsel %vm526_vm5, %v5754_v44, %v5762_v62  ;;  %v3904_v52 = vshrl.u32 %v3691_v8, 16  ;;  %v3897_v60 = vrot.slane %v3895_v11, 3  ;;  %v3900_v12 = vrot.slane %v3898_v19, 4  ;;  %v3697_v13 = vld [vmem:[#allocation3 + $0xf0] sm:$0xf8] }
 0x301   : > { %v6380_v34 = vld [vmem:[#allocation4 + $0x40] sm:$0xff]  ;;  %5794 = vrot.lane.b32.xlu1 %v5763_v42, %s7095_s13  ;;  %v6306_v25 = vor.u32 %v6305_v55, %v6302_v18  ;;  %v3889_v22 = vrot.slane %v3887_v46, 3  ;;  %v3892_v3 = vrot.slane %v3890_v38, 4  ;;  %v3907_v45 = vshll.u32 %v3691_v8, 16  ;;  %s8853_s13 = scalar_lea.vmem %s9021_s7, %s6902_s26 }
 0x302   : > { %7002 = vmatprep.mubr.msk.bf16.mxu1 %vm3246_vm15, %v6380_v34  ;;  %v3906_v21 = vrot.slane %v3904_v52, 3  ;;  %v3912_v16 = vshrl.u32 %v3692_v26, 16  ;;  %v3901_v58 = vor.u32 %v3900_v12, %v3897_v60  ;;  %v3915_v48 = vshll.u32 %v3692_v26, 16  ;;  %v4138_v28 = vpop.permute.xlu1 %4137  ;;  %v4872_v57 = vpop.permute.xlu0 %4871 }
 0x303   : > { %v6307_v54 = vsel %vm1041_vm3, %v6298_v24, %v6306_v25  ;;  %v3929_v6 = vshrl.u32 %v3694_v0, 16  ;;  %v3893_v4 = vor.u32 %v3892_v3, %v3889_v22  ;;  %v3909_v39 = vrot.slane %v3907_v45, 4  ;;  %4909 = vst.msk [vmem:[#allocation4 + $0x50] sm:$0xff] %vm1731_vm8, %v4872_v57 }
 0x304   : > { %v3914_v53 = vrot.slane %v3912_v16, 3  ;;  %v3932_v50 = vshll.u32 %v3694_v0, 16  ;;  %v3917_v30 = vrot.slane %v3915_v48, 4  ;;  %v3921_v5 = vshrl.u32 %v3693_v43, 16  ;;  %5085 = vst.msk [vmem:[#allocation4 + $0x50] sm:$0xff] %vm1908_vm9, %v8738_v2 }
 0x305   : > { %5970 = vrot.lane.b32.xlu1 %v5939_v14, %s7092_s10  ;;  %v3931_v29 = vrot.slane %v3929_v6, 3  ;;  %v3924_v35 = vshll.u32 %v3693_v43, 16  ;;  %v3902_v37 = vsel %vm526_vm5, %v3893_v4, %v3901_v58  ;;  %v3910_v59 = vor.u32 %v3909_v39, %v3906_v21 }
 0x306   : > { %v3934_v49 = vrot.slane %v3932_v50, 4  ;;  %v3938_v23 = vshrl.u32 %v3695_v7, 16  ;;  %3998 = vst.msk [vmem:[#allocation4 + $0x58] sm:$0xff] %vm280_vm0, %v3902_v37  ;;  %v3918_v9 = vor.u32 %v3917_v30, %v3914_v53  ;;  %v3923_v32 = vrot.slane %v3921_v5, 3  ;;  %v4874_v2 = vpop.permute.xlu1 %4873 }
 0x307   : > { %v3926_v63 = vrot.slane %v3924_v35, 4  ;;  %v3941_v41 = vshll.u32 %v3695_v7, 16  ;;  %4174 = vst.msk [vmem:[#allocation4 + $0x58] sm:$0xff] %vm992_vm6, %v4138_v28  ;;  %v3946_v1 = vshrl.u32 %v3696_v40, 16  ;;  %v3949_v27 = vshll.u32 %v3696_v40, 16 }
 0x308   : > { %v3935_v33 = vor.u32 %v3934_v49, %v3931_v29  ;;  %v3940_v17 = vrot.slane %v3938_v23, 3  ;;  %v3919_v51 = vsel %vm526_vm5, %v3910_v59, %v3918_v9  ;;  %v3963_v14 = vshrl.u32 %v3698_v61, 16 }
 0x309   : > { %6338 = vrot.lane.b32.xlu1 %v6307_v54, %s7096_s14  ;;  %v3927_v31 = vor.u32 %v3926_v63, %v3923_v32  ;;  %v3943_v44 = vrot.slane %v3941_v41, 4  ;;  %3999 = vst.msk [vmem:[#allocation4 + $0x60] sm:$0xff] %vm280_vm0, %v3919_v51  ;;  %v3948_v10 = vrot.slane %v3946_v1, 3  ;;  %v3951_v8 = vrot.slane %v3949_v27, 4  ;;  %v5416_v47 = vpop.permute.xlu0 %5415 }
 0x30a   : > { %v3966_v62 = vshll.u32 %v3698_v61, 16  ;;  %v3955_v20 = vshrl.u32 %v3697_v13, 16  ;;  %v3965_v11 = vrot.slane %v3963_v14, 3  ;;  %v3958_v19 = vshll.u32 %v3697_v13, 16  ;;  %5453 = vst.msk [vmem:[#allocation4 + $0x50] sm:$0xff] %vm2277_vm10, %v5416_v47 }
 0x30b   : > { %v3936_v18 = vsel %vm526_vm5, %v3927_v31, %v3935_v33  ;;  %v3944_v55 = vor.u32 %v3943_v44, %v3940_v17  ;;  %v3952_v46 = vor.u32 %v3951_v8, %v3948_v10  ;;  %v8837_v44 = vld [vmem:[%s9020_s6] ss:$0 sm:$0xff] }
 0x30c   : > { %4000 = vst.msk [vmem:[#allocation4 + $0x68] sm:$0xff] %vm280_vm0, %v3936_v18  ;;  %v3968_v26 = vrot.slane %v3966_v62, 4  ;;  %v3957_v42 = vrot.slane %v3955_v20, 3  ;;  %v3960_v24 = vrot.slane %v3958_v19, 4 }
 0x30d   : > { %v3953_v34 = vsel %vm526_vm5, %v3944_v55, %v3952_v46  ;;  %v5418_v52 = vpop.permute.xlu1 %5417  ;;  %v7048_v46 = vld [vmem:[%s7317_s29 + $0x10] sm:$0xff] }
 0x30e   : > { %v3969_v38 = vor.u32 %v3968_v26, %v3965_v11  ;;  %4001 = vst.msk [vmem:[#allocation4 + $0x70] sm:$0xff] %vm280_vm0, %v3953_v34  ;;  %v3961_v0 = vor.u32 %v3960_v24, %v3957_v42  ;;  %v7049_v34 = vld [vmem:[%s7317_s29] sm:$0xff] }
 0x310   : > { %v3970_v25 = vsel %vm526_vm5, %v3961_v0, %v3969_v38 }
 0x311   : > { %4002 = vst.msk [vmem:[#allocation4 + $0x78] sm:$0xff] %vm280_vm0, %v3970_v25 }
 0x312   : > { %v5785_v60 = vpop.permute.xlu0 %5784 }
 0x313   : > { %5822 = vst.msk [vmem:[#allocation4 + $0x50] sm:$0xff] %vm2647_vm11, %v5785_v60  ;;  %v7050_v60 = vld [vmem:[%s7317_s29 + $0x18] sm:$0xff] }
 0x314   : > { %v5783_v12 = vpop.permute.xlu1 %5782 }
 0x315   : > { %5821 = vst.msk [vmem:[#allocation4 + $0x48] sm:$0xff] %vm2647_vm11, %v5783_v12 }
 0x316   : > { %5997 = vst.msk [vmem:[#allocation4 + $0x48] sm:$0xff] %vm2824_vm12, %v8755_v15  ;;  %v5961_v22 = vpop.permute.xlu0 %5960 }
 0x317   : > { %6365 = vst.msk [vmem:[#allocation4 + $0x48] sm:$0xff] %vm3193_vm13, %v8757_v56 }
 0x318   : > { %5998 = vst.msk [vmem:[#allocation4 + $0x50] sm:$0xff] %vm2824_vm12, %v5961_v22 }
 0x31a   : > { %v4506_v3 = vpop.permute.xlu1 %4505 }
 0x31b   : > { %4542 = vst.msk [vmem:[#allocation4 + $0x58] sm:$0xff] %vm1362_vm7, %v4506_v3  ;;  %v7051_v3 = vld [vmem:[%s7317_s29 + $0x8] sm:$0xff] }
 0x31c   : > { %4910 = vst.msk [vmem:[#allocation4 + $0x58] sm:$0xff] %vm1731_vm8, %v4874_v2  ;;  %v8831_v2 = vld [vmem:[%s9019_s5] ss:$0 sm:$0xff] }
 0x31d   : > { %5086 = vst.msk [vmem:[#allocation4 + $0x58] sm:$0xff] %vm1908_vm9, %v8744_v36  ;;  %v6329_v21 = vpop.permute.xlu0 %6328 }
 0x31e   : > { %6366 = vst.msk [vmem:[#allocation4 + $0x50] sm:$0xff] %vm3193_vm13, %v6329_v21  ;;  %v6381_v15 = vld [vmem:[#allocation4 + $0x48] sm:$0xff]  ;;  %v5963_v45 = vpop.permute.xlu1 %5962 }
 0x31f   : > { %5454 = vst.msk [vmem:[#allocation4 + $0x58] sm:$0xff] %vm2277_vm10, %v5418_v52  ;;  %7003 = vmatmul.mubr.msk.bf16.gmra.mrb[16].mxu1 %vm3246_vm15, %v6381_v15 }
 0x323   : > { %v6331_v56 = vpop.permute.xlu0 %6330 }
 0x325   : > { %v6382_v16 = vld [vmem:[#allocation4 + $0x50] sm:$0xff] }
 0x326   : > { %7006 = vmatprep.mubr.msk.bf16.mxu1 %vm3246_vm15, %v6382_v16  ;;  %v5787_v43 = vpop.permute.xlu1 %5786 }
 0x327   : > { %5823 = vst.msk [vmem:[#allocation4 + $0x58] sm:$0xff] %vm2647_vm11, %v5787_v43 }
 0x328   : > { %5999 = vst.msk [vmem:[#allocation4 + $0x58] sm:$0xff] %vm2824_vm12, %v5963_v45 }
 0x329   : > { %6367 = vst.msk [vmem:[#allocation4 + $0x58] sm:$0xff] %vm3193_vm13, %v6331_v56  ;;  %v4508_v36 = vpop.permute.xlu0 %4507 }
 0x32a   : > { %v4140_v54 = vpop.permute.xlu1 %4139 }
 0x32b   : > { %4175 = vst.msk [vmem:[#allocation4 + $0x60] sm:$0xff] %vm992_vm6, %v4140_v54 }
 0x32c   : > { %4543 = vst.msk [vmem:[#allocation4 + $0x60] sm:$0xff] %vm1362_vm7, %v4508_v36 }
 0x32e   : > { %v4142_v58 = vpop.permute.xlu1 %4141 }
 0x32f   : > { %4176 = vst.msk [vmem:[#allocation4 + $0x68] sm:$0xff] %vm992_vm6, %v4142_v58 }
 0x330   : > { %v4876_v48 = vpop.permute.xlu0 %4875  ;;  %v6383_v6 = vld [vmem:[#allocation4 + $0x58] sm:$0xff] }
 0x331   : > { %4911 = vst.msk [vmem:[#allocation4 + $0x60] sm:$0xff] %vm1731_vm8, %v4876_v48  ;;  %7007 = vmatmul.mubr.msk.bf16.gmra.mrb[20].mxu1 %vm3246_vm15, %v6383_v6 }
 0x334   : > { %v5052_v7 = vpop.permute.xlu0 %5051 }
 0x335   : > { %5087 = vst.msk [vmem:[#allocation4 + $0x60] sm:$0xff] %vm1908_vm9, %v5052_v7  ;;  %v4510_v28 = vpop.permute.xlu1 %4509 }
 0x336   : > { %4544 = vst.msk [vmem:[#allocation4 + $0x68] sm:$0xff] %vm1362_vm7, %v4510_v28 }
 0x338   : > { %v5420_v4 = vpop.permute.xlu0 %5419 }
 0x339   : > { %5455 = vst.msk [vmem:[#allocation4 + $0x60] sm:$0xff] %vm2277_vm10, %v5420_v4 }
 0x33a   : > { %v4878_v57 = vpop.permute.xlu1 %4877 }
 0x33b   : > { %4912 = vst.msk [vmem:[#allocation4 + $0x68] sm:$0xff] %vm1731_vm8, %v4878_v57 }
 0x33e   : > { %v5054_v39 = vpop.permute.xlu1 %5053 }
 0x33f   : > { %5088 = vst.msk [vmem:[#allocation4 + $0x68] sm:$0xff] %vm1908_vm9, %v5054_v39  ;;  %v7052_v39 = vld [vmem:[%s7317_s29 + $0x30] sm:$0xff] }
 0x340   : > { %v5789_v53 = vpop.permute.xlu0 %5788 }
 0x341   : > { %5824 = vst.msk [vmem:[#allocation4 + $0x60] sm:$0xff] %vm2647_vm11, %v5789_v53 }
 0x344   : > { %v5965_v50 = vpop.permute.xlu0 %5964 }
 0x345   : > { %6000 = vst.msk [vmem:[#allocation4 + $0x60] sm:$0xff] %vm2824_vm12, %v5965_v50  ;;  %v5422_v30 = vpop.permute.xlu1 %5421 }
 0x346   : > { %5456 = vst.msk [vmem:[#allocation4 + $0x68] sm:$0xff] %vm2277_vm10, %v5422_v30  ;;  %v7053_v30 = vld [vmem:[%s7317_s29 + $0x20] sm:$0xff] }
 0x34a   : > { %v6333_v29 = vpop.permute.xlu0 %6332 }
 0x34b   : > { %6368 = vst.msk [vmem:[#allocation4 + $0x60] sm:$0xff] %vm3193_vm13, %v6333_v29 }
 0x34d   : > { %v5791_v5 = vpop.permute.xlu1 %5790 }
 0x34e   : > { %5825 = vst.msk [vmem:[#allocation4 + $0x68] sm:$0xff] %vm2647_vm11, %v5791_v5 }
 0x34f   : > { %v6335_v35 = vpop.permute.xlu0 %6334 }
 0x351   : > { %v5967_v40 = vpop.permute.xlu1 %5966 }
 0x352   : > { %6001 = vst.msk [vmem:[#allocation4 + $0x68] sm:$0xff] %vm2824_vm12, %v5967_v40  ;;  %v6384_v37 = vld [vmem:[#allocation4 + $0x60] sm:$0xff]  ;;  %v7054_v40 = vld [vmem:[%s7317_s29 + $0x38] sm:$0xff] }
 0x353   : > { %6369 = vst.msk [vmem:[#allocation4 + $0x68] sm:$0xff] %vm3193_vm13, %v6335_v35  ;;  %7010 = vmatprep.mubr.msk.bf16.mxu1 %vm3246_vm15, %v6384_v37  ;;  %v4512_v59 = vpop.permute.xlu0 %4511 }
 0x355   : > { %v4144_v49 = vpop.permute.xlu1 %4143 }
 0x356   : > { %4177 = vst.msk [vmem:[#allocation4 + $0x70] sm:$0xff] %vm992_vm6, %v4144_v49  ;;  %v7055_v49 = vld [vmem:[%s7317_s29 + $0x28] sm:$0xff] }
 0x357   : > { %4545 = vst.msk [vmem:[#allocation4 + $0x70] sm:$0xff] %vm1362_vm7, %v4512_v59  ;;  %v4880_v23 = vpop.permute.xlu0 %4879 }
 0x358   : > { %4913 = vst.msk [vmem:[#allocation4 + $0x70] sm:$0xff] %vm1731_vm8, %v4880_v23 }
 0x359   : > { %v4146_v61 = vpop.permute.xlu1 %4145 }
 0x35a   : > { %4178 = vst.msk [vmem:[#allocation4 + $0x78] sm:$0xff] %vm992_vm6, %v4146_v61  ;;  %v6385_v9 = vld [vmem:[#allocation4 + $0x68] sm:$0xff] }
 0x35b   : > { %7011 = vmatmul.mubr.msk.bf16.gmra.mrb[24].mxu1 %vm3246_vm15, %v6385_v9  ;;  %v5056_v32 = vpop.permute.xlu0 %5055 }
 0x35c   : > { %5089 = vst.msk [vmem:[#allocation4 + $0x70] sm:$0xff] %vm1908_vm9, %v5056_v32 }
 0x35d   : > { %v4514_v63 = vpop.permute.xlu1 %4513 }
 0x35e   : > { %4546 = vst.msk [vmem:[#allocation4 + $0x78] sm:$0xff] %vm1362_vm7, %v4514_v63 }
 0x35f   : > { %v5424_v41 = vpop.permute.xlu0 %5423 }
 0x360   : > { %5457 = vst.msk [vmem:[#allocation4 + $0x70] sm:$0xff] %vm2277_vm10, %v5424_v41 }
 0x363   : > { %v4882_v13 = vpop.permute.xlu1 %4881 }
 0x364   : > { %4914 = vst.msk [vmem:[#allocation4 + $0x78] sm:$0xff] %vm1731_vm8, %v4882_v13 }
 0x365   : > { %v5793_v33 = vpop.permute.xlu0 %5792 }
 0x366   : > { %5826 = vst.msk [vmem:[#allocation4 + $0x70] sm:$0xff] %vm2647_vm11, %v5793_v33 }
 0x367   : > { %v5058_v17 = vpop.permute.xlu1 %5057 }
 0x368   : > { %5090 = vst.msk [vmem:[#allocation4 + $0x78] sm:$0xff] %vm1908_vm9, %v5058_v17 }
 0x369   : > { %v5969_v1 = vpop.permute.xlu0 %5968 }
 0x36a   : > { %6002 = vst.msk [vmem:[#allocation4 + $0x70] sm:$0xff] %vm2824_vm12, %v5969_v1 }
 0x36c   : > { %v5426_v27 = vpop.permute.xlu1 %5425 }
 0x36d   : > { %5458 = vst.msk [vmem:[#allocation4 + $0x78] sm:$0xff] %vm2277_vm10, %v5426_v27 }
 0x36f   : > { %v6337_v51 = vpop.permute.xlu0 %6336 }
 0x370   : > { %6370 = vst.msk [vmem:[#allocation4 + $0x70] sm:$0xff] %vm3193_vm13, %v6337_v51  ;;  %v6988_v31 = vpop.f32.mrb[0].mxu1 }
 0x371   : > { %v6629_v14 = vmul.f32 %v6988_v31, %v8831_v2  ;;  %v6493_v10 = vpop.f32.mrb[1].mxu1 }
 0x372   : > { %v6627_v62 = vmul.f32 %v8831_v2, %v6493_v10  ;;  %v6989_v20 = vpop.f32.mrb[2].mxu1 }
 0x373   : > { %v5795_v8 = vpop.permute.xlu1 %5794  ;;  %v6668_v47 = vadd.f32 %v8837_v44, %v6629_v14  ;;  %v6630_v18 = vmul.f32 %v6989_v20, %v8831_v2  ;;  %v6496_v55 = vpop.f32.mrb[3].mxu1  ;;  %v7056_v14 = vld [vmem:[%s7317_s29 + $0x50] sm:$0xff] }
 0x374   : > { %5827 = vst.msk [vmem:[#allocation4 + $0x78] sm:$0xff] %vm2647_vm11, %v5795_v8  ;;  %v6666_v11 = vadd.f32 %v8837_v44, %v6627_v62  ;;  %v6628_v19 = vmul.f32 %v8831_v2, %v6496_v55  ;;  %v7057_v62 = vld [vmem:[%s7317_s29 + $0x40] sm:$0xff]  ;;  %v7058_v55 = vld [vmem:[%s7317_s29 + $0x58] sm:$0xff] }
 0x375   : > { %v6700_v26 = vadd.f32 %v7048_v46, %v6668_v47  ;;  %v6669_v42 = vadd.f32 %v8837_v44, %v6630_v18  ;;  %v7059_v46 = vld [vmem:[%s7317_s29 + $0x48] sm:$0xff] }
 0x376   : > { %v6698_v38 = vadd.f32 %v7049_v34, %v6666_v11  ;;  %v6667_v52 = vadd.f32 %v8837_v44, %v6628_v19 }
 0x377   : > { %v5971_v24 = vpop.permute.xlu1 %5970  ;;  %v6386_v0 = vld [vmem:[#allocation4 + $0x70] sm:$0xff]  ;;  %v6732_v25 = vmax.f32 %v6700_v26, 0.0  ;;  %v6701_v12 = vadd.f32 %v7050_v60, %v6669_v42 }
 0x378   : > { %6003 = vst.msk [vmem:[#allocation4 + $0x78] sm:$0xff] %vm2824_vm12, %v5971_v24  ;;  %7014 = vmatprep.mubr.msk.bf16.mxu1 %vm3246_vm15, %v6386_v0  ;;  %v6730_v22 = vmax.f32 %v6698_v38, 0.0  ;;  %v6699_v21 = vadd.f32 %v7051_v3, %v6667_v52 }
 0x379   : > { %6764 = vst.msk [vmem:[%s8853_s13 + $0x10] sm:$0xff] %vm280_vm0, %v6732_v25  ;;  %v6733_v15 = vmax.f32 %v6701_v12, 0.0 }
 0x37a   : > { %6762 = vst.msk [vmem:[%s8853_s13] sm:$0xff] %vm280_vm0, %v6730_v22  ;;  %v6731_v56 = vmax.f32 %v6699_v21, 0.0 }
 0x37b   : > { %v6339_v45 = vpop.permute.xlu1 %6338  ;;  %6765 = vst.msk [vmem:[%s8853_s13 + $0x18] sm:$0xff] %vm280_vm0, %v6733_v15  ;;  %v7060_v15 = vld [vmem:[%s7317_s29 + $0x70] sm:$0xff] }
 0x37c   : > { %6371 = vst.msk [vmem:[#allocation4 + $0x78] sm:$0xff] %vm3193_vm13, %v6339_v45 }
 0x37d   : > { %6763 = vst.msk [vmem:[%s8853_s13 + $0x8] sm:$0xff] %vm280_vm0, %v6731_v56  ;;  %v6992_v16 = vpop.f32.mrb[4].mxu1 }
 0x37e   : > { %v6633_v43 = vmul.f32 %v6992_v16, %v8831_v2  ;;  %v6509_v36 = vpop.f32.mrb[5].mxu1  ;;  %v7061_v16 = vld [vmem:[%s7317_s29 + $0x60] sm:$0xff] }
 0x37f   : > { %v6631_v58 = vmul.f32 %v8831_v2, %v6509_v36  ;;  %v6993_v48 = vpop.f32.mrb[6].mxu1 }
 0x380   : > { %v6672_v6 = vadd.f32 %v8837_v44, %v6633_v43  ;;  %v6634_v7 = vmul.f32 %v6993_v48, %v8831_v2  ;;  %v6512_v28 = vpop.f32.mrb[7].mxu1 }
 0x381   : > { %v6670_v4 = vadd.f32 %v8837_v44, %v6631_v58  ;;  %v6632_v57 = vmul.f32 %v8831_v2, %v6512_v28  ;;  %v7062_v58 = vld [vmem:[%s7317_s29 + $0x78] sm:$0xff] }
 0x382   : > { %v6704_v53 = vadd.f32 %v7052_v39, %v6672_v6  ;;  %v6673_v50 = vadd.f32 %v8837_v44, %v6634_v7  ;;  %v7063_v7 = vld [vmem:[%s7317_s29 + $0x68] sm:$0xff] }
 0x383   : > { %v6387_v54 = vld [vmem:[#allocation4 + $0x78] sm:$0xff]  ;;  %v6702_v29 = vadd.f32 %v7053_v30, %v6670_v4  ;;  %v6671_v5 = vadd.f32 %v8837_v44, %v6632_v57 }
 0x384   : > { %7015 = vmatmul.mubr.msk.bf16.gmra.mrb[28].mxu1 %vm3246_vm15, %v6387_v54  ;;  %v6736_v35 = vmax.f32 %v6704_v53, 0.0  ;;  %v6705_v37 = vadd.f32 %v7054_v40, %v6673_v50 }
 0x385   : > { %v6734_v59 = vmax.f32 %v6702_v29, 0.0  ;;  %v6703_v23 = vadd.f32 %v7055_v49, %v6671_v5  ;;  %v7064_v49 = vld [vmem:[%s7317_s29 + $0x90] sm:$0xff] }
 0x386   : > { %6768 = vst.msk [vmem:[%s8853_s13 + $0x30] sm:$0xff] %vm280_vm0, %v6736_v35  ;;  %v6737_v61 = vmax.f32 %v6705_v37, 0.0 }
 0x387   : > { %6766 = vst.msk [vmem:[%s8853_s13 + $0x20] sm:$0xff] %vm280_vm0, %v6734_v59  ;;  %v6735_v9 = vmax.f32 %v6703_v23, 0.0 }
 0x388   : > { %6769 = vst.msk [vmem:[%s8853_s13 + $0x38] sm:$0xff] %vm280_vm0, %v6737_v61 }
 0x389   : > { %6767 = vst.msk [vmem:[%s8853_s13 + $0x28] sm:$0xff] %vm280_vm0, %v6735_v9  ;;  %v7065_v9 = vld [vmem:[%s7317_s29 + $0x80] sm:$0xff] }
 0x3a4   : > { %v6996_v32 = vpop.f32.mrb[8].mxu1 }
 0x3a5   : > { %v6637_v63 = vmul.f32 %v6996_v32, %v8831_v2  ;;  %v6525_v41 = vpop.f32.mrb[9].mxu1 }
 0x3a6   : > { %v6635_v13 = vmul.f32 %v8831_v2, %v6525_v41  ;;  %v6997_v33 = vpop.f32.mrb[10].mxu1 }
 0x3a7   : > { %v6676_v17 = vadd.f32 %v8837_v44, %v6637_v63  ;;  %v6638_v1 = vmul.f32 %v6997_v33, %v8831_v2  ;;  %v6528_v27 = vpop.f32.mrb[11].mxu1 }
 0x3a8   : > { %v6674_v51 = vadd.f32 %v8837_v44, %v6635_v13  ;;  %v6636_v31 = vmul.f32 %v8831_v2, %v6528_v27  ;;  %v7066_v13 = vld [vmem:[%s7317_s29 + $0x98] sm:$0xff] }
 0x3a9   : > { %v6708_v10 = vadd.f32 %v7056_v14, %v6676_v17  ;;  %v6677_v8 = vadd.f32 %v8837_v44, %v6638_v1  ;;  %v7067_v1 = vld [vmem:[%s7317_s29 + $0x88] sm:$0xff] }
 0x3aa   : > { %v6706_v20 = vadd.f32 %v7057_v62, %v6674_v51  ;;  %v6675_v47 = vadd.f32 %v8837_v44, %v6636_v31 }
 0x3ab   : > { %v6740_v18 = vmax.f32 %v6708_v10, 0.0  ;;  %v6709_v11 = vadd.f32 %v7058_v55, %v6677_v8 }
 0x3ac   : > { %v6738_v19 = vmax.f32 %v6706_v20, 0.0  ;;  %v6707_v26 = vadd.f32 %v7059_v46, %v6675_v47  ;;  %v7068_v46 = vld [vmem:[%s7317_s29 + $0xb0] sm:$0xff] }
 0x3ad   : > { %6772 = vst.msk [vmem:[%s8853_s13 + $0x50] sm:$0xff] %vm280_vm0, %v6740_v18  ;;  %v6741_v42 = vmax.f32 %v6709_v11, 0.0 }
 0x3ae   : > { %6770 = vst.msk [vmem:[%s8853_s13 + $0x40] sm:$0xff] %vm280_vm0, %v6738_v19  ;;  %v6739_v24 = vmax.f32 %v6707_v26, 0.0 }
 0x3af   : > { %6773 = vst.msk [vmem:[%s8853_s13 + $0x58] sm:$0xff] %vm280_vm0, %v6741_v42 }
 0x3b0   : > { %6771 = vst.msk [vmem:[%s8853_s13 + $0x48] sm:$0xff] %vm280_vm0, %v6739_v24  ;;  %v7069_v24 = vld [vmem:[%s7317_s29 + $0xa0] sm:$0xff] }
 0x3d0   : > { %v7000_v34 = vpop.f32.mrb[12].mxu1 }
 0x3d1   : > { %v6641_v38 = vmul.f32 %v7000_v34, %v8831_v2  ;;  %v6541_v52 = vpop.f32.mrb[13].mxu1 }
 0x3d2   : > { %v6639_v0 = vmul.f32 %v8831_v2, %v6541_v52  ;;  %v7001_v25 = vpop.f32.mrb[14].mxu1 }
 0x3d3   : > { %v6680_v60 = vadd.f32 %v8837_v44, %v6641_v38  ;;  %v6642_v12 = vmul.f32 %v7001_v25, %v8831_v2  ;;  %v6544_v22 = vpop.f32.mrb[15].mxu1 }
 0x3d4   : > { %v6678_v3 = vadd.f32 %v8837_v44, %v6639_v0  ;;  %v6640_v21 = vmul.f32 %v8831_v2, %v6544_v22  ;;  %v7070_v0 = vld [vmem:[%s7317_s29 + $0xb8] sm:$0xff] }
 0x3d5   : > { %v6712_v45 = vadd.f32 %v7060_v15, %v6680_v60  ;;  %v6681_v56 = vadd.f32 %v8837_v44, %v6642_v12  ;;  %v7071_v12 = vld [vmem:[%s7317_s29 + $0xa8] sm:$0xff] }
 0x3d6   : > { %v6710_v43 = vadd.f32 %v7061_v16, %v6678_v3  ;;  %v6679_v36 = vadd.f32 %v8837_v44, %v6640_v21 }
 0x3d7   : > { %v6744_v54 = vmax.f32 %v6712_v45, 0.0  ;;  %v6713_v48 = vadd.f32 %v7062_v58, %v6681_v56 }
 0x3d8   : > { %v6742_v6 = vmax.f32 %v6710_v43, 0.0  ;;  %v6711_v28 = vadd.f32 %v7063_v7, %v6679_v36  ;;  %v7072_v7 = vld [vmem:[%s7317_s29 + $0xd0] sm:$0xff] }
 0x3d9   : > { %6776 = vst.msk [vmem:[%s8853_s13 + $0x70] sm:$0xff] %vm280_vm0, %v6744_v54  ;;  %v6745_v4 = vmax.f32 %v6713_v48, 0.0 }
 0x3da   : > { %6774 = vst.msk [vmem:[%s8853_s13 + $0x60] sm:$0xff] %vm280_vm0, %v6742_v6  ;;  %v6743_v57 = vmax.f32 %v6711_v28, 0.0 }
 0x3db   : > { %6777 = vst.msk [vmem:[%s8853_s13 + $0x78] sm:$0xff] %vm280_vm0, %v6745_v4 }
 0x3dc   : > { %6775 = vst.msk [vmem:[%s8853_s13 + $0x68] sm:$0xff] %vm280_vm0, %v6743_v57  ;;  %v7073_v57 = vld [vmem:[%s7317_s29 + $0xc0] sm:$0xff] }
 0x3f2   : > { %v7004_v39 = vpop.f32.mrb[16].mxu1 }
 0x3f3   : > { %v6645_v53 = vmul.f32 %v7004_v39, %v8831_v2  ;;  %v6557_v50 = vpop.f32.mrb[17].mxu1 }
 0x3f4   : > { %v6643_v30 = vmul.f32 %v8831_v2, %v6557_v50  ;;  %v7005_v29 = vpop.f32.mrb[18].mxu1 }
 0x3f5   : > { %v6684_v5 = vadd.f32 %v8837_v44, %v6645_v53  ;;  %v6646_v35 = vmul.f32 %v7005_v29, %v8831_v2  ;;  %v6560_v40 = vpop.f32.mrb[19].mxu1 }
 0x3f6   : > { %v6682_v37 = vadd.f32 %v8837_v44, %v6643_v30  ;;  %v6644_v59 = vmul.f32 %v8831_v2, %v6560_v40  ;;  %v7074_v30 = vld [vmem:[%s7317_s29 + $0xd8] sm:$0xff] }
 0x3f7   : > { %v6716_v23 = vadd.f32 %v7064_v49, %v6684_v5  ;;  %v6685_v61 = vadd.f32 %v8837_v44, %v6646_v35  ;;  %v7075_v35 = vld [vmem:[%s7317_s29 + $0xc8] sm:$0xff] }
 0x3f8   : > { %v6714_v32 = vadd.f32 %v7065_v9, %v6682_v37  ;;  %v6683_v63 = vadd.f32 %v8837_v44, %v6644_v59 }
 0x3f9   : > { %v6748_v41 = vmax.f32 %v6716_v23, 0.0  ;;  %v6717_v33 = vadd.f32 %v7066_v13, %v6685_v61 }
 0x3fa   : > { %v6746_v17 = vmax.f32 %v6714_v32, 0.0  ;;  %v6715_v27 = vadd.f32 %v7067_v1, %v6683_v63  ;;  %v7076_v1 = vld [vmem:[%s7317_s29 + $0xf0] sm:$0xff] }
 0x3fb   : > { %6780 = vst.msk [vmem:[%s8853_s13 + $0x90] sm:$0xff] %vm280_vm0, %v6748_v41  ;;  %v6749_v51 = vmax.f32 %v6717_v33, 0.0 }
 0x3fc   : > { %6778 = vst.msk [vmem:[%s8853_s13 + $0x80] sm:$0xff] %vm280_vm0, %v6746_v17  ;;  %v6747_v31 = vmax.f32 %v6715_v27, 0.0 }
 0x3fd   : > { %6781 = vst.msk [vmem:[%s8853_s13 + $0x98] sm:$0xff] %vm280_vm0, %v6749_v51 }
 0x3fe   : > { %6779 = vst.msk [vmem:[%s8853_s13 + $0x88] sm:$0xff] %vm280_vm0, %v6747_v31  ;;  %v7077_v31 = vld [vmem:[%s7317_s29 + $0xe0] sm:$0xff] }
 0x404   : > { %v7008_v14 = vpop.f32.mrb[20].mxu1 }
 0x405   : > { %v6649_v10 = vmul.f32 %v7008_v14, %v8831_v2  ;;  %v6573_v8 = vpop.f32.mrb[21].mxu1 }
 0x406   : > { %v6647_v62 = vmul.f32 %v8831_v2, %v6573_v8  ;;  %v7009_v20 = vpop.f32.mrb[22].mxu1 }
 0x407   : > { %v6688_v47 = vadd.f32 %v8837_v44, %v6649_v10  ;;  %v6650_v18 = vmul.f32 %v7009_v20, %v8831_v2  ;;  %v6576_v55 = vpop.f32.mrb[23].mxu1 }
 0x408   : > { %v6686_v11 = vadd.f32 %v8837_v44, %v6647_v62  ;;  %v6648_v19 = vmul.f32 %v8831_v2, %v6576_v55  ;;  %v7078_v62 = vld [vmem:[%s7317_s29 + $0xf8] sm:$0xff] }
 0x409   : > { %v6720_v26 = vadd.f32 %v7068_v46, %v6688_v47  ;;  %v6689_v42 = vadd.f32 %v8837_v44, %v6650_v18  ;;  %v7079_v18 = vld [vmem:[%s7317_s29 + $0xe8] sm:$0xff] }
 0x40a   : > { %v6718_v34 = vadd.f32 %v7069_v24, %v6686_v11  ;;  %v6687_v38 = vadd.f32 %v8837_v44, %v6648_v19 }
 0x40b   : > { %v6752_v52 = vmax.f32 %v6720_v26, 0.0  ;;  %v6721_v25 = vadd.f32 %v7070_v0, %v6689_v42 }
 0x40c   : > { %v6750_v60 = vmax.f32 %v6718_v34, 0.0  ;;  %v6719_v22 = vadd.f32 %v7071_v12, %v6687_v38 }
 0x40d   : > { %6784 = vst.msk [vmem:[%s8853_s13 + $0xb0] sm:$0xff] %vm280_vm0, %v6752_v52  ;;  %v6753_v3 = vmax.f32 %v6721_v25, 0.0 }
 0x40e   : > { %6782 = vst.msk [vmem:[%s8853_s13 + $0xa0] sm:$0xff] %vm280_vm0, %v6750_v60  ;;  %v6751_v21 = vmax.f32 %v6719_v22, 0.0 }
 0x40f   : > { %6785 = vst.msk [vmem:[%s8853_s13 + $0xb8] sm:$0xff] %vm280_vm0, %v6753_v3 }
 0x410   : > { %6783 = vst.msk [vmem:[%s8853_s13 + $0xa8] sm:$0xff] %vm280_vm0, %v6751_v21 }
 0x42e   : > { %v7012_v15 = vpop.f32.mrb[24].mxu1 }
 0x42f   : > { %v6653_v45 = vmul.f32 %v7012_v15, %v8831_v2  ;;  %v6589_v56 = vpop.f32.mrb[25].mxu1 }
 0x430   : > { %v6651_v16 = vmul.f32 %v8831_v2, %v6589_v56  ;;  %v7013_v43 = vpop.f32.mrb[26].mxu1 }
 0x431   : > { %v6692_v36 = vadd.f32 %v8837_v44, %v6653_v45  ;;  %v6654_v54 = vmul.f32 %v7013_v43, %v8831_v2  ;;  %v6592_v58 = vpop.f32.mrb[27].mxu1 }
 0x432   : > { %v6690_v48 = vadd.f32 %v8837_v44, %v6651_v16  ;;  %v6652_v6 = vmul.f32 %v8831_v2, %v6592_v58 }
 0x433   : > { %v6724_v28 = vadd.f32 %v7072_v7, %v6692_v36  ;;  %v6693_v4 = vadd.f32 %v8837_v44, %v6654_v54 }
 0x434   : > { %v6722_v39 = vadd.f32 %v7073_v57, %v6690_v48  ;;  %v6691_v53 = vadd.f32 %v8837_v44, %v6652_v6 }
 0x435   : > { %v6756_v50 = vmax.f32 %v6724_v28, 0.0  ;;  %v6725_v29 = vadd.f32 %v7074_v30, %v6693_v4 }
 0x436   : > { %v6754_v5 = vmax.f32 %v6722_v39, 0.0  ;;  %v6723_v40 = vadd.f32 %v7075_v35, %v6691_v53 }
 0x437   : > { %6788 = vst.msk [vmem:[%s8853_s13 + $0xd0] sm:$0xff] %vm280_vm0, %v6756_v50  ;;  %v6757_v37 = vmax.f32 %v6725_v29, 0.0 }
 0x438   : > { %6786 = vst.msk [vmem:[%s8853_s13 + $0xc0] sm:$0xff] %vm280_vm0, %v6754_v5  ;;  %v6755_v59 = vmax.f32 %v6723_v40, 0.0 }
 0x439   : > { %6789 = vst.msk [vmem:[%s8853_s13 + $0xd8] sm:$0xff] %vm280_vm0, %v6757_v37 }
 0x43a   : > { %6787 = vst.msk [vmem:[%s8853_s13 + $0xc8] sm:$0xff] %vm280_vm0, %v6755_v59 }
 0x457   : > { %v7016_v49 = vpop.f32.mrb[28].mxu1 }
 0x458   : > { %v6657_v23 = vmul.f32 %v7016_v49, %v8831_v2  ;;  %v6605_v61 = vpop.f32.mrb[29].mxu1 }
 0x459   : > { %v6655_v9 = vmul.f32 %v8831_v2, %v6605_v61  ;;  %v7017_v32 = vpop.f32.mrb[30].mxu1 }
 0x45a   : > { %v6696_v63 = vadd.f32 %v8837_v44, %v6657_v23  ;;  %v6658_v41 = vmul.f32 %v7017_v32, %v8831_v2  ;;  %v6608_v13 = vpop.f32.mrb[31].mxu1 }
 0x45b   : > { %v6694_v33 = vadd.f32 %v8837_v44, %v6655_v9  ;;  %v6656_v17 = vmul.f32 %v8831_v2, %v6608_v13 }
 0x45c   : > { %v6728_v27 = vadd.f32 %v7076_v1, %v6696_v63  ;;  %v6697_v51 = vadd.f32 %v8837_v44, %v6658_v41 }
 0x45d   : > { %v6726_v14 = vadd.f32 %v7077_v31, %v6694_v33  ;;  %v6695_v10 = vadd.f32 %v8837_v44, %v6656_v17 }
 0x45e   : > { %v6760_v8 = vmax.f32 %v6728_v27, 0.0  ;;  %v6729_v20 = vadd.f32 %v7078_v62, %v6697_v51 }
 0x45f   : > { %v6758_v47 = vmax.f32 %v6726_v14, 0.0  ;;  %v6727_v55 = vadd.f32 %v7079_v18, %v6695_v10 }
 0x460   : > { %6792 = vst.msk [vmem:[%s8853_s13 + $0xf0] sm:$0xff] %vm280_vm0, %v6760_v8  ;;  %v6761_v11 = vmax.f32 %v6729_v20, 0.0 }
 0x461   : > { %6790 = vst.msk [vmem:[%s8853_s13 + $0xe0] sm:$0xff] %vm280_vm0, %v6758_v47  ;;  %v6759_v2 = vmax.f32 %v6727_v55, 0.0 }
 0x462   : > { %6793 = vst.msk [vmem:[%s8853_s13 + $0xf8] sm:$0xff] %vm280_vm0, %v6761_v11 }
 0x463   : > { %6791 = vst.msk [vmem:[%s8853_s13 + $0xe8] sm:$0xff] %vm280_vm0, %v6759_v2 }
 0x464 PF: > { %s17_s24 = sadd.s32 1, %s7086_s24  }
 0x465   : > { %p14_p4 = scmp.ge.s32.totalorder %s17_s24, 4  }
 0x467   :  { %16 = sbr.rel (!%p14_p4) target bundleno = 1 (0x1), region = 84 }

</bundles_post_ra>
